<compile_context>
chip_gen: v7x
topology: tpu7x:2x2x1
jax: 0.10.0
libtpu: 0.0.40
codegen_flags: <defaults>
</compile_context>

<pallas_src>
import numpy as np

import jax
import jax.numpy as jnp
from jax.experimental import pallas as pl
from jax.experimental.pallas import tpu as pltpu

TB = 32     # batch rows per grid step


# ----------------------------- fused kernel ---------------------------------

def _net_kernel(x_ref, wc1_ref, wc2_ref, wf1_ref, wf2_ref, bias_ref,
                o_ref, a1s, a2s):
    f32 = jnp.float32
    bf16 = jnp.bfloat16

    # ---- conv1 (1->10, 5x5, valid) as ONE K=192 MXU matmul -------------------
    # x_ref is (TB, 18, 64): row m holds image rows 2m (lanes 0:32) / 2m+1 (32:64).
    # Output rows = (tb, h2) with h2 = h_out//2 (12 real of 16); output cols =
    # p*512 + r*256 + w1*16 + c with p = h_out%2, r = w_out%2, w1 = w_out//2.
    xs = [x_ref[:, s:s + 16, :].reshape(TB * 16, 64) for s in range(3)]
    xcat = jnp.concatenate(xs, axis=1)                       # (TB*16, 192) bf16
    acc1 = jnp.dot(xcat, wc1_ref[...], preferred_element_type=f32)  # (TB*16,1024)

    # ---- 2x2 max-pool (h via parity halves, w via parity halves) + bias + relu
    hp = jnp.maximum(acc1[:, :512], acc1[:, 512:])           # pool h pairs
    wp = jnp.maximum(hp[:, :256], hp[:, 256:])               # pool w pairs
    a1 = jnp.maximum(wp + bias_ref[0:1, :], 0.0)             # (TB*16, 256)
    a1s[...] = a1.astype(bf16).reshape(TB, 16, 256)          # one lane-dense store

    # ---- conv2 (10->20, 5x5, valid): 5 row-taps, each a native K=256 matmul ----
    # TODO(synk): nn.Dropout2d (conv2_drop) is identity in eval mode; no RNG mask.
    # Output rows = (tb, h2') in [0,8); cols = r2*128 + w3*32 + co (w2 = 2*w3+r2).
    acc2 = jnp.zeros((TB * 8, 256), f32)
    for ki in range(5):
        slab = a1s[:, ki:ki + 8, :].reshape(TB * 8, 256)     # lane-aligned read
        acc2 = acc2 + jnp.dot(slab, wc2_ref[ki], preferred_element_type=f32)

    # ---- 2x2 max-pool: w via parity halves now, h pairs below + bias + relu ---
    wp2 = jnp.maximum(acc2[:, :128], acc2[:, 128:])          # (TB*8, 128)
    act2 = jnp.maximum(wp2 + bias_ref[1:2, :128], 0.0)
    a2s[...] = act2.reshape(TB, 8, 128)                      # f32, lane-dense

    # h-pool over adjacent rows while assembling the fc1 operand (vreg-aligned
    # 128-lane concat -> single lane-dense (TB, 512) operand).
    rows = [jnp.maximum(a2s[:, 2 * h, :], a2s[:, 2 * h + 1, :]) for h in range(4)]
    xfc = jnp.concatenate(rows, axis=1).astype(bf16)         # (TB, 512)

    # ---- fc1 (320 -> 50) + ReLU: ONE K=512 matmul -----------------------------
    h1 = jnp.dot(xfc, wf1_ref[...], preferred_element_type=f32) + bias_ref[2:3, :128]
    h1 = jnp.maximum(h1, 0.0)
    # TODO(synk): F.dropout is identity in eval mode; no RNG masking applied.

    # ---- fc2 (50 -> 10) + log_softmax over the 10 real classes ----------------
    logits = jnp.dot(h1.astype(bf16), wf2_ref[...],
                     preferred_element_type=f32) + bias_ref[3:4, :128]
    col = jax.lax.broadcasted_iota(jnp.int32, (TB, 128), 1)
    ml = jnp.where(col < 10, logits, jnp.float32(-1e30))
    mx = jnp.max(ml, axis=-1, keepdims=True)
    ex = jnp.exp(ml - mx)
    lse = jnp.log(jnp.sum(ex, axis=-1, keepdims=True))
    o_ref[...] = (ml - mx) - lse


# ------------------------- host-side wrapper --------------------------------

def net_forward(packed, x):
    """x: (N, 1, 28, 28) float32 -> (N, 10) log-probabilities."""
    n = x.shape[0]
    xs = x.reshape(n, 28, 28)
    pad_n = (-n) % TB
    # pad batch to TB multiple, H 28->36 (so all sublane-shifted reads fit),
    # W 28->32; then fold row pairs into lanes (free, row-major identical bytes).
    xs = jnp.pad(xs, ((0, pad_n), (0, 8), (0, 4)))
    xs = xs.reshape(-1, 18, 64).astype(jnp.bfloat16)
    n_pad = xs.shape[0]

    out = pl.pallas_call(
        _net_kernel,
        out_shape=jax.ShapeDtypeStruct((n_pad, 128), jnp.float32),
        grid_spec=pltpu.PrefetchScalarGridSpec(
            num_scalar_prefetch=0,
            grid=(n_pad // TB,),
            in_specs=[
                pl.BlockSpec((TB, 18, 64), lambda i: (i, 0, 0)),       # x (folded)
                pl.BlockSpec((192, 1024), lambda i: (0, 0)),           # conv1 fused
                pl.BlockSpec((5, 256, 256), lambda i: (0, 0, 0)),      # conv2 taps
                pl.BlockSpec((512, 128), lambda i: (0, 0)),            # fc1
                pl.BlockSpec((128, 128), lambda i: (0, 0)),            # fc2
                pl.BlockSpec((8, 256), lambda i: (0, 0)),              # packed biases
            ],
            out_specs=pl.BlockSpec((TB, 128), lambda i: (i, 0)),
            scratch_shapes=[
                pltpu.VMEM((TB, 16, 256), jnp.bfloat16),   # pooled conv1 act
                pltpu.VMEM((TB, 8, 128), jnp.float32),     # w-pooled conv2 act
            ],
        ),
        compiler_params=pltpu.CompilerParams(
            dimension_semantics=("parallel",),
            vmem_limit_bytes=32 * 1024 * 1024,
        ),
    )(xs, packed["wc1"], packed["wc2"], packed["wfc1"], packed["wfc2"],
      packed["bias"])
    return out[:n, :10]


# ------------------------- parameter packing --------------------------------

def init_params(key):
    """PyTorch-layout parameters with PyTorch's default uniform init."""
    def uniform(k, shape, fan_in):
        bound = 1.0 / (fan_in ** 0.5)
        return jax.random.uniform(k, shape, jnp.float32, -bound, bound)
    ks = jax.random.split(key, 8)
    return {
        "conv1_w": uniform(ks[0], (10, 1, 5, 5), 25),
        "conv1_b": uniform(ks[1], (10,), 25),
        "conv2_w": uniform(ks[2], (20, 10, 5, 5), 250),
        "conv2_b": uniform(ks[3], (20,), 250),
        "fc1_w": uniform(ks[4], (50, 320), 320),
        "fc1_b": uniform(ks[5], (50,), 320),
        "fc2_w": uniform(ks[6], (10, 50), 50),
        "fc2_b": uniform(ks[7], (10,), 50),
    }


def pack_params(p):
    """One-time host-side repack into padded, MXU/lane-friendly layouts."""
    w1 = np.asarray(p["conv1_w"], np.float32)
    b1 = np.asarray(p["conv1_b"], np.float32)
    w2 = np.asarray(p["conv2_w"], np.float32)
    b2 = np.asarray(p["conv2_b"], np.float32)
    f1w = np.asarray(p["fc1_w"], np.float32)
    f1b = np.asarray(p["fc1_b"], np.float32)
    f2w = np.asarray(p["fc2_w"], np.float32)
    f2b = np.asarray(p["fc2_b"], np.float32)

    # conv1 fused weight: row = sig*64 + q*32 + j  (x row 2*(h2+sig)+q, col j)
    #                     col = p*512 + r*256 + w1*16 + c  (h_out=2h2+p, w_out=2w1+r)
    wc1 = np.zeros((192, 1024), np.float32)
    for p_par in range(2):
        for r in range(2):
            for w1i in range(12):
                cbase = p_par * 512 + r * 256 + w1i * 16
                for ki in range(5):
                    s = p_par + ki
                    sig, q = s // 2, s % 2
                    for kj in range(5):
                        j = 2 * w1i + r + kj
                        wc1[sig * 64 + q * 32 + j, cbase:cbase + 10] = w1[:, 0, ki, kj]

    # conv2 row-tap weights (banded over w inside K):
    #   wc2[ki][w1*16 + ci, r2*128 + w3*32 + co] = W2[co, ci, ki, w1 - (2*w3+r2)]
    wc2 = np.zeros((5, 256, 256), np.float32)
    for ki in range(5):
        for kj in range(5):
            blk = w2[:, :, ki, kj].T                      # (ci=10, co=20)
            for w3 in range(4):
                for r2 in range(2):
                    w1i = 2 * w3 + r2 + kj
                    if w1i >= 12:
                        continue
                    wc2[ki, w1i * 16:w1i * 16 + 10,
                        r2 * 128 + w3 * 32:r2 * 128 + w3 * 32 + 20] = blk

    # fc1 remapped to the kernel's (h3*128 + w3*32 + co) feature layout
    wf1 = np.zeros((512, 128), np.float32)
    for h3 in range(4):
        for w3 in range(4):
            for co in range(20):
                wf1[h3 * 128 + w3 * 32 + co, :50] = f1w[:, co * 16 + h3 * 4 + w3]

    wf2 = np.zeros((128, 128), np.float32)
    wf2[:50, :10] = f2w.T

    # packed biases: row0 conv1 (tiled per w1), row1 conv2 (per w3), row2 fc1, row3 fc2
    bias = np.zeros((8, 256), np.float32)
    for w1i in range(12):
        bias[0, w1i * 16:w1i * 16 + 10] = b1
    for w3 in range(4):
        bias[1, w3 * 32:w3 * 32 + 20] = b2
    bias[2, :50] = f1b
    bias[3, :10] = f2b

    return {
        "wc1": jnp.asarray(wc1, jnp.bfloat16),
        "wc2": jnp.asarray(wc2, jnp.bfloat16),
        "wfc1": jnp.asarray(wf1, jnp.bfloat16),
        "wfc2": jnp.asarray(wf2, jnp.bfloat16),
        "bias": jnp.asarray(bias),
    }


# ------------------------- pure-JAX reference --------------------------------

def reference_forward(params, x):
    """Eval-mode PyTorch semantics in plain JAX (weights rounded to bf16 like the kernel)."""
    hp = jax.lax.Precision.HIGHEST
    bf = lambda a: a.astype(jnp.bfloat16).astype(jnp.float32)
    y = jax.lax.conv_general_dilated(
        bf(x), bf(params["conv1_w"]), (1, 1), "VALID",
        dimension_numbers=("NCHW", "OIHW", "NCHW"), precision=hp)
    y = y + params["conv1_b"][None, :, None, None]
    y = jax.lax.reduce_window(y, -jnp.inf, jax.lax.max,
                              (1, 1, 2, 2), (1, 1, 2, 2), "VALID")
    y = jnp.maximum(y, 0.0)
    y = jax.lax.conv_general_dilated(
        y, bf(params["conv2_w"]), (1, 1), "VALID",
        dimension_numbers=("NCHW", "OIHW", "NCHW"), precision=hp)
    y = y + params["conv2_b"][None, :, None, None]
    y = jax.lax.reduce_window(y, -jnp.inf, jax.lax.max,
                              (1, 1, 2, 2), (1, 1, 2, 2), "VALID")
    y = jnp.maximum(y, 0.0)
    y = y.reshape(y.shape[0], 320)
    y = jnp.maximum(jnp.dot(y, bf(params["fc1_w"]).T, precision=hp)
                    + params["fc1_b"], 0.0)
    y = jnp.dot(y, bf(params["fc2_w"]).T, precision=hp) + params["fc2_b"]
    return jax.nn.log_softmax(y, axis=-1)


# --------------------------------- main --------------------------------------

if __name__ == "__main__":
    key = jax.random.PRNGKey(0)
    pkey, xkey = jax.random.split(key)
    params = init_params(pkey)
    packed = pack_params(params)

    # MNIST-shaped input (the view(-1, 320) forces 28x28); batch 48 -> 2 grid steps.
    x = jax.random.normal(xkey, (48, 1, 28, 28), dtype=jnp.float32)

    out = jax.jit(net_forward)(packed, x)
    out = jax.block_until_ready(out)

    assert out.shape == (48, 10)
    assert bool(jnp.all(jnp.isfinite(out)))
    # log_softmax rows sum (in prob space) to ~1
    assert bool(jnp.allclose(jnp.sum(jnp.exp(out), axis=-1), 1.0, atol=1e-4))
    # matches the plain-JAX reference (bf16 activation tolerance)
    ref = reference_forward(params, x)
    assert float(jnp.max(jnp.abs(out - ref))) < 0.15

    print("KERNEL_OK")
</pallas_src>

<mosaic_0001>
module attributes {stable_mosaic.version = 11 : i64} {
  func.func @_net_kernel(%arg0: i32, %arg1: memref<32x18x64xbf16, #tpu.memory_space<vmem>>, %arg2: memref<192x1024xbf16, #tpu.memory_space<vmem>>, %arg3: memref<5x256x256xbf16, #tpu.memory_space<vmem>>, %arg4: memref<512x128xbf16, #tpu.memory_space<vmem>>, %arg5: memref<128x128xbf16, #tpu.memory_space<vmem>>, %arg6: memref<8x256xf32, #tpu.memory_space<vmem>>, %arg7: memref<32x128xf32, #tpu.memory_space<vmem>>, %arg8: memref<32x16x256xbf16, #tpu.memory_space<vmem>>, %arg9: memref<32x8x128xf32, #tpu.memory_space<vmem>>) attributes {dimension_semantics = [#tpu.dimension_semantics<parallel>], iteration_bounds = array<i64: 2>, scalar_prefetch = 0 : i64, scratch_operands = 2 : i64, tpu.core_type = #tpu.core_type<tc>, window_params = [{transform_indices = @transform_0, window_bounds = array<i64: 32, 18, 64>}, {pipeline_mode = #tpu.pipeline_mode<synchronous>, transform_indices = @transform_1, window_bounds = array<i64: 192, 1024>}, {pipeline_mode = #tpu.pipeline_mode<synchronous>, transform_indices = @transform_2, window_bounds = array<i64: 5, 256, 256>}, {pipeline_mode = #tpu.pipeline_mode<synchronous>, transform_indices = @transform_3, window_bounds = array<i64: 512, 128>}, {pipeline_mode = #tpu.pipeline_mode<synchronous>, transform_indices = @transform_4, window_bounds = array<i64: 128, 128>}, {pipeline_mode = #tpu.pipeline_mode<synchronous>, transform_indices = @transform_5, window_bounds = array<i64: 8, 256>}, {transform_indices = @transform_6, window_bounds = array<i64: 32, 128>}]} {
    %c0 = arith.constant 0 : index
    %c0_0 = arith.constant 0 : index
    %c0_1 = arith.constant 0 : index
    %0 = vector.load %arg1[%c0, %c0_0, %c0_1] : memref<32x18x64xbf16, #tpu.memory_space<vmem>>, vector<32x16x64xbf16>
    %1 = vector.shape_cast %0 : vector<32x16x64xbf16> to vector<512x64xbf16>
    %c0_2 = arith.constant 0 : index
    %c1 = arith.constant 1 : index
    %c0_3 = arith.constant 0 : index
    %2 = vector.load %arg1[%c0_2, %c1, %c0_3] : memref<32x18x64xbf16, #tpu.memory_space<vmem>>, vector<32x16x64xbf16>
    %3 = vector.shape_cast %2 : vector<32x16x64xbf16> to vector<512x64xbf16>
    %c0_4 = arith.constant 0 : index
    %c2 = arith.constant 2 : index
    %c0_5 = arith.constant 0 : index
    %4 = vector.load %arg1[%c0_4, %c2, %c0_5] : memref<32x18x64xbf16, #tpu.memory_space<vmem>>, vector<32x16x64xbf16>
    %5 = vector.shape_cast %4 : vector<32x16x64xbf16> to vector<512x64xbf16>
    %6 = tpu.concatenate %1, %3, %5 in 1 : vector<512x64xbf16>, vector<512x64xbf16>, vector<512x64xbf16> -> vector<512x192xbf16>
    %c0_6 = arith.constant 0 : index
    %c0_7 = arith.constant 0 : index
    %7 = vector.load %arg2[%c0_6, %c0_7] : memref<192x1024xbf16, #tpu.memory_space<vmem>>, vector<192x1024xbf16>
    %cst = arith.constant dense<0.000000e+00> : vector<512x1024xf32>
    %8 = tpu.matmul %6, %7, %cst {dimension_numbers = #tpu.dot_dimension_numbers<[1], [0], [0], [1], [0, 0, 1, 1], [], []>} : vector<512x192xbf16>, vector<192x1024xbf16>, vector<512x1024xf32> -> vector<512x1024xf32>
    %9 = vector.extract_strided_slice %8 {offsets = [0, 0], sizes = [512, 512], strides = [1, 1]} : vector<512x1024xf32> to vector<512x512xf32>
    %10 = vector.extract_strided_slice %8 {offsets = [0, 512], sizes = [512, 512], strides = [1, 1]} : vector<512x1024xf32> to vector<512x512xf32>
    %11 = arith.maximumf %9, %10 : vector<512x512xf32>
    %12 = vector.extract_strided_slice %11 {offsets = [0, 0], sizes = [512, 256], strides = [1, 1]} : vector<512x512xf32> to vector<512x256xf32>
    %13 = vector.extract_strided_slice %11 {offsets = [0, 256], sizes = [512, 256], strides = [1, 1]} : vector<512x512xf32> to vector<512x256xf32>
    %14 = arith.maximumf %12, %13 : vector<512x256xf32>
    %c0_8 = arith.constant 0 : index
    %c0_9 = arith.constant 0 : index
    %15 = vector.load %arg6[%c0_8, %c0_9] : memref<8x256xf32, #tpu.memory_space<vmem>>, vector<1x256xf32>
    %16 = vector.broadcast %15 : vector<1x256xf32> to vector<512x256xf32>
    %17 = arith.addf %14, %16 : vector<512x256xf32>
    %cst_10 = arith.constant 0.000000e+00 : f32
    %18 = vector.broadcast %cst_10 : f32 to vector<512x256xf32>
    %19 = arith.maximumf %17, %18 : vector<512x256xf32>
    %20 = arith.truncf %19 : vector<512x256xf32> to vector<512x256xbf16>
    %21 = vector.shape_cast %20 : vector<512x256xbf16> to vector<32x16x256xbf16>
    %c0_11 = arith.constant 0 : index
    %c0_12 = arith.constant 0 : index
    %c0_13 = arith.constant 0 : index
    %22 = vector.load %arg8[%c0_11, %c0_12, %c0_13] : memref<32x16x256xbf16, #tpu.memory_space<vmem>>, vector<32x16x256xbf16>
    tpu.vector_store %arg8[%c0_11, %c0_12, %c0_13], %21 {strides = array<i32>} : memref<32x16x256xbf16, #tpu.memory_space<vmem>>, vector<32x16x256xbf16>,
    %cst_14 = arith.constant 0.000000e+00 : f32
    %23 = vector.broadcast %cst_14 : f32 to vector<256x256xf32>
    %c0_15 = arith.constant 0 : index
    %c0_16 = arith.constant 0 : index
    %c0_17 = arith.constant 0 : index
    %24 = vector.load %arg8[%c0_15, %c0_16, %c0_17] : memref<32x16x256xbf16, #tpu.memory_space<vmem>>, vector<32x8x256xbf16>
    %25 = vector.shape_cast %24 : vector<32x8x256xbf16> to vector<256x256xbf16>
    %c0_18 = arith.constant 0 : index
    %c0_19 = arith.constant 0 : index
    %c0_20 = arith.constant 0 : index
    %26 = vector.load %arg3[%c0_18, %c0_19, %c0_20] : memref<5x256x256xbf16, #tpu.memory_space<vmem>>, vector<1x256x256xbf16>
    %27 = vector.shape_cast %26 : vector<1x256x256xbf16> to vector<256x256xbf16>
    %cst_21 = arith.constant dense<0.000000e+00> : vector<256x256xf32>
    %28 = tpu.matmul %25, %27, %cst_21 {dimension_numbers = #tpu.dot_dimension_numbers<[1], [0], [0], [1], [0, 0, 1, 1], [], []>} : vector<256x256xbf16>, vector<256x256xbf16>, vector<256x256xf32> -> vector<256x256xf32>
    %29 = arith.addf %23, %28 : vector<256x256xf32>
    %c0_22 = arith.constant 0 : index
    %c1_23 = arith.constant 1 : index
    %c0_24 = arith.constant 0 : index
    %30 = vector.load %arg8[%c0_22, %c1_23, %c0_24] : memref<32x16x256xbf16, #tpu.memory_space<vmem>>, vector<32x8x256xbf16>
    %31 = vector.shape_cast %30 : vector<32x8x256xbf16> to vector<256x256xbf16>
    %c1_25 = arith.constant 1 : index
    %c0_26 = arith.constant 0 : index
    %c0_27 = arith.constant 0 : index
    %32 = vector.load %arg3[%c1_25, %c0_26, %c0_27] : memref<5x256x256xbf16, #tpu.memory_space<vmem>>, vector<1x256x256xbf16>
    %33 = vector.shape_cast %32 : vector<1x256x256xbf16> to vector<256x256xbf16>
    %cst_28 = arith.constant dense<0.000000e+00> : vector<256x256xf32>
    %34 = tpu.matmul %31, %33, %cst_28 {dimension_numbers = #tpu.dot_dimension_numbers<[1], [0], [0], [1], [0, 0, 1, 1], [], []>} : vector<256x256xbf16>, vector<256x256xbf16>, vector<256x256xf32> -> vector<256x256xf32>
    %35 = arith.addf %29, %34 : vector<256x256xf32>
    %c0_29 = arith.constant 0 : index
    %c2_30 = arith.constant 2 : index
    %c0_31 = arith.constant 0 : index
    %36 = vector.load %arg8[%c0_29, %c2_30, %c0_31] : memref<32x16x256xbf16, #tpu.memory_space<vmem>>, vector<32x8x256xbf16>
    %37 = vector.shape_cast %36 : vector<32x8x256xbf16> to vector<256x256xbf16>
    %c2_32 = arith.constant 2 : index
    %c0_33 = arith.constant 0 : index
    %c0_34 = arith.constant 0 : index
    %38 = vector.load %arg3[%c2_32, %c0_33, %c0_34] : memref<5x256x256xbf16, #tpu.memory_space<vmem>>, vector<1x256x256xbf16>
    %39 = vector.shape_cast %38 : vector<1x256x256xbf16> to vector<256x256xbf16>
    %cst_35 = arith.constant dense<0.000000e+00> : vector<256x256xf32>
    %40 = tpu.matmul %37, %39, %cst_35 {dimension_numbers = #tpu.dot_dimension_numbers<[1], [0], [0], [1], [0, 0, 1, 1], [], []>} : vector<256x256xbf16>, vector<256x256xbf16>, vector<256x256xf32> -> vector<256x256xf32>
    %41 = arith.addf %35, %40 : vector<256x256xf32>
    %c0_36 = arith.constant 0 : index
    %c3 = arith.constant 3 : index
    %c0_37 = arith.constant 0 : index
    %42 = vector.load %arg8[%c0_36, %c3, %c0_37] : memref<32x16x256xbf16, #tpu.memory_space<vmem>>, vector<32x8x256xbf16>
    %43 = vector.shape_cast %42 : vector<32x8x256xbf16> to vector<256x256xbf16>
    %c3_38 = arith.constant 3 : index
    %c0_39 = arith.constant 0 : index
    %c0_40 = arith.constant 0 : index
    %44 = vector.load %arg3[%c3_38, %c0_39, %c0_40] : memref<5x256x256xbf16, #tpu.memory_space<vmem>>, vector<1x256x256xbf16>
    %45 = vector.shape_cast %44 : vector<1x256x256xbf16> to vector<256x256xbf16>
    %cst_41 = arith.constant dense<0.000000e+00> : vector<256x256xf32>
    %46 = tpu.matmul %43, %45, %cst_41 {dimension_numbers = #tpu.dot_dimension_numbers<[1], [0], [0], [1], [0, 0, 1, 1], [], []>} : vector<256x256xbf16>, vector<256x256xbf16>, vector<256x256xf32> -> vector<256x256xf32>
    %47 = arith.addf %41, %46 : vector<256x256xf32>
    %c0_42 = arith.constant 0 : index
    %c4 = arith.constant 4 : index
    %c0_43 = arith.constant 0 : index
    %48 = vector.load %arg8[%c0_42, %c4, %c0_43] : memref<32x16x256xbf16, #tpu.memory_space<vmem>>, vector<32x8x256xbf16>
    %49 = vector.shape_cast %48 : vector<32x8x256xbf16> to vector<256x256xbf16>
    %c4_44 = arith.constant 4 : index
    %c0_45 = arith.constant 0 : index
    %c0_46 = arith.constant 0 : index
    %50 = vector.load %arg3[%c4_44, %c0_45, %c0_46] : memref<5x256x256xbf16, #tpu.memory_space<vmem>>, vector<1x256x256xbf16>
    %51 = vector.shape_cast %50 : vector<1x256x256xbf16> to vector<256x256xbf16>
    %cst_47 = arith.constant dense<0.000000e+00> : vector<256x256xf32>
    %52 = tpu.matmul %49, %51, %cst_47 {dimension_numbers = #tpu.dot_dimension_numbers<[1], [0], [0], [1], [0, 0, 1, 1], [], []>} : vector<256x256xbf16>, vector<256x256xbf16>, vector<256x256xf32> -> vector<256x256xf32>
    %53 = arith.addf %47, %52 : vector<256x256xf32>
    %54 = vector.extract_strided_slice %53 {offsets = [0, 0], sizes = [256, 128], strides = [1, 1]} : vector<256x256xf32> to vector<256x128xf32>
    %55 = vector.extract_strided_slice %53 {offsets = [0, 128], sizes = [256, 128], strides = [1, 1]} : vector<256x256xf32> to vector<256x128xf32>
    %56 = arith.maximumf %54, %55 : vector<256x128xf32>
    %c1_48 = arith.constant 1 : index
    %c0_49 = arith.constant 0 : index
    %57 = vector.load %arg6[%c1_48, %c0_49] : memref<8x256xf32, #tpu.memory_space<vmem>>, vector<1x128xf32>
    %58 = vector.broadcast %57 : vector<1x128xf32> to vector<256x128xf32>
    %59 = arith.addf %56, %58 : vector<256x128xf32>
    %cst_50 = arith.constant 0.000000e+00 : f32
    %60 = vector.broadcast %cst_50 : f32 to vector<256x128xf32>
    %61 = arith.maximumf %59, %60 : vector<256x128xf32>
    %62 = vector.shape_cast %61 : vector<256x128xf32> to vector<32x8x128xf32>
    %c0_51 = arith.constant 0 : index
    %c0_52 = arith.constant 0 : index
    %c0_53 = arith.constant 0 : index
    %63 = vector.load %arg9[%c0_51, %c0_52, %c0_53] : memref<32x8x128xf32, #tpu.memory_space<vmem>>, vector<32x8x128xf32>
    tpu.vector_store %arg9[%c0_51, %c0_52, %c0_53], %62 {strides = array<i32>} : memref<32x8x128xf32, #tpu.memory_space<vmem>>, vector<32x8x128xf32>,
    %c0_54 = arith.constant 0 : index
    %c0_55 = arith.constant 0 : index
    %c0_56 = arith.constant 0 : index
    %64 = vector.load %arg9[%c0_54, %c0_55, %c0_56] : memref<32x8x128xf32, #tpu.memory_space<vmem>>, vector<32x1x128xf32>
    %65 = vector.shape_cast %64 : vector<32x1x128xf32> to vector<32x128xf32>
    %c0_57 = arith.constant 0 : index
    %c1_58 = arith.constant 1 : index
    %c0_59 = arith.constant 0 : index
    %66 = vector.load %arg9[%c0_57, %c1_58, %c0_59] : memref<32x8x128xf32, #tpu.memory_space<vmem>>, vector<32x1x128xf32>
    %67 = vector.shape_cast %66 : vector<32x1x128xf32> to vector<32x128xf32>
    %68 = arith.maximumf %65, %67 : vector<32x128xf32>
    %c0_60 = arith.constant 0 : index
    %c2_61 = arith.constant 2 : index
    %c0_62 = arith.constant 0 : index
    %69 = vector.load %arg9[%c0_60, %c2_61, %c0_62] : memref<32x8x128xf32, #tpu.memory_space<vmem>>, vector<32x1x128xf32>
    %70 = vector.shape_cast %69 : vector<32x1x128xf32> to vector<32x128xf32>
    %c0_63 = arith.constant 0 : index
    %c3_64 = arith.constant 3 : index
    %c0_65 = arith.constant 0 : index
    %71 = vector.load %arg9[%c0_63, %c3_64, %c0_65] : memref<32x8x128xf32, #tpu.memory_space<vmem>>, vector<32x1x128xf32>
    %72 = vector.shape_cast %71 : vector<32x1x128xf32> to vector<32x128xf32>
    %73 = arith.maximumf %70, %72 : vector<32x128xf32>
    %c0_66 = arith.constant 0 : index
    %c4_67 = arith.constant 4 : index
    %c0_68 = arith.constant 0 : index
    %74 = vector.load %arg9[%c0_66, %c4_67, %c0_68] : memref<32x8x128xf32, #tpu.memory_space<vmem>>, vector<32x1x128xf32>
    %75 = vector.shape_cast %74 : vector<32x1x128xf32> to vector<32x128xf32>
    %c0_69 = arith.constant 0 : index
    %c5 = arith.constant 5 : index
    %c0_70 = arith.constant 0 : index
    %76 = vector.load %arg9[%c0_69, %c5, %c0_70] : memref<32x8x128xf32, #tpu.memory_space<vmem>>, vector<32x1x128xf32>
    %77 = vector.shape_cast %76 : vector<32x1x128xf32> to vector<32x128xf32>
    %78 = arith.maximumf %75, %77 : vector<32x128xf32>
    %c0_71 = arith.constant 0 : index
    %c6 = arith.constant 6 : index
    %c0_72 = arith.constant 0 : index
    %79 = vector.load %arg9[%c0_71, %c6, %c0_72] : memref<32x8x128xf32, #tpu.memory_space<vmem>>, vector<32x1x128xf32>
    %80 = vector.shape_cast %79 : vector<32x1x128xf32> to vector<32x128xf32>
    %c0_73 = arith.constant 0 : index
    %c7 = arith.constant 7 : index
    %c0_74 = arith.constant 0 : index
    %81 = vector.load %arg9[%c0_73, %c7, %c0_74] : memref<32x8x128xf32, #tpu.memory_space<vmem>>, vector<32x1x128xf32>
    %82 = vector.shape_cast %81 : vector<32x1x128xf32> to vector<32x128xf32>
    %83 = arith.maximumf %80, %82 : vector<32x128xf32>
    %84 = tpu.concatenate %68, %73, %78, %83 in 1 : vector<32x128xf32>, vector<32x128xf32>, vector<32x128xf32>, vector<32x128xf32> -> vector<32x512xf32>
    %85 = arith.truncf %84 : vector<32x512xf32> to vector<32x512xbf16>
    %c0_75 = arith.constant 0 : index
    %c0_76 = arith.constant 0 : index
    %86 = vector.load %arg4[%c0_75, %c0_76] : memref<512x128xbf16, #tpu.memory_space<vmem>>, vector<512x128xbf16>
    %cst_77 = arith.constant dense<0.000000e+00> : vector<32x128xf32>
    %87 = tpu.matmul %85, %86, %cst_77 {dimension_numbers = #tpu.dot_dimension_numbers<[1], [0], [0], [1], [0, 0, 1, 1], [], []>} : vector<32x512xbf16>, vector<512x128xbf16>, vector<32x128xf32> -> vector<32x128xf32>
    %c2_78 = arith.constant 2 : index
    %c0_79 = arith.constant 0 : index
    %88 = vector.load %arg6[%c2_78, %c0_79] : memref<8x256xf32, #tpu.memory_space<vmem>>, vector<1x128xf32>
    %89 = vector.broadcast %88 : vector<1x128xf32> to vector<32x128xf32>
    %90 = arith.addf %87, %89 : vector<32x128xf32>
    %cst_80 = arith.constant 0.000000e+00 : f32
    %91 = vector.broadcast %cst_80 : f32 to vector<32x128xf32>
    %92 = arith.maximumf %90, %91 : vector<32x128xf32>
    %93 = arith.truncf %92 : vector<32x128xf32> to vector<32x128xbf16>
    %c0_81 = arith.constant 0 : index
    %c0_82 = arith.constant 0 : index
    %94 = vector.load %arg5[%c0_81, %c0_82] : memref<128x128xbf16, #tpu.memory_space<vmem>>, vector<128x128xbf16>
    %cst_83 = arith.constant dense<0.000000e+00> : vector<32x128xf32>
    %95 = tpu.matmul %93, %94, %cst_83 {dimension_numbers = #tpu.dot_dimension_numbers<[1], [0], [0], [1], [0, 0, 1, 1], [], []>} : vector<32x128xbf16>, vector<128x128xbf16>, vector<32x128xf32> -> vector<32x128xf32>
    %c3_84 = arith.constant 3 : index
    %c0_85 = arith.constant 0 : index
    %96 = vector.load %arg6[%c3_84, %c0_85] : memref<8x256xf32, #tpu.memory_space<vmem>>, vector<1x128xf32>
    %97 = vector.broadcast %96 : vector<1x128xf32> to vector<32x128xf32>
    %98 = arith.addf %95, %97 : vector<32x128xf32>
    %99 = tpu.iota {dimensions = array<i32: 1>} : vector<32x128xi32>
    %c10_i32 = arith.constant 10 : i32
    %100 = vector.broadcast %c10_i32 : i32 to vector<32x128xi32>
    %101 = arith.cmpi slt, %99, %100 : vector<32x128xi32>
    %cst_86 = arith.constant -1.000000e+30 : f32
    %102 = vector.broadcast %cst_86 : f32 to vector<32x128xf32>
    %103 = arith.select %101, %98, %102 : vector<32x128xi1>, vector<32x128xf32>
    %cst_87 = arith.constant dense<0xFF800000> : vector<32xf32>
    %104 = vector.multi_reduction <maximumf>, %103, %cst_87 [1] : vector<32x128xf32> to vector<32xf32>
    %105 = vector.shape_cast %104 : vector<32xf32> to vector<32x1xf32>
    %106 = vector.broadcast %105 : vector<32x1xf32> to vector<32x128xf32>
    %107 = arith.subf %103, %106 : vector<32x128xf32>
    %108 = math.exp %107 : vector<32x128xf32>
    %cst_88 = arith.constant dense<0.000000e+00> : vector<32xf32>
    %109 = vector.multi_reduction <add>, %108, %cst_88 [1] : vector<32x128xf32> to vector<32xf32>
    %110 = vector.shape_cast %109 : vector<32xf32> to vector<32x1xf32>
    %111 = math.log %110 : vector<32x1xf32>
    %112 = vector.broadcast %105 : vector<32x1xf32> to vector<32x128xf32>
    %113 = arith.subf %103, %112 : vector<32x128xf32>
    %114 = vector.broadcast %111 : vector<32x1xf32> to vector<32x128xf32>
    %115 = arith.subf %113, %114 : vector<32x128xf32>
    %c0_89 = arith.constant 0 : index
    %c0_90 = arith.constant 0 : index
    %116 = vector.load %arg7[%c0_89, %c0_90] : memref<32x128xf32, #tpu.memory_space<vmem>>, vector<32x128xf32>
    tpu.vector_store %arg7[%c0_89, %c0_90], %115 {strides = array<i32>} : memref<32x128xf32, #tpu.memory_space<vmem>>, vector<32x128xf32>,
    return
  }
  func.func @transform_0(%arg0: i32) -> (i32, i32, i32) {
    %c0_i32 = arith.constant 0 : i32
    %c0_i32_0 = arith.constant 0 : i32
    %c0_i32_1 = arith.constant 0 : i32
    return %arg0, %c0_i32, %c0_i32_0 : i32, i32, i32
  }
  func.func @transform_1(%arg0: i32) -> (i32, i32) {
    %c0_i32 = arith.constant 0 : i32
    %c0_i32_0 = arith.constant 0 : i32
    %c0_i32_1 = arith.constant 0 : i32
    return %c0_i32, %c0_i32_0 : i32, i32
  }
  func.func @transform_2(%arg0: i32) -> (i32, i32, i32) {
    %c0_i32 = arith.constant 0 : i32
    %c0_i32_0 = arith.constant 0 : i32
    %c0_i32_1 = arith.constant 0 : i32
    %c0_i32_2 = arith.constant 0 : i32
    return %c0_i32, %c0_i32_0, %c0_i32_1 : i32, i32, i32
  }
  func.func @transform_3(%arg0: i32) -> (i32, i32) {
    %c0_i32 = arith.constant 0 : i32
    %c0_i32_0 = arith.constant 0 : i32
    %c0_i32_1 = arith.constant 0 : i32
    return %c0_i32, %c0_i32_0 : i32, i32
  }
  func.func @transform_4(%arg0: i32) -> (i32, i32) {
    %c0_i32 = arith.constant 0 : i32
    %c0_i32_0 = arith.constant 0 : i32
    %c0_i32_1 = arith.constant 0 : i32
    return %c0_i32, %c0_i32_0 : i32, i32
  }
  func.func @transform_5(%arg0: i32) -> (i32, i32) {
    %c0_i32 = arith.constant 0 : i32
    %c0_i32_0 = arith.constant 0 : i32
    %c0_i32_1 = arith.constant 0 : i32
    return %c0_i32, %c0_i32_0 : i32, i32
  }
  func.func @transform_6(%arg0: i32) -> (i32, i32) {
    %c0_i32 = arith.constant 0 : i32
    %c0_i32_0 = arith.constant 0 : i32
    return %arg0, %c0_i32 : i32, i32
  }
}

</mosaic_0001>

<bundles_post_ra>
// kernel: net_forward.1
= control target key start
LH: loop header
LB: loop body
LE: loop exit
PB: predicated region body
PF: predicated region fallthrough
CT: control target
= control target key end

     0   :  { %s14177_s21 = smov 0   ;;  %s18945_s0 = inlined_call_operand.vmem [shape: bf16[64,18,64], index: 0, kind: input, shape index: {}]   ;;  %s18946_s1 = inlined_call_operand.vmem [shape: bf16[192,1024], index: 1, kind: input, shape index: {}]   ;;  %s18947_s2 = inlined_call_operand.vmem [shape: bf16[5,256,256], index: 2, kind: input, shape index: {}]   ;;  %s18948_s3 = inlined_call_operand.vmem [shape: bf16[512,128], index: 3, kind: input, shape index: {}]   ;;  %s18949_s4 = inlined_call_operand.vmem [shape: bf16[128,128], index: 4, kind: input, shape index: {}]   ;;  %s18950_s5 = inlined_call_operand.vmem [shape: f32[8,256], index: 5, kind: input, shape index: {}]   ;;  %s18951_s6 = inlined_call_operand.vmem [shape: f32[64,128], index: 6, kind: output, shape index: {}]  }
   0x1 LB: > { %s11791_s22 = sadd.s32 4294967295, %s14139_s21   ;;  %p11795_p0 = scmp.ge.s32.totalorder %s14139_s21, 1  ;;  %s14139_s21 = sphi %s14177_s21, %s16_s21  }
   0x2   : > { %p214_p1 = scmp.lt.s32.totalorder %s14139_s21, 3 }
   0x4   : > { %p215_p2 = pnand %p11795_p0, %p214_p1 }
   0x6   : > { %218 = sbr.rel (%p215_p2) target bundleno = 2699 (0xa8b), region = 44 }
   0xd   : > { %s11796_s23 = sshll.u32 %s11791_s22, 5  ;;  %v1994_v0 = vld [vmem:[%s18946_s1] sm:$0xff]  ;;  %v1996_v4 = vld [vmem:[%s18946_s1 + $0x10] sm:$0xff]  ;;  %vm355_vm0 = vsmask.f32 3328  ;;  %vm1254_vm3 = vcmask 1042432  }
   0xe   : > { %p246_p3 = scmp.lt.s32.totalorder %s11796_s23, 63  ;;  %v1998_v1 = vld [vmem:[%s18946_s1 + $0x20] sm:$0xff]  ;;  %v2000_v5 = vld [vmem:[%s18946_s1 + $0x30] sm:$0xff]  ;;  %vm356_vm1 = vsmask.f32 7440  ;;  %vm1255_vm4 = vcmask 1046532  }
   0xf   : > { %v11929_v2 = vcombine.high %v1994_v0, %v1998_v1  ;;  %v11928_v3 = vcombine.low %v1994_v0, %v1998_v1  ;;  %v2002_v6 = vld [vmem:[%s18946_s1 + $0x40] sm:$0xff]  ;;  %v11933_v7 = vcombine.high %v1996_v4, %v2000_v5  ;;  %v11932_v8 = vcombine.low %v1996_v4, %v2000_v5  ;;  %v2004_v10 = vld [vmem:[%s18946_s1 + $0x50] sm:$0xff]  ;;  %vm14307_vm2 = vmor %vm355_vm0, %vm356_vm1  ;;  %s11798_s24 = sshll.u32 %s11791_s22, 2 }
  0x10   : > { %s20181_s23 = smov (!%p246_p3, %s11796_s23), 63  ;;  %v2006_v9 = vld [vmem:[%s18946_s1 + $0x60] sm:$0xff]  ;;  %v2008_v11 = vld [vmem:[%s18946_s1 + $0x70] sm:$0xff]  ;;  %v19266_v0 = vmov 0  ;;  %vm1865_vm5 = vcmask 523264   ;;  %vm14575_vm6 = vmor %vm1254_vm3, %vm1255_vm4  ;;  %vm9604_vm10 = vcmask 1041408  }
  0x11   : > { %2666 = vmatprep.subr.bf16.mxu1 %v11929_v2  ;;  %v11937_v12 = vcombine.high %v2002_v6, %v2006_v9  ;;  %v11941_v13 = vcombine.high %v2004_v10, %v2008_v11  ;;  %v14214_v14 = vld [vmem:[%s18946_s1 + $0x80] sm:$0xff]  ;;  %v14222_v16 = vld [vmem:[%s18946_s1 + $0x90] sm:$0xff]  ;;  %s13304_s25 = smul.u32 12, %s20181_s23  ;;  %3372 = vmatprep.subr.bf16.mxu0 %v11933_v7  ;;  %v11936_v17 = vcombine.low %v2002_v6, %v2006_v9  ;;  %v19267_v0 = vsel %vm14307_vm2, 4294967295, %v19266_v0  ;;  %p253_p4 = scmp.lt.s32.totalorder %s11798_s24, 7 }
  0x12   : > { %v2014_v15 = vld [vmem:[%s18946_s1 + $0xa0] sm:$0xff]  ;;  %2667 = vmatpush1.bf16.msra.mxu1 %v11928_v3  ;;  %v2016_v18 = vld [vmem:[%s18946_s1 + $0xb0] sm:$0xff]  ;;  %3373 = vmatpush1.bf16.msra.mxu0 %v11932_v8  ;;  %v11940_v21 = vcombine.low %v2004_v10, %v2008_v11  ;;  %19268 = vst [vmem:[#allocation4_spill] sm:$0xff] %v19267_v0  ;;  %vm8127_vm7 = vsmask.f32 2304  ;;  %vm9605_vm11 = vcmask 1045508  }
  0x13   : > { %v14230_v19 = vld [vmem:[%s18946_s1 + $0xc0] sm:$0xff]  ;;  %2668 = vmatprep.subr.bf16.mxu1 %v11937_v12  ;;  %v11945_v22 = vcombine.high %v14214_v14, %v2014_v15  ;;  %v14241_v23 = vld [vmem:[%s18946_s1 + $0xd0] sm:$0xff]  ;;  %s14256_s15 = scalar_lea.vmem %s18945_s0, %s13304_s25  ;;  %3374 = vmatprep.subr.bf16.mxu0 %v11941_v13  ;;  %v11944_v26 = vcombine.low %v14214_v14, %v2014_v15  ;;  %v11949_v27 = vcombine.high %v14222_v16, %v2016_v18  ;;  %s14141_s25 = smov 64   ;;  %vm8128_vm8 = vsmask.f32 6416  ;;  %vm18255_vm12 = vmor %vm9604_vm10, %vm9605_vm11 }
  0x14   : > { %v14235_v20 = vld [vmem:[%s18946_s1 + $0xe0] sm:$0xff]  ;;  %v14246_v24 = vld [vmem:[%s18946_s1 + $0xf0] sm:$0xff]  ;;  %v11948_v28 = vcombine.low %v14222_v16, %v2016_v18  ;;  %v14281_v34 = vld [vmem:[%s14256_s15 + $0x8] sm:$0x1]  ;;  %vm10859_vm13 = vcmask 1041409   ;;  %vm10862_vm14 = vcmask 1042434  }
  0x15   : > { %v14251_v25 = vld [vmem:[%s18946_s1 + $0x100] sm:$0xff]  ;;  %v14269_v30 = vld [vmem:[%s18946_s1 + $0x110] sm:$0xff]  ;;  %v11953_v35 = vcombine.high %v14230_v19, %v14235_v20  ;;  %v11952_v36 = vcombine.low %v14230_v19, %v14235_v20  ;;  %v11957_v37 = vcombine.high %v14241_v23, %v14246_v24  ;;  %v11956_v38 = vcombine.low %v14241_v23, %v14246_v24  ;;  %v261_v43 = vld [vmem:[%s14256_s15 + $0xc] sm:$0xf]  ;;  %s20183_s24 = smov (!%p253_p4, %s11798_s24), 7 }
  0x16   : > { %v14264_v29 = vld [vmem:[%s18946_s1 + $0x120] sm:$0xff]  ;;  %v14274_v31 = vld [vmem:[%s18946_s1 + $0x130] sm:$0xff]  ;;  %2669 = vmatpush1.bf16.msra.mxu1 %v11936_v17  ;;  %v378_v44 = vshll.u32 %v14281_v34, 16  ;;  %3375 = vmatpush1.bf16.msra.mxu0 %v11940_v21  ;;  %v383_v55 = vshrl.u32 %v261_v43, 16  ;;  %v386_v56 = vshll.u32 %v261_v43, 16  ;;  %vm18078_vm9 = vmor %vm8127_vm7, %vm8128_vm8  ;;  %vm10865_vm15 = vcmask 1043459  }
  0x17   : > { %v259_v32 = vld [vmem:[%s14256_s15] sm:$0xf]  ;;  %v14278_v33 = vld [vmem:[%s14256_s15 + $0x4] sm:$0xf]  ;;  %v262_v45 = vld [vmem:[%s14256_s15 + $0x10] sm:$0xf]  ;;  %2670 = vmatprep.subr.bf16.mxu1 %v11945_v22  ;;  %v11961_v47 = vcombine.high %v14251_v25, %v14264_v29  ;;  %v11960_v48 = vcombine.low %v14251_v25, %v14264_v29  ;;  %v11965_v49 = vcombine.high %v14269_v30, %v14274_v31  ;;  %3376 = vmatprep.subr.bf16.mxu0 %v11949_v27 }
  0x18   : > { %v359_v39 = vshrl.u32 %v259_v32, 16  ;;  %v362_v40 = vshll.u32 %v259_v32, 16  ;;  %v368_v41 = vshll.u32 %v14278_v33, 16  ;;  %v372_v42 = vshrl.u32 %v14278_v33, 16  ;;  %v324_v46 = vld [vmem:[%s14256_s15 + $0x14] sm:$0x1] }
  0x19   : > { %v380_v54 = vrot.slane %v378_v44, 5  ;;  %v392_v57 = vshll.u32 %v262_v45, 16  ;;  %v396_v60 = vshrl.u32 %v262_v45, 16  ;;  %v402_v61 = vshll.u32 %v324_v46, 16  ;;  %v263_v62 = vld [vmem:[%s14256_s15 + $0x18] sm:$0xf] }
  0x1a   : > { %v361_v50 = vrot.slane %v359_v39, 4  ;;  %v364_v51 = vrot.slane %v362_v40, 5  ;;  %v370_v52 = vrot.slane %v368_v41, 5  ;;  %v374_v53 = vrot.slane %v372_v42, 4  ;;  %v264_v63 = vld [vmem:[%s14256_s15 + $0x1c] sm:$0xf]  ;;  %2671 = vmatpush1.bf16.msra.mxu1 %v11944_v26  ;;  %3377 = vmatpush1.bf16.msra.mxu0 %v11948_v28 }
  0x1b   : > { %v385_v1 = vrot.slane %v383_v55, 4  ;;  %v388_v2 = vrot.slane %v386_v56, 5  ;;  %v394_v3 = vrot.slane %v392_v57, 5  ;;  %2672 = vmatprep.subr.bf16.mxu1 %v11953_v35  ;;  %v11964_v4 = vcombine.low %v14269_v30, %v14274_v31  ;;  %3378 = vmatprep.subr.bf16.mxu0 %v11957_v37  ;;  %v325_v10 = vld [vmem:[%s14256_s15 + $0x20] sm:$0x1]  ;;  %s11799_s26 = sshll.u32 %s20183_s24, 3 }
  0x1c   : > { %v365_v58 = vor.u32 %v364_v51, %v361_v50  ;;  %v375_v59 = vor.u32 %v374_v53, %v370_v52  ;;  %v398_v7 = vrot.slane %v396_v60, 4  ;;  %v404_v8 = vrot.slane %v402_v61, 5  ;;  %v265_v18 = vld [vmem:[%s14256_s15 + $0x24] sm:$0xf]  ;;  %v266_v28 = vld [vmem:[%s14256_s15 + $0x28] sm:$0xf]  ;;  %s256_s29 = scalar_lea.vmem %s18951_s6, %s11799_s26 }
  0x1d   : > { %v389_v9 = vor.u32 %v388_v2, %v385_v1  ;;  %v407_v11 = vshrl.u32 %v263_v62, 16  ;;  %v410_v12 = vshll.u32 %v263_v62, 16  ;;  %v416_v13 = vshll.u32 %v264_v63, 16  ;;  %v326_v32 = vld [vmem:[%s14256_s15 + $0x2c] sm:$0x1] }
  0x1e   : > { %v366_v5 = vrot.slane %v365_v58, 4  ;;  %v376_v6 = vrot.slane %v375_v59, 4  ;;  %v399_v16 = vor.u32 %v398_v7, %v394_v3  ;;  %v420_v17 = vshrl.u32 %v264_v63, 16  ;;  %2673 = vmatpush1.bf16.msra.mxu1 %v11952_v36  ;;  %3379 = vmatpush1.bf16.msra.mxu0 %v11956_v38  ;;  %v267_v40 = vld [vmem:[%s14256_s15 + $0x30] sm:$0xf] }
  0x1f   : > { %v390_v20 = vrot.slane %v389_v9, 4  ;;  %v409_v21 = vrot.slane %v407_v11, 4  ;;  %v412_v22 = vrot.slane %v410_v12, 5  ;;  %2674 = vmatprep.subr.bf16.mxu1 %v11961_v47  ;;  %v418_v24 = vrot.slane %v416_v13, 5  ;;  %3380 = vmatprep.subr.bf16.mxu0 %v11965_v49  ;;  %v268_v50 = vld [vmem:[%s14256_s15 + $0x34] sm:$0xf] }
  0x20   : > { %v371_v14 = vsel %vm14307_vm2, %v366_v5, %v370_v52  ;;  %v381_v15 = vsel %vm14307_vm2, %v376_v6, %v380_v54  ;;  %v400_v23 = vrot.slane %v399_v16, 4  ;;  %v422_v26 = vrot.slane %v420_v17, 4  ;;  %v327_v25 = vld [vmem:[%s14256_s15 + $0x38] sm:$0x1]  ;;  %v269_v56 = vld [vmem:[%s14256_s15 + $0x3c] sm:$0xf] }
  0x21   : > { %v11864_v19 = vcombine.low %v371_v14, %v381_v15  ;;  %v426_v27 = vshll.u32 %v325_v10, 16  ;;  %v395_v30 = vsel %vm14307_vm2, %v390_v20, %v394_v3  ;;  %v413_v31 = vor.u32 %v412_v22, %v409_v21  ;;  %v270_v2 = vld [vmem:[%s14256_s15 + $0x40] sm:$0xf]  ;;  %v328_v5 = vld [vmem:[%s14256_s15 + $0x44] sm:$0x1] }
  0x22   : > { %v431_v35 = vshrl.u32 %v265_v18, 16  ;;  %v405_v36 = vsel %vm14307_vm2, %v400_v23, %v404_v8  ;;  %v423_v37 = vor.u32 %v422_v26, %v418_v24  ;;  %v434_v39 = vshll.u32 %v265_v18, 16  ;;  %2675 = vmatpush1.bf16.msra.mxu1 %v11960_v48  ;;  %3381 = vmatpush1.bf16.msra.mxu0 %v11964_v4  ;;  %v14096_v0 = vld [vmem:[%s14256_s15 + $0xa4] sm:$0x1] }
  0x23   : > { %1705 = vrot.lane.b32.xlu0 %v11864_v19, %s14141_s25  ;;  %v428_v38 = vrot.slane %v426_v27, 5  ;;  %v11865_v41 = vcombine.low %v395_v30, %v405_v36  ;;  %v414_v42 = vrot.slane %v413_v31, 4  ;;  %v440_v44 = vshll.u32 %v266_v28, 16  ;;  %v271_v19 = vld [vmem:[%s14256_s15 + $0x48] sm:$0xf] }
  0x24   : > { %v433_v43 = vrot.slane %v431_v35, 4  ;;  %v424_v45 = vrot.slane %v423_v37, 4  ;;  %v436_v46 = vrot.slane %v434_v39, 5  ;;  %v444_v47 = vshrl.u32 %v266_v28, 16 }
  0x25   : > { %v450_v49 = vshll.u32 %v326_v32, 16  ;;  %v419_v51 = vsel %vm14307_vm2, %v414_v42, %v418_v24  ;;  %v442_v52 = vrot.slane %v440_v44, 5  ;;  %v455_v29 = vshrl.u32 %v267_v40, 16  ;;  %v272_v24 = vld [vmem:[%s14256_s15 + $0x4c] sm:$0xf] }
  0x26   : > { %v429_v48 = vsel %vm14307_vm2, %v424_v45, %v428_v38  ;;  %v437_v53 = vor.u32 %v436_v46, %v433_v43  ;;  %v446_v54 = vrot.slane %v444_v47, 4  ;;  %v458_v59 = vshll.u32 %v267_v40, 16  ;;  %v329_v32 = vld [vmem:[%s14256_s15 + $0x50] sm:$0x1] }
  0x27   : > { %1707 = vrot.lane.b32.xlu0 %v11865_v41, %s14141_s25  ;;  %v452_v55 = vrot.slane %v450_v49, 5  ;;  %v11866_v57 = vcombine.low %v419_v51, %v429_v48  ;;  %v457_v58 = vrot.slane %v455_v29, 4  ;;  %v464_v60 = vshll.u32 %v268_v50, 16  ;;  %v273_v41 = vld [vmem:[%s14256_s15 + $0x54] sm:$0xf] }
  0x28   : > { %v438_v61 = vrot.slane %v437_v53, 4  ;;  %v447_v62 = vor.u32 %v446_v54, %v442_v52  ;;  %v468_v63 = vshrl.u32 %v268_v50, 16  ;;  %v474_v1 = vshll.u32 %v327_v25, 16  ;;  %v274_v51 = vld [vmem:[%s14256_s15 + $0x58] sm:$0xf] }
  0x29   : > { %1709 = vrot.lane.b32.xlu1 %v11866_v57, %s14141_s25  ;;  %v460_v3 = vrot.slane %v458_v59, 5  ;;  %v466_v4 = vrot.slane %v464_v60, 5  ;;  %v479_v6 = vshrl.u32 %v269_v56, 16  ;;  %v482_v13 = vshll.u32 %v269_v56, 16  ;;  %v330_v29 = vld [vmem:[%s14256_s15 + $0x5c] sm:$0x1] }
  0x2a   : > { %v443_v7 = vsel %vm14307_vm2, %v438_v61, %v442_v52  ;;  %v448_v8 = vrot.slane %v447_v62, 4  ;;  %v470_v9 = vrot.slane %v468_v63, 4  ;;  %v476_v10 = vrot.slane %v474_v1, 5  ;;  %v275_v57 = vld [vmem:[%s14256_s15 + $0x60] sm:$0xf] }
  0x2b   : > { %v461_v11 = vor.u32 %v460_v3, %v457_v58  ;;  %v481_v12 = vrot.slane %v479_v6, 4  ;;  %v488_v14 = vshll.u32 %v270_v2, 16  ;;  %v492_v17 = vshrl.u32 %v270_v2, 16  ;;  %v276_v3 = vld [vmem:[%s14256_s15 + $0x64] sm:$0xf] }
  0x2c   : > { %v453_v15 = vsel %vm14307_vm2, %v448_v8, %v452_v55  ;;  %v471_v16 = vor.u32 %v470_v9, %v466_v4  ;;  %v498_v18 = vshll.u32 %v328_v5, 16  ;;  %v484_v22 = vrot.slane %v482_v13, 5  ;;  %v331_v6 = vld [vmem:[%s14256_s15 + $0x68] sm:$0x1] }
  0x2d   : > { %v11867_v20 = vcombine.low %v443_v7, %v453_v15  ;;  %v462_v21 = vrot.slane %v461_v11, 4  ;;  %v490_v23 = vrot.slane %v488_v14, 5  ;;  %v494_v27 = vrot.slane %v492_v17, 4 }
  0x2e   : > { %v472_v26 = vrot.slane %v471_v16, 4  ;;  %v500_v28 = vrot.slane %v498_v18, 5  ;;  %v485_v31 = vor.u32 %v484_v22, %v481_v12  ;;  %v503_v35 = vshrl.u32 %v271_v19, 16  ;;  %v277_v12 = vld [vmem:[%s14256_s15 + $0x6c] sm:$0xf] }
  0x2f   : > { %1711 = vrot.lane.b32.xlu1 %v11867_v20, %s14141_s25  ;;  %v467_v30 = vsel %vm14307_vm2, %v462_v21, %v466_v4  ;;  %v506_v36 = vshll.u32 %v271_v19, 16  ;;  %v495_v38 = vor.u32 %v494_v27, %v490_v23  ;;  %v512_v39 = vshll.u32 %v272_v24, 16  ;;  %v278_v21 = vld [vmem:[%s14256_s15 + $0x70] sm:$0xf] }
  0x30   : > { %v477_v37 = vsel %vm14307_vm2, %v472_v26, %v476_v10  ;;  %v516_v40 = vshrl.u32 %v272_v24, 16  ;;  %v486_v43 = vrot.slane %v485_v31, 4  ;;  %v505_v44 = vrot.slane %v503_v35, 4  ;;  %v332_v24 = vld [vmem:[%s14256_s15 + $0x74] sm:$0x1] }
  0x31   : > { %v11868_v42 = vcombine.low %v467_v30, %v477_v37  ;;  %v508_v45 = vrot.slane %v506_v36, 5  ;;  %v496_v46 = vrot.slane %v495_v38, 4  ;;  %v514_v47 = vrot.slane %v512_v39, 5 }
  0x32   : > { %v518_v49 = vrot.slane %v516_v40, 4  ;;  %v522_v50 = vshll.u32 %v329_v32, 16  ;;  %v491_v52 = vsel %vm14307_vm2, %v486_v43, %v490_v23  ;;  %v527_v48 = vshrl.u32 %v273_v41, 16 }
  0x33   : > { %1713 = vrot.lane.b32.xlu0 %v11868_v42, %s14141_s25  ;;  %v509_v25 = vor.u32 %v508_v45, %v505_v44  ;;  %v501_v53 = vsel %vm14307_vm2, %v496_v46, %v500_v28  ;;  %v530_v56 = vshll.u32 %v273_v41, 16  ;;  %v536_v61 = vshll.u32 %v274_v51, 16  ;;  %v279_v42 = vld [vmem:[%s14256_s15 + $0x78] sm:$0xf] }
  0x34   : > { %v519_v54 = vor.u32 %v518_v49, %v514_v47  ;;  %v524_v55 = vrot.slane %v522_v50, 5  ;;  %v11869_v58 = vcombine.low %v491_v52, %v501_v53  ;;  %v529_v60 = vrot.slane %v527_v48, 4 }
  0x35   : > { %v510_v59 = vrot.slane %v509_v25, 4  ;;  %v532_v63 = vrot.slane %v530_v56, 5  ;;  %v540_v1 = vshrl.u32 %v274_v51, 16  ;;  %v546_v2 = vshll.u32 %v330_v29, 16  ;;  %v333_v29 = vld [vmem:[%s14256_s15 + $0x80] sm:$0x1] }
  0x36   : > { %v520_v62 = vrot.slane %v519_v54, 4  ;;  %1715 = vrot.lane.b32.xlu1 %v11869_v58, %s14141_s25  ;;  %v538_v5 = vrot.slane %v536_v61, 5  ;;  %v551_v7 = vshrl.u32 %v275_v57, 16  ;;  %v554_v15 = vshll.u32 %v275_v57, 16  ;;  %v2034_v58 = vld [vmem:[%s18946_s1 + $0x140] sm:$0xff] }
  0x37   : > { %v515_v4 = vsel %vm14307_vm2, %v510_v59, %v514_v47  ;;  %v533_v9 = vor.u32 %v532_v63, %v529_v60  ;;  %v542_v10 = vrot.slane %v540_v1, 4  ;;  %v548_v11 = vrot.slane %v546_v2, 5  ;;  %v280_v47 = vld [vmem:[%s14256_s15 + $0x7c] sm:$0xf]  ;;  %v2038_v59 = vld [vmem:[%s18946_s1 + $0x160] sm:$0xff]  ;;  %v2036_v1 = vld [vmem:[%s18946_s1 + $0x150] sm:$0xff] }
  0x38   : > { %v525_v8 = vsel %vm14307_vm2, %v520_v62, %v524_v55  ;;  %v553_v14 = vrot.slane %v551_v7, 4  ;;  %v560_v16 = vshll.u32 %v276_v3, 16  ;;  %v564_v19 = vshrl.u32 %v276_v3, 16  ;;  %v2040_v2 = vld [vmem:[%s18946_s1 + $0x170] sm:$0xff]  ;;  %v281_v7 = vld [vmem:[%s14256_s15 + $0x84] sm:$0xf] }
  0x39   : > { %v11870_v13 = vcombine.low %v515_v4, %v525_v8  ;;  %v534_v17 = vrot.slane %v533_v9, 4  ;;  %v543_v18 = vor.u32 %v542_v10, %v538_v5  ;;  %v570_v20 = vshll.u32 %v331_v6, 16 }
  0x3a   : > { %v556_v22 = vrot.slane %v554_v15, 5  ;;  %v562_v23 = vrot.slane %v560_v16, 5  ;;  %v575_v26 = vshrl.u32 %v277_v12, 16  ;;  %v566_v30 = vrot.slane %v564_v19, 4  ;;  %v334_v16 = vld [vmem:[%s14256_s15 + $0x8c] sm:$0x1] }
  0x3b   : > { %1717 = vrot.lane.b32.xlu0 %v11870_v13, %s14141_s25  ;;  %v539_v27 = vsel %vm14307_vm2, %v534_v17, %v538_v5  ;;  %v544_v28 = vrot.slane %v543_v18, 4  ;;  %v572_v31 = vrot.slane %v570_v20, 5  ;;  %v578_v36 = vshll.u32 %v277_v12, 16 }
  0x3c   : > { %v557_v32 = vor.u32 %v556_v22, %v553_v14  ;;  %v577_v35 = vrot.slane %v575_v26, 4  ;;  %v584_v37 = vshll.u32 %v278_v21, 16  ;;  %v567_v39 = vor.u32 %v566_v30, %v562_v23  ;;  %v2046_v22 = vld [vmem:[%s18946_s1 + $0x1a0] sm:$0xff]  ;;  %v2048_v30 = vld [vmem:[%s18946_s1 + $0x1b0] sm:$0xff] }
  0x3d   : > { %v549_v38 = vsel %vm14307_vm2, %v544_v28, %v548_v11  ;;  %v588_v40 = vshrl.u32 %v278_v21, 16  ;;  %v594_v41 = vshll.u32 %v332_v24, 16  ;;  %v580_v45 = vrot.slane %v578_v36, 5  ;;  %v282_v11 = vld [vmem:[%s14256_s15 + $0x88] sm:$0xf]  ;;  %v2042_v21 = vld [vmem:[%s18946_s1 + $0x180] sm:$0xff] }
  0x3e   : > { %v11871_v43 = vcombine.low %v539_v27, %v549_v38  ;;  %v558_v44 = vrot.slane %v557_v32, 4  ;;  %v586_v46 = vrot.slane %v584_v37, 5  ;;  %v568_v49 = vrot.slane %v567_v39, 4  ;;  %v2044_v28 = vld [vmem:[%s18946_s1 + $0x190] sm:$0xff]  ;;  %v2050_v36 = vld [vmem:[%s18946_s1 + $0x1c0] sm:$0xff] }
  0x3f   : > { %v590_v50 = vrot.slane %v588_v40, 4  ;;  %v596_v51 = vrot.slane %v594_v41, 5  ;;  %v581_v25 = vor.u32 %v580_v45, %v577_v35  ;;  %v599_v48 = vshrl.u32 %v279_v42, 16  ;;  %v2054_v37 = vld [vmem:[%s18946_s1 + $0x1e0] sm:$0xff] }
  0x40   : > { %1719 = vrot.lane.b32.xlu1 %v11871_v43, %s14141_s25  ;;  %v563_v52 = vsel %vm14307_vm2, %v558_v44, %v562_v23  ;;  %v602_v53 = vshll.u32 %v279_v42, 16  ;;  %v573_v54 = vsel %vm14307_vm2, %v568_v49, %v572_v31  ;;  %v608_v56 = vshll.u32 %v280_v47, 16  ;;  %v283_v42 = vld [vmem:[%s14256_s15 + $0x90] sm:$0xf] }
  0x41   : > { %v591_v55 = vor.u32 %v590_v50, %v586_v46  ;;  %v612_v57 = vshrl.u32 %v280_v47, 16  ;;  %v11872_v60 = vcombine.low %v563_v52, %v573_v54  ;;  %v582_v61 = vrot.slane %v581_v25, 4  ;;  %v14432_v47 = vld [vmem:[%s18946_s1 + $0x1d0] sm:$0xff] }
  0x42   : > { %v601_v62 = vrot.slane %v599_v48, 4  ;;  %v604_v63 = vrot.slane %v602_v53, 5  ;;  %v610_v4 = vrot.slane %v608_v56, 5  ;;  %v618_v6 = vshll.u32 %v333_v29, 16  ;;  %v14437_v49 = vld [vmem:[%s18946_s1 + $0x1f0] sm:$0xff] }
  0x43   : > { %v592_v3 = vrot.slane %v591_v55, 4  ;;  %v614_v5 = vrot.slane %v612_v57, 4  ;;  %1721 = vrot.lane.b32.xlu0 %v11872_v60, %s14141_s25  ;;  %v587_v8 = vsel %vm14307_vm2, %v582_v61, %v586_v46  ;;  %v11969_v10 = vcombine.high %v2034_v58, %v2038_v59  ;;  %v284_v29 = vld [vmem:[%s14256_s15 + $0x94] sm:$0xf]  ;;  %v335_v48 = vld [vmem:[%s14256_s15 + $0x98] sm:$0x1] }
  0x44   : > { %v605_v9 = vor.u32 %v604_v63, %v601_v62  ;;  %v620_v14 = vrot.slane %v618_v6, 5  ;;  %v11968_v15 = vcombine.low %v2034_v58, %v2038_v59  ;;  %v11973_v19 = vcombine.high %v2036_v1, %v2040_v2 }
  0x45   : > { %v597_v12 = vsel %vm14307_vm2, %v592_v3, %v596_v51  ;;  %v615_v13 = vor.u32 %v614_v5, %v610_v4  ;;  %2676 = vmatprep.subr.bf16.mxu1 %v11969_v10  ;;  %v623_v20 = vshrl.u32 %v281_v7, 16  ;;  %v626_v24 = vshll.u32 %v281_v7, 16  ;;  %v2062_v3 = vld [vmem:[%s18946_s1 + $0x220] sm:$0xff]  ;;  %v2060_v7 = vld [vmem:[%s18946_s1 + $0x210] sm:$0xff] }
  0x46   : > { %v11873_v17 = vcombine.low %v587_v8, %v597_v12  ;;  %v606_v18 = vrot.slane %v605_v9, 4  ;;  %2677 = vmatpush1.bf16.msra.mxu1 %v11968_v15  ;;  %v632_v26 = vshll.u32 %v282_v11, 16  ;;  %v636_v27 = vshrl.u32 %v282_v11, 16  ;;  %3382 = vmatprep.subr.bf16.mxu0 %v11973_v19  ;;  %v2064_v8 = vld [vmem:[%s18946_s1 + $0x230] sm:$0xff]  ;;  %v285_v9 = vld [vmem:[%s14256_s15 + $0x9c] sm:$0xf] }
  0x47   : > { %v616_v23 = vrot.slane %v615_v13, 4  ;;  %v625_v32 = vrot.slane %v623_v20, 4  ;;  %v642_v35 = vshll.u32 %v334_v16, 16  ;;  %v628_v39 = vrot.slane %v626_v24, 5  ;;  %v14464_v13 = vld [vmem:[%s18946_s1 + $0x240] sm:$0xff]  ;;  %v14474_v15 = vld [vmem:[%s18946_s1 + $0x250] sm:$0xff] }
  0x48   : > { %1723 = vrot.lane.b32.xlu1 %v11873_v17, %s14141_s25  ;;  %v611_v31 = vsel %vm14307_vm2, %v606_v18, %v610_v4  ;;  %v634_v40 = vrot.slane %v632_v26, 5  ;;  %v638_v41 = vrot.slane %v636_v27, 4  ;;  %v11972_v45 = vcombine.low %v2036_v1, %v2040_v2  ;;  %v2058_v2 = vld [vmem:[%s18946_s1 + $0x200] sm:$0xff]  ;;  %v14481_v20 = vld [vmem:[%s18946_s1 + $0x270] sm:$0xff] }
  0x49   : > { %v621_v38 = vsel %vm14307_vm2, %v616_v23, %v620_v14  ;;  %v644_v44 = vrot.slane %v642_v35, 5  ;;  %v11977_v46 = vcombine.high %v2042_v21, %v2046_v22  ;;  %v629_v50 = vor.u32 %v628_v39, %v625_v32  ;;  %v14469_v14 = vld [vmem:[%s18946_s1 + $0x260] sm:$0xff] }
  0x4a   : > { %v11874_v43 = vcombine.low %v611_v31, %v621_v38  ;;  %v639_v51 = vor.u32 %v638_v41, %v634_v40  ;;  %v11976_v52 = vcombine.low %v2042_v21, %v2046_v22  ;;  %v11981_v25 = vcombine.high %v2044_v28, %v2048_v30  ;;  %3383 = vmatpush1.bf16.msra.mxu0 %v11972_v45  ;;  %v286_v21 = vld [vmem:[%s14256_s15 + $0xa0] sm:$0xf]  ;;  %v336_v22 = vld [vmem:[%s14256_s15 + $0xa4] sm:$0x1]  ;;  %v14506_v41 = vld [vmem:[%s18946_s1 + $0x2b0] sm:$0xff] }
  0x4b   : > { %v11980_v53 = vcombine.low %v2044_v28, %v2048_v30  ;;  %v11985_v54 = vcombine.high %v2050_v36, %v2054_v37  ;;  %v11984_v55 = vcombine.low %v2050_v36, %v2054_v37  ;;  %v647_v56 = vshrl.u32 %v283_v42, 16  ;;  %2678 = vmatprep.subr.bf16.mxu1 %v11977_v46  ;;  %v14489_v28 = vld [vmem:[%s18946_s1 + $0x280] sm:$0xff] }
  0x4c   : > { %1725 = vrot.lane.b32.xlu0 %v11874_v43, %s14141_s25  ;;  %v630_v57 = vrot.slane %v629_v50, 4  ;;  %v640_v58 = vrot.slane %v639_v51, 4  ;;  %3384 = vmatprep.subr.bf16.mxu0 %v11981_v25  ;;  %v11989_v59 = vcombine.high %v14432_v47, %v14437_v49  ;;  %v650_v60 = vshll.u32 %v283_v42, 16  ;;  %v14494_v30 = vld [vmem:[%s18946_s1 + $0x2a0] sm:$0xff] }
  0x4d   : > { %2679 = vmatpush1.bf16.msra.mxu1 %v11976_v52  ;;  %v649_v61 = vrot.slane %v647_v56, 4  ;;  %v656_v62 = vshll.u32 %v284_v29, 16  ;;  %v660_v63 = vshrl.u32 %v284_v29, 16  ;;  %v666_v1 = vshll.u32 %v335_v48, 16  ;;  %v14515_v46 = vld [vmem:[%s18946_s1 + $0x2c0] sm:$0xff] }
  0x4e   : > { %v635_v4 = vsel %vm14307_vm2, %v630_v57, %v634_v40  ;;  %v645_v5 = vsel %vm14307_vm2, %v640_v58, %v644_v44  ;;  %2680 = vmatprep.subr.bf16.mxu1 %v11985_v54  ;;  %v652_v6 = vrot.slane %v650_v60, 5  ;;  %3385 = vmatpush1.bf16.msra.mxu0 %v11980_v53  ;;  %v11988_v18 = vcombine.low %v14432_v47, %v14437_v49  ;;  %v14501_v40 = vld [vmem:[%s18946_s1 + $0x290] sm:$0xff]  ;;  %v14520_v47 = vld [vmem:[%s18946_s1 + $0x2e0] sm:$0xff]  ;;  %v287_v49 = vld [vmem:[%s14256_s15 + $0xa8] sm:$0xf] }
  0x4f   : > { %v11875_v10 = vcombine.low %v635_v4, %v645_v5  ;;  %v658_v11 = vrot.slane %v656_v62, 5  ;;  %v662_v12 = vrot.slane %v660_v63, 4  ;;  %3386 = vmatprep.subr.bf16.mxu0 %v11989_v59  ;;  %v668_v17 = vrot.slane %v666_v1, 5  ;;  %v288_v29 = vld [vmem:[%s14256_s15 + $0xac] sm:$0xf]  ;;  %v14538_v60 = vld [vmem:[%s18946_s1 + $0x2d0] sm:$0xff] }
  0x50   : > { %v653_v16 = vor.u32 %v652_v6, %v649_v61  ;;  %v11993_v19 = vcombine.high %v2058_v2, %v2062_v3  ;;  %v11992_v24 = vcombine.low %v2058_v2, %v2062_v3  ;;  %v11997_v26 = vcombine.high %v2060_v7, %v2064_v8  ;;  %v14543_v61 = vld [vmem:[%s18946_s1 + $0x2f0] sm:$0xff]  ;;  %v1126_v4 = vld [vmem:[%s14256_s15] sm:$0xe] }
  0x51   : > { %1727 = vrot.lane.b32.xlu1 %v11875_v10, %s14141_s25  ;;  %2681 = vmatpush1.bf16.msra.mxu1 %v11984_v55  ;;  %v663_v23 = vor.u32 %v662_v12, %v658_v11  ;;  %v671_v27 = vshrl.u32 %v285_v9, 16  ;;  %v11996_v32 = vcombine.low %v2060_v7, %v2064_v8  ;;  %v12001_v35 = vcombine.high %v14464_v13, %v14469_v14  ;;  %v337_v62 = vld [vmem:[%s14256_s15 + $0xb0] sm:$0x1] }
  0x52   : > { %v654_v31 = vrot.slane %v653_v16, 4  ;;  %2682 = vmatprep.subr.bf16.mxu1 %v11993_v19  ;;  %3387 = vmatpush1.bf16.msra.mxu0 %v11988_v18  ;;  %v674_v38 = vshll.u32 %v285_v9, 16  ;;  %v680_v39 = vshll.u32 %v286_v21, 16  ;;  %v12005_v43 = vcombine.high %v14474_v15, %v14481_v20  ;;  %v14557_v9 = vld [vmem:[%s18946_s1 + $0x8] sm:$0xff]  ;;  %v289_v19 = vld [vmem:[%s14256_s15 + $0xb4] sm:$0xf] }
  0x53   : > { %v664_v36 = vrot.slane %v663_v23, 4  ;;  %v673_v37 = vrot.slane %v671_v27, 4  ;;  %3388 = vmatprep.subr.bf16.mxu0 %v11997_v26  ;;  %v684_v44 = vshrl.u32 %v286_v21, 16  ;;  %v690_v45 = vshll.u32 %v336_v22, 16  ;;  %v14566_v18 = vld [vmem:[%s18946_s1 + $0x28] sm:$0xff] }
  0x54   : > { %v659_v42 = vsel %vm14307_vm2, %v654_v31, %v658_v11  ;;  %v12000_v51 = vcombine.low %v14464_v13, %v14469_v14  ;;  %v676_v52 = vrot.slane %v674_v38, 5  ;;  %v682_v25 = vrot.slane %v680_v39, 5  ;;  %v290_v26 = vld [vmem:[%s14256_s15 + $0xb8] sm:$0xf]  ;;  %v338_v27 = vld [vmem:[%s14256_s15 + $0xbc] sm:$0x1] }
  0x55   : > { %v669_v50 = vsel %vm14307_vm2, %v664_v36, %v668_v17  ;;  %2683 = vmatpush1.bf16.msra.mxu1 %v11992_v24  ;;  %v1262_v48 = vrot.slane %v14281_v34, 5  ;;  %v686_v54 = vrot.slane %v684_v44, 4  ;;  %v12009_v55 = vcombine.high %v14489_v28, %v14494_v30 }
  0x56   : > { %v11876_v53 = vcombine.low %v659_v42, %v669_v50  ;;  %2684 = vmatprep.subr.bf16.mxu1 %v12001_v35  ;;  %3389 = vmatpush1.bf16.msra.mxu0 %v11996_v32  ;;  %v677_v56 = vor.u32 %v676_v52, %v673_v37  ;;  %v692_v57 = vrot.slane %v690_v45, 5  ;;  %v12004_v58 = vcombine.low %v14474_v15, %v14481_v20 }
  0x57   : > { %v12008_v59 = vcombine.low %v14489_v28, %v14494_v30  ;;  %3390 = vmatprep.subr.bf16.mxu0 %v12005_v43  ;;  %v687_v63 = vor.u32 %v686_v54, %v682_v25  ;;  %v12013_v1 = vcombine.high %v14501_v40, %v14506_v41  ;;  %v12012_v2 = vcombine.low %v14501_v40, %v14506_v41 }
  0x58   : > { %1729 = vrot.lane.b32.xlu0 %v11876_v53, %s14141_s25  ;;  %v695_v3 = vshrl.u32 %v287_v49, 16  ;;  %v678_v5 = vrot.slane %v677_v56, 4  ;;  %v12017_v6 = vcombine.high %v14515_v46, %v14520_v47  ;;  %v698_v7 = vshll.u32 %v287_v49, 16 }
  0x59   : > { %2685 = vmatpush1.bf16.msra.mxu1 %v12000_v51  ;;  %v704_v8 = vshll.u32 %v288_v29, 16  ;;  %v688_v10 = vrot.slane %v687_v63, 4  ;;  %v708_v12 = vshrl.u32 %v288_v29, 16  ;;  %v714_v13 = vshll.u32 %v337_v62, 16 }
  0x5a   : > { %2686 = vmatprep.subr.bf16.mxu1 %v12009_v55  ;;  %v697_v11 = vrot.slane %v695_v3, 4  ;;  %v683_v14 = vsel %vm14307_vm2, %v678_v5, %v682_v25  ;;  %3391 = vmatpush1.bf16.msra.mxu0 %v12004_v58  ;;  %v12016_v15 = vcombine.low %v14515_v46, %v14520_v47  ;;  %v700_v16 = vrot.slane %v698_v7, 5  ;;  %v291_v46 = vld [vmem:[%s14256_s15 + $0xc0] sm:$0xf]  ;;  %v292_v47 = vld [vmem:[%s14256_s15 + $0xc4] sm:$0xf] }
  0x5b   : > { %v706_v17 = vrot.slane %v704_v8, 5  ;;  %v693_v20 = vsel %vm14307_vm2, %v688_v10, %v692_v57  ;;  %3392 = vmatprep.subr.bf16.mxu0 %v12013_v1  ;;  %v12021_v21 = vcombine.high %v14538_v60, %v14543_v61  ;;  %v710_v22 = vrot.slane %v708_v12, 4  ;;  %v339_v57 = vld [vmem:[%s14256_s15 + $0xc8] sm:$0x1]  ;;  %v293_v1 = vld [vmem:[%s14256_s15 + $0xcc] sm:$0xf] }
  0x5c   : > { %v716_v23 = vrot.slane %v714_v13, 5  ;;  %v19269_v24 = vmov 0  ;;  %v11877_v28 = vcombine.low %v683_v14, %v693_v20  ;;  %v701_v30 = vor.u32 %v700_v16, %v697_v11  ;;  %v340_v7 = vld [vmem:[%s14256_s15 + $0xd4] sm:$0x1] }
  0x5d   : > { %v19270_v24 = vsel %vm14575_vm6, 4294967295, %v19269_v24  ;;  %2687 = vmatpush1.bf16.msra.mxu1 %v12008_v59  ;;  %v11800_v31 = vrot.slane %v1126_v4, 9  ;;  %v1259_v32 = vrot.slane %v14278_v33, 5  ;;  %v711_v35 = vor.u32 %v710_v22, %v706_v17 }
  0x5e   : > { %19271 = vst [vmem:[#allocation5_spill] sm:$0xff] %v19270_v24  ;;  %2688 = vmatprep.subr.bf16.mxu1 %v12017_v6  ;;  %v12020_v36 = vcombine.low %v14538_v60, %v14543_v61  ;;  %v11931_v37 = vcombine.high %v14557_v9, %v14566_v18  ;;  %v719_v38 = vshrl.u32 %v289_v19, 16  ;;  %1731 = vrot.lane.b32.xlu1 %v11877_v28, %s14141_s25  ;;  %v702_v39 = vrot.slane %v701_v30, 4  ;;  %v294_v6 = vld [vmem:[%s14256_s15 + $0xd0] sm:$0xf] }
  0x5f   : > { %3393 = vmatpush1.bf16.msra.mxu0 %v12012_v2  ;;  %v1260_v40 = vsel %vm14575_vm6, %v11800_v31, %v1259_v32  ;;  %v1261_v41 = vrot.slane %v1259_v32, 4  ;;  %v722_v33 = vshll.u32 %v289_v19, 16  ;;  %v712_v42 = vrot.slane %v711_v35, 4  ;;  %v295_v28 = vld [vmem:[%s14256_s15 + $0xd8] sm:$0xf] }
  0x60   : > { %3394 = vmatprep.subr.bf16.mxu0 %v12021_v21  ;;  %v721_v43 = vrot.slane %v719_v38, 4  ;;  %v728_v44 = vshll.u32 %v290_v26, 16  ;;  %v732_v45 = vshrl.u32 %v290_v26, 16  ;;  %v707_v49 = vsel %vm14307_vm2, %v702_v39, %v706_v17 }
  0x61   : > { %2689 = vmatpush1.bf16.msra.mxu1 %v12016_v15  ;;  %v1263_v50 = vsel %vm14575_vm6, %v1261_v41, %v1262_v48  ;;  %v724_v51 = vrot.slane %v722_v33, 5  ;;  %v738_v52 = vshll.u32 %v338_v27, 16  ;;  %v717_v25 = vsel %vm14307_vm2, %v712_v42, %v716_v23 }
  0x62   : > { %v14599_v29 = vcombine.low %v1260_v40, %v1263_v50  ;;  %3019 = vmatprep.subr.bf16.mxu1 %v11931_v37  ;;  %v730_v53 = vrot.slane %v728_v44, 5  ;;  %v734_v54 = vrot.slane %v732_v45, 4  ;;  %v11878_v55 = vcombine.low %v707_v49, %v717_v25  ;;  %v296_v37 = vld [vmem:[%s14256_s15 + $0xdc] sm:$0xf]  ;;  %v341_v44 = vld [vmem:[%s14256_s15 + $0xe0] sm:$0x1] }
  0x63   : > { %3395 = vmatpush1.bf16.msra.mxu0 %v12020_v36  ;;  %v725_v56 = vor.u32 %v724_v51, %v721_v43  ;;  %v740_v48 = vrot.slane %v738_v52, 5  ;;  %v743_v59 = vshrl.u32 %v291_v46, 16  ;;  %v746_v60 = vshll.u32 %v291_v46, 16  ;;  %v297_v52 = vld [vmem:[%s14256_s15 + $0xe4] sm:$0xf] }
  0x64   : > { %12024 = vmatprep.mubr.msk.bf16.mxu1 %vm1865_vm5, %v14599_v29  ;;  %12088 = vmatprep.mubr.msk.bf16.mxu0 %vm1865_vm5, %v14599_v29  ;;  %v735_v34 = vor.u32 %v734_v54, %v730_v53  ;;  %v752_v61 = vshll.u32 %v292_v47, 16  ;;  %v756_v63 = vshrl.u32 %v292_v47, 16  ;;  %v762_v11 = vshll.u32 %v339_v57, 16  ;;  %v298_v25 = vld [vmem:[%s14256_s15 + $0xe8] sm:$0xf] }
  0x65   : > { %1733 = vrot.lane.b32.xlu0 %v11878_v55, %s14141_s25  ;;  %v726_v58 = vrot.slane %v725_v56, 4  ;;  %v745_v3 = vrot.slane %v743_v59, 4  ;;  %v748_v4 = vrot.slane %v746_v60, 5  ;;  %v767_v17 = vshrl.u32 %v293_v1, 16  ;;  %v342_v57 = vld [vmem:[%s14256_s15 + $0xec] sm:$0x1] }
  0x66   : > { %v736_v62 = vrot.slane %v735_v34, 4  ;;  %v754_v5 = vrot.slane %v752_v61, 5  ;;  %v758_v10 = vrot.slane %v756_v63, 4  ;;  %v764_v15 = vrot.slane %v762_v11, 5 }
  0x67   : > { %v731_v2 = vsel %vm14307_vm2, %v726_v58, %v730_v53  ;;  %v749_v13 = vor.u32 %v748_v4, %v745_v3  ;;  %v770_v19 = vshll.u32 %v293_v1, 16  ;;  %v776_v21 = vshll.u32 %v294_v6, 16 }
  0x68   : > { %v741_v8 = vsel %vm14307_vm2, %v736_v62, %v740_v48  ;;  %v759_v14 = vor.u32 %v758_v10, %v754_v5  ;;  %v780_v22 = vshrl.u32 %v294_v6, 16  ;;  %v786_v23 = vshll.u32 %v340_v7, 16 }
  0x69   : > { %v11879_v12 = vcombine.low %v731_v2, %v741_v8  ;;  %v750_v16 = vrot.slane %v749_v13, 4  ;;  %v769_v27 = vrot.slane %v767_v17, 4  ;;  %v772_v31 = vrot.slane %v770_v19, 5  ;;  %v300_v13 = vld [vmem:[%s14256_s15 + $0xf4] sm:$0xf] }
  0x6a   : > { %v760_v20 = vrot.slane %v759_v14, 4  ;;  %v778_v32 = vrot.slane %v776_v21, 5  ;;  %v782_v35 = vrot.slane %v780_v22, 4  ;;  %v788_v40 = vrot.slane %v786_v23, 5  ;;  %v1127_v17 = vld [vmem:[%s14256_s15 + $0xc] sm:$0xe] }
  0x6b   : > { %1735 = vrot.lane.b32.xlu1 %v11879_v12, %s14141_s25  ;;  %v755_v26 = vsel %vm14307_vm2, %v750_v16, %v754_v5  ;;  %v773_v38 = vor.u32 %v772_v31, %v769_v27  ;;  %v791_v42 = vshrl.u32 %v295_v28, 16  ;;  %v794_v43 = vshll.u32 %v295_v28, 16  ;;  %v299_v12 = vld [vmem:[%s14256_s15 + $0xf0] sm:$0xf]  ;;  %v343_v19 = vld [vmem:[%s14256_s15 + $0xf8] sm:$0x1] }
  0x6c   : > { %v765_v30 = vsel %vm14307_vm2, %v760_v20, %v764_v15  ;;  %v783_v39 = vor.u32 %v782_v35, %v778_v32  ;;  %v800_v45 = vshll.u32 %v296_v37, 16  ;;  %v804_v46 = vshrl.u32 %v296_v37, 16  ;;  %v301_v27 = vld [vmem:[%s14256_s15 + $0xfc] sm:$0xf]  ;;  %v14644_v35 = vld [vmem:[%s14256_s15 + $0x10] sm:$0xf] }
  0x6d   : > { %v11880_v36 = vcombine.low %v755_v26, %v765_v30  ;;  %v774_v41 = vrot.slane %v773_v38, 4  ;;  %v793_v50 = vrot.slane %v791_v42, 4  ;;  %v796_v51 = vrot.slane %v794_v43, 5  ;;  %v14059_v42 = vld [vmem:[%s14256_s15 + $0x14] sm:$0x1] }
  0x6e   : > { %v784_v33 = vrot.slane %v783_v39, 4  ;;  %v802_v54 = vrot.slane %v800_v45, 5  ;;  %v806_v55 = vrot.slane %v804_v46, 4  ;;  %v810_v34 = vshll.u32 %v341_v44, 16  ;;  %v344_v46 = vld [vmem:[%s14256_s15 + $0x104] sm:$0x1] }
  0x6f   : > { %1737 = vrot.lane.b32.xlu0 %v11880_v36, %s14141_s25  ;;  %v779_v47 = vsel %vm14307_vm2, %v774_v41, %v778_v32  ;;  %v797_v56 = vor.u32 %v796_v51, %v793_v50  ;;  %v815_v60 = vshrl.u32 %v297_v52, 16  ;;  %v818_v61 = vshll.u32 %v297_v52, 16 }
  0x70   : > { %v789_v49 = vsel %vm14307_vm2, %v784_v33, %v788_v40  ;;  %v807_v48 = vor.u32 %v806_v55, %v802_v54  ;;  %v812_v59 = vrot.slane %v810_v34, 5  ;;  %v824_v63 = vshll.u32 %v298_v25, 16  ;;  %v302_v33 = vld [vmem:[%s14256_s15 + $0x100] sm:$0xf] }
  0x71   : > { %v11881_v53 = vcombine.low %v779_v47, %v789_v49  ;;  %v798_v58 = vrot.slane %v797_v56, 4  ;;  %v817_v2 = vrot.slane %v815_v60, 4  ;;  %v820_v3 = vrot.slane %v818_v61, 5  ;;  %v1128_v61 = vld [vmem:[%s14256_s15 + $0x18] sm:$0xe] }
  0x72   : > { %v808_v62 = vrot.slane %v807_v48, 4  ;;  %v828_v4 = vshrl.u32 %v298_v25, 16  ;;  %v826_v6 = vrot.slane %v824_v63, 5  ;;  %v834_v7 = vshll.u32 %v342_v57, 16  ;;  %v304_v57 = vld [vmem:[%s14256_s15 + $0x10c] sm:$0xf] }
  0x73   : > { %1739 = vrot.lane.b32.xlu1 %v11881_v53, %s14141_s25  ;;  %v803_v1 = vsel %vm14307_vm2, %v798_v58, %v802_v54  ;;  %v821_v10 = vor.u32 %v820_v3, %v817_v2  ;;  %v839_v20 = vshrl.u32 %v299_v12, 16  ;;  %v842_v21 = vshll.u32 %v299_v12, 16  ;;  %v303_v54 = vld [vmem:[%s14256_s15 + $0x108] sm:$0xf]  ;;  %v14060_v58 = vld [vmem:[%s14256_s15] sm:$0xf] }
  0x74   : > { %v813_v5 = vsel %vm14307_vm2, %v808_v62, %v812_v59  ;;  %v830_v11 = vrot.slane %v828_v4, 4  ;;  %v836_v16 = vrot.slane %v834_v7, 5  ;;  %v848_v22 = vshll.u32 %v300_v13, 16  ;;  %v14061_v59 = vld [vmem:[%s14256_s15 + $0x4] sm:$0xf] }
  0x75   : > { %v11882_v8 = vcombine.low %v803_v1, %v813_v5  ;;  %v822_v14 = vrot.slane %v821_v10, 4  ;;  %v841_v28 = vrot.slane %v839_v20, 4  ;;  %v844_v30 = vrot.slane %v842_v21, 5  ;;  %v14062_v2 = vld [vmem:[%s14256_s15 + $0x20] sm:$0x1] }
  0x76   : > { %v831_v15 = vor.u32 %v830_v11, %v826_v6  ;;  %v850_v31 = vrot.slane %v848_v22, 5  ;;  %v852_v32 = vshrl.u32 %v300_v13, 16  ;;  %v1266_v36 = vrot.slane %v14644_v35, 5  ;;  %v14662_v4 = vld [vmem:[%s14256_s15 + $0x1c] sm:$0xf] }
  0x77   : > { %1741 = vrot.lane.b32.xlu0 %v11882_v8, %s14141_s25  ;;  %v827_v23 = vsel %vm14307_vm2, %v822_v14, %v826_v6  ;;  %v858_v38 = vshll.u32 %v343_v19, 16  ;;  %v845_v40 = vor.u32 %v844_v30, %v841_v28  ;;  %v1269_v43 = vrot.slane %v14059_v42, 5  ;;  %v14668_v8 = vld [vmem:[%s14256_s15 + $0x2c] sm:$0x1]  ;;  %v345_v20 = vld [vmem:[%s14256_s15 + $0x110] sm:$0x1] }
  0x78   : > { %v832_v26 = vrot.slane %v831_v15, 4  ;;  %v854_v41 = vrot.slane %v852_v32, 4  ;;  %v11801_v44 = vrot.slane %v1127_v17, 9  ;;  %v863_v50 = vshrl.u32 %v301_v27, 16  ;;  %v14680_v28 = vld [vmem:[%s18946_s1 + $0x48] sm:$0xff] }
  0x79   : > { %v860_v45 = vrot.slane %v858_v38, 5  ;;  %v846_v47 = vrot.slane %v845_v40, 4  ;;  %v866_v51 = vshll.u32 %v301_v27, 16  ;;  %v1268_v52 = vrot.slane %v1266_v36, 4  ;;  %v14685_v30 = vld [vmem:[%s18946_s1 + $0x68] sm:$0xff] }
  0x7a   : > { %v837_v37 = vsel %vm14307_vm2, %v832_v26, %v836_v16  ;;  %v855_v49 = vor.u32 %v854_v41, %v850_v31  ;;  %v872_v25 = vshll.u32 %v302_v33, 16  ;;  %v876_v53 = vshrl.u32 %v302_v33, 16  ;;  %v305_v41 = vld [vmem:[%s14256_s15 + $0x114] sm:$0xf]  ;;  %v14694_v33 = vld [vmem:[%s14256_s15 + $0x38] sm:$0x1] }
  0x7b   : > { %v11883_v39 = vcombine.low %v827_v23, %v837_v37  ;;  %v851_v55 = vsel %vm14307_vm2, %v846_v47, %v850_v31  ;;  %v865_v34 = vrot.slane %v863_v50, 4  ;;  %v868_v48 = vrot.slane %v866_v51, 5  ;;  %v14066_v47 = vld [vmem:[%s14256_s15 + $0xc] sm:$0xf] }
  0x7c   : > { %v856_v56 = vrot.slane %v855_v49, 4  ;;  %v11832_v60 = vcombine.low %v14060_v58, %v14061_v59  ;;  %v874_v62 = vrot.slane %v872_v25, 5  ;;  %v878_v63 = vrot.slane %v876_v53, 4  ;;  %v14707_v51 = vld [vmem:[%s18946_s1 + $0x88] sm:$0xff]  ;;  %v346_v59 = vld [vmem:[%s14256_s15 + $0x11c] sm:$0x1] }
  0x7d   : > { %1743 = vrot.lane.b32.xlu1 %v11883_v39, %s14141_s25  ;;  %v882_v1 = vshll.u32 %v344_v46, 16  ;;  %v1276_v3 = vrot.slane %v14062_v2, 5  ;;  %v1273_v5 = vrot.slane %v14662_v4, 5  ;;  %v869_v7 = vor.u32 %v868_v48, %v865_v34  ;;  %v306_v46 = vld [vmem:[%s14256_s15 + $0x118] sm:$0xf] }
  0x7e   : > { %v861_v6 = vsel %vm14307_vm2, %v856_v56, %v860_v45  ;;  %v1283_v10 = vrot.slane %v14668_v8, 5  ;;  %v879_v12 = vor.u32 %v878_v63, %v874_v62  ;;  %v1267_v14 = vsel %vm14575_vm6, %v11801_v44, %v1266_v36  ;;  %v1129_v36 = vld [vmem:[%s14256_s15 + $0x24] sm:$0xe]  ;;  %v14725_v34 = vld [vmem:[%s14256_s15 + $0x28] sm:$0xf] }
  0x7f   : > { %v11884_v11 = vcombine.low %v851_v55, %v861_v6  ;;  %v884_v13 = vrot.slane %v882_v1, 5  ;;  %v1270_v15 = vsel %vm14575_vm6, %v1268_v52, %v1269_v43  ;;  %v870_v16 = vrot.slane %v869_v7, 4  ;;  %v14712_v52 = vld [vmem:[%s18946_s1 + $0xa8] sm:$0xff]  ;;  %v308_v7 = vld [vmem:[%s14256_s15 + $0x124] sm:$0xf] }
  0x80   : > { %v887_v17 = vshrl.u32 %v303_v54, 16  ;;  %v880_v19 = vrot.slane %v879_v12, 4  ;;  %v890_v21 = vshll.u32 %v303_v54, 16  ;;  %v896_v22 = vshll.u32 %v304_v57, 16 }
  0x81   : > { %1745 = vrot.lane.b32.xlu0 %v11884_v11, %s14141_s25  ;;  %v900_v23 = vshrl.u32 %v304_v57, 16  ;;  %v11802_v26 = vrot.slane %v1128_v61, 9  ;;  %v1275_v27 = vrot.slane %v1273_v5, 4  ;;  %v875_v31 = vsel %vm14307_vm2, %v870_v16, %v874_v62 }
  0x82   : > { %v889_v32 = vrot.slane %v887_v17, 4  ;;  %v885_v37 = vsel %vm14307_vm2, %v880_v19, %v884_v13  ;;  %v892_v38 = vrot.slane %v890_v21, 5  ;;  %v898_v39 = vrot.slane %v896_v22, 5 }
  0x83   : > { %v902_v40 = vrot.slane %v900_v23, 4  ;;  %v1290_v42 = vrot.slane %v14694_v33, 5  ;;  %v11930_v43 = vcombine.low %v14557_v9, %v14566_v18  ;;  %v11885_v44 = vcombine.low %v875_v31, %v885_v37  ;;  %v14767_v37 = vld [vmem:[%s14256_s15 + $0x30] sm:$0xe] }
  0x84   : > { %v906_v45 = vshll.u32 %v345_v20, 16  ;;  %v11833_v49 = vcombine.low %v14066_v47, %v14644_v35  ;;  %v14702_v50 = vcombine.low %v1267_v14, %v1270_v15  ;;  %v893_v9 = vor.u32 %v892_v38, %v889_v32  ;;  %v14748_v14 = vld [vmem:[%s18946_s1 + $0xc8] sm:$0xff] }
  0x85   : > { %v903_v18 = vor.u32 %v902_v40, %v898_v39  ;;  %v1274_v53 = vsel %vm14575_vm6, %v11802_v26, %v1273_v5  ;;  %v1277_v35 = vsel %vm14575_vm6, %v1275_v27, %v1276_v3  ;;  %v11939_v54 = vcombine.high %v14680_v28, %v14685_v30  ;;  %1747 = vrot.lane.b32.xlu1 %v11885_v44, %s14141_s25  ;;  %v14753_v15 = vld [vmem:[%s18946_s1 + $0xe8] sm:$0xff]  ;;  %v14774_v44 = vld [vmem:[%s14256_s15 + $0x34] sm:$0xf] }
  0x86   : > { %v908_v55 = vrot.slane %v906_v45, 5  ;;  %v1280_v48 = vrot.slane %v14725_v34, 5  ;;  %v894_v57 = vrot.slane %v893_v9, 4  ;;  %v11938_v61 = vcombine.low %v14680_v28, %v14685_v30  ;;  %v347_v28 = vld [vmem:[%s14256_s15 + $0x128] sm:$0x1] }
  0x87   : > { %v904_v58 = vrot.slane %v903_v18, 4  ;;  %v11803_v62 = vrot.slane %v1129_v36, 9  ;;  %v911_v63 = vshrl.u32 %v305_v41, 16  ;;  %v914_v1 = vshll.u32 %v305_v41, 16  ;;  %v14069_v9 = vld [vmem:[%s14256_s15 + $0x18] sm:$0xf] }
  0x88   : > { %v899_v2 = vsel %vm14307_vm2, %v894_v57, %v898_v39  ;;  %v920_v5 = vshll.u32 %v306_v46, 16  ;;  %v924_v6 = vshrl.u32 %v306_v46, 16  ;;  %v11947_v12 = vcombine.high %v14707_v51, %v14712_v52 }
  0x89   : > { %v909_v3 = vsel %vm14307_vm2, %v904_v58, %v908_v55  ;;  %v913_v16 = vrot.slane %v911_v63, 4  ;;  %v916_v17 = vrot.slane %v914_v1, 5  ;;  %v1282_v19 = vrot.slane %v1280_v48, 4  ;;  %v14804_v63 = vld [vmem:[%s14256_s15 + $0x40] sm:$0xf] }
  0x8a   : > { %v11886_v13 = vcombine.low %v899_v2, %v909_v3  ;;  %v922_v20 = vrot.slane %v920_v5, 5  ;;  %v926_v21 = vrot.slane %v924_v6, 4  ;;  %v14755_v22 = vcombine.low %v1274_v53, %v1277_v35  ;;  %v14808_v2 = vld [vmem:[%s14256_s15 + $0x134] sm:$0x1] }
  0x8b   : > { %v1281_v23 = vsel %vm14575_vm6, %v11803_v62, %v1280_v48  ;;  %v917_v26 = vor.u32 %v916_v17, %v913_v16  ;;  %v930_v27 = vshll.u32 %v346_v59, 16  ;;  %v11946_v31 = vcombine.low %v14707_v51, %v14712_v52  ;;  %v14800_v59 = vld [vmem:[%s14256_s15 + $0x130] sm:$0xf] }
  0x8c   : > { %1749 = vrot.lane.b32.xlu0 %v11886_v13, %s14141_s25  ;;  %v927_v32 = vor.u32 %v926_v21, %v922_v20  ;;  %v944_v41 = vshll.u32 %v308_v7, 16  ;;  %v1287_v45 = vrot.slane %v14774_v44, 5  ;;  %v11955_v46 = vcombine.high %v14748_v14, %v14753_v15 }
  0x8d   : > { %v918_v38 = vrot.slane %v917_v26, 4  ;;  %v932_v39 = vrot.slane %v930_v27, 5  ;;  %v11834_v18 = vcombine.low %v14069_v9, %v14662_v4  ;;  %v948_v35 = vshrl.u32 %v308_v7, 16 }
  0x8e   : > { %v928_v47 = vrot.slane %v927_v32, 4  ;;  %v946_v52 = vrot.slane %v944_v41, 5  ;;  %v11954_v4 = vcombine.low %v14748_v14, %v14753_v15  ;;  %v1289_v62 = vrot.slane %v1287_v45, 4 }
  0x8f   : > { %v1294_v1 = vrot.slane %v14804_v63, 5  ;;  %v968_v15 = vshll.u32 %v14800_v59, 16  ;;  %v972_v16 = vshrl.u32 %v14800_v59, 16  ;;  %vm10868_vm0 = vcmask 1044484  }
  0x90   : > { %v933_v53 = vsel %vm14307_vm2, %v928_v47, %v932_v39  ;;  %v14840_v39 = vld [vmem:[%s14256_s15 + $0x13c] sm:$0xf]  ;;  %vm10871_vm1 = vcmask 1045509   ;;  %vm10877_vm3 = vcmask 1047559  }
  0x91   : > { %v970_v26 = vrot.slane %v968_v15, 5  ;;  %v974_v27 = vrot.slane %v972_v16, 4  ;;  %v1296_v33 = vrot.slane %v1294_v1, 4  ;;  %v14884_v16 = vld [vmem:[%s14256_s15 + $0x5c] sm:$0x1] }
  0x95   : > { %v1706_v25 = vpop.permute.xlu0 %1705 }
  0x96   : > { %v14722_v56 = vsel %vm1865_vm5, %v11832_v60, %v1706_v25  ;;  %v307_v60 = vld [vmem:[%s14256_s15 + $0x120] sm:$0xf]  ;;  %v1131_v25 = vld [vmem:[%s14256_s15 + $0x3c] sm:$0xe] }
  0x97   : > { %2699 = vmatmul.mubr.bf16.vlgmr.msra.gmra.mrb[0].mxu1 %v14722_v56  ;;  %3405 = vmatmul.mubr.bf16.vlgmr.msra.gmra.mrb[0].mxu0 %v14722_v56  ;;  %v935_v36 = vshrl.u32 %v307_v60, 16  ;;  %v938_v40 = vshll.u32 %v307_v60, 16  ;;  %v950_v60 = vrot.slane %v948_v35, 4  ;;  %v11805_v17 = vrot.slane %v1131_v25, 9  ;;  %v14859_v25 = vld [vmem:[%s14256_s15 + $0x48] sm:$0xe] }
  0x98   : > { %3020 = vmatpush1.bf16.msra.mxu1 %v11930_v43  ;;  %12025 = vmatprep.mubr.msk.bf16.mxu1 %vm1865_vm5, %v14702_v50  ;;  %v1284_v43 = vsel %vm14575_vm6, %v1282_v19, %v1283_v10  ;;  %v14784_v10 = vld [vmem:[%s14256_s15 + $0x12c] sm:$0xf] }
  0x99   : > { %v1708_v11 = vpop.permute.xlu0 %1707  ;;  %12089 = vmatprep.mubr.msk.bf16.mxu0 %vm1865_vm5, %v14702_v50  ;;  %3021 = vmatprep.subr.bf16.mxu1 %v11939_v54  ;;  %v937_v8 = vrot.slane %v935_v36, 4  ;;  %v940_v51 = vrot.slane %v938_v40, 5  ;;  %v954_v54 = vshll.u32 %v347_v28, 16  ;;  %v14795_v48 = vcombine.low %v1281_v23, %v1284_v43  ;;  %v14071_v28 = vld [vmem:[%s14256_s15 + $0x44] sm:$0x1] }
  0x9a   : > { %v14762_v30 = vsel %vm1865_vm5, %v11833_v49, %v1708_v11  ;;  %v923_v49 = vsel %vm14307_vm2, %v918_v38, %v922_v20  ;;  %v959_v6 = vshrl.u32 %v14784_v10, 16  ;;  %v962_v7 = vshll.u32 %v14784_v10, 16  ;;  %v2027_v11 = vld [vmem:[%s18946_s1 + $0x108] sm:$0xff]  ;;  %v14837_v38 = vld [vmem:[%s14256_s15 + $0x138] sm:$0xf] }
  0x9b   : > { %v1710_v55 = vpop.permute.xlu1 %1709  ;;  %v11887_v57 = vcombine.low %v923_v49, %v933_v53  ;;  %v941_v58 = vor.u32 %v940_v51, %v937_v8  ;;  %v956_v5 = vrot.slane %v954_v54, 5  ;;  %v951_v14 = vor.u32 %v950_v60, %v946_v52  ;;  %v14072_v40 = vld [vmem:[%s14256_s15 + $0x24] sm:$0xf]  ;;  %v14851_v51 = vld [vmem:[%s14256_s15 + $0x140] sm:$0x1] }
  0x9c   : > { %3022 = vmatpush1.bf16.msra.mxu1 %v11938_v61  ;;  %v11804_v61 = vrot.slane %v14767_v37, 9  ;;  %v14820_v13 = vsel %vm1865_vm5, %v11834_v18, %v1710_v55  ;;  %v961_v20 = vrot.slane %v959_v6, 4  ;;  %v964_v23 = vrot.slane %v962_v7, 5 }
  0x9d   : > { %3023 = vmatprep.subr.bf16.mxu1 %v11947_v12  ;;  %1751 = vrot.lane.b32.xlu1 %v11887_v57, %s14141_s25  ;;  %v942_v3 = vrot.slane %v941_v58, 4  ;;  %v2031_v12 = vld [vmem:[%s18946_s1 + $0x128] sm:$0xff]  ;;  %v952_v21 = vrot.slane %v951_v14, 4  ;;  %v1291_v36 = vsel %vm14575_vm6, %v1289_v62, %v1290_v42  ;;  %v978_v37 = vshll.u32 %v14808_v2, 16  ;;  %v14074_v14 = vld [vmem:[%s14256_s15 + $0x50] sm:$0x1] }
  0x9e   : > { %v1288_v32 = vsel %vm14575_vm6, %v11804_v61, %v1287_v45  ;;  %v11835_v41 = vcombine.low %v14072_v40, %v14725_v34  ;;  %v11962_v43 = vcombine.low %v2027_v11, %v2031_v12  ;;  %v965_v47 = vor.u32 %v964_v23, %v961_v20  ;;  %v14870_v58 = vld [vmem:[%s14256_s15 + $0x4c] sm:$0xf]  ;;  %v14892_v23 = vld [vmem:[%s14256_s15 + $0x148] sm:$0xf] }
  0x9f   : > { %2709 = vmatmul.mubr.bf16.gmra.mrb[4].mxu1 %v14762_v30  ;;  %3415 = vmatmul.mubr.bf16.gmra.mrb[4].mxu0 %v14762_v30  ;;  %v947_v19 = vsel %vm14307_vm2, %v942_v3, %v946_v52  ;;  %v957_v42 = vsel %vm14307_vm2, %v952_v21, %v956_v5  ;;  %v975_v49 = vor.u32 %v974_v27, %v970_v26  ;;  %v980_v8 = vrot.slane %v978_v37, 5 }
  0xa0   : > { %12026 = vmatprep.mubr.msk.bf16.mxu1 %vm1865_vm5, %v14755_v22  ;;  %12090 = vmatprep.mubr.msk.bf16.mxu0 %vm1865_vm5, %v14755_v22  ;;  %v14853_v34 = vcombine.low %v1288_v32, %v1291_v36  ;;  %v1295_v52 = vsel %vm14575_vm6, %v11805_v17, %v1294_v1  ;;  %v11963_v9 = vcombine.high %v2027_v11, %v2031_v12  ;;  %v983_v18 = vshrl.u32 %v14837_v38, 16  ;;  %v14874_v1 = vld [vmem:[%s14256_s15 + $0x144] sm:$0xf]  ;;  %v14902_v32 = vld [vmem:[%s14256_s15 + $0x14c] sm:$0x1] }
  0xa1   : > { %3024 = vmatpush1.bf16.msra.mxu1 %v11946_v31  ;;  %v1297_v31 = vrot.slane %v14071_v28, 5  ;;  %v1712_v45 = vpop.permute.xlu1 %1711  ;;  %v966_v53 = vrot.slane %v965_v47, 4  ;;  %v976_v35 = vrot.slane %v975_v49, 4  ;;  %v986_v54 = vshll.u32 %v14837_v38, 16 }
  0xa2   : > { %3025 = vmatprep.subr.bf16.mxu1 %v11955_v46  ;;  %v11888_v46 = vcombine.low %v947_v19, %v957_v42  ;;  %v992_v55 = vshll.u32 %v14840_v39, 16  ;;  %v1301_v61 = vrot.slane %v14870_v58, 5  ;;  %v985_v62 = vrot.slane %v983_v18, 4  ;;  %v14076_v19 = vld [vmem:[%s14256_s15 + $0x30] sm:$0xf] }
  0xa3   : > { %v1298_v57 = vsel %vm14575_vm6, %v1296_v33, %v1297_v31  ;;  %v971_v60 = vsel %vm14307_vm2, %v966_v53, %v970_v26  ;;  %v981_v3 = vsel %vm14307_vm2, %v976_v35, %v980_v8  ;;  %v988_v5 = vrot.slane %v986_v54, 5  ;;  %v2035_v8 = vld [vmem:[%s18946_s1 + $0x148] sm:$0xff]  ;;  %v14923_v54 = vld [vmem:[%s14256_s15 + $0x58] sm:$0xf] }
  0xa4   : > { %1753 = vrot.lane.b32.xlu0 %v11888_v46, %s14141_s25  ;;  %v994_v6 = vrot.slane %v992_v55, 5  ;;  %v11889_v7 = vcombine.low %v971_v60, %v981_v3  ;;  %v996_v11 = vshrl.u32 %v14840_v39, 16  ;;  %v1002_v12 = vshll.u32 %v14851_v51, 16  ;;  %v14078_v60 = vld [vmem:[%s14256_s15 + $0x3c] sm:$0xf] }
  0xa5   : > { %3026 = vmatpush1.bf16.msra.mxu1 %v11954_v4  ;;  %v14865_v4 = vsel %vm1865_vm5, %v11835_v41, %v1712_v45  ;;  %v1304_v15 = vrot.slane %v14074_v14, 5  ;;  %v1311_v17 = vrot.slane %v14884_v16, 5  ;;  %v11836_v20 = vcombine.low %v14076_v19, %v14774_v44  ;;  %v1714_v26 = vpop.permute.xlu0 %1713  ;;  %v14080_v16 = vld [vmem:[%s14256_s15 + $0x48] sm:$0xf] }
  0xa6   : > { %3027 = vmatprep.subr.bf16.mxu1 %v11963_v9  ;;  %v989_v21 = vor.u32 %v988_v5, %v985_v62  ;;  %v14898_v27 = vcombine.low %v1295_v52, %v1298_v57  ;;  %v11806_v28 = vrot.slane %v14859_v25, 9  ;;  %v998_v31 = vrot.slane %v996_v11, 4  ;;  %1755 = vrot.lane.b32.xlu1 %v11889_v7, %s14141_s25  ;;  %v14919_v52 = vld [vmem:[%s14256_s15 + $0x150] sm:$0xf]  ;;  %v1133_v9 = vld [vmem:[%s14256_s15 + $0x54] sm:$0xe] }
  0xa7   : > { %2719 = vmatmul.mubr.bf16.gmra.mrb[8].mxu1 %v14820_v13  ;;  %3425 = vmatmul.mubr.bf16.gmra.mrb[8].mxu0 %v14820_v13  ;;  %v1303_v44 = vrot.slane %v1301_v61, 4  ;;  %v1007_v37 = vshrl.u32 %v14874_v1, 16  ;;  %v1010_v40 = vshll.u32 %v14874_v1, 16  ;;  %v1004_v33 = vrot.slane %v1002_v12, 5  ;;  %v2039_v57 = vld [vmem:[%s18946_s1 + $0x168] sm:$0xff] }
  0xa8   : > { %12027 = vmatprep.mubr.msk.bf16.mxu1 %vm1865_vm5, %v14795_v48  ;;  %12091 = vmatprep.mubr.msk.bf16.mxu0 %vm1865_vm5, %v14795_v48  ;;  %v990_v36 = vrot.slane %v989_v21, 4  ;;  %v999_v41 = vor.u32 %v998_v31, %v994_v6  ;;  %v1016_v42 = vshll.u32 %v14892_v23, 16  ;;  %v14910_v45 = vsel %vm1865_vm5, %v11836_v20, %v1714_v26  ;;  %v14930_v62 = vld [vmem:[%s14256_s15 + $0x154] sm:$0xf]  ;;  %v14943_v20 = vld [vmem:[%s14256_s15 + $0x158] sm:$0x1] }
  0xa9   : > { %3028 = vmatpush1.bf16.msra.mxu1 %v11962_v43  ;;  %v1020_v43 = vshrl.u32 %v14892_v23, 16  ;;  %v1009_v47 = vrot.slane %v1007_v37, 4  ;;  %v1026_v49 = vshll.u32 %v14902_v32, 16  ;;  %v1012_v25 = vrot.slane %v1010_v40, 5 }
  0xaa   : > { %v995_v46 = vsel %vm14307_vm2, %v990_v36, %v994_v6  ;;  %v1000_v18 = vrot.slane %v999_v41, 4  ;;  %v1018_v53 = vrot.slane %v1016_v42, 5  ;;  %v1308_v55 = vrot.slane %v14923_v54, 5 }
  0xab   : > { %v1022_v35 = vrot.slane %v1020_v43, 4  ;;  %v11837_v3 = vcombine.low %v14078_v60, %v14804_v63  ;;  %v1302_v5 = vsel %vm14575_vm6, %v11806_v28, %v1301_v61  ;;  %v1013_v7 = vor.u32 %v1012_v25, %v1009_v47  ;;  %v1716_v28 = vpop.permute.xlu1 %1715 }
  0xac   : > { %v1005_v6 = vsel %vm14307_vm2, %v1000_v18, %v1004_v33  ;;  %v1305_v11 = vsel %vm14575_vm6, %v1303_v44, %v1304_v15  ;;  %v1028_v19 = vrot.slane %v1026_v49, 5  ;;  %v11970_v61 = vcombine.low %v2035_v8, %v2039_v57  ;;  %v14956_v33 = vld [vmem:[%s14256_s15 + $0x15c] sm:$0xf]  ;;  %v14964_v49 = vld [vmem:[%s14256_s15 + $0x160] sm:$0xf] }
  0xad   : > { %v11890_v12 = vcombine.low %v995_v46, %v1005_v6  ;;  %v1023_v14 = vor.u32 %v1022_v35, %v1018_v53  ;;  %v1014_v63 = vrot.slane %v1013_v7, 4  ;;  %v11971_v21 = vcombine.high %v2035_v8, %v2039_v57  ;;  %v14971_v57 = vld [vmem:[%s14256_s15 + $0x68] sm:$0x1]  ;;  %v1134_v7 = vld [vmem:[%s14256_s15 + $0x60] sm:$0xe] }
  0xae   : > { %v1031_v26 = vshrl.u32 %v14919_v52, 16  ;;  %v11807_v15 = vrot.slane %v1133_v9, 9  ;;  %v1310_v31 = vrot.slane %v1308_v55, 4  ;;  %v1034_v36 = vshll.u32 %v14919_v52, 16 }
  0xaf   : > { %2729 = vmatmul.mubr.bf16.gmra.mrb[12].mxu1 %v14865_v4  ;;  %3435 = vmatmul.mubr.bf16.gmra.mrb[12].mxu0 %v14865_v4  ;;  %v1024_v44 = vrot.slane %v1023_v14, 4  ;;  %v1019_v37 = vsel %vm14307_vm2, %v1014_v63, %v1018_v53  ;;  %v1040_v41 = vshll.u32 %v14930_v62, 16  ;;  %v14958_v42 = vcombine.low %v1302_v5, %v1305_v11 }
  0xb0   : > { %12028 = vmatprep.mubr.msk.bf16.mxu1 %vm1865_vm5, %v14853_v34  ;;  %12092 = vmatprep.mubr.msk.bf16.mxu0 %vm1865_vm5, %v14853_v34  ;;  %v1033_v40 = vrot.slane %v1031_v26, 4  ;;  %v1036_v46 = vrot.slane %v1034_v36, 5  ;;  %v1044_v47 = vshrl.u32 %v14930_v62, 16  ;;  %v14967_v8 = vsel %vm1865_vm5, %v11837_v3, %v1716_v28  ;;  %v1718_v28 = vpop.permute.xlu0 %1717  ;;  %v15004_v36 = vld [vmem:[%s14256_s15 + $0x168] sm:$0xf] }
  0xb1   : > { %1757 = vrot.lane.b32.xlu0 %v11890_v12, %s14141_s25  ;;  %3029 = vmatprep.subr.bf16.mxu1 %v11971_v21  ;;  %v1029_v43 = vsel %vm14307_vm2, %v1024_v44, %v1028_v19  ;;  %v1042_v18 = vrot.slane %v1040_v41, 5  ;;  %v1050_v25 = vshll.u32 %v14943_v20, 16  ;;  %v1318_v60 = vrot.slane %v14971_v57, 5  ;;  %v14993_v19 = vld [vmem:[%s14256_s15 + $0x64] sm:$0xf] }
  0xb2   : > { %3030 = vmatpush1.bf16.msra.mxu1 %v11970_v61  ;;  %v11891_v9 = vcombine.low %v1019_v37, %v1029_v43  ;;  %v1037_v53 = vor.u32 %v1036_v46, %v1033_v40  ;;  %v1046_v35 = vrot.slane %v1044_v47, 4  ;;  %v1309_v5 = vsel %vm14575_vm6, %v11807_v15, %v1308_v55  ;;  %v14997_v61 = vld [vmem:[%s14256_s15 + $0x164] sm:$0x1]  ;;  %v15007_v37 = vld [vmem:[%s14256_s15 + $0x16c] sm:$0xf] }
  0xb3   : > { %v1312_v3 = vsel %vm14575_vm6, %v1310_v31, %v1311_v17  ;;  %v1052_v6 = vrot.slane %v1050_v25, 5  ;;  %v1055_v14 = vshrl.u32 %v14956_v33, 16  ;;  %v1058_v55 = vshll.u32 %v14956_v33, 16 }
  0xb4   : > { %1759 = vrot.lane.b32.xlu1 %v11891_v9, %s14141_s25  ;;  %v1038_v11 = vrot.slane %v1037_v53, 4  ;;  %v1047_v12 = vor.u32 %v1046_v35, %v1042_v18  ;;  %v11838_v17 = vcombine.low %v14080_v16, %v14870_v58  ;;  %v1315_v63 = vrot.slane %v14993_v19, 5 }
  0xb5   : > { %v1064_v21 = vshll.u32 %v14964_v49, 16  ;;  %v1068_v26 = vshrl.u32 %v14964_v49, 16  ;;  %v1057_v31 = vrot.slane %v1055_v14, 4  ;;  %v1060_v44 = vrot.slane %v1058_v55, 5  ;;  %v15020_v14 = vld [vmem:[%s14256_s15 + $0x170] sm:$0x1] }
  0xb6   : > { %v1043_v58 = vsel %vm14307_vm2, %v1038_v11, %v1042_v18  ;;  %v1048_v15 = vrot.slane %v1047_v12, 4  ;;  %v15009_v40 = vcombine.low %v1309_v5, %v1312_v3  ;;  %v11808_v46 = vrot.slane %v1134_v7, 9  ;;  %v14082_v11 = vld [vmem:[%s14256_s15 + $0x54] sm:$0xf]  ;;  %v1135_v7 = vld [vmem:[%s14256_s15 + $0x6c] sm:$0xe] }
  0xb7   : > { %2739 = vmatmul.mubr.bf16.gmra.mrb[16].mxu1 %v14910_v45  ;;  %3445 = vmatmul.mubr.bf16.gmra.mrb[16].mxu0 %v14910_v45  ;;  %v1066_v41 = vrot.slane %v1064_v21, 5  ;;  %v1070_v43 = vrot.slane %v1068_v26, 4  ;;  %v1061_v9 = vor.u32 %v1060_v44, %v1057_v31  ;;  %v1074_v18 = vshll.u32 %v14997_v61, 16  ;;  %v15032_v21 = vld [vmem:[%s14256_s15 + $0x70] sm:$0xf]  ;;  %v2047_v31 = vld [vmem:[%s18946_s1 + $0x1a8] sm:$0xff] }
  0xb8   : > { %12029 = vmatprep.mubr.msk.bf16.mxu1 %vm1865_vm5, %v14898_v27  ;;  %12093 = vmatprep.mubr.msk.bf16.mxu0 %vm1865_vm5, %v14898_v27  ;;  %19272 = vst [vmem:[#allocation6_spill] sm:$0xff] %v15009_v40  ;;  %v1053_v47 = vsel %vm14307_vm2, %v1048_v15, %v1052_v6  ;;  %v15015_v25 = vsel %vm1865_vm5, %v11838_v17, %v1718_v28  ;;  %v1317_v53 = vrot.slane %v1315_v63, 4  ;;  %v1079_v55 = vshrl.u32 %v15004_v36, 16  ;;  %v2043_v15 = vld [vmem:[%s18946_s1 + $0x188] sm:$0xff] }
  0xb9   : > { %19273 = vst [vmem:[#allocation7_spill] sm:$0xff] %v15015_v25  ;;  %v11892_v35 = vcombine.low %v1043_v58, %v1053_v47  ;;  %v1071_v57 = vor.u32 %v1070_v43, %v1066_v41  ;;  %v11839_v5 = vcombine.low %v14082_v11, %v14923_v54  ;;  %v1062_v3 = vrot.slane %v1061_v9, 4  ;;  %v1720_v47 = vpop.permute.xlu1 %1719 }
  0xba   : > { %v1076_v12 = vrot.slane %v1074_v18, 5  ;;  %v1082_v16 = vshll.u32 %v15004_v36, 16  ;;  %v1088_v17 = vshll.u32 %v15007_v37, 16  ;;  %v1316_v54 = vsel %vm14575_vm6, %v11808_v46, %v1315_v63  ;;  %v15053_v46 = vld [vmem:[%s14256_s15 + $0x174] sm:$0xf] }
  0xbb   : > { %1761 = vrot.lane.b32.xlu0 %v11892_v35, %s14141_s25  ;;  %v1072_v6 = vrot.slane %v1071_v57, 4  ;;  %v1322_v26 = vrot.slane %v15032_v21, 5  ;;  %v1067_v28 = vsel %vm14307_vm2, %v1062_v3, %v1066_v41  ;;  %v1092_v58 = vshrl.u32 %v15007_v37, 16  ;;  %v15056_v57 = vld [vmem:[%s14256_s15 + $0x178] sm:$0xf] }
  0xbc   : > { %v1319_v63 = vsel %vm14575_vm6, %v1317_v53, %v1318_v60  ;;  %v1081_v41 = vrot.slane %v1079_v55, 4  ;;  %v1084_v43 = vrot.slane %v1082_v16, 5  ;;  %v1090_v18 = vrot.slane %v1088_v17, 5 }
  0xbd   : > { %v1077_v44 = vsel %vm14307_vm2, %v1072_v6, %v1076_v12  ;;  %v1094_v35 = vrot.slane %v1092_v58, 4  ;;  %v1098_v3 = vshll.u32 %v15020_v14, 16  ;;  %v15060_v60 = vcombine.low %v1316_v54, %v1319_v63 }
  0xbe   : > { %v11893_v9 = vcombine.low %v1067_v28, %v1077_v44  ;;  %v1085_v11 = vor.u32 %v1084_v43, %v1081_v41  ;;  %v11809_v53 = vrot.slane %v1135_v7, 9  ;;  %v15064_v6 = vsel %vm1865_vm5, %v11839_v5, %v1720_v47  ;;  %v15067_v28 = vld [vmem:[%s14256_s15 + $0x17c] sm:$0x1]  ;;  %v14085_v43 = vld [vmem:[%s14256_s15 + $0x60] sm:$0xf] }
  0xbf   : > { %2749 = vmatmul.mubr.bf16.gmra.mrb[20].mxu1 %v14967_v8  ;;  %3455 = vmatmul.mubr.bf16.gmra.mrb[20].mxu0 %v14967_v8  ;;  %19274 = vst [vmem:[#allocation8_spill] sm:$0xff] %v15060_v60  ;;  %v1095_v12 = vor.u32 %v1094_v35, %v1090_v18  ;;  %v1100_v16 = vrot.slane %v1098_v3, 5  ;;  %v11979_v17 = vcombine.high %v2043_v15, %v2047_v31  ;;  %v1324_v58 = vrot.slane %v1322_v26, 4 }
  0xc0   : > { %12030 = vmatprep.mubr.msk.bf16.mxu1 %vm1865_vm5, %v14958_v42  ;;  %12094 = vmatprep.mubr.msk.bf16.mxu0 %vm1865_vm5, %v14958_v42  ;;  %v1086_v55 = vrot.slane %v1085_v11, 4  ;;  %v11978_v41 = vcombine.low %v2043_v15, %v2047_v31  ;;  %v1106_v54 = vshll.u32 %v15053_v46, 16  ;;  %v1112_v5 = vshll.u32 %v15056_v57, 16 }
  0xc1   : > { %1763 = vrot.lane.b32.xlu1 %v11893_v9, %s14141_s25  ;;  %v1096_v44 = vrot.slane %v1095_v12, 4  ;;  %3031 = vmatprep.subr.bf16.mxu1 %v11979_v17  ;;  %v1116_v63 = vshrl.u32 %v15056_v57, 16  ;;  %v11840_v15 = vcombine.low %v14085_v43, %v14993_v19  ;;  %v1323_v9 = vsel %vm14575_vm6, %v11809_v53, %v1322_v26  ;;  %v1722_v12 = vpop.permute.xlu0 %1721  ;;  %v2051_v26 = vld [vmem:[%s18946_s1 + $0x1c8] sm:$0xff] }
  0xc2   : > { %v1091_v7 = vsel %vm14307_vm2, %v1086_v55, %v1090_v18  ;;  %v1136_v18 = vld [vmem:[%s14256_s15 + $0x78] sm:$0xe]  ;;  %v1108_v11 = vrot.slane %v1106_v54, 5  ;;  %v1114_v3 = vrot.slane %v1112_v5, 5  ;;  %v15091_v55 = vld [vmem:[%s14256_s15 + $0x7c] sm:$0xf]  ;;  %3032 = vmatpush1.bf16.msra.mxu1 %v11978_v41 }
  0xc3   : > { %v1101_v31 = vsel %vm14307_vm2, %v1096_v44, %v1100_v16  ;;  %v1329_v16 = vrot.slane %v15091_v55, 5  ;;  %v1118_v17 = vrot.slane %v1116_v63, 4  ;;  %v1122_v44 = vshll.u32 %v15067_v28, 16 }
  0xc4   : > { %v11894_v35 = vcombine.low %v1091_v7, %v1101_v31  ;;  %v14087_v7 = vld [vmem:[%s14256_s15 + $0x80] sm:$0x1]  ;;  %v15104_v41 = vsel %vm1865_vm5, %v11840_v15, %v1722_v12  ;;  %v11810_v43 = vrot.slane %v1136_v18, 9  ;;  %v2059_v18 = vld [vmem:[%s18946_s1 + $0x208] sm:$0xff] }
  0xc5   : > { %v1332_v54 = vrot.slane %v14087_v7, 5  ;;  %v1331_v31 = vrot.slane %v1329_v16, 4  ;;  %v14089_v12 = vld [vmem:[%s14256_s15 + $0x6c] sm:$0xf] }
  0xc6   : > { %1765 = vrot.lane.b32.xlu0 %v11894_v35, %s14141_s25 }
  0xc7   : > { %2759 = vmatmul.mubr.bf16.gmra.mrb[24].mxu1 %v15015_v25  ;;  %3465 = vmatmul.mubr.bf16.gmra.mrb[24].mxu0 %v15015_v25 }
  0xc8   : > { %12031 = vmatprep.mubr.msk.bf16.mxu1 %vm1865_vm5, %v15009_v40  ;;  %12095 = vmatprep.mubr.msk.bf16.mxu0 %vm1865_vm5, %v15009_v40  ;;  %v14084_v40 = vld [vmem:[%s14256_s15 + $0x74] sm:$0x1] }
  0xc9   : > { %v1325_v25 = vrot.slane %v14084_v40, 5  ;;  %v1103_v40 = vshrl.u32 %v15053_v46, 16 }
  0xcb   : > { %v1105_v47 = vrot.slane %v1103_v40, 4  ;;  %v1326_v19 = vsel %vm14575_vm6, %v1324_v58, %v1325_v25  ;;  %v2055_v40 = vld [vmem:[%s18946_s1 + $0x1e8] sm:$0xff]  ;;  %v1119_v25 = vor.u32 %v1118_v17, %v1114_v3  ;;  %v1124_v58 = vrot.slane %v1122_v44, 5  ;;  %v1137_v44 = vld [vmem:[%s14256_s15 + $0x84] sm:$0xe] }
  0xcc   : > { %v15106_v5 = vcombine.low %v1323_v9, %v1326_v19  ;;  %v11987_v35 = vcombine.high %v2051_v26, %v2055_v40  ;;  %v15113_v17 = vld [vmem:[%s14256_s15 + $0x88] sm:$0xf]  ;;  %v11841_v19 = vcombine.low %v14089_v12, %v15032_v21 }
  0xcd   : > { %v1109_v53 = vor.u32 %v1108_v11, %v1105_v47  ;;  %v1120_v47 = vrot.slane %v1119_v25, 4  ;;  %v1336_v15 = vrot.slane %v15113_v17, 5  ;;  %v1333_v25 = vsel %vm14575_vm6, %v1331_v31, %v1332_v54  ;;  %v2071_v54 = vld [vmem:[%s18946_s1 + $0x268] sm:$0xff] }
  0xce   : > { %3033 = vmatprep.subr.bf16.mxu1 %v11987_v35  ;;  %v14091_v35 = vld [vmem:[%s14256_s15 + $0x78] sm:$0xf] }
  0xcf   : > { %2769 = vmatmul.mubr.bf16.gmra.mrb[28].mxu1 %v15064_v6  ;;  %3475 = vmatmul.mubr.bf16.gmra.mrb[28].mxu0 %v15064_v6  ;;  %v1110_v63 = vrot.slane %v1109_v53, 4  ;;  %v1125_v9 = vsel %vm14307_vm2, %v1120_v47, %v1124_v58  ;;  %v1724_v53 = vpop.permute.xlu1 %1723  ;;  %v14090_v58 = vld [vmem:[%s14256_s15 + $0x8c] sm:$0x1]  ;;  %v1338_v47 = vrot.slane %v1336_v15, 4 }
  0xd0   : > { %12032 = vmatprep.mubr.msk.bf16.mxu1 %vm1865_vm5, %v15060_v60  ;;  %12096 = vmatprep.mubr.msk.bf16.mxu0 %vm1865_vm5, %v15060_v60  ;;  %v11986_v60 = vcombine.low %v2051_v26, %v2055_v40  ;;  %v1330_v40 = vsel %vm14575_vm6, %v11810_v43, %v1329_v16  ;;  %v1339_v7 = vrot.slane %v14090_v58, 5 }
  0xd1   : > { %v1115_v11 = vsel %vm14307_vm2, %v1110_v63, %v1114_v3  ;;  %v2063_v3 = vld [vmem:[%s18946_s1 + $0x228] sm:$0xff]  ;;  %v11811_v63 = vrot.slane %v1137_v44, 9  ;;  %v15140_v16 = vcombine.low %v1330_v40, %v1333_v25  ;;  %v1152_v40 = vld [vmem:[%s14256_s15 + $0x138] sm:$0xe]  ;;  %v14093_v25 = vld [vmem:[%s14256_s15 + $0x98] sm:$0x1] }
  0xd2   : > { %v11895_v26 = vcombine.low %v1115_v11, %v1125_v9  ;;  %3034 = vmatpush1.bf16.msra.mxu1 %v11986_v60  ;;  %v11994_v21 = vcombine.low %v2059_v18, %v2063_v3  ;;  %v11995_v12 = vcombine.high %v2059_v18, %v2063_v3  ;;  %v15138_v11 = vsel %vm1865_vm5, %v11841_v19, %v1724_v53  ;;  %v2067_v60 = vld [vmem:[%s18946_s1 + $0x248] sm:$0xff]  ;;  %v1138_v18 = vld [vmem:[%s14256_s15 + $0x90] sm:$0xe]  ;;  %v15162_v3 = vld [vmem:[%s14256_s15 + $0x94] sm:$0xf] }
  0xd3   : > { %v1337_v43 = vsel %vm14575_vm6, %v11811_v63, %v1336_v15  ;;  %v1340_v31 = vsel %vm14575_vm6, %v1338_v47, %v1339_v7  ;;  %v11842_v9 = vcombine.low %v14091_v35, %v15091_v55  ;;  %v1343_v19 = vrot.slane %v15162_v3, 5  ;;  %v1726_v15 = vpop.permute.xlu0 %1725 }
  0xd4   : > { %1767 = vrot.lane.b32.xlu1 %v11895_v26, %s14141_s25  ;;  %3035 = vmatprep.subr.bf16.mxu1 %v11995_v12  ;;  %v12002_v44 = vcombine.low %v2067_v60, %v2071_v54  ;;  %v1151_v26 = vld [vmem:[%s14256_s15 + $0x12c] sm:$0xe]  ;;  %v12003_v53 = vcombine.high %v2067_v60, %v2071_v54  ;;  %v1437_v55 = vrot.slane %v14808_v2, 5  ;;  %v15169_v58 = vcombine.low %v1337_v43, %v1340_v31 }
  0xd5   : > { %v11812_v7 = vrot.slane %v1138_v18, 9  ;;  %v11825_v47 = vrot.slane %v1151_v26, 9  ;;  %v1434_v12 = vrot.slane %v14800_v59, 5  ;;  %v15175_v35 = vsel %vm1865_vm5, %v11842_v9, %v1726_v15 }
  0xd6   : > { %3036 = vmatpush1.bf16.msra.mxu1 %v11994_v21  ;;  %v1346_v21 = vrot.slane %v14093_v25, 5  ;;  %19275 = vst [vmem:[#allocation9_spill] sm:$0xff] %v15169_v58  ;;  %v1345_v60 = vrot.slane %v1343_v19, 4  ;;  %v11826_v2 = vrot.slane %v1152_v40, 9  ;;  %v1444_v43 = vrot.slane %v14851_v51, 5 }
  0xd7   : > { %2779 = vmatmul.mubr.bf16.gmra.mrb[32].mxu1 %v15104_v41  ;;  %3485 = vmatmul.mubr.bf16.gmra.mrb[32].mxu0 %v15104_v41  ;;  %v1435_v31 = vsel %vm14575_vm6, %v11825_v47, %v1434_v12  ;;  %v1436_v18 = vrot.slane %v1434_v12, 4  ;;  %v1441_v26 = vrot.slane %v14840_v39, 5  ;;  %v1448_v25 = vrot.slane %v14892_v23, 5  ;;  %v15203_v47 = vld [vmem:[%s14256_s15 + $0xa0] sm:$0xf] }
  0xd8   : > { %12033 = vmatprep.mubr.msk.bf16.mxu1 %vm1865_vm5, %v15106_v5  ;;  %12097 = vmatprep.mubr.msk.bf16.mxu0 %vm1865_vm5, %v15106_v5  ;;  %v1350_v12 = vrot.slane %v15203_v47, 5 }
  0xd9   : > { %3037 = vmatprep.subr.bf16.mxu1 %v12003_v53  ;;  %v14094_v53 = vld [vmem:[%s14256_s15 + $0x84] sm:$0xf]  ;;  %v1438_v51 = vsel %vm14575_vm6, %v1436_v18, %v1437_v55  ;;  %v1442_v15 = vsel %vm14575_vm6, %v11826_v2, %v1441_v26  ;;  %v1443_v40 = vrot.slane %v1441_v26, 4  ;;  %v1139_v55 = vld [vmem:[%s14256_s15 + $0x9c] sm:$0xe]  ;;  %v1728_v26 = vpop.permute.xlu1 %1727  ;;  %v1450_v63 = vrot.slane %v1448_v25, 4 }
  0xda   : > { %3038 = vmatpush1.bf16.msra.mxu1 %v12002_v44  ;;  %v11843_v9 = vcombine.low %v14094_v53, %v15113_v17  ;;  %v1451_v44 = vrot.slane %v14902_v32, 5  ;;  %v1344_v32 = vsel %vm14575_vm6, %v11812_v7, %v1343_v19  ;;  %v1347_v17 = vsel %vm14575_vm6, %v1345_v60, %v1346_v21  ;;  %v1153_v18 = vld [vmem:[%s14256_s15 + $0x144] sm:$0xe] }
  0xdb   : > { %v15206_v2 = vcombine.low %v1435_v31, %v1438_v51  ;;  %v1445_v53 = vsel %vm14575_vm6, %v1443_v40, %v1444_v43  ;;  %v11827_v54 = vrot.slane %v1153_v18, 9  ;;  %v15214_v7 = vcombine.low %v1344_v32, %v1347_v17  ;;  %v14097_v32 = vld [vmem:[%s14256_s15 + $0x90] sm:$0xf] }
  0xdc   : > { %v15212_v19 = vcombine.low %v1442_v15, %v1445_v53  ;;  %v11813_v21 = vrot.slane %v1139_v55, 9  ;;  %v1452_v31 = vsel %vm14575_vm6, %v1450_v63, %v1451_v44  ;;  %v15221_v51 = vsel %vm1865_vm5, %v11843_v9, %v1728_v26  ;;  %v2079_v15 = vld [vmem:[%s18946_s1 + $0x2a8] sm:$0xff] }
  0xdd   : > { %v1449_v60 = vsel %vm14575_vm6, %v11827_v54, %v1448_v25  ;;  %v1352_v43 = vrot.slane %v1350_v12, 4  ;;  %v1458_v44 = vrot.slane %v14943_v20, 5  ;;  %v1455_v25 = vrot.slane %v14930_v62, 5  ;;  %v1140_v26 = vld [vmem:[%s14256_s15 + $0xa8] sm:$0xe] }
  0xde   : > { %v15231_v40 = vcombine.low %v1449_v60, %v1452_v31  ;;  %v11844_v17 = vcombine.low %v14097_v32, %v15162_v3  ;;  %v1351_v55 = vsel %vm14575_vm6, %v11813_v21, %v1350_v12  ;;  %v15249_v20 = vld [vmem:[%s14256_s15 + $0xac] sm:$0xf]  ;;  %v1154_v60 = vld [vmem:[%s14256_s15 + $0x150] sm:$0xe]  ;;  %v1730_v31 = vpop.permute.xlu0 %1729  ;;  %v11814_v12 = vrot.slane %v1140_v26, 9 }
  0xdf   : > { %2789 = vmatmul.mubr.bf16.gmra.mrb[36].mxu1 %v15138_v11  ;;  %3495 = vmatmul.mubr.bf16.gmra.mrb[36].mxu0 %v15138_v11  ;;  %v1357_v53 = vrot.slane %v15249_v20, 5  ;;  %v11828_v3 = vrot.slane %v1154_v60, 9 }
  0xe0   : > { %12034 = vmatprep.mubr.msk.bf16.mxu1 %vm1865_vm5, %v15140_v16  ;;  %12098 = vmatprep.mubr.msk.bf16.mxu0 %vm1865_vm5, %v15140_v16 }
  0xe7   : > { %2799 = vmatmul.mubr.bf16.gmra.mrb[40].mxu1 %v15175_v35  ;;  %3505 = vmatmul.mubr.bf16.gmra.mrb[40].mxu0 %v15175_v35 }
  0xe8   : > { %12035 = vmatprep.mubr.msk.bf16.mxu1 %vm1865_vm5, %v15169_v58  ;;  %12099 = vmatprep.mubr.msk.bf16.mxu0 %vm1865_vm5, %v15169_v58  ;;  %v1353_v58 = vrot.slane %v14096_v0, 5  ;;  %v2075_v0 = vld [vmem:[%s18946_s1 + $0x288] sm:$0xff] }
  0xe9   : > { %v12011_v63 = vcombine.high %v2075_v0, %v2079_v15  ;;  %v12010_v9 = vcombine.low %v2075_v0, %v2079_v15  ;;  %v1457_v0 = vrot.slane %v1455_v25, 4  ;;  %v14099_v15 = vld [vmem:[%s14256_s15 + $0xb0] sm:$0x1] }
  0xea   : > { %v1354_v18 = vsel %vm14575_vm6, %v1352_v43, %v1353_v58  ;;  %v1360_v32 = vrot.slane %v14099_v15, 5  ;;  %v1456_v58 = vsel %vm14575_vm6, %v11828_v3, %v1455_v25  ;;  %v15261_v43 = vsel %vm1865_vm5, %v11844_v17, %v1730_v31  ;;  %v1141_v31 = vld [vmem:[%s14256_s15 + $0xb4] sm:$0xe]  ;;  %v15283_v3 = vld [vmem:[%s14256_s15 + $0xb8] sm:$0xf] }
  0xeb   : > { %3039 = vmatprep.subr.bf16.mxu1 %v12011_v63  ;;  %v15254_v54 = vcombine.low %v1351_v55, %v1354_v18  ;;  %v1459_v21 = vsel %vm14575_vm6, %v1457_v0, %v1458_v44  ;;  %19277 = vst [vmem:[#allocation11_spill] sm:$0xff] %v15261_v43  ;;  %v1359_v63 = vrot.slane %v1357_v53, 4  ;;  %v1465_v25 = vrot.slane %v14997_v61, 5  ;;  %v14100_v55 = vld [vmem:[%s14256_s15 + $0x9c] sm:$0xf] }
  0xec   : > { %3040 = vmatpush1.bf16.msra.mxu1 %v12010_v9  ;;  %v15265_v9 = vcombine.low %v1456_v58, %v1459_v21  ;;  %v1462_v44 = vrot.slane %v14964_v49, 5  ;;  %v11845_v17 = vcombine.low %v14100_v55, %v15203_v47  ;;  %v1358_v18 = vsel %vm14575_vm6, %v11814_v12, %v1357_v53  ;;  %v1155_v0 = vld [vmem:[%s14256_s15 + $0x15c] sm:$0xe]  ;;  %v1732_v47 = vpop.permute.xlu1 %1731  ;;  %v14102_v21 = vld [vmem:[%s14256_s15 + $0xbc] sm:$0x1] }
  0xed   : > { %19276 = vst [vmem:[#allocation10_spill] sm:$0xff] %v15254_v54  ;;  %v1361_v26 = vsel %vm14575_vm6, %v1359_v63, %v1360_v32  ;;  %v1364_v61 = vrot.slane %v15283_v3, 5  ;;  %v11829_v15 = vrot.slane %v1155_v0, 9  ;;  %v1367_v55 = vrot.slane %v14102_v21, 5  ;;  %v14104_v21 = vld [vmem:[%s14256_s15 + $0xc4] sm:$0xf] }
  0xee   : > { %19278 = vst [vmem:[#allocation12_spill] sm:$0xff] %v15265_v9  ;;  %v1464_v58 = vrot.slane %v1462_v44, 4  ;;  %v15288_v60 = vcombine.low %v1358_v18, %v1361_v26  ;;  %v15295_v12 = vsel %vm1865_vm5, %v11845_v17, %v1732_v47  ;;  %v1472_v17 = vrot.slane %v15020_v14, 5  ;;  %v2083_v26 = vld [vmem:[%s18946_s1 + $0x2c8] sm:$0xff] }
  0xef   : > { %2809 = vmatmul.mubr.bf16.gmra.mrb[44].mxu1 %v15221_v51  ;;  %3515 = vmatmul.mubr.bf16.gmra.mrb[44].mxu0 %v15221_v51  ;;  %v1463_v53 = vsel %vm14575_vm6, %v11829_v15, %v1462_v44  ;;  %19280 = vst [vmem:[#allocation14_spill] sm:$0xff] %v15295_v12  ;;  %v1366_v63 = vrot.slane %v1364_v61, 4  ;;  %v14103_v44 = vld [vmem:[%s14256_s15 + $0xa8] sm:$0xf]  ;;  %v1469_v47 = vrot.slane %v15007_v37, 5  ;;  %v1734_v15 = vpop.permute.xlu0 %1733 }
  0xf0   : > { %12036 = vmatprep.mubr.msk.bf16.mxu1 %vm1865_vm5, %v15214_v7  ;;  %12100 = vmatprep.mubr.msk.bf16.mxu0 %vm1865_vm5, %v15214_v7  ;;  %19279 = vst [vmem:[#allocation13_spill] sm:$0xff] %v15288_v60  ;;  %v1466_v32 = vsel %vm14575_vm6, %v1464_v58, %v1465_v25  ;;  %v11846_v18 = vcombine.low %v14103_v44, %v15249_v20  ;;  %v1142_v58 = vld [vmem:[%s14256_s15 + $0xc0] sm:$0xe] }
  0xf1   : > { %v15299_v0 = vcombine.low %v1463_v53, %v1466_v32  ;;  %v1371_v53 = vrot.slane %v14104_v21, 5  ;;  %v1471_v44 = vrot.slane %v1469_v47, 4 }
  0xf3   : > { %19281 = vst [vmem:[#allocation15_spill] sm:$0xff] %v15299_v0 }
  0xf7   : > { %2819 = vmatmul.mubr.bf16.gmra.mrb[48].mxu1 %v15261_v43  ;;  %3525 = vmatmul.mubr.bf16.gmra.mrb[48].mxu0 %v15261_v43 }
  0xf8   : > { %12037 = vmatprep.mubr.msk.bf16.mxu1 %vm1865_vm5, %v15254_v54  ;;  %12101 = vmatprep.mubr.msk.bf16.mxu0 %vm1865_vm5, %v15254_v54  ;;  %v11815_v54 = vrot.slane %v1141_v31, 9  ;;  %v2087_v31 = vld [vmem:[%s18946_s1 + $0x2e8] sm:$0xff] }
  0xf9   : > { %v12018_v14 = vcombine.low %v2083_v26, %v2087_v31  ;;  %v12019_v20 = vcombine.high %v2083_v26, %v2087_v31  ;;  %v11816_v26 = vrot.slane %v1142_v58, 9  ;;  %v1736_v58 = vpop.permute.xlu1 %1735 }
  0xfa   : > { %v1365_v25 = vsel %vm14575_vm6, %v11815_v54, %v1364_v61  ;;  %v1368_v54 = vsel %vm14575_vm6, %v1366_v63, %v1367_v55  ;;  %v1156_v61 = vld [vmem:[%s14256_s15 + $0x168] sm:$0xe]  ;;  %v1473_v55 = vsel %vm14575_vm6, %v1471_v44, %v1472_v17  ;;  %v15331_v63 = vsel %vm1865_vm5, %v11846_v18, %v1734_v15  ;;  %v1157_v15 = vld [vmem:[%s14256_s15 + $0x174] sm:$0xe] }
  0xfb   : > { %v11830_v32 = vrot.slane %v1156_v61, 9  ;;  %3041 = vmatprep.subr.bf16.mxu1 %v12019_v20  ;;  %v15324_v43 = vcombine.low %v1365_v25, %v1368_v54  ;;  %19283 = vst [vmem:[#allocation17_spill] sm:$0xff] %v15331_v63  ;;  %v14105_v25 = vld [vmem:[%s14256_s15 + $0xc8] sm:$0x1]  ;;  %v1479_v17 = vrot.slane %v15067_v28, 5  ;;  %v1476_v18 = vrot.slane %v15056_v57, 5 }
  0xfc   : > { %3042 = vmatpush1.bf16.msra.mxu1 %v12018_v14  ;;  %v1374_v54 = vrot.slane %v14105_v25, 5  ;;  %v1373_v14 = vrot.slane %v1371_v53, 4  ;;  %v1143_v25 = vld [vmem:[%s14256_s15 + $0xcc] sm:$0xe] }
  0xfd   : > { %19282 = vst [vmem:[#allocation16_spill] sm:$0xff] %v15324_v43 }
  0xfe   : > { %v1375_v28 = vsel %vm14575_vm6, %v1373_v14, %v1374_v54  ;;  %v14108_v14 = vld [vmem:[%s14256_s15 + $0xd4] sm:$0x1] }
  0xff   : > { %2829 = vmatmul.mubr.bf16.gmra.mrb[52].mxu1 %v15295_v12  ;;  %3535 = vmatmul.mubr.bf16.gmra.mrb[52].mxu0 %v15295_v12 }
 0x100   : > { %12038 = vmatprep.mubr.msk.bf16.mxu1 %vm1865_vm5, %v15288_v60  ;;  %12102 = vmatprep.mubr.msk.bf16.mxu0 %vm1865_vm5, %v15288_v60  ;;  %v1470_v60 = vsel %vm14575_vm6, %v11830_v32, %v1469_v47  ;;  %v14106_v47 = vld [vmem:[%s14256_s15 + $0xb4] sm:$0xf]  ;;  %v14107_v32 = vld [vmem:[%s14256_s15 + $0xd0] sm:$0xf] }
 0x101   : > { %v15335_v61 = vcombine.low %v1470_v60, %v1473_v55  ;;  %v11847_v20 = vcombine.low %v14106_v47, %v15283_v3  ;;  %v1372_v60 = vsel %vm14575_vm6, %v11816_v26, %v1371_v53  ;;  %v1378_v44 = vrot.slane %v14107_v32, 5 }
 0x102   : > { %v11831_v55 = vrot.slane %v1157_v15, 9  ;;  %v1478_v3 = vrot.slane %v1476_v18, 4  ;;  %v15362_v53 = vcombine.low %v1372_v60, %v1375_v28  ;;  %v1381_v15 = vrot.slane %v14108_v14, 5  ;;  %v14110_v28 = vld [vmem:[%s14256_s15 + $0xdc] sm:$0xf] }
 0x103   : > { %19284 = vst [vmem:[#allocation18_spill] sm:$0xff] %v15335_v61 }
 0x104   : > { %v1477_v47 = vsel %vm14575_vm6, %v11831_v55, %v1476_v18  ;;  %v1480_v31 = vsel %vm14575_vm6, %v1478_v3, %v1479_v17  ;;  %19286 = vst [vmem:[#allocation20_spill] sm:$0xff] %v15362_v53  ;;  %v1380_v18 = vrot.slane %v1378_v44, 4  ;;  %v14109_v17 = vld [vmem:[%s14256_s15 + $0xc0] sm:$0xf]  ;;  %v1385_v55 = vrot.slane %v14110_v28, 5 }
 0x105   : > { %v15366_v54 = vcombine.low %v1477_v47, %v1480_v31  ;;  %v1738_v31 = vpop.permute.xlu0 %1737  ;;  %v1144_v3 = vld [vmem:[%s14256_s15 + $0xd8] sm:$0xe]  ;;  %v14111_v47 = vld [vmem:[%s14256_s15 + $0xe0] sm:$0x1] }
 0x106   : > { %v1388_v14 = vrot.slane %v14111_v47, 5  ;;  %v1387_v26 = vrot.slane %v1385_v55, 4  ;;  %v14113_v47 = vld [vmem:[%s14256_s15 + $0xe8] sm:$0xf] }
 0x107   : > { %2839 = vmatmul.mubr.bf16.gmra.mrb[56].mxu1 %v15331_v63  ;;  %3545 = vmatmul.mubr.bf16.gmra.mrb[56].mxu0 %v15331_v63  ;;  %19287 = vst [vmem:[#allocation21_spill] sm:$0xff] %v15366_v54  ;;  %v11817_v63 = vrot.slane %v1143_v25, 9 }
 0x108   : > { %12039 = vmatprep.mubr.msk.bf16.mxu1 %vm1865_vm5, %v15324_v43  ;;  %12103 = vmatprep.mubr.msk.bf16.mxu0 %vm1865_vm5, %v15324_v43  ;;  %v15360_v43 = vsel %vm1865_vm5, %v11847_v20, %v1736_v58  ;;  %v11848_v20 = vcombine.low %v14109_v17, %v14104_v21  ;;  %v1382_v58 = vsel %vm14575_vm6, %v1380_v18, %v1381_v15  ;;  %v11818_v17 = vrot.slane %v1144_v3, 9 }
 0x109   : > { %19285 = vst [vmem:[#allocation19_spill] sm:$0xff] %v15360_v43  ;;  %v1379_v60 = vsel %vm14575_vm6, %v11817_v63, %v1378_v44  ;;  %v15391_v63 = vld [vmem:[%s18946_s1 + $0x18] sm:$0xff]  ;;  %v1389_v3 = vsel %vm14575_vm6, %v1387_v26, %v1388_v14  ;;  %v1392_v15 = vrot.slane %v14113_v47, 5  ;;  %v1742_v14 = vpop.permute.xlu0 %1741 }
 0x10a   : > { %v15383_v25 = vsel %vm1865_vm5, %v11848_v20, %v1738_v31  ;;  %v15385_v21 = vcombine.low %v1379_v60, %v1382_v58  ;;  %v15396_v44 = vld [vmem:[%s18946_s1 + $0x38] sm:$0xff]  ;;  %v14112_v20 = vld [vmem:[%s14256_s15 + $0xcc] sm:$0xf]  ;;  %v1740_v60 = vpop.permute.xlu1 %1739  ;;  %v1386_v58 = vsel %vm14575_vm6, %v11818_v17, %v1385_v55  ;;  %v14116_v17 = vld [vmem:[%s14256_s15 + $0xf4] sm:$0xf] }
 0x10b   : > { %19288 = vst [vmem:[#allocation22_spill] sm:$0xff] %v15383_v25  ;;  %v11935_v18 = vcombine.high %v15391_v63, %v15396_v44  ;;  %v11849_v31 = vcombine.low %v14112_v20, %v14107_v32  ;;  %v15418_v20 = vcombine.low %v1386_v58, %v1389_v3  ;;  %v1394_v12 = vrot.slane %v1392_v15, 4  ;;  %v14115_v26 = vld [vmem:[%s14256_s15 + $0xd8] sm:$0xf] }
 0x10c   : > { %19289 = vst [vmem:[#allocation23_spill] sm:$0xff] %v15385_v21  ;;  %v11850_v55 = vcombine.low %v14115_v26, %v14110_v28  ;;  %v14117_v58 = vld [vmem:[%s14256_s15 + $0xf8] sm:$0x1] }
 0x10d   : > { %3725 = vmatprep.subr.bf16.mxu1 %v11935_v18  ;;  %v15416_v32 = vsel %vm1865_vm5, %v11849_v31, %v1740_v60  ;;  %19290 = vst [vmem:[#allocation24_spill] sm:$0xff] %v15418_v20  ;;  %v1399_v18 = vrot.slane %v14116_v17, 5  ;;  %v1146_v31 = vld [vmem:[%s14256_s15 + $0xf0] sm:$0xe]  ;;  %v1402_v3 = vrot.slane %v14117_v58, 5 }
 0x10e   : > { %v15435_v28 = vsel %vm1865_vm5, %v11850_v55, %v1742_v14  ;;  %v11820_v26 = vrot.slane %v1146_v31, 9  ;;  %v14119_v14 = vld [vmem:[%s14256_s15 + $0x100] sm:$0xf]  ;;  %v14120_v58 = vld [vmem:[%s14256_s15 + $0x104] sm:$0x1] }
 0x10f   : > { %2849 = vmatmul.mubr.bf16.gmra.mrb[60].mxu1 %v15360_v43  ;;  %3555 = vmatmul.mubr.bf16.gmra.mrb[60].mxu0 %v15360_v43  ;;  %19291 = vst [vmem:[#allocation25_spill] sm:$0xff] %v15435_v28 }
 0x110   : > { %12040 = vmatprep.mubr.msk.bf16.mxu1 %vm1865_vm5, %v15362_v53  ;;  %12104 = vmatprep.mubr.msk.bf16.mxu0 %vm1865_vm5, %v15362_v53 }
 0x117   : > { %2859 = vmatmul.mubr.bf16.gmra.mrb[64].mxu1 %v15383_v25  ;;  %3565 = vmatmul.mubr.bf16.gmra.mrb[64].mxu0 %v15383_v25  ;;  %v1145_v25 = vld [vmem:[%s14256_s15 + $0xe4] sm:$0xe] }
 0x118   : > { %12041 = vmatprep.mubr.msk.bf16.mxu1 %vm1865_vm5, %v15385_v21  ;;  %12105 = vmatprep.mubr.msk.bf16.mxu0 %vm1865_vm5, %v15385_v21  ;;  %v14114_v21 = vld [vmem:[%s14256_s15 + $0xec] sm:$0x1]  ;;  %v11819_v43 = vrot.slane %v1145_v25, 9 }
 0x119   : > { %v1395_v53 = vrot.slane %v14114_v21, 5 }
 0x11a   : > { %v1393_v21 = vsel %vm14575_vm6, %v11819_v43, %v1392_v15  ;;  %v14118_v43 = vld [vmem:[%s14256_s15 + $0xe4] sm:$0xf]  ;;  %v1400_v15 = vsel %vm14575_vm6, %v11820_v26, %v1399_v18 }
 0x11b   : > { %v1396_v25 = vsel %vm14575_vm6, %v1394_v12, %v1395_v53  ;;  %v11851_v12 = vcombine.low %v14118_v43, %v14113_v47  ;;  %v1744_v53 = vpop.permute.xlu1 %1743  ;;  %v1409_v43 = vrot.slane %v14120_v58, 5  ;;  %v14123_v58 = vld [vmem:[%s14256_s15 + $0x110] sm:$0x1] }
 0x11c   : > { %v15437_v60 = vcombine.low %v1393_v21, %v1396_v25  ;;  %v1406_v21 = vrot.slane %v14119_v14, 5  ;;  %v1147_v25 = vld [vmem:[%s14256_s15 + $0xfc] sm:$0xe] }
 0x11d   : > { %v15454_v47 = vsel %vm1865_vm5, %v11851_v12, %v1744_v53  ;;  %v14122_v53 = vld [vmem:[%s14256_s15 + $0x10c] sm:$0xf] }
 0x11e   : > { %19292 = vst [vmem:[#allocation26_spill] sm:$0xff] %v15437_v60  ;;  %19293 = vst [vmem:[#allocation27_spill] sm:$0xff] %v15454_v47 }
 0x11f   : > { %2869 = vmatmul.mubr.bf16.gmra.mrb[68].mxu1 %v15416_v32  ;;  %3575 = vmatmul.mubr.bf16.gmra.mrb[68].mxu0 %v15416_v32 }
 0x120   : > { %12042 = vmatprep.mubr.msk.bf16.mxu1 %vm1865_vm5, %v15418_v20  ;;  %12106 = vmatprep.mubr.msk.bf16.mxu0 %vm1865_vm5, %v15418_v20  ;;  %v1401_v20 = vrot.slane %v1399_v18, 4 }
 0x122   : > { %v1403_v55 = vsel %vm14575_vm6, %v1401_v20, %v1402_v3  ;;  %v14121_v20 = vld [vmem:[%s14256_s15 + $0xf0] sm:$0xf]  ;;  %v1746_v3 = vpop.permute.xlu0 %1745 }
 0x123   : > { %v15456_v31 = vcombine.low %v1400_v15, %v1403_v55  ;;  %v11852_v18 = vcombine.low %v14121_v20, %v14116_v17  ;;  %v1413_v15 = vrot.slane %v14122_v53, 5  ;;  %v1148_v55 = vld [vmem:[%s14256_s15 + $0x108] sm:$0xe]  ;;  %v1416_v20 = vrot.slane %v14123_v58, 5  ;;  %v14126_v58 = vld [vmem:[%s14256_s15 + $0x11c] sm:$0x1] }
 0x125   : > { %19294 = vst [vmem:[#allocation28_spill] sm:$0xff] %v15456_v31  ;;  %v15473_v17 = vsel %vm1865_vm5, %v11852_v18, %v1746_v3  ;;  %v14125_v3 = vld [vmem:[%s14256_s15 + $0x118] sm:$0xf] }
 0x126   : > { %19295 = vst [vmem:[#allocation29_spill] sm:$0xff] %v15473_v17 }
 0x127   : > { %2879 = vmatmul.mubr.bf16.gmra.mrb[72].mxu1 %v15435_v28  ;;  %3585 = vmatmul.mubr.bf16.gmra.mrb[72].mxu0 %v15435_v28  ;;  %v1408_v28 = vrot.slane %v1406_v21, 4 }
 0x128   : > { %12043 = vmatprep.mubr.msk.bf16.mxu1 %vm1865_vm5, %v15437_v60  ;;  %12107 = vmatprep.mubr.msk.bf16.mxu0 %vm1865_vm5, %v15437_v60  ;;  %v11821_v60 = vrot.slane %v1147_v25, 9 }
 0x129   : > { %v1410_v12 = vsel %vm14575_vm6, %v1408_v28, %v1409_v43  ;;  %v14124_v28 = vld [vmem:[%s14256_s15 + $0xfc] sm:$0xf] }
 0x12a   : > { %v1407_v26 = vsel %vm14575_vm6, %v11821_v60, %v1406_v21  ;;  %v11853_v60 = vcombine.low %v14124_v28, %v14119_v14  ;;  %v1748_v21 = vpop.permute.xlu1 %1747  ;;  %v1423_v28 = vrot.slane %v14126_v58, 5  ;;  %v14129_v58 = vld [vmem:[%s14256_s15 + $0x128] sm:$0x1] }
 0x12b   : > { %v15475_v25 = vcombine.low %v1407_v26, %v1410_v12  ;;  %v1420_v26 = vrot.slane %v14125_v3, 5  ;;  %v1149_v12 = vld [vmem:[%s14256_s15 + $0x114] sm:$0xe] }
 0x12c   : > { %v15492_v14 = vsel %vm1865_vm5, %v11853_v60, %v1748_v21  ;;  %v14128_v21 = vld [vmem:[%s14256_s15 + $0x124] sm:$0xf] }
 0x12d   : > { %19296 = vst [vmem:[#allocation30_spill] sm:$0xff] %v15475_v25  ;;  %19297 = vst [vmem:[#allocation31_spill] sm:$0xff] %v15492_v14 }
 0x12f   : > { %2889 = vmatmul.mubr.bf16.gmra.mrb[76].mxu1 %v15454_v47  ;;  %3595 = vmatmul.mubr.bf16.gmra.mrb[76].mxu0 %v15454_v47  ;;  %v1415_v47 = vrot.slane %v1413_v15, 4 }
 0x130   : > { %12044 = vmatprep.mubr.msk.bf16.mxu1 %vm1865_vm5, %v15456_v31  ;;  %12108 = vmatprep.mubr.msk.bf16.mxu0 %vm1865_vm5, %v15456_v31  ;;  %v11822_v31 = vrot.slane %v1148_v55, 9 }
 0x131   : > { %v1417_v18 = vsel %vm14575_vm6, %v1415_v47, %v1416_v20  ;;  %v14127_v47 = vld [vmem:[%s14256_s15 + $0x108] sm:$0xf] }
 0x132   : > { %v1414_v43 = vsel %vm14575_vm6, %v11822_v31, %v1413_v15  ;;  %v11854_v31 = vcombine.low %v14127_v47, %v14122_v53  ;;  %v1750_v15 = vpop.permute.xlu0 %1749  ;;  %v1430_v47 = vrot.slane %v14129_v58, 5 }
 0x133   : > { %v15494_v55 = vcombine.low %v1414_v43, %v1417_v18  ;;  %v1427_v43 = vrot.slane %v14128_v21, 5  ;;  %v1150_v18 = vld [vmem:[%s14256_s15 + $0x120] sm:$0xe] }
 0x135   : > { %19298 = vst [vmem:[#allocation32_spill] sm:$0xff] %v15494_v55 }
 0x137   : > { %2899 = vmatmul.mubr.bf16.gmra.mrb[80].mxu1 %v15473_v17  ;;  %3605 = vmatmul.mubr.bf16.gmra.mrb[80].mxu0 %v15473_v17  ;;  %v1422_v17 = vrot.slane %v1420_v26, 4 }
 0x138   : > { %12045 = vmatprep.mubr.msk.bf16.mxu1 %vm1865_vm5, %v15475_v25  ;;  %12109 = vmatprep.mubr.msk.bf16.mxu0 %vm1865_vm5, %v15475_v25  ;;  %v11823_v25 = vrot.slane %v1149_v12, 9  ;;  %v15511_v12 = vsel %vm1865_vm5, %v11854_v31, %v1750_v15 }
 0x139   : > { %v1424_v60 = vsel %vm14575_vm6, %v1422_v17, %v1423_v28  ;;  %v1752_v17 = vpop.permute.xlu1 %1751 }
 0x13a   : > { %v1421_v20 = vsel %vm14575_vm6, %v11823_v25, %v1420_v26  ;;  %v14130_v25 = vld [vmem:[%s14256_s15 + $0x114] sm:$0xf] }
 0x13b   : > { %v15513_v53 = vcombine.low %v1421_v20, %v1424_v60  ;;  %v11855_v26 = vcombine.low %v14130_v25, %v14125_v3  ;;  %v14131_v3 = vld [vmem:[%s14256_s15 + $0x120] sm:$0xf] }
 0x13c   : > { %v11856_v60 = vcombine.low %v14131_v3, %v14128_v21 }
 0x13d   : > { %v15528_v15 = vsel %vm1865_vm5, %v11855_v26, %v1752_v17  ;;  %v1756_v21 = vpop.permute.xlu1 %1755 }
 0x13f   : > { %2909 = vmatmul.mubr.bf16.gmra.mrb[84].mxu1 %v15492_v14  ;;  %3615 = vmatmul.mubr.bf16.gmra.mrb[84].mxu0 %v15492_v14  ;;  %v11824_v14 = vrot.slane %v1150_v18, 9 }
 0x140   : > { %12046 = vmatprep.mubr.msk.bf16.mxu1 %vm1865_vm5, %v15494_v55  ;;  %12110 = vmatprep.mubr.msk.bf16.mxu0 %vm1865_vm5, %v15494_v55  ;;  %v1429_v55 = vrot.slane %v1427_v43, 4 }
 0x141   : > { %v1428_v28 = vsel %vm14575_vm6, %v11824_v14, %v1427_v43  ;;  %v1754_v14 = vpop.permute.xlu0 %1753  ;;  %v19299_v43 = vcombine.low %v14784_v10, %v14800_v59  ;;  %v1760_v10 = vpop.permute.xlu1 %1759 }
 0x142   : > { %v1431_v31 = vsel %vm14575_vm6, %v1429_v55, %v1430_v47  ;;  %v15540_v55 = vsel %vm1865_vm5, %v11856_v60, %v1754_v14  ;;  %v19300_v47 = vcombine.low %v14837_v38, %v14840_v39  ;;  %v19307_v60 = vcombine.low %v14874_v1, %v14892_v23 }
 0x143   : > { %v15530_v20 = vcombine.low %v1428_v28, %v1431_v31  ;;  %v15552_v18 = vsel %vm1865_vm5, %v19299_v43, %v1756_v21 }
 0x144   : > { %v15592_v14 = vsel %vm1865_vm5, %v19307_v60, %v1760_v10 }
 0x145   : > { %v1758_v58 = vpop.permute.xlu0 %1757 }
 0x146   : > { %v15564_v25 = vsel %vm1865_vm5, %v19300_v47, %v1758_v58 }
 0x147   : > { %2919 = vmatmul.mubr.bf16.gmra.mrb[88].mxu1 %v15511_v12  ;;  %3625 = vmatmul.mubr.bf16.gmra.mrb[88].mxu0 %v15511_v12 }
 0x148   : > { %12047 = vmatprep.mubr.msk.bf16.mxu1 %vm1865_vm5, %v15513_v53  ;;  %12111 = vmatprep.mubr.msk.bf16.mxu0 %vm1865_vm5, %v15513_v53 }
 0x149   : > { %v1762_v1 = vpop.permute.xlu0 %1761 }
 0x14f   : > { %2929 = vmatmul.mubr.bf16.gmra.mrb[92].mxu1 %v15528_v15  ;;  %3635 = vmatmul.mubr.bf16.gmra.mrb[92].mxu0 %v15528_v15 }
 0x150   : > { %12048 = vmatprep.mubr.msk.bf16.mxu1 %vm1865_vm5, %v15530_v20  ;;  %12112 = vmatprep.mubr.msk.bf16.mxu0 %vm1865_vm5, %v15530_v20 }
 0x157   : > { %2939 = vmatmul.mubr.bf16.gmra.mrb[96].mxu1 %v15540_v55  ;;  %3645 = vmatmul.mubr.bf16.gmra.mrb[96].mxu0 %v15540_v55 }
 0x158   : > { %12049 = vmatprep.mubr.msk.bf16.mxu1 %vm1865_vm5, %v15206_v2  ;;  %12113 = vmatprep.mubr.msk.bf16.mxu0 %vm1865_vm5, %v15206_v2 }
 0x15f   : > { %2949 = vmatmul.mubr.bf16.gmra.mrb[100].mxu1 %v15552_v18  ;;  %3655 = vmatmul.mubr.bf16.gmra.mrb[100].mxu0 %v15552_v18 }
 0x160   : > { %12050 = vmatprep.mubr.msk.bf16.mxu1 %vm1865_vm5, %v15212_v19  ;;  %12114 = vmatprep.mubr.msk.bf16.mxu0 %vm1865_vm5, %v15212_v19 }
 0x167   : > { %2959 = vmatmul.mubr.bf16.gmra.mrb[104].mxu1 %v15564_v25  ;;  %3665 = vmatmul.mubr.bf16.gmra.mrb[104].mxu0 %v15564_v25 }
 0x168   : > { %12051 = vmatprep.mubr.msk.bf16.mxu1 %vm1865_vm5, %v15231_v40  ;;  %12115 = vmatprep.mubr.msk.bf16.mxu0 %vm1865_vm5, %v15231_v40 }
 0x16a   : > { %v15572_v59 = vpop.f32.mrb[0].mxu1  ;;  %v15574_v26 = vpop.f32.mrb[0].mxu0 }
 0x16b   : > { %19301 = vst [vmem:[#allocation33_spill] sm:$0xff] %v15572_v59  ;;  %19302 = vst [vmem:[#allocation34_spill] sm:$0xff] %v15574_v26  ;;  %v15578_v39 = vpop.f32.mrb[1].mxu1  ;;  %v15580_v17 = vpop.f32.mrb[1].mxu0 }
 0x16c   : > { %19303 = vst [vmem:[#allocation35_spill] sm:$0xff] %v15578_v39  ;;  %19304 = vst [vmem:[#allocation36_spill] sm:$0xff] %v15580_v17  ;;  %v15584_v31 = vpop.f32.mrb[2].mxu1  ;;  %v15586_v3 = vpop.f32.mrb[2].mxu0 }
 0x16d   : > { %19305 = vst [vmem:[#allocation37_spill] sm:$0xff] %v15584_v31  ;;  %19306 = vst [vmem:[#allocation38_spill] sm:$0xff] %v15586_v3  ;;  %v15596_v43 = vpop.f32.mrb[3].mxu1  ;;  %v15598_v58 = vpop.f32.mrb[3].mxu0 }
 0x16e   : > { %19308 = vst [vmem:[#allocation39_spill] sm:$0xff] %v15596_v43  ;;  %19309 = vst [vmem:[#allocation40_spill] sm:$0xff] %v15598_v58  ;;  %v19316_v58 = vcombine.low %v14919_v52, %v14930_v62  ;;  %v1764_v52 = vpop.permute.xlu1 %1763 }
 0x16f   : > { %2969 = vmatmul.mubr.bf16.gmra.mrb[108].mxu1 %v15592_v14  ;;  %3675 = vmatmul.mubr.bf16.gmra.mrb[108].mxu0 %v15592_v14 }
 0x170   : > { %12052 = vmatprep.mubr.msk.bf16.mxu1 %vm1865_vm5, %v15265_v9  ;;  %12116 = vmatprep.mubr.msk.bf16.mxu0 %vm1865_vm5, %v15265_v9  ;;  %v15628_v43 = vsel %vm1865_vm5, %v19316_v58, %v1762_v1 }
 0x171   : > { %19317 = vst [vmem:[#allocation47_spill] sm:$0xff] %v15628_v43 }
 0x172   : > { %v15608_v23 = vpop.f32.mrb[4].mxu1  ;;  %v15610_v10 = vpop.f32.mrb[4].mxu0 }
 0x173   : > { %19310 = vst [vmem:[#allocation41_spill] sm:$0xff] %v15608_v23  ;;  %19311 = vst [vmem:[#allocation42_spill] sm:$0xff] %v15610_v10  ;;  %v15614_v21 = vpop.f32.mrb[5].mxu1  ;;  %v15616_v47 = vpop.f32.mrb[5].mxu0 }
 0x174   : > { %19312 = vst [vmem:[#allocation43_spill] sm:$0xff] %v15614_v21  ;;  %19313 = vst [vmem:[#allocation44_spill] sm:$0xff] %v15616_v47  ;;  %v15620_v38 = vpop.f32.mrb[6].mxu1  ;;  %v15622_v24 = vpop.f32.mrb[6].mxu0 }
 0x175   : > { %19314 = vst [vmem:[#allocation45_spill] sm:$0xff] %v15620_v38  ;;  %19315 = vst [vmem:[#allocation46_spill] sm:$0xff] %v15622_v24  ;;  %v15632_v10 = vpop.f32.mrb[7].mxu1  ;;  %v15634_v23 = vpop.f32.mrb[7].mxu0  ;;  %v19326_v38 = vcombine.low %v14956_v33, %v14964_v49 }
 0x176   : > { %19318 = vst [vmem:[#allocation48_spill] sm:$0xff] %v15632_v10  ;;  %19319 = vst [vmem:[#allocation49_spill] sm:$0xff] %v15634_v23  ;;  %v1766_v33 = vpop.permute.xlu0 %1765 }
 0x177   : > { %2979 = vmatmul.mubr.bf16.gmra.mrb[112].mxu1 %v15628_v43  ;;  %3685 = vmatmul.mubr.bf16.gmra.mrb[112].mxu0 %v15628_v43  ;;  %v15664_v47 = vsel %vm1865_vm5, %v19326_v38, %v1764_v52 }
 0x178   : > { %12053 = vmatprep.mubr.msk.bf16.mxu1 %vm1865_vm5, %v15299_v0  ;;  %12117 = vmatprep.mubr.msk.bf16.mxu0 %vm1865_vm5, %v15299_v0  ;;  %19327 = vst [vmem:[#allocation56_spill] sm:$0xff] %v15664_v47 }
 0x17a   : > { %v15644_v62 = vpop.f32.mrb[8].mxu1  ;;  %v15646_v58 = vpop.f32.mrb[8].mxu0 }
 0x17b   : > { %19320 = vst [vmem:[#allocation50_spill] sm:$0xff] %v15644_v62  ;;  %19321 = vst [vmem:[#allocation51_spill] sm:$0xff] %v15646_v58  ;;  %v15650_v60 = vpop.f32.mrb[9].mxu1  ;;  %v15652_v28 = vpop.f32.mrb[9].mxu0 }
 0x17c   : > { %19322 = vst [vmem:[#allocation52_spill] sm:$0xff] %v15650_v60  ;;  %19323 = vst [vmem:[#allocation53_spill] sm:$0xff] %v15652_v28  ;;  %v15656_v10 = vpop.f32.mrb[10].mxu1  ;;  %v15658_v24 = vpop.f32.mrb[10].mxu0 }
 0x17d   : > { %19324 = vst [vmem:[#allocation54_spill] sm:$0xff] %v15656_v10  ;;  %19325 = vst [vmem:[#allocation55_spill] sm:$0xff] %v15658_v24  ;;  %v15668_v58 = vpop.f32.mrb[11].mxu1  ;;  %v15670_v62 = vpop.f32.mrb[11].mxu0  ;;  %v19336_v10 = vcombine.low %v15004_v36, %v15007_v37 }
 0x17e   : > { %19328 = vst [vmem:[#allocation57_spill] sm:$0xff] %v15668_v58  ;;  %19329 = vst [vmem:[#allocation58_spill] sm:$0xff] %v15670_v62  ;;  %v1768_v36 = vpop.permute.xlu1 %1767 }
 0x17f   : > { %2989 = vmatmul.mubr.bf16.gmra.mrb[116].mxu1 %v15664_v47  ;;  %3695 = vmatmul.mubr.bf16.gmra.mrb[116].mxu0 %v15664_v47  ;;  %v15700_v28 = vsel %vm1865_vm5, %v19336_v10, %v1766_v33 }
 0x180   : > { %12054 = vmatprep.mubr.msk.bf16.mxu1 %vm1865_vm5, %v15335_v61  ;;  %12118 = vmatprep.mubr.msk.bf16.mxu0 %vm1865_vm5, %v15335_v61 }
 0x182   : > { %v15680_v49 = vpop.f32.mrb[12].mxu1  ;;  %v15682_v38 = vpop.f32.mrb[12].mxu0 }
 0x183   : > { %19330 = vst [vmem:[#allocation59_spill] sm:$0xff] %v15680_v49  ;;  %19331 = vst [vmem:[#allocation60_spill] sm:$0xff] %v15682_v38  ;;  %v15686_v1 = vpop.f32.mrb[13].mxu1  ;;  %v15688_v23 = vpop.f32.mrb[13].mxu0 }
 0x184   : > { %19332 = vst [vmem:[#allocation61_spill] sm:$0xff] %v15686_v1  ;;  %19333 = vst [vmem:[#allocation62_spill] sm:$0xff] %v15688_v23  ;;  %v15692_v58 = vpop.f32.mrb[14].mxu1  ;;  %v15694_v24 = vpop.f32.mrb[14].mxu0 }
 0x185   : > { %19334 = vst [vmem:[#allocation63_spill] sm:$0xff] %v15692_v58  ;;  %19335 = vst [vmem:[#allocation64_spill] sm:$0xff] %v15694_v24  ;;  %v15704_v38 = vpop.f32.mrb[15].mxu1  ;;  %v15706_v49 = vpop.f32.mrb[15].mxu0  ;;  %v19345_v58 = vcombine.low %v15053_v46, %v15056_v57 }
 0x186   : > { %19337 = vst [vmem:[#allocation65_spill] sm:$0xff] %v15704_v38  ;;  %19338 = vst [vmem:[#allocation66_spill] sm:$0xff] %v15706_v49 }
 0x187   : > { %2999 = vmatmul.mubr.bf16.gmra.mrb[120].mxu1 %v15700_v28  ;;  %3705 = vmatmul.mubr.bf16.gmra.mrb[120].mxu0 %v15700_v28  ;;  %v15736_v23 = vsel %vm1865_vm5, %v19345_v58, %v1768_v36  ;;  %v2005_v58 = vld [vmem:[%s18946_s1 + $0x58] sm:$0xff] }
 0x188   : > { %12055 = vmatprep.mubr.msk.bf16.mxu1 %vm1865_vm5, %v15366_v54  ;;  %12119 = vmatprep.mubr.msk.bf16.mxu0 %vm1865_vm5, %v15366_v54  ;;  %19346 = vst [vmem:[#allocation73_spill] sm:$0xff] %v15736_v23  ;;  %v2009_v36 = vld [vmem:[%s18946_s1 + $0x78] sm:$0xff] }
 0x189   : > { %v11943_v60 = vcombine.high %v2005_v58, %v2009_v36 }
 0x18a   : > { %v15716_v37 = vpop.f32.mrb[16].mxu1  ;;  %v15718_v10 = vpop.f32.mrb[16].mxu0 }
 0x18b   : > { %19339 = vst [vmem:[#allocation67_spill] sm:$0xff] %v15716_v37  ;;  %19340 = vst [vmem:[#allocation68_spill] sm:$0xff] %v15718_v10  ;;  %v15722_v52 = vpop.f32.mrb[17].mxu1  ;;  %v15724_v62 = vpop.f32.mrb[17].mxu0 }
 0x18c   : > { %19341 = vst [vmem:[#allocation69_spill] sm:$0xff] %v15722_v52  ;;  %19342 = vst [vmem:[#allocation70_spill] sm:$0xff] %v15724_v62  ;;  %v15728_v38 = vpop.f32.mrb[18].mxu1  ;;  %v15730_v24 = vpop.f32.mrb[18].mxu0  ;;  %v19357_v62 = vcombine.low %v15391_v63, %v15396_v44 }
 0x18d   : > { %19343 = vst [vmem:[#allocation71_spill] sm:$0xff] %v15728_v38  ;;  %19344 = vst [vmem:[#allocation72_spill] sm:$0xff] %v15730_v24  ;;  %v15740_v10 = vpop.f32.mrb[19].mxu1  ;;  %v15742_v37 = vpop.f32.mrb[19].mxu0 }
 0x18e   : > { %19347 = vst [vmem:[#allocation74_spill] sm:$0xff] %v15740_v10  ;;  %19348 = vst [vmem:[#allocation75_spill] sm:$0xff] %v15742_v37  ;;  %v2017_v10 = vld [vmem:[%s18946_s1 + $0xb8] sm:$0xff] }
 0x18f   : > { %3009 = vmatmul.mubr.bf16.gmra.mrb[124].mxu1 %v15736_v23  ;;  %3715 = vmatmul.mubr.bf16.gmra.mrb[124].mxu0 %v15736_v23 }
 0x190   : > { %12056 = vmatprep.mubr.msk.bf16.mxu1 %vm1865_vm5, %v14599_v29 }
 0x192   : > { %v15750_v46 = vpop.f32.mrb[20].mxu1  ;;  %v15752_v57 = vpop.f32.mrb[20].mxu0 }
 0x193   : > { %19349 = vst [vmem:[#allocation76_spill] sm:$0xff] %v15750_v46  ;;  %19350 = vst [vmem:[#allocation77_spill] sm:$0xff] %v15752_v57  ;;  %v15762_v33 = vpop.f32.mrb[21].mxu1  ;;  %v15764_v37 = vpop.f32.mrb[21].mxu0  ;;  %v2013_v57 = vld [vmem:[%s18946_s1 + $0x98] sm:$0xff] }
 0x194   : > { %19351 = vst [vmem:[#allocation78_spill] sm:$0xff] %v15762_v33  ;;  %19352 = vst [vmem:[#allocation79_spill] sm:$0xff] %v15764_v37  ;;  %v15768_v24 = vpop.f32.mrb[22].mxu1  ;;  %v15770_v38 = vpop.f32.mrb[22].mxu0  ;;  %v11951_v49 = vcombine.high %v2013_v57, %v2017_v10  ;;  %v2025_v37 = vld [vmem:[%s18946_s1 + $0xf8] sm:$0xff]  ;;  %v11950_v33 = vcombine.low %v2013_v57, %v2017_v10 }
 0x195   : > { %19353 = vst [vmem:[#allocation80_spill] sm:$0xff] %v15768_v24  ;;  %19354 = vst [vmem:[#allocation81_spill] sm:$0xff] %v15770_v38  ;;  %v15774_v52 = vpop.f32.mrb[23].mxu1  ;;  %v15776_v1 = vpop.f32.mrb[23].mxu0  ;;  %v11942_v38 = vcombine.low %v2005_v58, %v2009_v36  ;;  %v2021_v24 = vld [vmem:[%s18946_s1 + $0xd8] sm:$0xff] }
 0x196   : > { %19355 = vst [vmem:[#allocation82_spill] sm:$0xff] %v15774_v52  ;;  %19356 = vst [vmem:[#allocation83_spill] sm:$0xff] %v15776_v1  ;;  %v11959_v63 = vcombine.high %v2021_v24, %v2025_v37  ;;  %v11958_v10 = vcombine.low %v2021_v24, %v2025_v37  ;;  %v2037_v46 = vld [vmem:[%s18946_s1 + $0x158] sm:$0xff] }
 0x197   : > { %3052 = vmatmul.mubr.bf16.vlgmr.msra.gmra.mrb[128].mxu1 %v14722_v56  ;;  %v2045_v37 = vld [vmem:[%s18946_s1 + $0x198] sm:$0xff] }
 0x198   : > { %3726 = vmatpush1.bf16.msra.mxu1 %v19357_v62  ;;  %12057 = vmatprep.mubr.msk.bf16.mxu1 %vm1865_vm5, %v14702_v50 }
 0x199   : > { %3727 = vmatprep.subr.bf16.mxu1 %v11943_v60  ;;  %v2029_v60 = vld [vmem:[%s18946_s1 + $0x118] sm:$0xff] }
 0x19a   : > { %v15792_v1 = vpop.f32.mrb[24].mxu1  ;;  %v15794_v52 = vpop.f32.mrb[24].mxu0 }
 0x19b   : > { %19358 = vst [vmem:[#allocation84_spill] sm:$0xff] %v15792_v1  ;;  %19359 = vst [vmem:[#allocation85_spill] sm:$0xff] %v15794_v52  ;;  %v15804_v44 = vpop.f32.mrb[25].mxu1  ;;  %v15806_v62 = vpop.f32.mrb[25].mxu0 }
 0x19c   : > { %19360 = vst [vmem:[#allocation86_spill] sm:$0xff] %v15804_v44  ;;  %19361 = vst [vmem:[#allocation87_spill] sm:$0xff] %v15806_v62  ;;  %v15810_v58 = vpop.f32.mrb[26].mxu1  ;;  %v15812_v36 = vpop.f32.mrb[26].mxu0  ;;  %3728 = vmatpush1.bf16.msra.mxu1 %v11942_v38  ;;  %v2033_v38 = vld [vmem:[%s18946_s1 + $0x138] sm:$0xff] }
 0x19d   : > { %19362 = vst [vmem:[#allocation88_spill] sm:$0xff] %v15810_v58  ;;  %19363 = vst [vmem:[#allocation89_spill] sm:$0xff] %v15812_v36  ;;  %v15816_v21 = vpop.f32.mrb[27].mxu1  ;;  %v15818_v3 = vpop.f32.mrb[27].mxu0  ;;  %3729 = vmatprep.subr.bf16.mxu1 %v11951_v49  ;;  %v11967_v49 = vcombine.high %v2029_v60, %v2033_v38  ;;  %v11966_v58 = vcombine.low %v2029_v60, %v2033_v38  ;;  %v2049_v60 = vld [vmem:[%s18946_s1 + $0x1b8] sm:$0xff] }
 0x19e   : > { %19364 = vst [vmem:[#allocation90_spill] sm:$0xff] %v15816_v21  ;;  %19365 = vst [vmem:[#allocation91_spill] sm:$0xff] %v15818_v3  ;;  %v2041_v3 = vld [vmem:[%s18946_s1 + $0x178] sm:$0xff] }
 0x19f   : > { %3062 = vmatmul.mubr.bf16.gmra.mrb[132].mxu1 %v14762_v30  ;;  %v11975_v21 = vcombine.high %v2037_v46, %v2041_v3  ;;  %v11974_v38 = vcombine.low %v2037_v46, %v2041_v3  ;;  %v11982_v3 = vcombine.low %v2045_v37, %v2049_v60  ;;  %v2053_v62 = vld [vmem:[%s18946_s1 + $0x1d8] sm:$0xff] }
 0x1a0   : > { %12058 = vmatprep.mubr.msk.bf16.mxu1 %vm1865_vm5, %v14755_v22  ;;  %3730 = vmatpush1.bf16.msra.mxu1 %v11950_v33 }
 0x1a1   : > { %3731 = vmatprep.subr.bf16.mxu1 %v11959_v63 }
 0x1a2   : > { %v15831_v57 = vpop.f32.mrb[28].mxu1  ;;  %v15833_v52 = vpop.f32.mrb[28].mxu0 }
 0x1a3   : > { %19366 = vst [vmem:[#allocation92_spill] sm:$0xff] %v15831_v57  ;;  %19367 = vst [vmem:[#allocation93_spill] sm:$0xff] %v15833_v52  ;;  %v15843_v36 = vpop.f32.mrb[29].mxu1  ;;  %v15845_v24 = vpop.f32.mrb[29].mxu0 }
 0x1a4   : > { %19368 = vst [vmem:[#allocation94_spill] sm:$0xff] %v15843_v36  ;;  %19369 = vst [vmem:[#allocation95_spill] sm:$0xff] %v15845_v24  ;;  %v15849_v33 = vpop.f32.mrb[30].mxu1  ;;  %v15851_v63 = vpop.f32.mrb[30].mxu0  ;;  %3732 = vmatpush1.bf16.msra.mxu1 %v11958_v10  ;;  %v11983_v10 = vcombine.high %v2045_v37, %v2049_v60 }
 0x1a5   : > { %19370 = vst [vmem:[#allocation96_spill] sm:$0xff] %v15849_v33  ;;  %19371 = vst [vmem:[#allocation97_spill] sm:$0xff] %v15851_v63  ;;  %v15855_v44 = vpop.f32.mrb[31].mxu1  ;;  %v15857_v1 = vpop.f32.mrb[31].mxu0  ;;  %3733 = vmatprep.subr.bf16.mxu1 %v11967_v49  ;;  %v2057_v63 = vld [vmem:[%s18946_s1 + $0x1f8] sm:$0xff] }
 0x1a6   : > { %19372 = vst [vmem:[#allocation98_spill] sm:$0xff] %v15855_v44  ;;  %19373 = vst [vmem:[#allocation99_spill] sm:$0xff] %v15857_v1  ;;  %v11991_v37 = vcombine.high %v2053_v62, %v2057_v63  ;;  %v11990_v60 = vcombine.low %v2053_v62, %v2057_v63 }
 0x1a7   : > { %3072 = vmatmul.mubr.bf16.gmra.mrb[136].mxu1 %v14820_v13 }
 0x1a8   : > { %12059 = vmatprep.mubr.msk.bf16.mxu1 %vm1865_vm5, %v14795_v48  ;;  %3734 = vmatpush1.bf16.msra.mxu1 %v11966_v58 }
 0x1a9   : > { %3735 = vmatprep.subr.bf16.mxu1 %v11975_v21 }
 0x1aa   : > { %v15870_v49 = vpop.f32.mrb[32].mxu1  ;;  %v15872_v52 = vpop.f32.mrb[32].mxu0 }
 0x1ab   : > { %19374 = vst [vmem:[#allocation100_spill] sm:$0xff] %v15870_v49  ;;  %19375 = vst [vmem:[#allocation101_spill] sm:$0xff] %v15872_v52  ;;  %v15876_v1 = vpop.f32.mrb[33].mxu1  ;;  %v15878_v44 = vpop.f32.mrb[33].mxu0 }
 0x1ac   : > { %19376 = vst [vmem:[#allocation102_spill] sm:$0xff] %v15876_v1  ;;  %19377 = vst [vmem:[#allocation103_spill] sm:$0xff] %v15878_v44  ;;  %v15882_v33 = vpop.f32.mrb[34].mxu1  ;;  %v15884_v58 = vpop.f32.mrb[34].mxu0  ;;  %3736 = vmatpush1.bf16.msra.mxu1 %v11974_v38 }
 0x1ad   : > { %19378 = vst [vmem:[#allocation104_spill] sm:$0xff] %v15882_v33  ;;  %19379 = vst [vmem:[#allocation105_spill] sm:$0xff] %v15884_v58  ;;  %v15888_v46 = vpop.f32.mrb[35].mxu1  ;;  %v15890_v24 = vpop.f32.mrb[35].mxu0  ;;  %3737 = vmatprep.subr.bf16.mxu1 %v11983_v10 }
 0x1ae   : > { %19380 = vst [vmem:[#allocation106_spill] sm:$0xff] %v15888_v46  ;;  %19381 = vst [vmem:[#allocation107_spill] sm:$0xff] %v15890_v24 }
 0x1af   : > { %3082 = vmatmul.mubr.bf16.gmra.mrb[140].mxu1 %v14865_v4 }
 0x1b0   : > { %12060 = vmatprep.mubr.msk.bf16.mxu1 %vm1865_vm5, %v14853_v34  ;;  %3738 = vmatpush1.bf16.msra.mxu1 %v11982_v3 }
 0x1b1   : > { %3739 = vmatprep.subr.bf16.mxu1 %v11991_v37 }
 0x1b2   : > { %v15903_v10 = vpop.f32.mrb[36].mxu1  ;;  %v15905_v21 = vpop.f32.mrb[36].mxu0 }
 0x1b3   : > { %19382 = vst [vmem:[#allocation108_spill] sm:$0xff] %v15903_v10  ;;  %19383 = vst [vmem:[#allocation109_spill] sm:$0xff] %v15905_v21  ;;  %v15909_v33 = vpop.f32.mrb[37].mxu1  ;;  %v15911_v44 = vpop.f32.mrb[37].mxu0 }
 0x1b4   : > { %19384 = vst [vmem:[#allocation110_spill] sm:$0xff] %v15909_v33  ;;  %19385 = vst [vmem:[#allocation111_spill] sm:$0xff] %v15911_v44  ;;  %v15915_v24 = vpop.f32.mrb[38].mxu1  ;;  %v15917_v46 = vpop.f32.mrb[38].mxu0  ;;  %3740 = vmatpush1.bf16.msra.mxu1 %v11990_v60 }
 0x1b5   : > { %19386 = vst [vmem:[#allocation112_spill] sm:$0xff] %v15915_v24  ;;  %19387 = vst [vmem:[#allocation113_spill] sm:$0xff] %v15917_v46  ;;  %v15921_v63 = vpop.f32.mrb[39].mxu1  ;;  %v15923_v3 = vpop.f32.mrb[39].mxu0  ;;  %v2061_v24 = vld [vmem:[%s18946_s1 + $0x218] sm:$0xff] }
 0x1b6   : > { %19388 = vst [vmem:[#allocation114_spill] sm:$0xff] %v15921_v63  ;;  %19389 = vst [vmem:[#allocation115_spill] sm:$0xff] %v15923_v3 }
 0x1b7   : > { %3092 = vmatmul.mubr.bf16.gmra.mrb[144].mxu1 %v14910_v45 }
 0x1b8   : > { %12061 = vmatprep.mubr.msk.bf16.mxu1 %vm1865_vm5, %v14898_v27 }
 0x1ba   : > { %v15930_v38 = vpop.f32.mrb[40].mxu1  ;;  %v15932_v58 = vpop.f32.mrb[40].mxu0 }
 0x1bb   : > { %19390 = vst [vmem:[#allocation116_spill] sm:$0xff] %v15930_v38  ;;  %19391 = vst [vmem:[#allocation117_spill] sm:$0xff] %v15932_v58  ;;  %v15936_v62 = vpop.f32.mrb[41].mxu1  ;;  %v15938_v46 = vpop.f32.mrb[41].mxu0 }
 0x1bc   : > { %19392 = vst [vmem:[#allocation118_spill] sm:$0xff] %v15936_v62  ;;  %19393 = vst [vmem:[#allocation119_spill] sm:$0xff] %v15938_v46  ;;  %v15942_v37 = vpop.f32.mrb[42].mxu1  ;;  %v15944_v3 = vpop.f32.mrb[42].mxu0  ;;  %v2065_v46 = vld [vmem:[%s18946_s1 + $0x238] sm:$0xff] }
 0x1bd   : > { %19394 = vst [vmem:[#allocation120_spill] sm:$0xff] %v15942_v37  ;;  %19395 = vst [vmem:[#allocation121_spill] sm:$0xff] %v15944_v3  ;;  %v15948_v44 = vpop.f32.mrb[43].mxu1  ;;  %v15950_v33 = vpop.f32.mrb[43].mxu0  ;;  %v11998_v63 = vcombine.low %v2061_v24, %v2065_v46  ;;  %v11999_v3 = vcombine.high %v2061_v24, %v2065_v46 }
 0x1be   : > { %19396 = vst [vmem:[#allocation122_spill] sm:$0xff] %v15948_v44  ;;  %19397 = vst [vmem:[#allocation123_spill] sm:$0xff] %v15950_v33 }
 0x1bf   : > { %3102 = vmatmul.mubr.bf16.gmra.mrb[148].mxu1 %v14967_v8  ;;  %3741 = vmatprep.subr.bf16.mxu1 %v11999_v3 }
 0x1c0   : > { %12062 = vmatprep.mubr.msk.bf16.mxu1 %vm1865_vm5, %v14958_v42  ;;  %3742 = vmatpush1.bf16.msra.mxu1 %v11998_v63  ;;  %v19407_v63 = vld [vmem:[#allocation6_spill] sm:$0xff] }
 0x1c2   : > { %v15963_v37 = vpop.f32.mrb[44].mxu1  ;;  %v15965_v62 = vpop.f32.mrb[44].mxu0 }
 0x1c3   : > { %19398 = vst [vmem:[#allocation124_spill] sm:$0xff] %v15963_v37  ;;  %19399 = vst [vmem:[#allocation125_spill] sm:$0xff] %v15965_v62  ;;  %v15969_v33 = vpop.f32.mrb[45].mxu1  ;;  %v15971_v44 = vpop.f32.mrb[45].mxu0  ;;  %v19406_v62 = vld [vmem:[#allocation7_spill] sm:$0xff] }
 0x1c4   : > { %19400 = vst [vmem:[#allocation126_spill] sm:$0xff] %v15969_v33  ;;  %19401 = vst [vmem:[#allocation127_spill] sm:$0xff] %v15971_v44  ;;  %v15975_v38 = vpop.f32.mrb[46].mxu1  ;;  %v15977_v21 = vpop.f32.mrb[46].mxu0 }
 0x1c5   : > { %19402 = vst [vmem:[#allocation128_spill] sm:$0xff] %v15975_v38  ;;  %19403 = vst [vmem:[#allocation129_spill] sm:$0xff] %v15977_v21  ;;  %v15981_v46 = vpop.f32.mrb[47].mxu1  ;;  %v15983_v3 = vpop.f32.mrb[47].mxu0 }
 0x1c6   : > { %19404 = vst [vmem:[#allocation130_spill] sm:$0xff] %v15981_v46  ;;  %19405 = vst [vmem:[#allocation131_spill] sm:$0xff] %v15983_v3 }
 0x1c7   : > { %3112 = vmatmul.mubr.bf16.gmra.mrb[152].mxu1 %v19406_v62 }
 0x1c8   : > { %12063 = vmatprep.mubr.msk.bf16.mxu1 %vm1865_vm5, %v19407_v63 }
 0x1ca   : > { %v15990_v58 = vpop.f32.mrb[48].mxu1  ;;  %v15992_v44 = vpop.f32.mrb[48].mxu0 }
 0x1cb   : > { %19408 = vst [vmem:[#allocation7_spill] sm:$0xff] %v15990_v58  ;;  %19409 = vst [vmem:[#allocation6_spill] sm:$0xff] %v15992_v44  ;;  %v15996_v24 = vpop.f32.mrb[49].mxu1  ;;  %v15998_v21 = vpop.f32.mrb[49].mxu0  ;;  %v19416_v44 = vld [vmem:[#allocation8_spill] sm:$0xff] }
 0x1cc   : > { %19410 = vst [vmem:[#allocation132_spill] sm:$0xff] %v15996_v24  ;;  %19411 = vst [vmem:[#allocation133_spill] sm:$0xff] %v15998_v21  ;;  %v16002_v60 = vpop.f32.mrb[50].mxu1  ;;  %v16004_v3 = vpop.f32.mrb[50].mxu0 }
 0x1cd   : > { %19412 = vst [vmem:[#allocation134_spill] sm:$0xff] %v16002_v60  ;;  %19413 = vst [vmem:[#allocation135_spill] sm:$0xff] %v16004_v3  ;;  %v16008_v37 = vpop.f32.mrb[51].mxu1  ;;  %v16010_v10 = vpop.f32.mrb[51].mxu0  ;;  %v2073_v60 = vld [vmem:[%s18946_s1 + $0x278] sm:$0xff] }
 0x1ce   : > { %19414 = vst [vmem:[#allocation136_spill] sm:$0xff] %v16008_v37  ;;  %19415 = vst [vmem:[#allocation137_spill] sm:$0xff] %v16010_v10 }
 0x1cf   : > { %3122 = vmatmul.mubr.bf16.gmra.mrb[156].mxu1 %v15064_v6 }
 0x1d0   : > { %12064 = vmatprep.mubr.msk.bf16.mxu1 %vm1865_vm5, %v19416_v44 }
 0x1d2   : > { %v16017_v38 = vpop.f32.mrb[52].mxu1  ;;  %v16019_v21 = vpop.f32.mrb[52].mxu0 }
 0x1d3   : > { %19417 = vst [vmem:[#allocation8_spill] sm:$0xff] %v16017_v38  ;;  %19418 = vst [vmem:[#allocation138_spill] sm:$0xff] %v16019_v21  ;;  %v16023_v46 = vpop.f32.mrb[53].mxu1  ;;  %v16025_v3 = vpop.f32.mrb[53].mxu0  ;;  %v2069_v21 = vld [vmem:[%s18946_s1 + $0x258] sm:$0xff] }
 0x1d4   : > { %19419 = vst [vmem:[#allocation139_spill] sm:$0xff] %v16023_v46  ;;  %19420 = vst [vmem:[#allocation140_spill] sm:$0xff] %v16025_v3  ;;  %v16029_v33 = vpop.f32.mrb[54].mxu1  ;;  %v16031_v10 = vpop.f32.mrb[54].mxu0  ;;  %v12006_v3 = vcombine.low %v2069_v21, %v2073_v60  ;;  %v12007_v46 = vcombine.high %v2069_v21, %v2073_v60 }
 0x1d5   : > { %19421 = vst [vmem:[#allocation141_spill] sm:$0xff] %v16029_v33  ;;  %19422 = vst [vmem:[#allocation142_spill] sm:$0xff] %v16031_v10  ;;  %v16035_v58 = vpop.f32.mrb[55].mxu1  ;;  %v16037_v1 = vpop.f32.mrb[55].mxu0 }
 0x1d6   : > { %19423 = vst [vmem:[#allocation143_spill] sm:$0xff] %v16035_v58  ;;  %19424 = vst [vmem:[#allocation144_spill] sm:$0xff] %v16037_v1  ;;  %3743 = vmatprep.subr.bf16.mxu1 %v12007_v46 }
 0x1d7   : > { %3132 = vmatmul.mubr.bf16.gmra.mrb[160].mxu1 %v15104_v41 }
 0x1d8   : > { %12065 = vmatprep.mubr.msk.bf16.mxu1 %vm1865_vm5, %v15106_v5  ;;  %3744 = vmatpush1.bf16.msra.mxu1 %v12006_v3 }
 0x1da   : > { %v16050_v37 = vpop.f32.mrb[56].mxu1  ;;  %v16052_v10 = vpop.f32.mrb[56].mxu0 }
 0x1db   : > { %19425 = vst [vmem:[#allocation145_spill] sm:$0xff] %v16050_v37  ;;  %19426 = vst [vmem:[#allocation146_spill] sm:$0xff] %v16052_v10  ;;  %v16056_v1 = vpop.f32.mrb[57].mxu1  ;;  %v16058_v58 = vpop.f32.mrb[57].mxu0 }
 0x1dc   : > { %19427 = vst [vmem:[#allocation147_spill] sm:$0xff] %v16056_v1  ;;  %19428 = vst [vmem:[#allocation148_spill] sm:$0xff] %v16058_v58  ;;  %v16062_v21 = vpop.f32.mrb[58].mxu1  ;;  %v16064_v60 = vpop.f32.mrb[58].mxu0 }
 0x1dd   : > { %19429 = vst [vmem:[#allocation149_spill] sm:$0xff] %v16062_v21  ;;  %19430 = vst [vmem:[#allocation150_spill] sm:$0xff] %v16064_v60  ;;  %v16068_v38 = vpop.f32.mrb[59].mxu1  ;;  %v16070_v3 = vpop.f32.mrb[59].mxu0 }
 0x1de   : > { %19431 = vst [vmem:[#allocation151_spill] sm:$0xff] %v16068_v38  ;;  %19432 = vst [vmem:[#allocation152_spill] sm:$0xff] %v16070_v3 }
 0x1df   : > { %3142 = vmatmul.mubr.bf16.gmra.mrb[164].mxu1 %v15138_v11 }
 0x1e0   : > { %12066 = vmatprep.mubr.msk.bf16.mxu1 %vm1865_vm5, %v15140_v16 }
 0x1e2   : > { %v16077_v33 = vpop.f32.mrb[60].mxu1  ;;  %v16079_v58 = vpop.f32.mrb[60].mxu0 }
 0x1e3   : > { %19433 = vst [vmem:[#allocation153_spill] sm:$0xff] %v16077_v33  ;;  %19434 = vst [vmem:[#allocation154_spill] sm:$0xff] %v16079_v58  ;;  %v16083_v46 = vpop.f32.mrb[61].mxu1  ;;  %v16085_v60 = vpop.f32.mrb[61].mxu0  ;;  %v19441_v58 = vld [vmem:[#allocation9_spill] sm:$0xff]  ;;  %v2081_v33 = vld [vmem:[%s18946_s1 + $0x2b8] sm:$0xff] }
 0x1e4   : > { %19435 = vst [vmem:[#allocation155_spill] sm:$0xff] %v16083_v46  ;;  %19436 = vst [vmem:[#allocation156_spill] sm:$0xff] %v16085_v60  ;;  %v16089_v24 = vpop.f32.mrb[62].mxu1  ;;  %v16091_v3 = vpop.f32.mrb[62].mxu0 }
 0x1e5   : > { %19437 = vst [vmem:[#allocation157_spill] sm:$0xff] %v16089_v24  ;;  %19438 = vst [vmem:[#allocation158_spill] sm:$0xff] %v16091_v3  ;;  %v16095_v10 = vpop.f32.mrb[63].mxu1  ;;  %v16097_v37 = vpop.f32.mrb[63].mxu0 }
 0x1e6   : > { %19439 = vst [vmem:[#allocation159_spill] sm:$0xff] %v16095_v10  ;;  %19440 = vst [vmem:[#allocation160_spill] sm:$0xff] %v16097_v37  ;;  %v2077_v10 = vld [vmem:[%s18946_s1 + $0x298] sm:$0xff] }
 0x1e7   : > { %3152 = vmatmul.mubr.bf16.gmra.mrb[168].mxu1 %v15175_v35  ;;  %v12014_v24 = vcombine.low %v2077_v10, %v2081_v33 }
 0x1e8   : > { %12067 = vmatprep.mubr.msk.bf16.mxu1 %vm1865_vm5, %v19441_v58 }
 0x1ea   : > { %v16104_v21 = vpop.f32.mrb[64].mxu1  ;;  %v16106_v60 = vpop.f32.mrb[64].mxu0 }
 0x1eb   : > { %19442 = vst [vmem:[#allocation9_spill] sm:$0xff] %v16104_v21  ;;  %19443 = vst [vmem:[#allocation161_spill] sm:$0xff] %v16106_v60  ;;  %v16110_v38 = vpop.f32.mrb[65].mxu1  ;;  %v16112_v3 = vpop.f32.mrb[65].mxu0 }
 0x1ec   : > { %19444 = vst [vmem:[#allocation162_spill] sm:$0xff] %v16110_v38  ;;  %19445 = vst [vmem:[#allocation163_spill] sm:$0xff] %v16112_v3  ;;  %v16116_v1 = vpop.f32.mrb[66].mxu1  ;;  %v16118_v37 = vpop.f32.mrb[66].mxu0  ;;  %v12015_v3 = vcombine.high %v2077_v10, %v2081_v33 }
 0x1ed   : > { %19446 = vst [vmem:[#allocation164_spill] sm:$0xff] %v16116_v1  ;;  %19447 = vst [vmem:[#allocation165_spill] sm:$0xff] %v16118_v37  ;;  %v16128_v60 = vpop.f32.mrb[67].mxu1  ;;  %v16130_v21 = vpop.f32.mrb[67].mxu0 }
 0x1ee   : > { %19448 = vst [vmem:[#allocation166_spill] sm:$0xff] %v16128_v60  ;;  %19449 = vst [vmem:[#allocation167_spill] sm:$0xff] %v16130_v21  ;;  %3745 = vmatprep.subr.bf16.mxu1 %v12015_v3 }
 0x1ef   : > { %3162 = vmatmul.mubr.bf16.gmra.mrb[172].mxu1 %v15221_v51 }
 0x1f0   : > { %12068 = vmatprep.mubr.msk.bf16.mxu1 %vm1865_vm5, %v15214_v7  ;;  %3746 = vmatpush1.bf16.msra.mxu1 %v12014_v24 }
 0x1f2   : > { %v16137_v52 = vpop.f32.mrb[68].mxu1  ;;  %v16139_v49 = vpop.f32.mrb[68].mxu0 }
 0x1f3   : > { %19450 = vst [vmem:[#allocation168_spill] sm:$0xff] %v16137_v52  ;;  %19451 = vst [vmem:[#allocation169_spill] sm:$0xff] %v16139_v49  ;;  %v16143_v37 = vpop.f32.mrb[69].mxu1  ;;  %v16145_v33 = vpop.f32.mrb[69].mxu0  ;;  %v19458_v49 = vld [vmem:[#allocation11_spill] sm:$0xff]  ;;  %v19459_v52 = vld [vmem:[#allocation10_spill] sm:$0xff] }
 0x1f4   : > { %19452 = vst [vmem:[#allocation170_spill] sm:$0xff] %v16143_v37  ;;  %19453 = vst [vmem:[#allocation171_spill] sm:$0xff] %v16145_v33  ;;  %v16149_v38 = vpop.f32.mrb[70].mxu1  ;;  %v16151_v3 = vpop.f32.mrb[70].mxu0 }
 0x1f5   : > { %19454 = vst [vmem:[#allocation172_spill] sm:$0xff] %v16149_v38  ;;  %19455 = vst [vmem:[#allocation173_spill] sm:$0xff] %v16151_v3  ;;  %v16155_v21 = vpop.f32.mrb[71].mxu1  ;;  %v16157_v60 = vpop.f32.mrb[71].mxu0  ;;  %v2085_v38 = vld [vmem:[%s18946_s1 + $0x2d8] sm:$0xff] }
 0x1f6   : > { %19456 = vst [vmem:[#allocation174_spill] sm:$0xff] %v16155_v21  ;;  %19457 = vst [vmem:[#allocation175_spill] sm:$0xff] %v16157_v60 }
 0x1f7   : > { %3172 = vmatmul.mubr.bf16.gmra.mrb[176].mxu1 %v19458_v49 }
 0x1f8   : > { %12069 = vmatprep.mubr.msk.bf16.mxu1 %vm1865_vm5, %v19459_v52 }
 0x1fa   : > { %v16164_v10 = vpop.f32.mrb[72].mxu1  ;;  %v16166_v33 = vpop.f32.mrb[72].mxu0 }
 0x1fb   : > { %19460 = vst [vmem:[#allocation11_spill] sm:$0xff] %v16164_v10  ;;  %19461 = vst [vmem:[#allocation10_spill] sm:$0xff] %v16166_v33  ;;  %v16170_v24 = vpop.f32.mrb[73].mxu1  ;;  %v16172_v3 = vpop.f32.mrb[73].mxu0  ;;  %v19468_v33 = vld [vmem:[#allocation14_spill] sm:$0xff] }
 0x1fc   : > { %19462 = vst [vmem:[#allocation176_spill] sm:$0xff] %v16170_v24  ;;  %19463 = vst [vmem:[#allocation177_spill] sm:$0xff] %v16172_v3  ;;  %v16176_v46 = vpop.f32.mrb[74].mxu1  ;;  %v16178_v60 = vpop.f32.mrb[74].mxu0  ;;  %v2089_v3 = vld [vmem:[%s18946_s1 + $0x2f8] sm:$0xff]  ;;  %v19469_v24 = vld [vmem:[#allocation13_spill] sm:$0xff] }
 0x1fd   : > { %19464 = vst [vmem:[#allocation178_spill] sm:$0xff] %v16176_v46  ;;  %19465 = vst [vmem:[#allocation179_spill] sm:$0xff] %v16178_v60  ;;  %v16182_v1 = vpop.f32.mrb[75].mxu1  ;;  %v16184_v36 = vpop.f32.mrb[75].mxu0  ;;  %v12022_v21 = vcombine.low %v2085_v38, %v2089_v3  ;;  %v12023_v60 = vcombine.high %v2085_v38, %v2089_v3 }
 0x1fe   : > { %19466 = vst [vmem:[#allocation180_spill] sm:$0xff] %v16182_v1  ;;  %19467 = vst [vmem:[#allocation181_spill] sm:$0xff] %v16184_v36 }
 0x1ff   : > { %3182 = vmatmul.mubr.bf16.gmra.mrb[180].mxu1 %v19468_v33  ;;  %3747 = vmatprep.subr.bf16.mxu1 %v12023_v60 }
 0x200   : > { %12070 = vmatprep.mubr.msk.bf16.mxu1 %vm1865_vm5, %v19469_v24  ;;  %3748 = vmatpush1.bf16.msra.mxu1 %v12022_v21  ;;  %v19479_v21 = vld [vmem:[#allocation16_spill] sm:$0xff] }
 0x202   : > { %v16197_v46 = vpop.f32.mrb[76].mxu1  ;;  %v16199_v10 = vpop.f32.mrb[76].mxu0 }
 0x203   : > { %19470 = vst [vmem:[#allocation14_spill] sm:$0xff] %v16197_v46  ;;  %19471 = vst [vmem:[#allocation13_spill] sm:$0xff] %v16199_v10  ;;  %v16203_v36 = vpop.f32.mrb[77].mxu1  ;;  %v16205_v1 = vpop.f32.mrb[77].mxu0  ;;  %v19478_v10 = vld [vmem:[#allocation17_spill] sm:$0xff] }
 0x204   : > { %19472 = vst [vmem:[#allocation182_spill] sm:$0xff] %v16203_v36  ;;  %19473 = vst [vmem:[#allocation183_spill] sm:$0xff] %v16205_v1  ;;  %v16209_v31 = vpop.f32.mrb[78].mxu1  ;;  %v16211_v17 = vpop.f32.mrb[78].mxu0 }
 0x205   : > { %19474 = vst [vmem:[#allocation184_spill] sm:$0xff] %v16209_v31  ;;  %19475 = vst [vmem:[#allocation185_spill] sm:$0xff] %v16211_v17  ;;  %v16215_v3 = vpop.f32.mrb[79].mxu1  ;;  %v16217_v60 = vpop.f32.mrb[79].mxu0 }
 0x206   : > { %19476 = vst [vmem:[#allocation186_spill] sm:$0xff] %v16215_v3  ;;  %19477 = vst [vmem:[#allocation187_spill] sm:$0xff] %v16217_v60 }
 0x207   : > { %3192 = vmatmul.mubr.bf16.gmra.mrb[184].mxu1 %v19478_v10 }
 0x208   : > { %12071 = vmatprep.mubr.msk.bf16.mxu1 %vm1865_vm5, %v19479_v21 }
 0x20a   : > { %v16224_v57 = vpop.f32.mrb[80].mxu1  ;;  %v16226_v1 = vpop.f32.mrb[80].mxu0 }
 0x20b   : > { %19480 = vst [vmem:[#allocation17_spill] sm:$0xff] %v16224_v57  ;;  %19481 = vst [vmem:[#allocation16_spill] sm:$0xff] %v16226_v1  ;;  %v16230_v38 = vpop.f32.mrb[81].mxu1  ;;  %v16232_v17 = vpop.f32.mrb[81].mxu0  ;;  %v19488_v1 = vld [vmem:[#allocation19_spill] sm:$0xff]  ;;  %v19489_v57 = vld [vmem:[#allocation20_spill] sm:$0xff] }
 0x20c   : > { %19482 = vst [vmem:[#allocation188_spill] sm:$0xff] %v16230_v38  ;;  %19483 = vst [vmem:[#allocation189_spill] sm:$0xff] %v16232_v17  ;;  %v16236_v37 = vpop.f32.mrb[82].mxu1  ;;  %v16238_v60 = vpop.f32.mrb[82].mxu0 }
 0x20d   : > { %19484 = vst [vmem:[#allocation190_spill] sm:$0xff] %v16236_v37  ;;  %19485 = vst [vmem:[#allocation191_spill] sm:$0xff] %v16238_v60  ;;  %v16242_v46 = vpop.f32.mrb[83].mxu1  ;;  %v16244_v39 = vpop.f32.mrb[83].mxu0 }
 0x20e   : > { %19486 = vst [vmem:[#allocation192_spill] sm:$0xff] %v16242_v46  ;;  %19487 = vst [vmem:[#allocation193_spill] sm:$0xff] %v16244_v39 }
 0x20f   : > { %3202 = vmatmul.mubr.bf16.gmra.mrb[188].mxu1 %v19488_v1 }
 0x210   : > { %12072 = vmatprep.mubr.msk.bf16.mxu1 %vm1865_vm5, %v19489_v57 }
 0x212   : > { %v16251_v31 = vpop.f32.mrb[84].mxu1  ;;  %v16253_v17 = vpop.f32.mrb[84].mxu0 }
 0x213   : > { %19490 = vst [vmem:[#allocation19_spill] sm:$0xff] %v16251_v31  ;;  %19491 = vst [vmem:[#allocation20_spill] sm:$0xff] %v16253_v17  ;;  %v16257_v3 = vpop.f32.mrb[85].mxu1  ;;  %v16259_v60 = vpop.f32.mrb[85].mxu0  ;;  %v19498_v17 = vld [vmem:[#allocation22_spill] sm:$0xff]  ;;  %v19499_v31 = vld [vmem:[#allocation23_spill] sm:$0xff] }
 0x214   : > { %19492 = vst [vmem:[#allocation194_spill] sm:$0xff] %v16257_v3  ;;  %19493 = vst [vmem:[#allocation195_spill] sm:$0xff] %v16259_v60  ;;  %v16263_v36 = vpop.f32.mrb[86].mxu1  ;;  %v16265_v39 = vpop.f32.mrb[86].mxu0 }
 0x215   : > { %19494 = vst [vmem:[#allocation196_spill] sm:$0xff] %v16263_v36  ;;  %19495 = vst [vmem:[#allocation197_spill] sm:$0xff] %v16265_v39  ;;  %v16269_v26 = vpop.f32.mrb[87].mxu1  ;;  %v16271_v59 = vpop.f32.mrb[87].mxu0 }
 0x216   : > { %19496 = vst [vmem:[#allocation198_spill] sm:$0xff] %v16269_v26  ;;  %19497 = vst [vmem:[#allocation199_spill] sm:$0xff] %v16271_v59 }
 0x217   : > { %3212 = vmatmul.mubr.bf16.gmra.mrb[192].mxu1 %v19498_v17 }
 0x218   : > { %12073 = vmatprep.mubr.msk.bf16.mxu1 %vm1865_vm5, %v19499_v31 }
 0x21a   : > { %v16278_v37 = vpop.f32.mrb[88].mxu1  ;;  %v16280_v60 = vpop.f32.mrb[88].mxu0 }
 0x21b   : > { %19500 = vst [vmem:[#allocation200_spill] sm:$0xff] %v16278_v37  ;;  %19501 = vst [vmem:[#allocation201_spill] sm:$0xff] %v16280_v60  ;;  %v16284_v46 = vpop.f32.mrb[89].mxu1  ;;  %v16286_v39 = vpop.f32.mrb[89].mxu0  ;;  %v19508_v60 = vld [vmem:[#allocation24_spill] sm:$0xff] }
 0x21c   : > { %19502 = vst [vmem:[#allocation202_spill] sm:$0xff] %v16284_v46  ;;  %19503 = vst [vmem:[#allocation203_spill] sm:$0xff] %v16286_v39  ;;  %v16290_v38 = vpop.f32.mrb[90].mxu1  ;;  %v16292_v59 = vpop.f32.mrb[90].mxu0 }
 0x21d   : > { %19504 = vst [vmem:[#allocation204_spill] sm:$0xff] %v16290_v38  ;;  %19505 = vst [vmem:[#allocation205_spill] sm:$0xff] %v16292_v59  ;;  %v16296_v31 = vpop.f32.mrb[91].mxu1  ;;  %v16298_v17 = vpop.f32.mrb[91].mxu0 }
 0x21e   : > { %19506 = vst [vmem:[#allocation206_spill] sm:$0xff] %v16296_v31  ;;  %19507 = vst [vmem:[#allocation207_spill] sm:$0xff] %v16298_v17 }
 0x21f   : > { %3222 = vmatmul.mubr.bf16.gmra.mrb[196].mxu1 %v15416_v32 }
 0x220   : > { %12074 = vmatprep.mubr.msk.bf16.mxu1 %vm1865_vm5, %v19508_v60 }
 0x222   : > { %v16305_v36 = vpop.f32.mrb[92].mxu1  ;;  %v16307_v39 = vpop.f32.mrb[92].mxu0 }
 0x223   : > { %19509 = vst [vmem:[#allocation208_spill] sm:$0xff] %v16305_v36  ;;  %19510 = vst [vmem:[#allocation209_spill] sm:$0xff] %v16307_v39  ;;  %v16311_v26 = vpop.f32.mrb[93].mxu1  ;;  %v16313_v59 = vpop.f32.mrb[93].mxu0  ;;  %v19517_v39 = vld [vmem:[#allocation25_spill] sm:$0xff]  ;;  %v19518_v36 = vld [vmem:[#allocation26_spill] sm:$0xff] }
 0x224   : > { %19511 = vst [vmem:[#allocation210_spill] sm:$0xff] %v16311_v26  ;;  %19512 = vst [vmem:[#allocation211_spill] sm:$0xff] %v16313_v59  ;;  %v16317_v3 = vpop.f32.mrb[94].mxu1  ;;  %v16319_v17 = vpop.f32.mrb[94].mxu0 }
 0x225   : > { %19513 = vst [vmem:[#allocation212_spill] sm:$0xff] %v16317_v3  ;;  %19514 = vst [vmem:[#allocation213_spill] sm:$0xff] %v16319_v17  ;;  %v16323_v37 = vpop.f32.mrb[95].mxu1  ;;  %v16325_v60 = vpop.f32.mrb[95].mxu0 }
 0x226   : > { %19515 = vst [vmem:[#allocation214_spill] sm:$0xff] %v16323_v37  ;;  %19516 = vst [vmem:[#allocation215_spill] sm:$0xff] %v16325_v60 }
 0x227   : > { %3232 = vmatmul.mubr.bf16.gmra.mrb[200].mxu1 %v19517_v39 }
 0x228   : > { %12075 = vmatprep.mubr.msk.bf16.mxu1 %vm1865_vm5, %v19518_v36 }
 0x22a   : > { %v16332_v38 = vpop.f32.mrb[96].mxu1  ;;  %v16334_v59 = vpop.f32.mrb[96].mxu0 }
 0x22b   : > { %19519 = vst [vmem:[#allocation216_spill] sm:$0xff] %v16332_v38  ;;  %19520 = vst [vmem:[#allocation217_spill] sm:$0xff] %v16334_v59  ;;  %v16338_v31 = vpop.f32.mrb[97].mxu1  ;;  %v16340_v17 = vpop.f32.mrb[97].mxu0  ;;  %v19527_v59 = vld [vmem:[#allocation27_spill] sm:$0xff]  ;;  %v19528_v38 = vld [vmem:[#allocation28_spill] sm:$0xff] }
 0x22c   : > { %19521 = vst [vmem:[#allocation218_spill] sm:$0xff] %v16338_v31  ;;  %19522 = vst [vmem:[#allocation219_spill] sm:$0xff] %v16340_v17  ;;  %v16344_v46 = vpop.f32.mrb[98].mxu1  ;;  %v16346_v60 = vpop.f32.mrb[98].mxu0 }
 0x22d   : > { %19523 = vst [vmem:[#allocation220_spill] sm:$0xff] %v16344_v46  ;;  %19524 = vst [vmem:[#allocation221_spill] sm:$0xff] %v16346_v60  ;;  %v16350_v36 = vpop.f32.mrb[99].mxu1  ;;  %v16352_v39 = vpop.f32.mrb[99].mxu0 }
 0x22e   : > { %19525 = vst [vmem:[#allocation222_spill] sm:$0xff] %v16350_v36  ;;  %19526 = vst [vmem:[#allocation223_spill] sm:$0xff] %v16352_v39 }
 0x22f   : > { %3242 = vmatmul.mubr.bf16.gmra.mrb[204].mxu1 %v19527_v59 }
 0x230   : > { %12076 = vmatprep.mubr.msk.bf16.mxu1 %vm1865_vm5, %v19528_v38 }
 0x232   : > { %v16359_v3 = vpop.f32.mrb[100].mxu1  ;;  %v16361_v17 = vpop.f32.mrb[100].mxu0 }
 0x233   : > { %19529 = vst [vmem:[#allocation224_spill] sm:$0xff] %v16359_v3  ;;  %19530 = vst [vmem:[#allocation225_spill] sm:$0xff] %v16361_v17  ;;  %v16365_v37 = vpop.f32.mrb[101].mxu1  ;;  %v16367_v60 = vpop.f32.mrb[101].mxu0  ;;  %v19537_v17 = vld [vmem:[#allocation29_spill] sm:$0xff]  ;;  %v19538_v3 = vld [vmem:[#allocation30_spill] sm:$0xff] }
 0x234   : > { %19531 = vst [vmem:[#allocation226_spill] sm:$0xff] %v16365_v37  ;;  %19532 = vst [vmem:[#allocation227_spill] sm:$0xff] %v16367_v60  ;;  %v16371_v26 = vpop.f32.mrb[102].mxu1  ;;  %v16373_v39 = vpop.f32.mrb[102].mxu0 }
 0x235   : > { %19533 = vst [vmem:[#allocation228_spill] sm:$0xff] %v16371_v26  ;;  %19534 = vst [vmem:[#allocation229_spill] sm:$0xff] %v16373_v39  ;;  %v16377_v38 = vpop.f32.mrb[103].mxu1  ;;  %v16379_v59 = vpop.f32.mrb[103].mxu0 }
 0x236   : > { %19535 = vst [vmem:[#allocation230_spill] sm:$0xff] %v16377_v38  ;;  %19536 = vst [vmem:[#allocation231_spill] sm:$0xff] %v16379_v59 }
 0x237   : > { %3252 = vmatmul.mubr.bf16.gmra.mrb[208].mxu1 %v19537_v17 }
 0x238   : > { %12077 = vmatprep.mubr.msk.bf16.mxu1 %vm1865_vm5, %v19538_v3 }
 0x23a   : > { %v16386_v46 = vpop.f32.mrb[104].mxu1  ;;  %v16388_v60 = vpop.f32.mrb[104].mxu0 }
 0x23b   : > { %19539 = vst [vmem:[#allocation232_spill] sm:$0xff] %v16386_v46  ;;  %19540 = vst [vmem:[#allocation233_spill] sm:$0xff] %v16388_v60  ;;  %v16392_v36 = vpop.f32.mrb[105].mxu1  ;;  %v16394_v39 = vpop.f32.mrb[105].mxu0  ;;  %v19547_v60 = vld [vmem:[#allocation31_spill] sm:$0xff]  ;;  %v19548_v46 = vld [vmem:[#allocation32_spill] sm:$0xff] }
 0x23c   : > { %19541 = vst [vmem:[#allocation234_spill] sm:$0xff] %v16392_v36  ;;  %19542 = vst [vmem:[#allocation235_spill] sm:$0xff] %v16394_v39  ;;  %v16398_v31 = vpop.f32.mrb[106].mxu1  ;;  %v16400_v59 = vpop.f32.mrb[106].mxu0 }
 0x23d   : > { %19543 = vst [vmem:[#allocation236_spill] sm:$0xff] %v16398_v31  ;;  %19544 = vst [vmem:[#allocation237_spill] sm:$0xff] %v16400_v59  ;;  %v16404_v3 = vpop.f32.mrb[107].mxu1  ;;  %v16406_v17 = vpop.f32.mrb[107].mxu0 }
 0x23e   : > { %19545 = vst [vmem:[#allocation238_spill] sm:$0xff] %v16404_v3  ;;  %19546 = vst [vmem:[#allocation239_spill] sm:$0xff] %v16406_v17 }
 0x23f   : > { %3262 = vmatmul.mubr.bf16.gmra.mrb[212].mxu1 %v19547_v60 }
 0x240   : > { %12078 = vmatprep.mubr.msk.bf16.mxu1 %vm1865_vm5, %v19548_v46 }
 0x242   : > { %v16413_v26 = vpop.f32.mrb[108].mxu1  ;;  %v16415_v39 = vpop.f32.mrb[108].mxu0 }
 0x243   : > { %19549 = vst [vmem:[#allocation240_spill] sm:$0xff] %v16413_v26  ;;  %19550 = vst [vmem:[#allocation241_spill] sm:$0xff] %v16415_v39  ;;  %v16419_v38 = vpop.f32.mrb[109].mxu1  ;;  %v16421_v59 = vpop.f32.mrb[109].mxu0 }
 0x244   : > { %19551 = vst [vmem:[#allocation242_spill] sm:$0xff] %v16419_v38  ;;  %19552 = vst [vmem:[#allocation243_spill] sm:$0xff] %v16421_v59  ;;  %v16425_v37 = vpop.f32.mrb[110].mxu1  ;;  %v16427_v17 = vpop.f32.mrb[110].mxu0 }
 0x245   : > { %19553 = vst [vmem:[#allocation244_spill] sm:$0xff] %v16425_v37  ;;  %19554 = vst [vmem:[#allocation245_spill] sm:$0xff] %v16427_v17  ;;  %v16431_v46 = vpop.f32.mrb[111].mxu1  ;;  %v16433_v60 = vpop.f32.mrb[111].mxu0 }
 0x246   : > { %19555 = vst [vmem:[#allocation246_spill] sm:$0xff] %v16431_v46  ;;  %19556 = vst [vmem:[#allocation247_spill] sm:$0xff] %v16433_v60 }
 0x247   : > { %3272 = vmatmul.mubr.bf16.gmra.mrb[216].mxu1 %v15511_v12 }
 0x248   : > { %12079 = vmatprep.mubr.msk.bf16.mxu1 %vm1865_vm5, %v15513_v53 }
 0x24a   : > { %v16440_v31 = vpop.f32.mrb[112].mxu1  ;;  %v16442_v59 = vpop.f32.mrb[112].mxu0 }
 0x24b   : > { %19557 = vst [vmem:[#allocation248_spill] sm:$0xff] %v16440_v31  ;;  %19558 = vst [vmem:[#allocation249_spill] sm:$0xff] %v16442_v59  ;;  %v16446_v3 = vpop.f32.mrb[113].mxu1  ;;  %v16448_v17 = vpop.f32.mrb[113].mxu0 }
 0x24c   : > { %19559 = vst [vmem:[#allocation250_spill] sm:$0xff] %v16446_v3  ;;  %19560 = vst [vmem:[#allocation251_spill] sm:$0xff] %v16448_v17  ;;  %v16452_v36 = vpop.f32.mrb[114].mxu1  ;;  %v16454_v60 = vpop.f32.mrb[114].mxu0 }
 0x24d   : > { %19561 = vst [vmem:[#allocation252_spill] sm:$0xff] %v16452_v36  ;;  %19562 = vst [vmem:[#allocation253_spill] sm:$0xff] %v16454_v60  ;;  %v16458_v39 = vpop.f32.mrb[115].mxu1  ;;  %v16460_v26 = vpop.f32.mrb[115].mxu0 }
 0x24e   : > { %19563 = vst [vmem:[#allocation254_spill] sm:$0xff] %v16458_v39  ;;  %19564 = vst [vmem:[#allocation255_spill] sm:$0xff] %v16460_v26 }
 0x24f   : > { %3282 = vmatmul.mubr.bf16.gmra.mrb[220].mxu1 %v15528_v15 }
 0x250   : > { %12080 = vmatprep.mubr.msk.bf16.mxu1 %vm1865_vm5, %v15530_v20 }
 0x252   : > { %v16467_v37 = vpop.f32.mrb[116].mxu1  ;;  %v16469_v17 = vpop.f32.mrb[116].mxu0 }
 0x253   : > { %19565 = vst [vmem:[#allocation256_spill] sm:$0xff] %v16467_v37  ;;  %19566 = vst [vmem:[#allocation257_spill] sm:$0xff] %v16469_v17  ;;  %v16473_v46 = vpop.f32.mrb[117].mxu1  ;;  %v16475_v60 = vpop.f32.mrb[117].mxu0 }
 0x254   : > { %19567 = vst [vmem:[#allocation258_spill] sm:$0xff] %v16473_v46  ;;  %19568 = vst [vmem:[#allocation259_spill] sm:$0xff] %v16475_v60  ;;  %v16479_v38 = vpop.f32.mrb[118].mxu1  ;;  %v16481_v26 = vpop.f32.mrb[118].mxu0 }
 0x255   : > { %19569 = vst [vmem:[#allocation260_spill] sm:$0xff] %v16479_v38  ;;  %19570 = vst [vmem:[#allocation261_spill] sm:$0xff] %v16481_v26  ;;  %v16485_v59 = vpop.f32.mrb[119].mxu1  ;;  %v16487_v31 = vpop.f32.mrb[119].mxu0 }
 0x256   : > { %19571 = vst [vmem:[#allocation262_spill] sm:$0xff] %v16485_v59  ;;  %19572 = vst [vmem:[#allocation263_spill] sm:$0xff] %v16487_v31 }
 0x257   : > { %3292 = vmatmul.mubr.bf16.gmra.mrb[224].mxu1 %v15540_v55 }
 0x258   : > { %12081 = vmatprep.mubr.msk.bf16.mxu1 %vm1865_vm5, %v15206_v2 }
 0x25a   : > { %v16494_v36 = vpop.f32.mrb[120].mxu1  ;;  %v16496_v60 = vpop.f32.mrb[120].mxu0 }
 0x25b   : > { %19573 = vst [vmem:[#allocation264_spill] sm:$0xff] %v16494_v36  ;;  %19574 = vst [vmem:[#allocation265_spill] sm:$0xff] %v16496_v60  ;;  %v16500_v39 = vpop.f32.mrb[121].mxu1  ;;  %v16502_v26 = vpop.f32.mrb[121].mxu0 }
 0x25c   : > { %19575 = vst [vmem:[#allocation266_spill] sm:$0xff] %v16500_v39  ;;  %19576 = vst [vmem:[#allocation267_spill] sm:$0xff] %v16502_v26  ;;  %v16506_v3 = vpop.f32.mrb[122].mxu1  ;;  %v16508_v31 = vpop.f32.mrb[122].mxu0 }
 0x25d   : > { %19577 = vst [vmem:[#allocation268_spill] sm:$0xff] %v16506_v3  ;;  %19578 = vst [vmem:[#allocation269_spill] sm:$0xff] %v16508_v31  ;;  %v16512_v17 = vpop.f32.mrb[123].mxu1  ;;  %v16514_v37 = vpop.f32.mrb[123].mxu0 }
 0x25e   : > { %19579 = vst [vmem:[#allocation270_spill] sm:$0xff] %v16512_v17  ;;  %19580 = vst [vmem:[#allocation271_spill] sm:$0xff] %v16514_v37 }
 0x25f   : > { %3302 = vmatmul.mubr.bf16.gmra.mrb[228].mxu1 %v15552_v18 }
 0x260   : > { %12082 = vmatprep.mubr.msk.bf16.mxu1 %vm1865_vm5, %v15212_v19 }
 0x262   : > { %v16521_v38 = vpop.f32.mrb[124].mxu1  ;;  %v16523_v26 = vpop.f32.mrb[124].mxu0 }
 0x263   : > { %19581 = vst [vmem:[#allocation272_spill] sm:$0xff] %v16521_v38  ;;  %19582 = vst [vmem:[#allocation273_spill] sm:$0xff] %v16523_v26  ;;  %v16527_v59 = vpop.f32.mrb[125].mxu1  ;;  %v16529_v31 = vpop.f32.mrb[125].mxu0 }
 0x264   : > { %19583 = vst [vmem:[#allocation274_spill] sm:$0xff] %v16527_v59  ;;  %19584 = vst [vmem:[#allocation275_spill] sm:$0xff] %v16529_v31  ;;  %v16533_v46 = vpop.f32.mrb[126].mxu1  ;;  %v16535_v37 = vpop.f32.mrb[126].mxu0 }
 0x265   : > { %19585 = vst [vmem:[#allocation276_spill] sm:$0xff] %v16533_v46  ;;  %19586 = vst [vmem:[#allocation277_spill] sm:$0xff] %v16535_v37  ;;  %v16539_v60 = vpop.f32.mrb[127].mxu1  ;;  %v16541_v36 = vpop.f32.mrb[127].mxu0 }
 0x266   : > { %19587 = vst [vmem:[#allocation278_spill] sm:$0xff] %v16539_v60  ;;  %19588 = vst [vmem:[#allocation279_spill] sm:$0xff] %v16541_v36 }
 0x267   : > { %3312 = vmatmul.mubr.bf16.gmra.mrb[232].mxu1 %v15564_v25 }
 0x268   : > { %12083 = vmatprep.mubr.msk.bf16.mxu1 %vm1865_vm5, %v15231_v40 }
 0x26a   : > { %v16548_v3 = vpop.f32.mrb[128].mxu1 }
 0x26b   : > { %v16550_v31 = vpop.f32.mrb[129].mxu1 }
 0x26c   : > { %v16552_v59 = vpop.f32.mrb[130].mxu1 }
 0x26d   : > { %v16554_v26 = vpop.f32.mrb[131].mxu1 }
 0x26f   : > { %3322 = vmatmul.mubr.bf16.gmra.mrb[236].mxu1 %v15592_v14 }
 0x270   : > { %12084 = vmatprep.mubr.msk.bf16.mxu1 %vm1865_vm5, %v15265_v9 }
 0x272   : > { %v16559_v17 = vpop.f32.mrb[132].mxu1 }
 0x273   : > { %v16561_v39 = vpop.f32.mrb[133].mxu1 }
 0x274   : > { %v16563_v36 = vpop.f32.mrb[134].mxu1 }
 0x275   : > { %19589 = vst [vmem:[#allocation280_spill] sm:$0xff] %v16563_v36  ;;  %v16565_v60 = vpop.f32.mrb[135].mxu1 }
 0x276   : > { %19590 = vst [vmem:[#allocation281_spill] sm:$0xff] %v16565_v60 }
 0x277   : > { %3332 = vmatmul.mubr.bf16.gmra.mrb[240].mxu1 %v15628_v43 }
 0x278   : > { %12085 = vmatprep.mubr.msk.bf16.mxu1 %vm1865_vm5, %v15299_v0 }
 0x27a   : > { %v16570_v37 = vpop.f32.mrb[136].mxu1 }
 0x27b   : > { %v16572_v46 = vpop.f32.mrb[137].mxu1 }
 0x27c   : > { %v16574_v38 = vpop.f32.mrb[138].mxu1 }
 0x27d   : > { %19591 = vst [vmem:[#allocation282_spill] sm:$0xff] %v16574_v38  ;;  %v16576_v9 = vpop.f32.mrb[139].mxu1 }
 0x27e   : > { %19592 = vst [vmem:[#allocation283_spill] sm:$0xff] %v16576_v9 }
 0x27f   : > { %3342 = vmatmul.mubr.bf16.gmra.mrb[244].mxu1 %v15664_v47 }
 0x280   : > { %12086 = vmatprep.mubr.msk.bf16.mxu1 %vm1865_vm5, %v15335_v61 }
 0x282   : > { %v16581_v36 = vpop.f32.mrb[140].mxu1 }
 0x283   : > { %v16583_v60 = vpop.f32.mrb[141].mxu1 }
 0x284   : > { %19593 = vst [vmem:[#allocation284_spill] sm:$0xff] %v16583_v60  ;;  %v16585_v43 = vpop.f32.mrb[142].mxu1  ;;  %v13346_v60 = vld [vmem:[%s18947_s2 + $0x100] ss:$8 sps:$4 sm:$0xff]  }
 0x285   : > { %v16587_v0 = vpop.f32.mrb[143].mxu1 }
 0x286   : > { %19594 = vst [vmem:[#allocation285_spill] sm:$0xff] %v16587_v0  ;;  %v13348_v0 = vld [vmem:[%s18947_s2 + $0x104] ss:$8 sps:$4 sm:$0xff]  }
 0x287   : > { %3352 = vmatmul.mubr.bf16.gmra.mrb[248].mxu1 %v15700_v28  ;;  %6171 = vmatprep.subr.bf16.mxu0 %v13348_v0 }
 0x288   : > { %12087 = vmatprep.mubr.msk.bf16.mxu1 %vm1865_vm5, %v15366_v54  ;;  %6172 = vmatpush1.bf16.msra.mxu0 %v13346_v60  ;;  %v13349_v60 = vld [vmem:[%s18947_s2 + $0x110] ss:$8 sps:$4 sm:$0xff]  }
 0x28a   : > { %v16592_v38 = vpop.f32.mrb[144].mxu1 }
 0x28b   : > { %19595 = vst [vmem:[#allocation286_spill] sm:$0xff] %v16592_v38  ;;  %v16594_v9 = vpop.f32.mrb[145].mxu1 }
 0x28c   : > { %19596 = vst [vmem:[#allocation287_spill] sm:$0xff] %v16594_v9  ;;  %v16596_v47 = vpop.f32.mrb[146].mxu1 }
 0x28d   : > { %19597 = vst [vmem:[#allocation288_spill] sm:$0xff] %v16596_v47  ;;  %v16598_v61 = vpop.f32.mrb[147].mxu1 }
 0x28e   : > { %19598 = vst [vmem:[#allocation289_spill] sm:$0xff] %v16598_v61 }
 0x28f   : > { %3362 = vmatmul.mubr.bf16.gmra.mrb[252].mxu1 %v15736_v23 }
 0x290   : > { %12120 = vmatprep.mubr.msk.bf16.mxu1 %vm1865_vm5, %v14599_v29 }
 0x292   : > { %v16609_v9 = vpop.f32.mrb[148].mxu1 }
 0x293   : > { %v16611_v47 = vpop.f32.mrb[149].mxu1 }
 0x294   : > { %v16613_v61 = vpop.f32.mrb[150].mxu1 }
 0x295   : > { %v16615_v38 = vpop.f32.mrb[151].mxu1 }
 0x296   : > { %19599 = vst [vmem:[#allocation290_spill] sm:$0xff] %v16615_v38  ;;  %v13351_v38 = vld [vmem:[%s18947_s2 + $0x114] ss:$8 sps:$4 sm:$0xff]  }
 0x297   : > { %3758 = vmatmul.mubr.bf16.vlgmr.msra.gmra.mrb[0].mxu1 %v14722_v56  ;;  %6173 = vmatprep.subr.bf16.mxu0 %v13351_v38 }
 0x298   : > { %12121 = vmatprep.mubr.msk.bf16.mxu1 %vm1865_vm5, %v14702_v50  ;;  %6174 = vmatpush1.bf16.msra.mxu0 %v13349_v60  ;;  %v13352_v60 = vld [vmem:[%s18947_s2 + $0x120] ss:$8 sps:$4 sm:$0xff]  }
 0x29a   : > { %v16620_v54 = vpop.f32.mrb[152].mxu1 }
 0x29b   : > { %v16622_v0 = vpop.f32.mrb[153].mxu1 }
 0x29c   : > { %19600 = vst [vmem:[#allocation291_spill] sm:$0xff] %v16622_v0  ;;  %v16624_v23 = vpop.f32.mrb[154].mxu1 }
 0x29d   : > { %19601 = vst [vmem:[#allocation292_spill] sm:$0xff] %v16624_v23  ;;  %v16626_v29 = vpop.f32.mrb[155].mxu1 }
 0x29e   : > { %19602 = vst [vmem:[#allocation293_spill] sm:$0xff] %v16626_v29 }
 0x29f   : > { %3768 = vmatmul.mubr.bf16.gmra.mrb[4].mxu1 %v14762_v30 }
 0x2a0   : > { %12122 = vmatprep.mubr.msk.bf16.mxu1 %vm1865_vm5, %v14755_v22 }
 0x2a2   : > { %v16637_v50 = vpop.f32.mrb[156].mxu1 }
 0x2a3   : > { %v16639_v56 = vpop.f32.mrb[157].mxu1 }
 0x2a4   : > { %v16641_v29 = vpop.f32.mrb[158].mxu1 }
 0x2a5   : > { %v16643_v23 = vpop.f32.mrb[159].mxu1 }
 0x2a6   : > { %19603 = vst [vmem:[#allocation294_spill] sm:$0xff] %v16643_v23  ;;  %v13354_v23 = vld [vmem:[%s18947_s2 + $0x124] ss:$8 sps:$4 sm:$0xff]  }
 0x2a7   : > { %3778 = vmatmul.mubr.bf16.gmra.mrb[8].mxu1 %v14820_v13  ;;  %6175 = vmatprep.subr.bf16.mxu0 %v13354_v23 }
 0x2a8   : > { %12123 = vmatprep.mubr.msk.bf16.mxu1 %vm1865_vm5, %v14795_v48  ;;  %6176 = vmatpush1.bf16.msra.mxu0 %v13352_v60  ;;  %v13355_v60 = vld [vmem:[%s18947_s2 + $0x130] ss:$8 sps:$4 sm:$0xff]  }
 0x2aa   : > { %v16648_v0 = vpop.f32.mrb[160].mxu1 }
 0x2ab   : > { %v16650_v30 = vpop.f32.mrb[161].mxu1 }
 0x2ac   : > { %19604 = vst [vmem:[#allocation295_spill] sm:$0xff] %v16650_v30  ;;  %v16652_v38 = vpop.f32.mrb[162].mxu1 }
 0x2ad   : > { %19605 = vst [vmem:[#allocation296_spill] sm:$0xff] %v16652_v38  ;;  %v16654_v22 = vpop.f32.mrb[163].mxu1 }
 0x2ae   : > { %19606 = vst [vmem:[#allocation297_spill] sm:$0xff] %v16654_v22 }
 0x2af   : > { %3788 = vmatmul.mubr.bf16.gmra.mrb[12].mxu1 %v14865_v4 }
 0x2b0   : > { %12124 = vmatprep.mubr.msk.bf16.mxu1 %vm1865_vm5, %v14853_v34 }
 0x2b2   : > { %v16665_v48 = vpop.f32.mrb[164].mxu1 }
 0x2b3   : > { %v16667_v13 = vpop.f32.mrb[165].mxu1 }
 0x2b4   : > { %v16669_v22 = vpop.f32.mrb[166].mxu1 }
 0x2b5   : > { %v16671_v38 = vpop.f32.mrb[167].mxu1 }
 0x2b6   : > { %19607 = vst [vmem:[#allocation298_spill] sm:$0xff] %v16671_v38  ;;  %v13357_v38 = vld [vmem:[%s18947_s2 + $0x134] ss:$8 sps:$4 sm:$0xff]  }
 0x2b7   : > { %3798 = vmatmul.mubr.bf16.gmra.mrb[16].mxu1 %v14910_v45  ;;  %6177 = vmatprep.subr.bf16.mxu0 %v13357_v38 }
 0x2b8   : > { %12125 = vmatprep.mubr.msk.bf16.mxu1 %vm1865_vm5, %v14898_v27  ;;  %6178 = vmatpush1.bf16.msra.mxu0 %v13355_v60  ;;  %v13358_v60 = vld [vmem:[%s18947_s2 + $0x140] ss:$8 sps:$4 sm:$0xff]  }
 0x2ba   : > { %v16676_v30 = vpop.f32.mrb[168].mxu1 }
 0x2bb   : > { %v16678_v4 = vpop.f32.mrb[169].mxu1 }
 0x2bc   : > { %19608 = vst [vmem:[#allocation299_spill] sm:$0xff] %v16678_v4  ;;  %v16680_v23 = vpop.f32.mrb[170].mxu1 }
 0x2bd   : > { %19609 = vst [vmem:[#allocation300_spill] sm:$0xff] %v16680_v23  ;;  %v16682_v34 = vpop.f32.mrb[171].mxu1 }
 0x2be   : > { %19610 = vst [vmem:[#allocation301_spill] sm:$0xff] %v16682_v34 }
 0x2bf   : > { %3808 = vmatmul.mubr.bf16.gmra.mrb[20].mxu1 %v14967_v8 }
 0x2c0   : > { %12126 = vmatprep.mubr.msk.bf16.mxu1 %vm1865_vm5, %v14958_v42 }
 0x2c2   : > { %v16693_v27 = vpop.f32.mrb[172].mxu1 }
 0x2c3   : > { %v16695_v45 = vpop.f32.mrb[173].mxu1 }
 0x2c4   : > { %v16697_v34 = vpop.f32.mrb[174].mxu1 }
 0x2c5   : > { %v16699_v23 = vpop.f32.mrb[175].mxu1 }
 0x2c6   : > { %19611 = vst [vmem:[#allocation302_spill] sm:$0xff] %v16699_v23  ;;  %v13360_v23 = vld [vmem:[%s18947_s2 + $0x144] ss:$8 sps:$4 sm:$0xff]  }
 0x2c7   : > { %3818 = vmatmul.mubr.bf16.gmra.mrb[24].mxu1 %v19406_v62  ;;  %6179 = vmatprep.subr.bf16.mxu0 %v13360_v23 }
 0x2c8   : > { %12127 = vmatprep.mubr.msk.bf16.mxu1 %vm1865_vm5, %v19407_v63  ;;  %6180 = vmatpush1.bf16.msra.mxu0 %v13358_v60  ;;  %v13361_v60 = vld [vmem:[%s18947_s2 + $0x150] ss:$8 sps:$4 sm:$0xff]  }
 0x2ca   : > { %v16704_v4 = vpop.f32.mrb[176].mxu1 }
 0x2cb   : > { %v16706_v8 = vpop.f32.mrb[177].mxu1 }
 0x2cc   : > { %19612 = vst [vmem:[#allocation303_spill] sm:$0xff] %v16706_v8  ;;  %v16708_v38 = vpop.f32.mrb[178].mxu1 }
 0x2cd   : > { %19613 = vst [vmem:[#allocation304_spill] sm:$0xff] %v16708_v38  ;;  %v16710_v42 = vpop.f32.mrb[179].mxu1 }
 0x2ce   : > { %19614 = vst [vmem:[#allocation305_spill] sm:$0xff] %v16710_v42 }
 0x2cf   : > { %3828 = vmatmul.mubr.bf16.gmra.mrb[28].mxu1 %v15064_v6 }
 0x2d0   : > { %12128 = vmatprep.mubr.msk.bf16.mxu1 %vm1865_vm5, %v19416_v44 }
 0x2d2   : > { %v16721_v62 = vpop.f32.mrb[180].mxu1 }
 0x2d3   : > { %v16723_v63 = vpop.f32.mrb[181].mxu1 }
 0x2d4   : > { %v16725_v42 = vpop.f32.mrb[182].mxu1 }
 0x2d5   : > { %v16727_v38 = vpop.f32.mrb[183].mxu1 }
 0x2d6   : > { %19615 = vst [vmem:[#allocation306_spill] sm:$0xff] %v16727_v38  ;;  %v13363_v38 = vld [vmem:[%s18947_s2 + $0x154] ss:$8 sps:$4 sm:$0xff]  }
 0x2d7   : > { %3838 = vmatmul.mubr.bf16.gmra.mrb[32].mxu1 %v15104_v41  ;;  %6181 = vmatprep.subr.bf16.mxu0 %v13363_v38 }
 0x2d8   : > { %12129 = vmatprep.mubr.msk.bf16.mxu1 %vm1865_vm5, %v15106_v5  ;;  %6182 = vmatpush1.bf16.msra.mxu0 %v13361_v60 }
 0x2da   : > { %v16732_v8 = vpop.f32.mrb[184].mxu1 }
 0x2db   : > { %v16734_v6 = vpop.f32.mrb[185].mxu1 }
 0x2dc   : > { %19616 = vst [vmem:[#allocation307_spill] sm:$0xff] %v16734_v6  ;;  %v16736_v23 = vpop.f32.mrb[186].mxu1 }
 0x2dd   : > { %19617 = vst [vmem:[#allocation308_spill] sm:$0xff] %v16736_v23  ;;  %v16738_v44 = vpop.f32.mrb[187].mxu1 }
 0x2de   : > { %19618 = vst [vmem:[#allocation309_spill] sm:$0xff] %v16738_v44 }
 0x2df   : > { %3848 = vmatmul.mubr.bf16.gmra.mrb[36].mxu1 %v15138_v11 }
 0x2e0   : > { %12130 = vmatprep.mubr.msk.bf16.mxu1 %vm1865_vm5, %v15140_v16  ;;  %v13366_v16 = vld [vmem:[%s18947_s2 + $0x164] ss:$8 sps:$4 sm:$0xff]  }
 0x2e1   : > { %6183 = vmatprep.subr.bf16.mxu0 %v13366_v16 }
 0x2e2   : > { %v16749_v41 = vpop.f32.mrb[188].mxu1 }
 0x2e3   : > { %v16751_v5 = vpop.f32.mrb[189].mxu1 }
 0x2e4   : > { %v16753_v44 = vpop.f32.mrb[190].mxu1 }
 0x2e5   : > { %v16755_v23 = vpop.f32.mrb[191].mxu1 }
 0x2e6   : > { %19619 = vst [vmem:[#allocation310_spill] sm:$0xff] %v16755_v23  ;;  %v13364_v23 = vld [vmem:[%s18947_s2 + $0x160] ss:$8 sps:$4 sm:$0xff]  }
 0x2e7   : > { %3858 = vmatmul.mubr.bf16.gmra.mrb[40].mxu1 %v15175_v35  ;;  %6184 = vmatpush1.bf16.msra.mxu0 %v13364_v23  ;;  %v13369_v35 = vld [vmem:[%s18947_s2 + $0x174] ss:$8 sps:$4 sm:$0xff]  }
 0x2e8   : > { %12131 = vmatprep.mubr.msk.bf16.mxu1 %vm1865_vm5, %v19441_v58  ;;  %v13367_v58 = vld [vmem:[%s18947_s2 + $0x170] ss:$8 sps:$4 sm:$0xff]   ;;  %6185 = vmatprep.subr.bf16.mxu0 %v13369_v35  ;;  %v13375_v35 = vld [vmem:[%s18947_s2 + $0x194] ss:$8 sps:$4 sm:$0xff]  }
 0x2ea   : > { %v16760_v6 = vpop.f32.mrb[192].mxu1 }
 0x2eb   : > { %v16762_v11 = vpop.f32.mrb[193].mxu1  ;;  %6186 = vmatpush1.bf16.msra.mxu0 %v13367_v58  ;;  %v13373_v58 = vld [vmem:[%s18947_s2 + $0x190] ss:$8 sps:$4 sm:$0xff]  }
 0x2ec   : > { %v16767_v38 = vpop.f32.mrb[194].mxu1 }
 0x2ed   : > { %19620 = vst [vmem:[#allocation311_spill] sm:$0xff] %v16767_v38  ;;  %v16769_v60 = vpop.f32.mrb[195].mxu1 }
 0x2ee   : > { %19621 = vst [vmem:[#allocation312_spill] sm:$0xff] %v16769_v60 }
 0x2ef   : > { %3868 = vmatmul.mubr.bf16.gmra.mrb[44].mxu1 %v15221_v51  ;;  %v13372_v51 = vld [vmem:[%s18947_s2 + $0x184] ss:$8 sps:$4 sm:$0xff]  }
 0x2f0   : > { %12132 = vmatprep.mubr.msk.bf16.mxu1 %vm1865_vm5, %v15214_v7  ;;  %v13370_v7 = vld [vmem:[%s18947_s2 + $0x180] ss:$8 sps:$4 sm:$0xff]   ;;  %6187 = vmatprep.subr.bf16.mxu0 %v13372_v51 }
 0x2f1   : > { %6188 = vmatpush1.bf16.msra.mxu0 %v13370_v7 }
 0x2f2   : > { %v16783_v60 = vpop.f32.mrb[196].mxu1  ;;  %6189 = vmatprep.subr.bf16.mxu0 %v13375_v35  ;;  %v13381_v35 = vld [vmem:[%s18947_s2 + $0x1b4] ss:$8 sps:$4 sm:$0xff]  }
 0x2f3   : > { %v16785_v38 = vpop.f32.mrb[197].mxu1 }
 0x2f4   : > { %19622 = vst [vmem:[#allocation313_spill] sm:$0xff] %v16785_v38  ;;  %v16790_v23 = vpop.f32.mrb[198].mxu1 }
 0x2f5   : > { %19623 = vst [vmem:[#allocation314_spill] sm:$0xff] %v16790_v23  ;;  %v16795_v16 = vpop.f32.mrb[199].mxu1  ;;  %6190 = vmatpush1.bf16.msra.mxu0 %v13373_v58  ;;  %v13379_v58 = vld [vmem:[%s18947_s2 + $0x1b0] ss:$8 sps:$4 sm:$0xff]  }
 0x2f7   : > { %3878 = vmatmul.mubr.bf16.gmra.mrb[48].mxu1 %v19458_v49  ;;  %v13378_v49 = vld [vmem:[%s18947_s2 + $0x1a4] ss:$8 sps:$4 sm:$0xff]  }
 0x2f8   : > { %12133 = vmatprep.mubr.msk.bf16.mxu1 %vm1865_vm5, %v19459_v52  ;;  %v13376_v52 = vld [vmem:[%s18947_s2 + $0x1a0] ss:$8 sps:$4 sm:$0xff]   ;;  %6191 = vmatprep.subr.bf16.mxu0 %v13378_v49 }
 0x2f9   : > { %6192 = vmatpush1.bf16.msra.mxu0 %v13376_v52 }
 0x2fa   : > { %v16806_v23 = vpop.f32.mrb[200].mxu1  ;;  %6193 = vmatprep.subr.bf16.mxu0 %v13381_v35  ;;  %v13387_v35 = vld [vmem:[%s18947_s2 + $0x1d4] ss:$8 sps:$4 sm:$0xff]  }
 0x2fb   : > { %v16808_v38 = vpop.f32.mrb[201].mxu1 }
 0x2fc   : > { %19624 = vst [vmem:[#allocation315_spill] sm:$0xff] %v16808_v38  ;;  %v16813_v51 = vpop.f32.mrb[202].mxu1 }
 0x2fd   : > { %19625 = vst [vmem:[#allocation316_spill] sm:$0xff] %v16813_v51  ;;  %v16818_v7 = vpop.f32.mrb[203].mxu1  ;;  %6194 = vmatpush1.bf16.msra.mxu0 %v13379_v58  ;;  %v13385_v58 = vld [vmem:[%s18947_s2 + $0x1d0] ss:$8 sps:$4 sm:$0xff]  }
 0x2ff   : > { %3888 = vmatmul.mubr.bf16.gmra.mrb[52].mxu1 %v19468_v33  ;;  %v13384_v33 = vld [vmem:[%s18947_s2 + $0x1c4] ss:$8 sps:$4 sm:$0xff]  }
 0x300   : > { %12134 = vmatprep.mubr.msk.bf16.mxu1 %vm1865_vm5, %v19469_v24  ;;  %v13382_v24 = vld [vmem:[%s18947_s2 + $0x1c0] ss:$8 sps:$4 sm:$0xff]   ;;  %6195 = vmatprep.subr.bf16.mxu0 %v13384_v33 }
 0x301   : > { %6196 = vmatpush1.bf16.msra.mxu0 %v13382_v24 }
 0x302   : > { %v16829_v51 = vpop.f32.mrb[204].mxu1  ;;  %6197 = vmatprep.subr.bf16.mxu0 %v13387_v35  ;;  %v13393_v35 = vld [vmem:[%s18947_s2 + $0x1f4] ss:$8 sps:$4 sm:$0xff]  }
 0x303   : > { %v16831_v38 = vpop.f32.mrb[205].mxu1 }
 0x304   : > { %19626 = vst [vmem:[#allocation317_spill] sm:$0xff] %v16831_v38  ;;  %v16836_v49 = vpop.f32.mrb[206].mxu1 }
 0x305   : > { %19627 = vst [vmem:[#allocation318_spill] sm:$0xff] %v16836_v49  ;;  %v16841_v52 = vpop.f32.mrb[207].mxu1  ;;  %6198 = vmatpush1.bf16.msra.mxu0 %v13385_v58  ;;  %v13391_v58 = vld [vmem:[%s18947_s2 + $0x1f0] ss:$8 sps:$4 sm:$0xff]  }
 0x306   : > { %19628 = vst [vmem:[#allocation319_spill] sm:$0xff] %v16841_v52 }
 0x307   : > { %3898 = vmatmul.mubr.bf16.gmra.mrb[56].mxu1 %v19478_v10  ;;  %v13390_v10 = vld [vmem:[%s18947_s2 + $0x1e4] ss:$8 sps:$4 sm:$0xff]  }
 0x308   : > { %12135 = vmatprep.mubr.msk.bf16.mxu1 %vm1865_vm5, %v19479_v21  ;;  %v13388_v21 = vld [vmem:[%s18947_s2 + $0x1e0] ss:$8 sps:$4 sm:$0xff]   ;;  %6199 = vmatprep.subr.bf16.mxu0 %v13390_v10 }
 0x309   : > { %6200 = vmatpush1.bf16.msra.mxu0 %v13388_v21  ;;  %v19637_v21 = vld [vmem:[#allocation22_spill] sm:$0xff] }
 0x30a   : > { %v16852_v49 = vpop.f32.mrb[208].mxu1  ;;  %6201 = vmatprep.subr.bf16.mxu0 %v13393_v35 }
 0x30b   : > { %19629 = vst [vmem:[#allocation320_spill] sm:$0xff] %v16852_v49  ;;  %v16854_v38 = vpop.f32.mrb[209].mxu1 }
 0x30c   : > { %19630 = vst [vmem:[#allocation321_spill] sm:$0xff] %v16854_v38  ;;  %v16859_v33 = vpop.f32.mrb[210].mxu1 }
 0x30d   : > { %19631 = vst [vmem:[#allocation322_spill] sm:$0xff] %v16859_v33  ;;  %v16864_v24 = vpop.f32.mrb[211].mxu1  ;;  %6202 = vmatpush1.bf16.msra.mxu0 %v13391_v58  ;;  %v19643_v58 = vld [vmem:[#allocation24_spill] sm:$0xff] }
 0x30e   : > { %19632 = vst [vmem:[#allocation323_spill] sm:$0xff] %v16864_v24  ;;  %v19638_v24 = vld [vmem:[#allocation23_spill] sm:$0xff] }
 0x30f   : > { %3908 = vmatmul.mubr.bf16.gmra.mrb[60].mxu1 %v19488_v1 }
 0x310   : > { %12136 = vmatprep.mubr.msk.bf16.mxu1 %vm1865_vm5, %v19489_v57 }
 0x312   : > { %v16875_v33 = vpop.f32.mrb[212].mxu1 }
 0x313   : > { %19633 = vst [vmem:[#allocation324_spill] sm:$0xff] %v16875_v33  ;;  %v16877_v38 = vpop.f32.mrb[213].mxu1 }
 0x314   : > { %19634 = vst [vmem:[#allocation325_spill] sm:$0xff] %v16877_v38  ;;  %v16879_v10 = vpop.f32.mrb[214].mxu1 }
 0x315   : > { %19635 = vst [vmem:[#allocation326_spill] sm:$0xff] %v16879_v10  ;;  %v16881_v1 = vpop.f32.mrb[215].mxu1 }
 0x316   : > { %19636 = vst [vmem:[#allocation327_spill] sm:$0xff] %v16881_v1 }
 0x317   : > { %3918 = vmatmul.mubr.bf16.gmra.mrb[64].mxu1 %v19637_v21 }
 0x318   : > { %12137 = vmatprep.mubr.msk.bf16.mxu1 %vm1865_vm5, %v19638_v24 }
 0x31a   : > { %v16886_v57 = vpop.f32.mrb[216].mxu1 }
 0x31b   : > { %19639 = vst [vmem:[#allocation22_spill] sm:$0xff] %v16886_v57  ;;  %v16888_v49 = vpop.f32.mrb[217].mxu1  ;;  %v19648_v57 = vld [vmem:[#allocation25_spill] sm:$0xff] }
 0x31c   : > { %19640 = vst [vmem:[#allocation23_spill] sm:$0xff] %v16888_v49  ;;  %v16890_v52 = vpop.f32.mrb[218].mxu1  ;;  %v19649_v49 = vld [vmem:[#allocation26_spill] sm:$0xff] }
 0x31d   : > { %19641 = vst [vmem:[#allocation328_spill] sm:$0xff] %v16890_v52  ;;  %v16892_v35 = vpop.f32.mrb[219].mxu1 }
 0x31e   : > { %19642 = vst [vmem:[#allocation329_spill] sm:$0xff] %v16892_v35 }
 0x31f   : > { %3928 = vmatmul.mubr.bf16.gmra.mrb[68].mxu1 %v15416_v32 }
 0x320   : > { %12138 = vmatprep.mubr.msk.bf16.mxu1 %vm1865_vm5, %v19643_v58 }
 0x322   : > { %v16897_v10 = vpop.f32.mrb[220].mxu1 }
 0x323   : > { %19644 = vst [vmem:[#allocation24_spill] sm:$0xff] %v16897_v10  ;;  %v16899_v1 = vpop.f32.mrb[221].mxu1  ;;  %v19654_v10 = vld [vmem:[#allocation27_spill] sm:$0xff] }
 0x324   : > { %19645 = vst [vmem:[#allocation330_spill] sm:$0xff] %v16899_v1  ;;  %v16901_v21 = vpop.f32.mrb[222].mxu1  ;;  %v19655_v1 = vld [vmem:[#allocation28_spill] sm:$0xff] }
 0x325   : > { %19646 = vst [vmem:[#allocation331_spill] sm:$0xff] %v16901_v21  ;;  %v16903_v24 = vpop.f32.mrb[223].mxu1 }
 0x326   : > { %19647 = vst [vmem:[#allocation332_spill] sm:$0xff] %v16903_v24 }
 0x327   : > { %3938 = vmatmul.mubr.bf16.gmra.mrb[72].mxu1 %v19648_v57 }
 0x328   : > { %12139 = vmatprep.mubr.msk.bf16.mxu1 %vm1865_vm5, %v19649_v49 }
 0x32a   : > { %v16908_v52 = vpop.f32.mrb[224].mxu1 }
 0x32b   : > { %19650 = vst [vmem:[#allocation25_spill] sm:$0xff] %v16908_v52  ;;  %v16910_v35 = vpop.f32.mrb[225].mxu1  ;;  %v19660_v52 = vld [vmem:[#allocation29_spill] sm:$0xff] }
 0x32c   : > { %19651 = vst [vmem:[#allocation26_spill] sm:$0xff] %v16910_v35  ;;  %v16912_v32 = vpop.f32.mrb[226].mxu1  ;;  %v19661_v35 = vld [vmem:[#allocation30_spill] sm:$0xff] }
 0x32d   : > { %19652 = vst [vmem:[#allocation333_spill] sm:$0xff] %v16912_v32  ;;  %v16914_v58 = vpop.f32.mrb[227].mxu1 }
 0x32e   : > { %19653 = vst [vmem:[#allocation334_spill] sm:$0xff] %v16914_v58 }
 0x32f   : > { %3948 = vmatmul.mubr.bf16.gmra.mrb[76].mxu1 %v19654_v10 }
 0x330   : > { %12140 = vmatprep.mubr.msk.bf16.mxu1 %vm1865_vm5, %v19655_v1 }
 0x332   : > { %v16919_v21 = vpop.f32.mrb[228].mxu1 }
 0x333   : > { %19656 = vst [vmem:[#allocation27_spill] sm:$0xff] %v16919_v21  ;;  %v16921_v24 = vpop.f32.mrb[229].mxu1  ;;  %v19666_v21 = vld [vmem:[#allocation31_spill] sm:$0xff] }
 0x334   : > { %19657 = vst [vmem:[#allocation28_spill] sm:$0xff] %v16921_v24  ;;  %v16923_v57 = vpop.f32.mrb[230].mxu1  ;;  %v19667_v24 = vld [vmem:[#allocation32_spill] sm:$0xff] }
 0x335   : > { %19658 = vst [vmem:[#allocation335_spill] sm:$0xff] %v16923_v57  ;;  %v16925_v49 = vpop.f32.mrb[231].mxu1 }
 0x336   : > { %19659 = vst [vmem:[#allocation336_spill] sm:$0xff] %v16925_v49 }
 0x337   : > { %3958 = vmatmul.mubr.bf16.gmra.mrb[80].mxu1 %v19660_v52 }
 0x338   : > { %12141 = vmatprep.mubr.msk.bf16.mxu1 %vm1865_vm5, %v19661_v35 }
 0x33a   : > { %v16930_v32 = vpop.f32.mrb[232].mxu1 }
 0x33b   : > { %19662 = vst [vmem:[#allocation29_spill] sm:$0xff] %v16930_v32  ;;  %v16932_v58 = vpop.f32.mrb[233].mxu1 }
 0x33c   : > { %19663 = vst [vmem:[#allocation30_spill] sm:$0xff] %v16932_v58  ;;  %v16934_v10 = vpop.f32.mrb[234].mxu1 }
 0x33d   : > { %19664 = vst [vmem:[#allocation337_spill] sm:$0xff] %v16934_v10  ;;  %v16936_v1 = vpop.f32.mrb[235].mxu1 }
 0x33e   : > { %19665 = vst [vmem:[#allocation338_spill] sm:$0xff] %v16936_v1 }
 0x33f   : > { %3968 = vmatmul.mubr.bf16.gmra.mrb[84].mxu1 %v19666_v21 }
 0x340   : > { %12142 = vmatprep.mubr.msk.bf16.mxu1 %vm1865_vm5, %v19667_v24 }
 0x342   : > { %v16941_v57 = vpop.f32.mrb[236].mxu1 }
 0x343   : > { %19668 = vst [vmem:[#allocation31_spill] sm:$0xff] %v16941_v57  ;;  %v16943_v49 = vpop.f32.mrb[237].mxu1  ;;  %v19691_v57 = vld [vmem:[#allocation35_spill] sm:$0xff] }
 0x344   : > { %19669 = vst [vmem:[#allocation32_spill] sm:$0xff] %v16943_v49  ;;  %v16945_v52 = vpop.f32.mrb[238].mxu1 }
 0x345   : > { %19670 = vst [vmem:[#allocation339_spill] sm:$0xff] %v16945_v52  ;;  %v16947_v35 = vpop.f32.mrb[239].mxu1 }
 0x346   : > { %19671 = vst [vmem:[#allocation340_spill] sm:$0xff] %v16947_v35 }
 0x347   : > { %3978 = vmatmul.mubr.bf16.gmra.mrb[88].mxu1 %v15511_v12 }
 0x348   : > { %12143 = vmatprep.mubr.msk.bf16.mxu1 %vm1865_vm5, %v15513_v53 }
 0x34a   : > { %v16952_v10 = vpop.f32.mrb[240].mxu1 }
 0x34b   : > { %19672 = vst [vmem:[#allocation341_spill] sm:$0xff] %v16952_v10  ;;  %v16954_v1 = vpop.f32.mrb[241].mxu1 }
 0x34c   : > { %19673 = vst [vmem:[#allocation342_spill] sm:$0xff] %v16954_v1  ;;  %v16956_v21 = vpop.f32.mrb[242].mxu1 }
 0x34d   : > { %19674 = vst [vmem:[#allocation343_spill] sm:$0xff] %v16956_v21  ;;  %v16958_v24 = vpop.f32.mrb[243].mxu1 }
 0x34e   : > { %19675 = vst [vmem:[#allocation344_spill] sm:$0xff] %v16958_v24 }
 0x34f   : > { %3988 = vmatmul.mubr.bf16.gmra.mrb[92].mxu1 %v15528_v15 }
 0x350   : > { %12144 = vmatprep.mubr.msk.bf16.mxu1 %vm1865_vm5, %v15530_v20 }
 0x352   : > { %v16963_v52 = vpop.f32.mrb[244].mxu1 }
 0x353   : > { %19676 = vst [vmem:[#allocation345_spill] sm:$0xff] %v16963_v52  ;;  %v16965_v35 = vpop.f32.mrb[245].mxu1  ;;  %v19689_v52 = vld [vmem:[#allocation34_spill] sm:$0xff] }
 0x354   : > { %19677 = vst [vmem:[#allocation346_spill] sm:$0xff] %v16965_v35  ;;  %v16967_v12 = vpop.f32.mrb[246].mxu1  ;;  %v19265_v35 = vlaneseq }
 0x355   : > { %19678 = vst [vmem:[#allocation347_spill] sm:$0xff] %v16967_v12  ;;  %v16969_v53 = vpop.f32.mrb[247].mxu1 }
 0x356   : > { %19679 = vst [vmem:[#allocation348_spill] sm:$0xff] %v16969_v53 }
 0x357   : > { %3998 = vmatmul.mubr.bf16.gmra.mrb[96].mxu1 %v15540_v55 }
 0x358   : > { %12145 = vmatprep.mubr.msk.bf16.mxu1 %vm1865_vm5, %v15206_v2  ;;  %v4465_v2 = vshrl.u32 %v19265_v35, 7 }
 0x35a   : > { %v16974_v21 = vpop.f32.mrb[248].mxu1 }
 0x35b   : > { %19680 = vst [vmem:[#allocation349_spill] sm:$0xff] %v16974_v21  ;;  %v16976_v24 = vpop.f32.mrb[249].mxu1 }
 0x35c   : > { %19681 = vst [vmem:[#allocation350_spill] sm:$0xff] %v16976_v24  ;;  %v16978_v15 = vpop.f32.mrb[250].mxu1  ;;  %v19688_v24 = vld [vmem:[#allocation33_spill] sm:$0xff] }
 0x35d   : > { %19682 = vst [vmem:[#allocation351_spill] sm:$0xff] %v16978_v15  ;;  %v16980_v20 = vpop.f32.mrb[251].mxu1  ;;  %v4466_v15 = vsub.s32 0, %v4465_v2  ;;  %v19690_v1 = vmax.f32 %v19688_v24, %v19689_v52  ;;  %v19698_v24 = vld [vmem:[#allocation40_spill] sm:$0xff] }
 0x35e   : > { %19683 = vst [vmem:[#allocation352_spill] sm:$0xff] %v16980_v20  ;;  %v4470_v20 = vsub.s32 1, %v4465_v2 }
 0x35f   : > { %4008 = vmatmul.mubr.bf16.gmra.mrb[100].mxu1 %v15552_v18  ;;  %v4462_v18 = vld [vmem:[%s18950_s5] ss:$8 sm:$0x3] }
 0x360   : > { %12146 = vmatprep.mubr.msk.bf16.mxu1 %vm1865_vm5, %v15212_v19 }
 0x362   : > { %v16985_v53 = vpop.f32.mrb[252].mxu1 }
 0x363   : > { %19684 = vst [vmem:[#allocation353_spill] sm:$0xff] %v16985_v53  ;;  %v16987_v55 = vpop.f32.mrb[253].mxu1  ;;  %v17001_v53 = vrot.slane %v4462_v18, %v4466_v15 }
 0x364   : > { %19685 = vst [vmem:[#allocation354_spill] sm:$0xff] %v16987_v55  ;;  %v16990_v12 = vpop.f32.mrb[254].mxu1 }
 0x365   : > { %19686 = vst [vmem:[#allocation355_spill] sm:$0xff] %v16990_v12  ;;  %v16992_v21 = vpop.f32.mrb[255].mxu1 }
 0x366   : > { %19687 = vst [vmem:[#allocation356_spill] sm:$0xff] %v16992_v21  ;;  %v17004_v21 = vrot.slane %v4462_v18, %v4470_v20  ;;  %v19700_v18 = vld [vmem:[#allocation12_spill] sm:$0xff] }
 0x367   : > { %4018 = vmatmul.mubr.bf16.gmra.mrb[104].mxu1 %v15564_v25 }
 0x368   : > { %12147 = vmatprep.mubr.msk.bf16.mxu1 %vm1865_vm5, %v15231_v40  ;;  %v19692_v40 = vld [vmem:[#allocation36_spill] sm:$0xff] }
 0x369   : > { %v19693_v58 = vmax.f32 %v19691_v57, %v19692_v40 }
 0x36a   : > { %v3759_v19 = vpop.f32.mrb[0].mxu1 }
 0x36b   : > { %v4080_v55 = vmax.f32 %v16548_v3, %v3759_v19  ;;  %v3761_v35 = vpop.f32.mrb[1].mxu1  ;;  %v19694_v19 = vld [vmem:[#allocation37_spill] sm:$0xff] }
 0x36c   : > { %v4081_v12 = vmax.f32 %v16550_v31, %v3761_v35  ;;  %v3763_v25 = vpop.f32.mrb[2].mxu1  ;;  %v19695_v31 = vld [vmem:[#allocation38_spill] sm:$0xff] }
 0x36d   : > { %v4334_v10 = vmax.f32 %v19690_v1, %v4080_v55  ;;  %v4084_v2 = vmax.f32 %v16552_v59, %v3763_v25  ;;  %v3765_v49 = vpop.f32.mrb[3].mxu1  ;;  %v19696_v35 = vmax.f32 %v19694_v19, %v19695_v31  ;;  %v19697_v1 = vld [vmem:[#allocation39_spill] sm:$0xff]  ;;  %v19702_v31 = vld [vmem:[#allocation42_spill] sm:$0xff] }
 0x36e   : > { %v4335_v32 = vmax.f32 %v19693_v58, %v4081_v12  ;;  %v4085_v3 = vmax.f32 %v16554_v26, %v3765_v49  ;;  %v19699_v59 = vmax.f32 %v19697_v1, %v19698_v24  ;;  %v19704_v24 = vld [vmem:[#allocation280_spill] sm:$0xff] }
 0x36f   : > { %v4474_v15 = vadd.f32 %v17001_v53, %v4334_v10  ;;  %v4336_v20 = vmax.f32 %v19696_v35, %v4084_v2  ;;  %4028 = vmatmul.mubr.bf16.gmra.mrb[108].mxu1 %v15592_v14 }
 0x370   : > { %v4475_v52 = vadd.f32 %v17004_v21, %v4335_v32  ;;  %v4337_v55 = vmax.f32 %v19699_v59, %v4085_v3  ;;  %12148 = vmatprep.mubr.msk.bf16.mxu1 %vm1865_vm5, %v19700_v18  ;;  %v19701_v3 = vld [vmem:[#allocation41_spill] sm:$0xff]  ;;  %v19705_v18 = vld [vmem:[#allocation43_spill] sm:$0xff] }
 0x371   : > { %v4476_v58 = vadd.f32 %v17001_v53, %v4336_v20  ;;  %v4602_v49 = vmax.f32 %v4474_v15, 0.0  ;;  %v19703_v35 = vmax.f32 %v19701_v3, %v19702_v31  ;;  %v19706_v15 = vld [vmem:[#allocation44_spill] sm:$0xff]  ;;  %v19716_v31 = vld [vmem:[#allocation15_spill] sm:$0xff] }
 0x372   : > { %v4477_v26 = vadd.f32 %v17004_v21, %v4337_v55  ;;  %v3769_v57 = vpop.f32.mrb[4].mxu1  ;;  %v4603_v14 = vmax.f32 %v4475_v52, 0.0 }
 0x373   : > { %v4604_v10 = vmax.f32 %v4476_v58, 0.0  ;;  %v4088_v12 = vmax.f32 %v16559_v17, %v3769_v57  ;;  %v3771_v25 = vpop.f32.mrb[5].mxu1  ;;  %v19707_v58 = vmax.f32 %v19705_v18, %v19706_v15  ;;  %v19708_v17 = vld [vmem:[#allocation281_spill] sm:$0xff] }
 0x374   : > { %v4605_v2 = vmax.f32 %v4477_v26, 0.0  ;;  %v4089_v32 = vmax.f32 %v16561_v39, %v3771_v25  ;;  %v3773_v40 = vpop.f32.mrb[6].mxu1  ;;  %v19709_v39 = vld [vmem:[#allocation45_spill] sm:$0xff]  ;;  %v19710_v26 = vld [vmem:[#allocation46_spill] sm:$0xff]  ;;  %v19712_v25 = vld [vmem:[#allocation47_spill] sm:$0xff] }
 0x375   : > { %v4730_v19 = vpack.c.bf16 %v4604_v10, %v4602_v49  ;;  %v4338_v1 = vmax.f32 %v19703_v35, %v4088_v12  ;;  %v4092_v20 = vmax.f32 %v19704_v24, %v3773_v40  ;;  %v3775_v59 = vpop.f32.mrb[7].mxu1  ;;  %v19711_v49 = vmax.f32 %v19709_v39, %v19710_v26  ;;  %v19713_v40 = vld [vmem:[#allocation48_spill] sm:$0xff] }
 0x376   : > { %v4731_v55 = vpack.c.bf16 %v4605_v2, %v4603_v14  ;;  %v4339_v38 = vmax.f32 %v19707_v58, %v4089_v32  ;;  %v4093_v57 = vmax.f32 %v19708_v17, %v3775_v59  ;;  %v19714_v14 = vld [vmem:[#allocation49_spill] sm:$0xff]  ;;  %v19717_v17 = vld [vmem:[#allocation50_spill] sm:$0xff] }
 0x377   : > { %4794 = vst [vmem:[#allocation2] sm:$0xff] %v4730_v19  ;;  %v4478_v52 = vadd.f32 %v17001_v53, %v4338_v1  ;;  %v4340_v10 = vmax.f32 %v19711_v49, %v4092_v20  ;;  %4038 = vmatmul.mubr.bf16.gmra.mrb[112].mxu1 %v19712_v25  ;;  %v19715_v2 = vmax.f32 %v19713_v40, %v19714_v14  ;;  %v19720_v49 = vld [vmem:[#allocation282_spill] sm:$0xff]  ;;  %v19721_v14 = vld [vmem:[#allocation52_spill] sm:$0xff] }
 0x378   : > { %4795 = vst [vmem:[#allocation2 + $0x8] sm:$0xff] %v4731_v55  ;;  %v4479_v12 = vadd.f32 %v17004_v21, %v4339_v38  ;;  %12149 = vmatprep.mubr.msk.bf16.mxu1 %vm1865_vm5, %v19716_v31 }
 0x379   : > { %v4341_v3 = vmax.f32 %v19715_v2, %v4093_v57  ;;  %v4480_v32 = vadd.f32 %v17001_v53, %v4340_v10  ;;  %v4606_v1 = vmax.f32 %v4478_v52, 0.0  ;;  %v19718_v57 = vld [vmem:[#allocation51_spill] sm:$0xff]  ;;  %v19722_v52 = vld [vmem:[#allocation53_spill] sm:$0xff] }
 0x37a   : > { %v3779_v35 = vpop.f32.mrb[8].mxu1  ;;  %v4607_v55 = vmax.f32 %v4479_v12, 0.0  ;;  %v19719_v39 = vmax.f32 %v19717_v17, %v19718_v57  ;;  %v19723_v2 = vmax.f32 %v19721_v14, %v19722_v52 }
 0x37b   : > { %v4481_v19 = vadd.f32 %v17004_v21, %v4341_v3  ;;  %v4608_v24 = vmax.f32 %v4480_v32, 0.0  ;;  %v4096_v20 = vmax.f32 %v16570_v37, %v3779_v35  ;;  %v3781_v59 = vpop.f32.mrb[9].mxu1  ;;  %v19724_v37 = vld [vmem:[#allocation283_spill] sm:$0xff] }
 0x37c   : > { %v4097_v38 = vmax.f32 %v16572_v46, %v3781_v59  ;;  %v3783_v15 = vpop.f32.mrb[10].mxu1  ;;  %v19725_v46 = vld [vmem:[#allocation54_spill] sm:$0xff]  ;;  %v19726_v32 = vld [vmem:[#allocation55_spill] sm:$0xff]  ;;  %v19729_v59 = vld [vmem:[#allocation57_spill] sm:$0xff] }
 0x37d   : > { %v4609_v18 = vmax.f32 %v4481_v19, 0.0  ;;  %v4732_v58 = vpack.c.bf16 %v4608_v24, %v4606_v1  ;;  %v4342_v26 = vmax.f32 %v19719_v39, %v4096_v20  ;;  %v4100_v10 = vmax.f32 %v19720_v49, %v3783_v15  ;;  %v3785_v25 = vpop.f32.mrb[11].mxu1  ;;  %v19728_v1 = vld [vmem:[#allocation56_spill] sm:$0xff] }
 0x37e   : > { %v4343_v3 = vmax.f32 %v19723_v2, %v4097_v38  ;;  %v4101_v31 = vmax.f32 %v19724_v37, %v3785_v25  ;;  %v19727_v19 = vmax.f32 %v19725_v46, %v19726_v32  ;;  %v19732_v38 = vld [vmem:[#allocation18_spill] sm:$0xff] }
 0x37f   : > { %v4733_v40 = vpack.c.bf16 %v4609_v18, %v4607_v55  ;;  %4796 = vst [vmem:[#allocation2 + $0x10] sm:$0xff] %v4732_v58  ;;  %v4482_v12 = vadd.f32 %v17001_v53, %v4342_v26  ;;  %4048 = vmatmul.mubr.bf16.gmra.mrb[116].mxu1 %v19728_v1  ;;  %v13394_v24 = vld [vmem:[#allocation2] ss:$8 sps:$4 sm:$0xff]   ;;  %v19730_v55 = vld [vmem:[#allocation58_spill] sm:$0xff] }
 0x380   : > { %v4344_v35 = vmax.f32 %v19727_v19, %v4100_v10  ;;  %v4483_v20 = vadd.f32 %v17004_v21, %v4343_v3  ;;  %v19731_v18 = vmax.f32 %v19729_v59, %v19730_v55  ;;  %12150 = vmatprep.mubr.msk.bf16.mxu1 %vm1865_vm5, %v19732_v38  ;;  %v5403_v17 = vshrl.u32 %v13394_v24, 16  ;;  %v13396_v49 = vld [vmem:[#allocation2 + $0x4] ss:$8 sps:$4 sm:$0x11]   ;;  %v19734_v19 = vld [vmem:[#allocation59_spill] sm:$0xff]  ;;  %v19738_v38 = vld [vmem:[#allocation62_spill] sm:$0xff] }
 0x381   : > { %4797 = vst [vmem:[#allocation2 + $0x18] sm:$0xff] %v4733_v40  ;;  %v5406_v57 = vshll.u32 %v13394_v24, 16  ;;  %v4610_v10 = vmax.f32 %v4482_v12, 0.0  ;;  %v19733_v3 = vld [vmem:[#allocation284_spill] sm:$0xff] }
 0x382   : > { %v4345_v15 = vmax.f32 %v19731_v18, %v4101_v31  ;;  %v4484_v58 = vadd.f32 %v17001_v53, %v4344_v35  ;;  %v3789_v26 = vpop.f32.mrb[12].mxu1  ;;  %v4611_v52 = vmax.f32 %v4483_v20, 0.0  ;;  %v5405_v46 = vrot.slane %v5403_v17, 4  ;;  %v19735_v35 = vld [vmem:[#allocation60_spill] sm:$0xff]  ;;  %v19740_v20 = vld [vmem:[#allocation285_spill] sm:$0xff] }
 0x383   : > { %v4104_v40 = vmax.f32 %v16581_v36, %v3789_v26  ;;  %v3791_v14 = vpop.f32.mrb[13].mxu1  ;;  %v19736_v1 = vmax.f32 %v19734_v19, %v19735_v35  ;;  %v5408_v18 = vrot.slane %v5406_v57, 5  ;;  %v5412_v26 = vshll.u32 %v13396_v49, 16 }
 0x384   : > { %v4485_v39 = vadd.f32 %v17004_v21, %v4345_v15  ;;  %v4612_v25 = vmax.f32 %v4484_v58, 0.0  ;;  %v4105_v37 = vmax.f32 %v19733_v3, %v3791_v14  ;;  %v3793_v31 = vpop.f32.mrb[14].mxu1  ;;  %v19737_v15 = vld [vmem:[#allocation61_spill] sm:$0xff] }
 0x385   : > { %v4346_v24 = vmax.f32 %v19736_v1, %v4104_v40  ;;  %v4108_v59 = vmax.f32 %v16585_v43, %v3793_v31  ;;  %v3795_v55 = vpop.f32.mrb[15].mxu1  ;;  %v19739_v36 = vmax.f32 %v19737_v15, %v19738_v38  ;;  %v19744_v40 = vld [vmem:[#allocation65_spill] sm:$0xff]  ;;  %v5409_v19 = vor.u32 %v5408_v18, %v5405_v46  ;;  %v19748_v38 = vld [vmem:[#allocation286_spill] sm:$0xff]  ;;  %v19750_v18 = vld [vmem:[#allocation67_spill] sm:$0xff] }
 0x386   : > { %v4613_v2 = vmax.f32 %v4485_v39, 0.0  ;;  %v4734_v32 = vpack.c.bf16 %v4612_v25, %v4610_v10  ;;  %v4109_v39 = vmax.f32 %v19740_v20, %v3795_v55  ;;  %v19741_v10 = vld [vmem:[#allocation63_spill] sm:$0xff]  ;;  %v19742_v25 = vld [vmem:[#allocation64_spill] sm:$0xff]  ;;  %v19747_v31 = vld [vmem:[#allocation21_spill] sm:$0xff] }
 0x387   : > { %v4347_v58 = vmax.f32 %v19739_v36, %v4105_v37  ;;  %v4486_v17 = vadd.f32 %v17001_v53, %v4346_v24  ;;  %v19743_v14 = vmax.f32 %v19741_v10, %v19742_v25  ;;  %4058 = vmatmul.mubr.bf16.gmra.mrb[120].mxu1 %v15700_v28  ;;  %v19749_v10 = vld [vmem:[#allocation287_spill] sm:$0xff] }
 0x388   : > { %v4735_v12 = vpack.c.bf16 %v4613_v2, %v4611_v52  ;;  %4798 = vst [vmem:[#allocation2 + $0x20] sm:$0xff] %v4734_v32  ;;  %v13397_v43 = vld [vmem:[#allocation2 + $0x10] ss:$8 sps:$4 sm:$0xff]   ;;  %12151 = vmatprep.mubr.msk.bf16.mxu1 %vm1865_vm5, %v19747_v31  ;;  %v13399_v49 = vld [vmem:[#allocation2 + $0x14] ss:$8 sps:$4 sm:$0x11]  }
 0x389   : > { %v4348_v3 = vmax.f32 %v19743_v14, %v4108_v59  ;;  %v4487_v57 = vadd.f32 %v17004_v21, %v4347_v58  ;;  %v19745_v52 = vld [vmem:[#allocation66_spill] sm:$0xff]  ;;  %v5417_v35 = vshrl.u32 %v13397_v43, 16  ;;  %v4614_v1 = vmax.f32 %v4486_v17, 0.0  ;;  %v19751_v17 = vld [vmem:[#allocation68_spill] sm:$0xff] }
 0x38a   : > { %4799 = vst [vmem:[#allocation2 + $0x28] sm:$0xff] %v4735_v12  ;;  %v19746_v2 = vmax.f32 %v19744_v40, %v19745_v52  ;;  %v3799_v28 = vpop.f32.mrb[16].mxu1  ;;  %v5414_v59 = vrot.slane %v5412_v26, 5  ;;  %v5420_v55 = vshll.u32 %v13397_v43, 16  ;;  %v19752_v52 = vmax.f32 %v19750_v18, %v19751_v17 }
 0x38b   : > { %v4488_v32 = vadd.f32 %v17001_v53, %v4348_v3  ;;  %v4615_v12 = vmax.f32 %v4487_v57, 0.0  ;;  %v4112_v36 = vmax.f32 %v19748_v38, %v3799_v28  ;;  %v3801_v58 = vpop.f32.mrb[17].mxu1  ;;  %v5419_v20 = vrot.slane %v5417_v35, 4  ;;  %v19755_v28 = vld [vmem:[#allocation70_spill] sm:$0xff] }
 0x38c   : > { %v4349_v37 = vmax.f32 %v19746_v2, %v4109_v39  ;;  %v4113_v25 = vmax.f32 %v19749_v10, %v3801_v58  ;;  %v3803_v14 = vpop.f32.mrb[18].mxu1  ;;  %v5422_v40 = vrot.slane %v5420_v55, 5  ;;  %v5426_v3 = vshll.u32 %v13399_v49, 16  ;;  %v19759_v55 = vld [vmem:[#allocation72_spill] sm:$0xff] }
 0x38d   : > { %v4616_v15 = vmax.f32 %v4488_v32, 0.0  ;;  %v4350_v2 = vmax.f32 %v19752_v52, %v4112_v36  ;;  %v3805_v43 = vpop.f32.mrb[19].mxu1  ;;  %v5410_v57 = vrot.slane %v5409_v19, 4  ;;  %v19754_v32 = vld [vmem:[#allocation69_spill] sm:$0xff] }
 0x38e   : > { %v4489_v24 = vadd.f32 %v17004_v21, %v4349_v37  ;;  %v19753_v37 = vld [vmem:[#allocation288_spill] sm:$0xff]  ;;  %v19756_v38 = vmax.f32 %v19754_v32, %v19755_v28  ;;  %v5423_v58 = vor.u32 %v5422_v40, %v5419_v20  ;;  %v19761_v36 = vld [vmem:[#allocation73_spill] sm:$0xff]  ;;  %v5428_v52 = vrot.slane %v5426_v3, 5  ;;  %v13544_v40 = vld [vmem:[%s18947_s2 + $0x210] ss:$8 sps:$4 sm:$0xff]  }
 0x38f   : > { %v4736_v46 = vpack.c.bf16 %v4616_v15, %v4614_v1  ;;  %v4116_v26 = vmax.f32 %v19753_v37, %v3803_v14  ;;  %v4490_v49 = vadd.f32 %v17001_v53, %v4350_v2  ;;  %v19758_v1 = vld [vmem:[#allocation71_spill] sm:$0xff]  ;;  %4068 = vmatmul.mubr.bf16.gmra.mrb[124].mxu1 %v19761_v36 }
 0x390   : > { %v4617_v39 = vmax.f32 %v4489_v24, 0.0  ;;  %v4351_v35 = vmax.f32 %v19756_v38, %v4113_v25  ;;  %v19757_v24 = vld [vmem:[#allocation289_spill] sm:$0xff]  ;;  %v19760_v15 = vmax.f32 %v19758_v1, %v19759_v55  ;;  %v5424_v17 = vrot.slane %v5423_v58, 4 }
 0x391   : > { %v4117_v33 = vmax.f32 %v19757_v24, %v3805_v43  ;;  %4800 = vst [vmem:[#allocation2 + $0x30] sm:$0xff] %v4736_v46  ;;  %v13400_v14 = vld [vmem:[#allocation2 + $0x20] ss:$8 sps:$4 sm:$0xff]   ;;  %v5415_v46 = vsel %vm14307_vm2, %v5410_v57, %v5414_v59 }
 0x392   : > { %v4737_v31 = vpack.c.bf16 %v4617_v39, %v4615_v12  ;;  %v4352_v10 = vmax.f32 %v19760_v15, %v4116_v26  ;;  %v4491_v19 = vadd.f32 %v17004_v21, %v4351_v35  ;;  %v19762_v12 = vld [vmem:[#allocation74_spill] sm:$0xff]  ;;  %v19763_v39 = vld [vmem:[#allocation75_spill] sm:$0xff]  ;;  %v5431_v2 = vshrl.u32 %v13400_v14, 16  ;;  %v19766_v15 = vld [vmem:[#allocation76_spill] sm:$0xff] }
 0x393   : > { %v19764_v18 = vmax.f32 %v19762_v12, %v19763_v39  ;;  %v5434_v37 = vshll.u32 %v13400_v14, 16  ;;  %v4618_v26 = vmax.f32 %v4490_v49, 0.0  ;;  %v5429_v28 = vsel %vm14307_vm2, %v5424_v17, %v5428_v52  ;;  %v13402_v39 = vld [vmem:[#allocation2 + $0x24] ss:$8 sps:$4 sm:$0x11]  }
 0x394   : > { %4801 = vst [vmem:[#allocation2 + $0x38] sm:$0xff] %v4737_v31  ;;  %v4492_v20 = vadd.f32 %v17001_v53, %v4352_v10  ;;  %v4619_v43 = vmax.f32 %v4491_v19, 0.0  ;;  %v3809_v31 = vpop.f32.mrb[20].mxu1  ;;  %v12248_v3 = vcombine.low %v5415_v46, %v5429_v28  ;;  %v12249_v24 = vcombine.high %v5415_v46, %v5429_v28  ;;  %v19767_v10 = vld [vmem:[#allocation77_spill] sm:$0xff]  ;;  %v19776_v28 = vld [vmem:[#allocation82_spill] sm:$0xff] }
 0x395   : > { %v4353_v25 = vmax.f32 %v19764_v18, %v4117_v33  ;;  %v4120_v33 = vmax.f32 %v16609_v9, %v3809_v31  ;;  %v3811_v35 = vpop.f32.mrb[21].mxu1  ;;  %v5433_v57 = vrot.slane %v5431_v2, 4  ;;  %v5436_v55 = vrot.slane %v5434_v37, 5  ;;  %v19769_v18 = vld [vmem:[#allocation78_spill] sm:$0xff]  ;;  %v19773_v2 = vld [vmem:[#allocation80_spill] sm:$0xff]  ;;  %v19774_v37 = vld [vmem:[#allocation81_spill] sm:$0xff] }
 0x396   : > { %v4620_v38 = vmax.f32 %v4492_v20, 0.0  ;;  %v4121_v1 = vmax.f32 %v16611_v47, %v3811_v35  ;;  %v3813_v59 = vpop.f32.mrb[22].mxu1  ;;  %v19768_v36 = vmax.f32 %v19766_v15, %v19767_v10  ;;  %6203 = vmatprep.mubr.bf16.mxu0 %v12249_v24  ;;  %v19772_v20 = vld [vmem:[#allocation290_spill] sm:$0xff] }
 0x397   : > { %v4493_v32 = vadd.f32 %v17004_v21, %v4353_v25  ;;  %v4124_v19 = vmax.f32 %v16613_v61, %v3813_v59  ;;  %v3815_v12 = vpop.f32.mrb[23].mxu1  ;;  %v19770_v25 = vld [vmem:[#allocation79_spill] sm:$0xff]  ;;  %6204 = vmatmul.mubr.bf16.vlgmr.msra.gmra.mrb[128].mxu0 %v12248_v3  ;;  %v5437_v24 = vor.u32 %v5436_v55, %v5433_v57  ;;  %v13442_v3 = vld [vmem:[%s18947_s2] ss:$8 sps:$4 sm:$0xff]  }
 0x398   : > { %v4738_v49 = vpack.c.bf16 %v4620_v38, %v4618_v26  ;;  %v4354_v14 = vmax.f32 %v19768_v36, %v4120_v33  ;;  %v19771_v17 = vmax.f32 %v19769_v18, %v19770_v25  ;;  %v4125_v47 = vmax.f32 %v19772_v20, %v3815_v12 }
 0x399   : > { %v4621_v58 = vmax.f32 %v4493_v32, 0.0  ;;  %v19775_v26 = vmax.f32 %v19773_v2, %v19774_v37  ;;  %v5438_v2 = vrot.slane %v5437_v24, 4  ;;  %v19780_v37 = vld [vmem:[#allocation84_spill] sm:$0xff] }
 0x39a   : > { %v4355_v52 = vmax.f32 %v19771_v17, %v4121_v1  ;;  %4802 = vst [vmem:[#allocation2 + $0x40] sm:$0xff] %v4738_v49  ;;  %v4494_v46 = vadd.f32 %v17001_v53, %v4354_v14  ;;  %v13444_v49 = vld [vmem:[%s18947_s2 + $0x4] ss:$8 sps:$4 sm:$0xff]   ;;  %v3819_v36 = vpop.f32.mrb[24].mxu1  ;;  %v5440_v14 = vshll.u32 %v13402_v39, 16 }
 0x39b   : > { %v4739_v9 = vpack.c.bf16 %v4621_v58, %v4619_v43  ;;  %v4356_v32 = vmax.f32 %v19775_v26, %v4124_v19  ;;  %v13403_v31 = vld [vmem:[#allocation2 + $0x30] ss:$8 sps:$4 sm:$0xff]   ;;  %v13405_v35 = vld [vmem:[#allocation2 + $0x34] ss:$8 sps:$4 sm:$0x11]   ;;  %v4128_v57 = vmax.f32 %v16620_v54, %v3819_v36  ;;  %v3821_v55 = vpop.f32.mrb[25].mxu1  ;;  %6588 = vmatprep.subr.bf16.mxu0 %v13444_v49 }
 0x39c   : > { %v4495_v61 = vadd.f32 %v17004_v21, %v4355_v52  ;;  %v19777_v43 = vld [vmem:[#allocation83_spill] sm:$0xff]  ;;  %v5445_v1 = vshrl.u32 %v13403_v31, 16  ;;  %v5448_v59 = vshll.u32 %v13403_v31, 16  ;;  %v4622_v15 = vmax.f32 %v4494_v46, 0.0  ;;  %6589 = vmatpush1.bf16.msra.mxu0 %v13442_v3  ;;  %v19781_v26 = vld [vmem:[#allocation85_spill] sm:$0xff]  ;;  %v19783_v31 = vld [vmem:[#allocation292_spill] sm:$0xff] }
 0x39d   : > { %4803 = vst [vmem:[#allocation2 + $0x48] sm:$0xff] %v4739_v9  ;;  %v19778_v38 = vmax.f32 %v19776_v28, %v19777_v43  ;;  %v4496_v58 = vadd.f32 %v17001_v53, %v4356_v32  ;;  %v5454_v19 = vshll.u32 %v13405_v35, 16  ;;  %v19779_v52 = vld [vmem:[#allocation291_spill] sm:$0xff]  ;;  %v19782_v32 = vmax.f32 %v19780_v37, %v19781_v26  ;;  %v19788_v3 = vld [vmem:[#allocation88_spill] sm:$0xff] }
 0x39e   : > { %v5447_v9 = vrot.slane %v5445_v1, 4  ;;  %v5450_v18 = vrot.slane %v5448_v59, 5  ;;  %v4623_v25 = vmax.f32 %v4495_v61, 0.0  ;;  %v4129_v20 = vmax.f32 %v19779_v52, %v3821_v55  ;;  %v19785_v35 = vld [vmem:[#allocation87_spill] sm:$0xff]  ;;  %v19787_v1 = vld [vmem:[#allocation293_spill] sm:$0xff] }
 0x39f   : > { %v4357_v33 = vmax.f32 %v19778_v38, %v4125_v47  ;;  %v4624_v12 = vmax.f32 %v4496_v58, 0.0  ;;  %v3823_v47 = vpop.f32.mrb[26].mxu1  ;;  %v4358_v39 = vmax.f32 %v19782_v32, %v4128_v57  ;;  %v5442_v49 = vrot.slane %v5440_v14, 5  ;;  %v13451_v14 = vld [vmem:[%s18947_s2 + $0x10] ss:$8 sps:$4 sm:$0xff]  }
 0x3a0   : > { %v4132_v28 = vmax.f32 %v19783_v31, %v3823_v47  ;;  %v3825_v43 = vpop.f32.mrb[27].mxu1  ;;  %v5451_v54 = vor.u32 %v5450_v18, %v5447_v9  ;;  %v5456_v57 = vrot.slane %v5454_v19, 5  ;;  %v19791_v18 = vld [vmem:[#allocation90_spill] sm:$0xff] }
 0x3a1   : > { %v4497_v10 = vadd.f32 %v17004_v21, %v4357_v33  ;;  %v4740_v46 = vpack.c.bf16 %v4624_v12, %v4622_v15  ;;  %v19784_v33 = vld [vmem:[#allocation86_spill] sm:$0xff]  ;;  %v4133_v59 = vmax.f32 %v19787_v1, %v3825_v43  ;;  %v4498_v24 = vadd.f32 %v17001_v53, %v4358_v39  ;;  %v19789_v15 = vld [vmem:[#allocation89_spill] sm:$0xff] }
 0x3a2   : > { %v19786_v58 = vmax.f32 %v19784_v33, %v19785_v35  ;;  %v5452_v12 = vrot.slane %v5451_v54, 4  ;;  %v5443_v47 = vsel %vm14307_vm2, %v5438_v2, %v5442_v49  ;;  %v13453_v37 = vld [vmem:[%s18947_s2 + $0x14] ss:$8 sps:$4 sm:$0xff]   ;;  %v3829_v32 = vpop.f32.mrb[28].mxu1 }
 0x3a3   : > { %v4625_v17 = vmax.f32 %v4497_v10, 0.0  ;;  %4804 = vst [vmem:[#allocation2 + $0x50] sm:$0xff] %v4740_v46  ;;  %v19790_v10 = vmax.f32 %v19788_v3, %v19789_v15  ;;  %v4626_v43 = vmax.f32 %v4498_v24, 0.0  ;;  %v3831_v33 = vpop.f32.mrb[29].mxu1  ;;  %6590 = vmatprep.subr.bf16.mxu0 %v13453_v37  ;;  %v19794_v3 = vld [vmem:[#allocation92_spill] sm:$0xff]  ;;  %v19795_v15 = vld [vmem:[#allocation93_spill] sm:$0xff] }
 0x3a4   : > { %v4359_v61 = vmax.f32 %v19786_v58, %v4129_v20  ;;  %v13406_v55 = vld [vmem:[#allocation2 + $0x40] ss:$8 sps:$4 sm:$0xff]   ;;  %v5457_v19 = vsel %vm14307_vm2, %v5452_v12, %v5456_v57  ;;  %v3833_v1 = vpop.f32.mrb[30].mxu1  ;;  %6591 = vmatpush1.bf16.msra.mxu0 %v13451_v14 }
 0x3a5   : > { %v4741_v38 = vpack.c.bf16 %v4625_v17, %v4623_v25  ;;  %v4360_v36 = vmax.f32 %v19790_v10, %v4132_v28  ;;  %v19792_v25 = vld [vmem:[#allocation91_spill] sm:$0xff]  ;;  %v5459_v46 = vshrl.u32 %v13406_v55, 16  ;;  %v12251_v39 = vcombine.high %v5443_v47, %v5457_v19  ;;  %v13408_v28 = vld [vmem:[#allocation2 + $0x44] ss:$8 sps:$4 sm:$0x11]   ;;  %v3835_v12 = vpop.f32.mrb[31].mxu1 }
 0x3a6   : > { %v4499_v9 = vadd.f32 %v17004_v21, %v4359_v61  ;;  %v19793_v17 = vmax.f32 %v19791_v18, %v19792_v25  ;;  %v12250_v31 = vcombine.low %v5443_v47, %v5457_v19  ;;  %v5462_v2 = vshll.u32 %v13406_v55, 16  ;;  %v19797_v55 = vld [vmem:[#allocation94_spill] sm:$0xff]  ;;  %v19802_v47 = vld [vmem:[#allocation97_spill] sm:$0xff] }
 0x3a7   : > { %4805 = vst [vmem:[#allocation2 + $0x58] sm:$0xff] %v4741_v38  ;;  %v4500_v20 = vadd.f32 %v17001_v53, %v4360_v36  ;;  %v4136_v38 = vmax.f32 %v16637_v50, %v3829_v32  ;;  %v4137_v61 = vmax.f32 %v16639_v56, %v3831_v33  ;;  %6213 = vmatprep.mubr.bf16.mxu0 %v12251_v39  ;;  %v19800_v56 = vld [vmem:[#allocation294_spill] sm:$0xff]  ;;  %v19805_v32 = vld [vmem:[#allocation99_spill] sm:$0xff] }
 0x3a8   : > { %v4361_v52 = vmax.f32 %v19793_v17, %v4133_v59  ;;  %v4627_v35 = vmax.f32 %v4499_v9, 0.0  ;;  %v5461_v59 = vrot.slane %v5459_v46, 4  ;;  %v19796_v10 = vmax.f32 %v19794_v3, %v19795_v15  ;;  %6214 = vmatmul.mubr.bf16.gmra.mrb[132].mxu0 %v12250_v31  ;;  %v19798_v9 = vld [vmem:[#allocation95_spill] sm:$0xff] }
 0x3a9   : > { %v4628_v54 = vmax.f32 %v4500_v20, 0.0  ;;  %v4140_v24 = vmax.f32 %v16641_v29, %v3833_v1  ;;  %v5464_v50 = vrot.slane %v5462_v2, 5  ;;  %v19799_v18 = vmax.f32 %v19797_v55, %v19798_v9  ;;  %v19801_v20 = vld [vmem:[#allocation96_spill] sm:$0xff] }
 0x3aa   : > { %v4501_v26 = vadd.f32 %v17004_v21, %v4361_v52  ;;  %v4362_v36 = vmax.f32 %v19796_v10, %v4136_v38  ;;  %v4141_v17 = vmax.f32 %v19800_v56, %v3835_v12  ;;  %v5468_v52 = vshll.u32 %v13408_v28, 16  ;;  %v13454_v28 = vld [vmem:[%s18947_s2 + $0x20] ss:$8 sps:$4 sm:$0xff]   ;;  %v13456_v2 = vld [vmem:[%s18947_s2 + $0x24] ss:$8 sps:$4 sm:$0xff]  }
 0x3ab   : > { %v4742_v49 = vpack.c.bf16 %v4628_v54, %v4626_v43  ;;  %v4363_v25 = vmax.f32 %v19799_v18, %v4137_v61  ;;  %v19803_v19 = vmax.f32 %v19801_v20, %v19802_v47  ;;  %v5465_v38 = vor.u32 %v5464_v50, %v5461_v59  ;;  %v3839_v61 = vpop.f32.mrb[32].mxu1  ;;  %6592 = vmatprep.subr.bf16.mxu0 %v13456_v2  ;;  %v19807_v59 = vld [vmem:[#allocation295_spill] sm:$0xff]  ;;  %v19809_v56 = vld [vmem:[#allocation101_spill] sm:$0xff] }
 0x3ac   : > { %v4629_v58 = vmax.f32 %v4501_v26, 0.0  ;;  %v4502_v14 = vadd.f32 %v17001_v53, %v4362_v36  ;;  %v19804_v26 = vld [vmem:[#allocation98_spill] sm:$0xff]  ;;  %v5470_v1 = vrot.slane %v5468_v52, 5  ;;  %v4144_v10 = vmax.f32 %v16648_v0, %v3839_v61  ;;  %v3841_v36 = vpop.f32.mrb[33].mxu1  ;;  %6593 = vmatpush1.bf16.msra.mxu0 %v13454_v28  ;;  %v19816_v28 = vld [vmem:[#allocation104_spill] sm:$0xff]  ;;  %v19820_v61 = vld [vmem:[#allocation107_spill] sm:$0xff] }
 0x3ad   : > { %4806 = vst [vmem:[#allocation2 + $0x60] sm:$0xff] %v4742_v49  ;;  %v4364_v46 = vmax.f32 %v19803_v19, %v4140_v24  ;;  %v4503_v29 = vadd.f32 %v17004_v21, %v4363_v25  ;;  %v19806_v39 = vmax.f32 %v19804_v26, %v19805_v32  ;;  %v4145_v50 = vmax.f32 %v19807_v59, %v3841_v36  ;;  %v19808_v25 = vld [vmem:[#allocation100_spill] sm:$0xff]  ;;  %v19815_v32 = vld [vmem:[#allocation297_spill] sm:$0xff]  ;;  %v13463_v36 = vld [vmem:[%s18947_s2 + $0x30] ss:$8 sps:$4 sm:$0xff]  }
 0x3ae   : > { %v4743_v57 = vpack.c.bf16 %v4629_v58, %v4627_v35  ;;  %v13409_v37 = vld [vmem:[#allocation2 + $0x50] ss:$8 sps:$4 sm:$0xff]   ;;  %v13411_v43 = vld [vmem:[#allocation2 + $0x54] ss:$8 sps:$4 sm:$0x11]   ;;  %v4630_v35 = vmax.f32 %v4502_v14, 0.0 }
 0x3af   : > { %v4365_v31 = vmax.f32 %v19806_v39, %v4141_v17  ;;  %v4504_v54 = vadd.f32 %v17001_v53, %v4364_v46  ;;  %v5473_v33 = vshrl.u32 %v13409_v37, 16  ;;  %v5476_v49 = vshll.u32 %v13409_v37, 16  ;;  %v19811_v14 = vld [vmem:[#allocation296_spill] sm:$0xff]  ;;  %v19812_v46 = vld [vmem:[#allocation102_spill] sm:$0xff]  ;;  %v19813_v37 = vld [vmem:[#allocation103_spill] sm:$0xff] }
 0x3b0   : > { %4807 = vst [vmem:[#allocation2 + $0x68] sm:$0xff] %v4743_v57  ;;  %v4631_v3 = vmax.f32 %v4503_v29, 0.0  ;;  %v3843_v57 = vpop.f32.mrb[34].mxu1  ;;  %v5482_v9 = vshll.u32 %v13411_v43, 16  ;;  %v19810_v17 = vmax.f32 %v19808_v25, %v19809_v56  ;;  %v5466_v19 = vrot.slane %v5465_v38, 4  ;;  %v19819_v38 = vld [vmem:[#allocation106_spill] sm:$0xff] }
 0x3b1   : > { %v4505_v58 = vadd.f32 %v17004_v21, %v4365_v31  ;;  %v4632_v15 = vmax.f32 %v4504_v54, 0.0  ;;  %v5475_v24 = vrot.slane %v5473_v33, 4  ;;  %v5478_v55 = vrot.slane %v5476_v49, 5  ;;  %v3845_v47 = vpop.f32.mrb[35].mxu1  ;;  %v19817_v54 = vld [vmem:[#allocation105_spill] sm:$0xff] }
 0x3b2   : > { %v4366_v52 = vmax.f32 %v19810_v17, %v4144_v10  ;;  %v4148_v20 = vmax.f32 %v19811_v14, %v3843_v57  ;;  %v19814_v29 = vmax.f32 %v19812_v46, %v19813_v37  ;;  %v4149_v39 = vmax.f32 %v19815_v32, %v3845_v47  ;;  %v13465_v57 = vld [vmem:[%s18947_s2 + $0x34] ss:$8 sps:$4 sm:$0xff]   ;;  %v19823_v32 = vld [vmem:[#allocation109_spill] sm:$0xff] }
 0x3b3   : > { %v4633_v12 = vmax.f32 %v4505_v58, 0.0  ;;  %v4744_v18 = vpack.c.bf16 %v4632_v15, %v4630_v35  ;;  %v5479_v31 = vor.u32 %v5478_v55, %v5475_v24  ;;  %v19818_v33 = vmax.f32 %v19816_v28, %v19817_v54  ;;  %6594 = vmatprep.subr.bf16.mxu0 %v13465_v57 }
 0x3b4   : > { %v4367_v26 = vmax.f32 %v19814_v29, %v4145_v50  ;;  %v4506_v43 = vadd.f32 %v17001_v53, %v4366_v52  ;;  %v19821_v49 = vmax.f32 %v19819_v38, %v19820_v61  ;;  %v5484_v10 = vrot.slane %v5482_v9, 5  ;;  %v3849_v9 = vpop.f32.mrb[36].mxu1  ;;  %6595 = vmatpush1.bf16.msra.mxu0 %v13463_v36 }
 0x3b5   : > { %v4745_v0 = vpack.c.bf16 %v4633_v12, %v4631_v3  ;;  %4808 = vst [vmem:[#allocation2 + $0x70] sm:$0xff] %v4744_v18  ;;  %v4368_v2 = vmax.f32 %v19818_v33, %v4148_v20  ;;  %v5480_v15 = vrot.slane %v5479_v31, 4  ;;  %v5471_v12 = vsel %vm14307_vm2, %v5466_v19, %v5470_v1  ;;  %v3851_v14 = vpop.f32.mrb[37].mxu1  ;;  %v19825_v33 = vld [vmem:[#allocation110_spill] sm:$0xff] }
 0x3b6   : > { %v4507_v58 = vadd.f32 %v17004_v21, %v4367_v26  ;;  %v4369_v3 = vmax.f32 %v19821_v49, %v4149_v39  ;;  %v4634_v55 = vmax.f32 %v4506_v43, 0.0  ;;  %v4152_v52 = vmax.f32 %v16665_v48, %v3849_v9  ;;  %v19822_v26 = vld [vmem:[#allocation108_spill] sm:$0xff] }
 0x3b7   : > { %v13412_v35 = vld [vmem:[#allocation2 + $0x60] ss:$8 sps:$4 sm:$0xff]   ;;  %4809 = vst [vmem:[#allocation2 + $0x78] sm:$0xff] %v4745_v0  ;;  %v4508_v24 = vadd.f32 %v17001_v53, %v4368_v2  ;;  %v5485_v56 = vsel %vm14307_vm2, %v5480_v15, %v5484_v10  ;;  %v4153_v19 = vmax.f32 %v16667_v13, %v3851_v14  ;;  %v3853_v0 = vpop.f32.mrb[38].mxu1  ;;  %v19824_v39 = vmax.f32 %v19822_v26, %v19823_v32  ;;  %v19826_v2 = vld [vmem:[#allocation111_spill] sm:$0xff]  ;;  %v19828_v13 = vld [vmem:[#allocation298_spill] sm:$0xff] }
 0x3b8   : > { %v5487_v59 = vshrl.u32 %v13412_v35, 16  ;;  %v5490_v50 = vshll.u32 %v13412_v35, 16  ;;  %v4635_v18 = vmax.f32 %v4507_v58, 0.0  ;;  %v4509_v25 = vadd.f32 %v17004_v21, %v4369_v3  ;;  %v3855_v28 = vpop.f32.mrb[39].mxu1  ;;  %v19829_v49 = vld [vmem:[#allocation112_spill] sm:$0xff]  ;;  %v19830_v3 = vld [vmem:[#allocation113_spill] sm:$0xff] }
 0x3b9   : > { %v4636_v17 = vmax.f32 %v4508_v24, 0.0  ;;  %v12253_v20 = vcombine.high %v5471_v12, %v5485_v56  ;;  %v12252_v1 = vcombine.low %v5471_v12, %v5485_v56  ;;  %v4370_v31 = vmax.f32 %v19824_v39, %v4152_v52  ;;  %v13414_v48 = vld [vmem:[#allocation2 + $0x64] ss:$8 sps:$4 sm:$0x11]   ;;  %v19832_v24 = vld [vmem:[#allocation114_spill] sm:$0xff]  ;;  %v19833_v12 = vld [vmem:[#allocation115_spill] sm:$0xff] }
 0x3ba   : > { %v4637_v47 = vmax.f32 %v4509_v25, 0.0  ;;  %v5489_v46 = vrot.slane %v5487_v59, 4  ;;  %v5492_v37 = vrot.slane %v5490_v50, 5  ;;  %v4156_v43 = vmax.f32 %v16669_v22, %v3853_v0  ;;  %v19835_v39 = vld [vmem:[#allocation299_spill] sm:$0xff] }
 0x3bb   : > { %v4746_v29 = vpack.c.bf16 %v4636_v17, %v4634_v55  ;;  %6223 = vmatprep.mubr.bf16.mxu0 %v12253_v20  ;;  %v19827_v35 = vmax.f32 %v19825_v33, %v19826_v2  ;;  %v4157_v38 = vmax.f32 %v19828_v13, %v3855_v28  ;;  %v4510_v61 = vadd.f32 %v17001_v53, %v4370_v31  ;;  %v13468_v17 = vld [vmem:[%s18947_s2 + $0x44] ss:$8 sps:$4 sm:$0xff]   ;;  %v3859_v20 = vpop.f32.mrb[40].mxu1 }
 0x3bc   : > { %v4747_v54 = vpack.c.bf16 %v4637_v47, %v4635_v18  ;;  %6224 = vmatmul.mubr.bf16.gmra.mrb[136].mxu0 %v12252_v1  ;;  %v19831_v15 = vmax.f32 %v19829_v49, %v19830_v3  ;;  %v19834_v59 = vmax.f32 %v19832_v24, %v19833_v12  ;;  %v5493_v55 = vor.u32 %v5492_v37, %v5489_v46  ;;  %v13466_v18 = vld [vmem:[%s18947_s2 + $0x40] ss:$8 sps:$4 sm:$0xff]   ;;  %v3861_v46 = vpop.f32.mrb[41].mxu1  ;;  %v19840_v49 = vld [vmem:[#allocation118_spill] sm:$0xff]  ;;  %v19841_v3 = vld [vmem:[#allocation119_spill] sm:$0xff] }
 0x3bd   : > { %v4371_v58 = vmax.f32 %v19827_v35, %v4153_v19  ;;  %4810 = vst [vmem:[#allocation2 + $0x80] sm:$0xff] %v4746_v29  ;;  %v4638_v52 = vmax.f32 %v4510_v61, 0.0  ;;  %v5496_v1 = vshll.u32 %v13414_v48, 16  ;;  %v4160_v0 = vmax.f32 %v16676_v30, %v3859_v20  ;;  %6596 = vmatprep.subr.bf16.mxu0 %v13468_v17  ;;  %v19836_v33 = vld [vmem:[#allocation116_spill] sm:$0xff]  ;;  %v19837_v2 = vld [vmem:[#allocation117_spill] sm:$0xff]  ;;  %v19847_v17 = vld [vmem:[#allocation122_spill] sm:$0xff] }
 0x3be   : > { %v4372_v10 = vmax.f32 %v19831_v15, %v4156_v43  ;;  %v13415_v36 = vld [vmem:[#allocation2 + $0x70] ss:$8 sps:$4 sm:$0xff]   ;;  %4811 = vst [vmem:[#allocation2 + $0x88] sm:$0xff] %v4747_v54  ;;  %v4373_v50 = vmax.f32 %v19834_v59, %v4157_v38  ;;  %v13417_v57 = vld [vmem:[#allocation2 + $0x74] ss:$8 sps:$4 sm:$0x11]   ;;  %v4161_v31 = vmax.f32 %v19835_v39, %v3861_v46  ;;  %6597 = vmatpush1.bf16.msra.mxu0 %v13466_v18 }
 0x3bf   : > { %v4511_v22 = vadd.f32 %v17004_v21, %v4371_v58  ;;  %v5501_v9 = vshrl.u32 %v13415_v36, 16  ;;  %v5504_v56 = vshll.u32 %v13415_v36, 16  ;;  %v5510_v47 = vshll.u32 %v13417_v57, 16  ;;  %v3863_v43 = vpop.f32.mrb[42].mxu1  ;;  %v19839_v58 = vld [vmem:[#allocation300_spill] sm:$0xff]  ;;  %v19843_v36 = vld [vmem:[#allocation301_spill] sm:$0xff] }
 0x3c0   : > { %v4512_v25 = vadd.f32 %v17001_v53, %v4372_v10  ;;  %v4513_v14 = vadd.f32 %v17004_v21, %v4373_v50  ;;  %v5494_v28 = vrot.slane %v5493_v55, 4  ;;  %v19838_v35 = vmax.f32 %v19836_v33, %v19837_v2  ;;  %v3865_v38 = vpop.f32.mrb[43].mxu1  ;;  %v19844_v59 = vld [vmem:[#allocation120_spill] sm:$0xff]  ;;  %v19845_v50 = vld [vmem:[#allocation121_spill] sm:$0xff] }
 0x3c1   : > { %v5503_v37 = vrot.slane %v5501_v9, 4  ;;  %v5506_v29 = vrot.slane %v5504_v56, 5  ;;  %v4639_v26 = vmax.f32 %v4511_v22, 0.0  ;;  %v4164_v13 = vmax.f32 %v19839_v58, %v3863_v43 }
 0x3c2   : > { %v4640_v19 = vmax.f32 %v4512_v25, 0.0  ;;  %v4641_v32 = vmax.f32 %v4513_v14, 0.0  ;;  %v4374_v48 = vmax.f32 %v19838_v35, %v4160_v0  ;;  %v19842_v15 = vmax.f32 %v19840_v49, %v19841_v3  ;;  %v19851_v49 = vld [vmem:[#allocation125_spill] sm:$0xff] }
 0x3c3   : > { %v5507_v30 = vor.u32 %v5506_v29, %v5503_v37  ;;  %v4165_v22 = vmax.f32 %v19843_v36, %v3865_v38  ;;  %v5498_v24 = vrot.slane %v5496_v1, 5  ;;  %v19846_v57 = vmax.f32 %v19844_v59, %v19845_v50  ;;  %v13475_v1 = vld [vmem:[%s18947_s2 + $0x50] ss:$8 sps:$4 sm:$0xff]   ;;  %v13477_v37 = vld [vmem:[%s18947_s2 + $0x54] ss:$8 sps:$4 sm:$0xff]  }
 0x3c4   : > { %v4748_v54 = vpack.c.bf16 %v4640_v19, %v4638_v52  ;;  %v4749_v61 = vpack.c.bf16 %v4641_v32, %v4639_v26  ;;  %v4375_v10 = vmax.f32 %v19842_v15, %v4161_v31  ;;  %v4514_v12 = vadd.f32 %v17001_v53, %v4374_v48  ;;  %v19848_v52 = vld [vmem:[#allocation123_spill] sm:$0xff]  ;;  %v3869_v26 = vpop.f32.mrb[44].mxu1  ;;  %6598 = vmatprep.subr.bf16.mxu0 %v13477_v37 }
 0x3c5   : > { %v4376_v55 = vmax.f32 %v19846_v57, %v4164_v13  ;;  %v5508_v18 = vrot.slane %v5507_v30, 4  ;;  %v5512_v25 = vrot.slane %v5510_v47, 5  ;;  %v13418_v9 = vld [vmem:[#allocation2 + $0x80] ss:$8 sps:$4 sm:$0xff]   ;;  %v19849_v14 = vmax.f32 %v19847_v17, %v19848_v52  ;;  %v3871_v2 = vpop.f32.mrb[45].mxu1  ;;  %6599 = vmatpush1.bf16.msra.mxu0 %v13475_v1 }
 0x3c6   : > { %4812 = vst [vmem:[#allocation2 + $0x90] sm:$0xff] %v4748_v54  ;;  %4813 = vst [vmem:[#allocation2 + $0x98] sm:$0xff] %v4749_v61  ;;  %v4515_v56 = vadd.f32 %v17004_v21, %v4375_v10  ;;  %v5499_v0 = vsel %vm14307_vm2, %v5494_v28, %v5498_v24  ;;  %v5515_v46 = vshrl.u32 %v13418_v9, 16  ;;  %v13420_v31 = vld [vmem:[#allocation2 + $0x84] ss:$8 sps:$4 sm:$0x11]   ;;  %v4168_v33 = vmax.f32 %v16693_v27, %v3869_v26 }
 0x3c7   : > { %v4377_v20 = vmax.f32 %v19849_v14, %v4165_v22  ;;  %v4516_v19 = vadd.f32 %v17001_v53, %v4376_v55  ;;  %v5513_v47 = vsel %vm14307_vm2, %v5508_v18, %v5512_v25  ;;  %v4642_v43 = vmax.f32 %v4514_v12, 0.0  ;;  %v3873_v13 = vpop.f32.mrb[46].mxu1  ;;  %v19850_v61 = vld [vmem:[#allocation124_spill] sm:$0xff]  ;;  %v19853_v24 = vld [vmem:[#allocation126_spill] sm:$0xff]  ;;  %v19854_v12 = vld [vmem:[#allocation127_spill] sm:$0xff] }
 0x3c8   : > { %v12255_v32 = vcombine.high %v5499_v0, %v5513_v47  ;;  %v12254_v39 = vcombine.low %v5499_v0, %v5513_v47  ;;  %v5518_v28 = vshll.u32 %v13418_v9, 16  ;;  %v4643_v35 = vmax.f32 %v4515_v56, 0.0  ;;  %v3875_v36 = vpop.f32.mrb[47].mxu1  ;;  %v19857_v25 = vld [vmem:[#allocation128_spill] sm:$0xff]  ;;  %v19858_v9 = vld [vmem:[#allocation129_spill] sm:$0xff]  ;;  %v19860_v14 = vld [vmem:[#allocation130_spill] sm:$0xff] }
 0x3c9   : > { %v4517_v29 = vadd.f32 %v17004_v21, %v4377_v20  ;;  %v4644_v54 = vmax.f32 %v4516_v19, 0.0  ;;  %v4169_v58 = vmax.f32 %v16695_v45, %v3871_v2  ;;  %v5517_v38 = vrot.slane %v5515_v46, 4  ;;  %v19856_v45 = vld [vmem:[#allocation302_spill] sm:$0xff]  ;;  %v19861_v20 = vld [vmem:[#allocation131_spill] sm:$0xff]  ;;  %v13478_v47 = vld [vmem:[%s18947_s2 + $0x60] ss:$8 sps:$4 sm:$0xff]  }
 0x3ca   : > { %6233 = vmatprep.mubr.bf16.mxu0 %v12255_v32  ;;  %v19852_v3 = vmax.f32 %v19850_v61, %v19851_v49  ;;  %v4172_v10 = vmax.f32 %v16697_v34, %v3873_v13  ;;  %v5520_v27 = vrot.slane %v5518_v28, 5  ;;  %v19855_v59 = vmax.f32 %v19853_v24, %v19854_v12  ;;  %v13480_v26 = vld [vmem:[%s18947_s2 + $0x64] ss:$8 sps:$4 sm:$0xff]   ;;  %v19863_v13 = vld [vmem:[#allocation303_spill] sm:$0xff] }
 0x3cb   : > { %v4645_v48 = vmax.f32 %v4517_v29, 0.0  ;;  %v4750_v30 = vpack.c.bf16 %v4644_v54, %v4642_v43  ;;  %6234 = vmatmul.mubr.bf16.gmra.mrb[140].mxu0 %v12254_v39  ;;  %v4173_v57 = vmax.f32 %v19856_v45, %v3875_v36  ;;  %v5524_v55 = vshll.u32 %v13420_v31, 16  ;;  %v3879_v31 = vpop.f32.mrb[48].mxu1  ;;  %6600 = vmatprep.subr.bf16.mxu0 %v13480_v26  ;;  %v19869_v45 = vld [vmem:[#allocation133_spill] sm:$0xff]  ;;  %v13487_v26 = vld [vmem:[%s18947_s2 + $0x70] ss:$8 sps:$4 sm:$0xff]  }
 0x3cc   : > { %v4378_v15 = vmax.f32 %v19852_v3, %v4168_v33  ;;  %v4379_v50 = vmax.f32 %v19855_v59, %v4169_v58  ;;  %v19859_v56 = vmax.f32 %v19857_v25, %v19858_v9  ;;  %v19862_v1 = vmax.f32 %v19860_v14, %v19861_v20  ;;  %6601 = vmatpush1.bf16.msra.mxu0 %v13478_v47 }
 0x3cd   : > { %v4751_v22 = vpack.c.bf16 %v4645_v48, %v4643_v35  ;;  %4814 = vst [vmem:[#allocation2 + $0xa0] sm:$0xff] %v4750_v30  ;;  %v13421_v52 = vld [vmem:[#allocation2 + $0x90] ss:$8 sps:$4 sm:$0xff]   ;;  %v13423_v0 = vld [vmem:[#allocation2 + $0x94] ss:$8 sps:$4 sm:$0x11]   ;;  %v5521_v37 = vor.u32 %v5520_v27, %v5517_v38  ;;  %v4176_v28 = vmax.f32 %v16704_v4, %v3879_v31 }
 0x3ce   : > { %v4518_v18 = vadd.f32 %v17001_v53, %v4378_v15  ;;  %v4380_v17 = vmax.f32 %v19859_v56, %v4172_v10  ;;  %v4519_v34 = vadd.f32 %v17004_v21, %v4379_v50  ;;  %v4381_v19 = vmax.f32 %v19862_v1, %v4173_v57  ;;  %v3881_v35 = vpop.f32.mrb[49].mxu1  ;;  %v19864_v15 = vld [vmem:[#allocation7_spill] sm:$0xff]  ;;  %v19865_v10 = vld [vmem:[#allocation6_spill] sm:$0xff]  ;;  %v19868_v50 = vld [vmem:[#allocation132_spill] sm:$0xff] }
 0x3cf   : > { %4815 = vst [vmem:[#allocation2 + $0xa8] sm:$0xff] %v4751_v22  ;;  %v5529_v29 = vshrl.u32 %v13421_v52, 16  ;;  %v5526_v43 = vrot.slane %v5524_v55, 5  ;;  %v5532_v54 = vshll.u32 %v13421_v52, 16  ;;  %v4177_v38 = vmax.f32 %v19863_v13, %v3881_v35  ;;  %v3883_v30 = vpop.f32.mrb[50].mxu1  ;;  %v19867_v22 = vld [vmem:[#allocation304_spill] sm:$0xff] }
 0x3d0   : > { %v4520_v46 = vadd.f32 %v17001_v53, %v4380_v17  ;;  %v4646_v32 = vmax.f32 %v4518_v18, 0.0  ;;  %v4521_v39 = vadd.f32 %v17004_v21, %v4381_v19  ;;  %v4647_v33 = vmax.f32 %v4519_v34, 0.0  ;;  %v3885_v12 = vpop.f32.mrb[51].mxu1  ;;  %v19871_v18 = vld [vmem:[#allocation305_spill] sm:$0xff]  ;;  %v19872_v17 = vld [vmem:[#allocation134_spill] sm:$0xff]  ;;  %v19873_v52 = vld [vmem:[#allocation135_spill] sm:$0xff] }
 0x3d1   : > { %v5531_v48 = vrot.slane %v5529_v29, 4  ;;  %v5534_v61 = vrot.slane %v5532_v54, 5  ;;  %v5538_v49 = vshll.u32 %v13423_v0, 16  ;;  %v19866_v36 = vmax.f32 %v19864_v15, %v19865_v10  ;;  %v19875_v19 = vld [vmem:[#allocation136_spill] sm:$0xff]  ;;  %v19876_v0 = vld [vmem:[#allocation137_spill] sm:$0xff] }
 0x3d2   : > { %v4648_v2 = vmax.f32 %v4520_v46, 0.0  ;;  %v4649_v58 = vmax.f32 %v4521_v39, 0.0  ;;  %v4180_v24 = vmax.f32 %v19867_v22, %v3883_v30  ;;  %v5522_v59 = vrot.slane %v5521_v37, 4  ;;  %v19878_v22 = vld [vmem:[#allocation8_spill] sm:$0xff] }
 0x3d3   : > { %v4382_v27 = vmax.f32 %v19866_v36, %v4176_v28  ;;  %v19870_v57 = vmax.f32 %v19868_v50, %v19869_v45  ;;  %v4181_v25 = vmax.f32 %v19871_v18, %v3885_v12  ;;  %v5535_v9 = vor.u32 %v5534_v61, %v5531_v48  ;;  %v3889_v48 = vpop.f32.mrb[52].mxu1 }
 0x3d4   : > { %v4752_v3 = vpack.c.bf16 %v4648_v2, %v4646_v32  ;;  %v4753_v4 = vpack.c.bf16 %v4649_v58, %v4647_v33  ;;  %v19874_v34 = vmax.f32 %v19872_v17, %v19873_v52  ;;  %v19877_v47 = vmax.f32 %v19875_v19, %v19876_v0  ;;  %v13489_v33 = vld [vmem:[%s18947_s2 + $0x74] ss:$8 sps:$4 sm:$0xff]   ;;  %v3891_v30 = vpop.f32.mrb[53].mxu1  ;;  %v19885_v17 = vld [vmem:[#allocation141_spill] sm:$0xff]  ;;  %v19889_v19 = vld [vmem:[#allocation144_spill] sm:$0xff] }
 0x3d5   : > { %v4383_v55 = vmax.f32 %v19870_v57, %v4177_v38  ;;  %v4522_v56 = vadd.f32 %v17001_v53, %v4382_v27  ;;  %v5536_v37 = vrot.slane %v5535_v9, 4  ;;  %v5540_v29 = vrot.slane %v5538_v49, 5  ;;  %6602 = vmatprep.subr.bf16.mxu0 %v13489_v33  ;;  %v3893_v15 = vpop.f32.mrb[54].mxu1  ;;  %v19881_v57 = vld [vmem:[#allocation139_spill] sm:$0xff]  ;;  %v19886_v52 = vld [vmem:[#allocation142_spill] sm:$0xff] }
 0x3d6   : > { %4816 = vst [vmem:[#allocation2 + $0xb0] sm:$0xff] %v4752_v3  ;;  %v4384_v14 = vmax.f32 %v19874_v34, %v4180_v24  ;;  %v13424_v20 = vld [vmem:[#allocation2 + $0xa0] ss:$8 sps:$4 sm:$0xff]   ;;  %4817 = vst [vmem:[#allocation2 + $0xb8] sm:$0xff] %v4753_v4  ;;  %v4385_v46 = vmax.f32 %v19877_v47, %v4181_v25  ;;  %v5527_v39 = vsel %vm14307_vm2, %v5522_v59, %v5526_v43  ;;  %6603 = vmatpush1.bf16.msra.mxu0 %v13487_v26  ;;  %v19879_v24 = vld [vmem:[#allocation138_spill] sm:$0xff]  ;;  %v3895_v50 = vpop.f32.mrb[55].mxu1 }
 0x3d7   : > { %v4523_v1 = vadd.f32 %v17004_v21, %v4383_v55  ;;  %v5543_v31 = vshrl.u32 %v13424_v20, 16  ;;  %v5546_v54 = vshll.u32 %v13424_v20, 16  ;;  %v4650_v2 = vmax.f32 %v4522_v56, 0.0  ;;  %v19882_v55 = vld [vmem:[#allocation140_spill] sm:$0xff] }
 0x3d8   : > { %v4524_v32 = vadd.f32 %v17001_v53, %v4384_v14  ;;  %v4525_v35 = vadd.f32 %v17004_v21, %v4385_v46  ;;  %v5541_v58 = vsel %vm14307_vm2, %v5536_v37, %v5540_v29  ;;  %v4184_v38 = vmax.f32 %v16721_v62, %v3889_v48  ;;  %v13426_v62 = vld [vmem:[#allocation2 + $0xa4] ss:$8 sps:$4 sm:$0x11]   ;;  %v13490_v29 = vld [vmem:[%s18947_s2 + $0x80] ss:$8 sps:$4 sm:$0xff]  }
 0x3d9   : > { %v4651_v28 = vmax.f32 %v4523_v1, 0.0  ;;  %v12257_v61 = vcombine.high %v5527_v39, %v5541_v58  ;;  %v12256_v43 = vcombine.low %v5527_v39, %v5541_v58  ;;  %v4185_v3 = vmax.f32 %v16723_v63, %v3891_v30  ;;  %v19884_v63 = vld [vmem:[#allocation306_spill] sm:$0xff]  ;;  %v19888_v1 = vld [vmem:[#allocation143_spill] sm:$0xff] }
 0x3da   : > { %v4652_v13 = vmax.f32 %v4524_v32, 0.0  ;;  %v4653_v49 = vmax.f32 %v4525_v35, 0.0  ;;  %v5545_v10 = vrot.slane %v5543_v31, 4  ;;  %v5548_v36 = vrot.slane %v5546_v54, 5  ;;  %v13492_v31 = vld [vmem:[%s18947_s2 + $0x84] ss:$8 sps:$4 sm:$0xff]  }
 0x3db   : > { %v19880_v12 = vmax.f32 %v19878_v22, %v19879_v24  ;;  %v4188_v4 = vmax.f32 %v16725_v42, %v3893_v15  ;;  %6243 = vmatprep.mubr.bf16.mxu0 %v12257_v61  ;;  %v19883_v18 = vmax.f32 %v19881_v57, %v19882_v55  ;;  %v4189_v9 = vmax.f32 %v19884_v63, %v3895_v50  ;;  %v19893_v22 = vld [vmem:[#allocation146_spill] sm:$0xff]  ;;  %v19897_v57 = vld [vmem:[#allocation148_spill] sm:$0xff] }
 0x3dc   : > { %v4754_v27 = vpack.c.bf16 %v4652_v13, %v4650_v2  ;;  %v4755_v45 = vpack.c.bf16 %v4653_v49, %v4651_v28  ;;  %6244 = vmatmul.mubr.bf16.gmra.mrb[144].mxu0 %v12256_v43  ;;  %v19887_v34 = vmax.f32 %v19885_v17, %v19886_v52  ;;  %v19890_v0 = vmax.f32 %v19888_v1, %v19889_v19  ;;  %v3899_v2 = vpop.f32.mrb[56].mxu1  ;;  %v19891_v49 = vld [vmem:[#allocation307_spill] sm:$0xff]  ;;  %v19900_v17 = vld [vmem:[#allocation149_spill] sm:$0xff]  ;;  %v19901_v52 = vld [vmem:[#allocation150_spill] sm:$0xff] }
 0x3dd   : > { %v4386_v59 = vmax.f32 %v19880_v12, %v4184_v38  ;;  %v4387_v25 = vmax.f32 %v19883_v18, %v4185_v3  ;;  %v13427_v20 = vld [vmem:[#allocation2 + $0xb0] ss:$8 sps:$4 sm:$0xff]   ;;  %v13429_v46 = vld [vmem:[#allocation2 + $0xb4] ss:$8 sps:$4 sm:$0x11]   ;;  %v5549_v37 = vor.u32 %v5548_v36, %v5545_v10  ;;  %v5552_v28 = vshll.u32 %v13426_v62, 16  ;;  %6604 = vmatprep.subr.bf16.mxu0 %v13492_v31 }
 0x3de   : > { %4818 = vst [vmem:[#allocation2 + $0xc0] sm:$0xff] %v4754_v27  ;;  %v4388_v14 = vmax.f32 %v19887_v34, %v4188_v4  ;;  %4819 = vst [vmem:[#allocation2 + $0xc8] sm:$0xff] %v4755_v45  ;;  %v4389_v47 = vmax.f32 %v19890_v0, %v4189_v9  ;;  %v5557_v32 = vshrl.u32 %v13427_v20, 16  ;;  %v5560_v39 = vshll.u32 %v13427_v20, 16  ;;  %v3901_v13 = vpop.f32.mrb[57].mxu1  ;;  %6605 = vmatpush1.bf16.msra.mxu0 %v13490_v29  ;;  %v19892_v27 = vld [vmem:[#allocation145_spill] sm:$0xff] }
 0x3df   : > { %v4526_v56 = vadd.f32 %v17001_v53, %v4386_v59  ;;  %v4527_v42 = vadd.f32 %v17004_v21, %v4387_v25  ;;  %v5566_v35 = vshll.u32 %v13429_v46, 16  ;;  %v4192_v58 = vmax.f32 %v16732_v8, %v3899_v2  ;;  %v3903_v15 = vpop.f32.mrb[58].mxu1  ;;  %v19895_v59 = vld [vmem:[#allocation308_spill] sm:$0xff]  ;;  %v19896_v45 = vld [vmem:[#allocation147_spill] sm:$0xff]  ;;  %v19899_v25 = vld [vmem:[#allocation309_spill] sm:$0xff] }
 0x3e0   : > { %v4528_v26 = vadd.f32 %v17001_v53, %v4388_v14  ;;  %v4529_v33 = vadd.f32 %v17004_v21, %v4389_v47  ;;  %v5559_v38 = vrot.slane %v5557_v32, 4  ;;  %v5562_v30 = vrot.slane %v5560_v39, 5  ;;  %v3905_v50 = vpop.f32.mrb[59].mxu1  ;;  %v19903_v0 = vld [vmem:[#allocation151_spill] sm:$0xff]  ;;  %v19904_v47 = vld [vmem:[#allocation152_spill] sm:$0xff] }
 0x3e1   : > { %v4654_v54 = vmax.f32 %v4526_v56, 0.0  ;;  %v4655_v61 = vmax.f32 %v4527_v42, 0.0  ;;  %v4193_v3 = vmax.f32 %v19891_v49, %v3901_v13  ;;  %v5550_v10 = vrot.slane %v5549_v37, 4  ;;  %v13499_v29 = vld [vmem:[%s18947_s2 + $0x90] ss:$8 sps:$4 sm:$0xff]  }
 0x3e2   : > { %v4656_v48 = vmax.f32 %v4528_v26, 0.0  ;;  %v4657_v43 = vmax.f32 %v4529_v33, 0.0  ;;  %v19894_v24 = vmax.f32 %v19892_v27, %v19893_v22  ;;  %v4196_v4 = vmax.f32 %v19895_v59, %v3903_v15  ;;  %v3909_v2 = vpop.f32.mrb[60].mxu1  ;;  %v19906_v27 = vld [vmem:[#allocation153_spill] sm:$0xff]  ;;  %v19907_v22 = vld [vmem:[#allocation154_spill] sm:$0xff] }
 0x3e3   : > { %v5563_v8 = vor.u32 %v5562_v30, %v5559_v38  ;;  %v19898_v55 = vmax.f32 %v19896_v45, %v19897_v57  ;;  %v4197_v63 = vmax.f32 %v19899_v25, %v3905_v50  ;;  %v5554_v9 = vrot.slane %v5552_v28, 5  ;;  %v3911_v30 = vpop.f32.mrb[61].mxu1 }
 0x3e4   : > { %v4756_v36 = vpack.c.bf16 %v4656_v48, %v4654_v54  ;;  %v4390_v12 = vmax.f32 %v19894_v24, %v4192_v58  ;;  %v4757_v62 = vpack.c.bf16 %v4657_v43, %v4655_v61  ;;  %v19902_v34 = vmax.f32 %v19900_v17, %v19901_v52  ;;  %v13501_v54 = vld [vmem:[%s18947_s2 + $0x94] ss:$8 sps:$4 sm:$0xff]   ;;  %v3913_v15 = vpop.f32.mrb[62].mxu1 }
 0x3e5   : > { %v4391_v18 = vmax.f32 %v19898_v55, %v4193_v3  ;;  %v5564_v20 = vrot.slane %v5563_v8, 4  ;;  %v5568_v42 = vrot.slane %v5566_v35, 5  ;;  %v13430_v1 = vld [vmem:[#allocation2 + $0xc0] ss:$8 sps:$4 sm:$0xff]   ;;  %v19905_v46 = vmax.f32 %v19903_v0, %v19904_v47  ;;  %6606 = vmatprep.subr.bf16.mxu0 %v13501_v54  ;;  %v19909_v8 = vld [vmem:[#allocation155_spill] sm:$0xff] }
 0x3e6   : > { %4820 = vst [vmem:[#allocation2 + $0xd0] sm:$0xff] %v4756_v36  ;;  %v4530_v56 = vadd.f32 %v17001_v53, %v4390_v12  ;;  %v4392_v14 = vmax.f32 %v19902_v34, %v4196_v4  ;;  %4821 = vst [vmem:[#allocation2 + $0xd8] sm:$0xff] %v4757_v62  ;;  %v5555_v32 = vsel %vm14307_vm2, %v5550_v10, %v5554_v9  ;;  %v5571_v31 = vshrl.u32 %v13430_v1, 16  ;;  %v13432_v48 = vld [vmem:[#allocation2 + $0xc4] ss:$8 sps:$4 sm:$0x11]  }
 0x3e7   : > { %v4531_v19 = vadd.f32 %v17004_v21, %v4391_v18  ;;  %v4393_v37 = vmax.f32 %v19905_v46, %v4197_v63  ;;  %v5569_v39 = vsel %vm14307_vm2, %v5564_v20, %v5568_v42  ;;  %v4200_v38 = vmax.f32 %v16749_v41, %v3909_v2  ;;  %6607 = vmatpush1.bf16.msra.mxu0 %v13499_v29  ;;  %v3915_v4 = vpop.f32.mrb[63].mxu1  ;;  %v19910_v62 = vld [vmem:[#allocation156_spill] sm:$0xff]  ;;  %v19913_v63 = vld [vmem:[#allocation157_spill] sm:$0xff]  ;;  %v19914_v9 = vld [vmem:[#allocation158_spill] sm:$0xff] }
 0x3e8   : > { %v4532_v26 = vadd.f32 %v17001_v53, %v4392_v14  ;;  %v12259_v28 = vcombine.high %v5555_v32, %v5569_v39  ;;  %v12258_v35 = vcombine.low %v5555_v32, %v5569_v39  ;;  %v4658_v58 = vmax.f32 %v4530_v56, 0.0  ;;  %v19916_v34 = vld [vmem:[#allocation159_spill] sm:$0xff]  ;;  %v19917_v14 = vld [vmem:[#allocation160_spill] sm:$0xff] }
 0x3e9   : > { %v4533_v33 = vadd.f32 %v17004_v21, %v4393_v37  ;;  %v5574_v61 = vshll.u32 %v13430_v1, 16  ;;  %v4659_v43 = vmax.f32 %v4531_v19, 0.0  ;;  %v4201_v3 = vmax.f32 %v16751_v5, %v3911_v30  ;;  %v19912_v5 = vld [vmem:[#allocation310_spill] sm:$0xff]  ;;  %v13502_v19 = vld [vmem:[%s18947_s2 + $0xa0] ss:$8 sps:$4 sm:$0xff]  }
 0x3ea   : > { %v4660_v13 = vmax.f32 %v4532_v26, 0.0  ;;  %6253 = vmatprep.mubr.bf16.mxu0 %v12259_v28  ;;  %v5573_v10 = vrot.slane %v5571_v31, 4  ;;  %v19908_v24 = vmax.f32 %v19906_v27, %v19907_v22  ;;  %v4204_v59 = vmax.f32 %v16753_v44, %v3913_v15  ;;  %v13504_v37 = vld [vmem:[%s18947_s2 + $0xa4] ss:$8 sps:$4 sm:$0xff]   ;;  %v3919_v32 = vpop.f32.mrb[64].mxu1 }
 0x3eb   : > { %v4661_v49 = vmax.f32 %v4533_v33, 0.0  ;;  %6254 = vmatmul.mubr.bf16.gmra.mrb[148].mxu0 %v12258_v35  ;;  %v5576_v41 = vrot.slane %v5574_v61, 5  ;;  %v19911_v45 = vmax.f32 %v19909_v8, %v19910_v62  ;;  %v4205_v55 = vmax.f32 %v19912_v5, %v3915_v4  ;;  %v3921_v28 = vpop.f32.mrb[65].mxu1  ;;  %6608 = vmatprep.subr.bf16.mxu0 %v13504_v37  ;;  %v19927_v62 = vld [vmem:[#allocation164_spill] sm:$0xff] }
 0x3ec   : > { %v4758_v36 = vpack.c.bf16 %v4660_v13, %v4658_v58  ;;  %v4394_v12 = vmax.f32 %v19908_v24, %v4200_v38  ;;  %v5580_v18 = vshll.u32 %v13432_v48, 16  ;;  %v19915_v56 = vmax.f32 %v19913_v63, %v19914_v9  ;;  %v3923_v13 = vpop.f32.mrb[66].mxu1  ;;  %6609 = vmatpush1.bf16.msra.mxu0 %v13502_v19  ;;  %v19923_v24 = vld [vmem:[#allocation162_spill] sm:$0xff]  ;;  %v19931_v63 = vld [vmem:[#allocation167_spill] sm:$0xff] }
 0x3ed   : > { %v4759_v50 = vpack.c.bf16 %v4661_v49, %v4659_v43  ;;  %v4395_v57 = vmax.f32 %v19911_v45, %v4201_v3  ;;  %v13433_v52 = vld [vmem:[#allocation2 + $0xd0] ss:$8 sps:$4 sm:$0xff]   ;;  %v19918_v20 = vmax.f32 %v19916_v34, %v19917_v14  ;;  %v13435_v1 = vld [vmem:[#allocation2 + $0xd4] ss:$8 sps:$4 sm:$0x11]   ;;  %v5577_v47 = vor.u32 %v5576_v41, %v5573_v10  ;;  %v19919_v43 = vld [vmem:[#allocation9_spill] sm:$0xff] }
 0x3ee   : > { %4822 = vst [vmem:[#allocation2 + $0xe0] sm:$0xff] %v4758_v36  ;;  %v4534_v25 = vadd.f32 %v17001_v53, %v4394_v12  ;;  %v4396_v17 = vmax.f32 %v19915_v56, %v4204_v59  ;;  %v5585_v46 = vshrl.u32 %v13433_v52, 16  ;;  %v5582_v39 = vrot.slane %v5580_v18, 5  ;;  %v19920_v49 = vld [vmem:[#allocation161_spill] sm:$0xff]  ;;  %v19922_v10 = vld [vmem:[#allocation311_spill] sm:$0xff]  ;;  %v3925_v27 = vpop.f32.mrb[67].mxu1 }
 0x3ef   : > { %4823 = vst [vmem:[#allocation2 + $0xe8] sm:$0xff] %v4759_v50  ;;  %v4535_v44 = vadd.f32 %v17004_v21, %v4395_v57  ;;  %v4397_v42 = vmax.f32 %v19918_v20, %v4205_v55  ;;  %v5588_v31 = vshll.u32 %v13433_v52, 16  ;;  %v4208_v2 = vmax.f32 %v16760_v6, %v3919_v32  ;;  %v19924_v12 = vld [vmem:[#allocation163_spill] sm:$0xff]  ;;  %v19926_v41 = vld [vmem:[#allocation312_spill] sm:$0xff]  ;;  %v19928_v45 = vld [vmem:[#allocation165_spill] sm:$0xff] }
 0x3f0   : > { %v4536_v0 = vadd.f32 %v17001_v53, %v4396_v17  ;;  %v4662_v29 = vmax.f32 %v4534_v25, 0.0  ;;  %v5587_v35 = vrot.slane %v5585_v46, 4  ;;  %v4209_v58 = vmax.f32 %v16762_v11, %v3921_v28  ;;  %v19930_v25 = vld [vmem:[#allocation166_spill] sm:$0xff]  ;;  %v19933_v28 = vld [vmem:[#allocation313_spill] sm:$0xff] }
 0x3f1   : > { %v4537_v26 = vadd.f32 %v17004_v21, %v4397_v42  ;;  %v4663_v54 = vmax.f32 %v4535_v44, 0.0  ;;  %v5590_v38 = vrot.slane %v5588_v31, 5  ;;  %v5594_v30 = vshll.u32 %v13435_v1, 16  ;;  %v13511_v44 = vld [vmem:[%s18947_s2 + $0xb0] ss:$8 sps:$4 sm:$0xff]  }
 0x3f2   : > { %v4664_v33 = vmax.f32 %v4536_v0, 0.0  ;;  %v19921_v3 = vmax.f32 %v19919_v43, %v19920_v49  ;;  %v4212_v36 = vmax.f32 %v19922_v10, %v3923_v13  ;;  %v5578_v22 = vrot.slane %v5577_v47, 4  ;;  %v13513_v1 = vld [vmem:[%s18947_s2 + $0xb4] ss:$8 sps:$4 sm:$0xff]   ;;  %v3929_v46 = vpop.f32.mrb[68].mxu1 }
 0x3f3   : > { %v4665_v48 = vmax.f32 %v4537_v26, 0.0  ;;  %v19925_v59 = vmax.f32 %v19923_v24, %v19924_v12  ;;  %v4213_v11 = vmax.f32 %v19926_v41, %v3925_v27  ;;  %v5591_v50 = vor.u32 %v5590_v38, %v5587_v35  ;;  %6610 = vmatprep.subr.bf16.mxu0 %v13513_v1  ;;  %v19937_v49 = vld [vmem:[#allocation314_spill] sm:$0xff]  ;;  %v19941_v41 = vld [vmem:[#allocation172_spill] sm:$0xff] }
 0x3f4   : > { %v4760_v61 = vpack.c.bf16 %v4664_v33, %v4662_v29  ;;  %v4398_v15 = vmax.f32 %v19921_v3, %v4208_v2  ;;  %v19929_v57 = vmax.f32 %v19927_v62, %v19928_v45  ;;  %v19932_v9 = vmax.f32 %v19930_v25, %v19931_v63  ;;  %v13514_v29 = vld [vmem:[%s18947_s2 + $0xc0] ss:$8 sps:$4 sm:$0xff]   ;;  %v13516_v33 = vld [vmem:[%s18947_s2 + $0xc4] ss:$8 sps:$4 sm:$0xff]   ;;  %6611 = vmatpush1.bf16.msra.mxu0 %v13511_v44  ;;  %v13525_v10 = vld [vmem:[%s18947_s2 + $0xd4] ss:$8 sps:$4 sm:$0xff]  }
 0x3f5   : > { %v4761_v6 = vpack.c.bf16 %v4665_v48, %v4663_v54  ;;  %v4399_v4 = vmax.f32 %v19925_v59, %v4209_v58  ;;  %v5592_v17 = vrot.slane %v5591_v50, 4  ;;  %v5596_v52 = vrot.slane %v5594_v30, 5  ;;  %v19934_v30 = vld [vmem:[#allocation168_spill] sm:$0xff]  ;;  %6612 = vmatprep.subr.bf16.mxu0 %v13516_v33  ;;  %v19938_v27 = vld [vmem:[#allocation170_spill] sm:$0xff] }
 0x3f6   : > { %4824 = vst [vmem:[#allocation2 + $0xf0] sm:$0xff] %v4760_v61  ;;  %v4538_v8 = vadd.f32 %v17001_v53, %v4398_v15  ;;  %v4400_v5 = vmax.f32 %v19929_v57, %v4212_v36  ;;  %v13436_v55 = vld [vmem:[#allocation2 + $0xe0] ss:$8 sps:$4 sm:$0xff]   ;;  %v4401_v56 = vmax.f32 %v19932_v9, %v4213_v11  ;;  %v5583_v14 = vsel %vm14307_vm2, %v5578_v22, %v5582_v39  ;;  %v3931_v39 = vpop.f32.mrb[69].mxu1  ;;  %v19939_v22 = vld [vmem:[#allocation171_spill] sm:$0xff]  ;;  %v19944_v57 = vld [vmem:[#allocation174_spill] sm:$0xff] }
 0x3f7   : > { %4825 = vst [vmem:[#allocation2 + $0xf8] sm:$0xff] %v4761_v6  ;;  %v4539_v18 = vadd.f32 %v17004_v21, %v4399_v4  ;;  %v5599_v20 = vshrl.u32 %v13436_v55, 16  ;;  %v5602_v42 = vshll.u32 %v13436_v55, 16  ;;  %v5597_v37 = vsel %vm14307_vm2, %v5592_v17, %v5596_v52  ;;  %v3933_v48 = vpop.f32.mrb[70].mxu1  ;;  %v19935_v61 = vld [vmem:[#allocation169_spill] sm:$0xff] }
 0x3f8   : > { %v4540_v34 = vadd.f32 %v17001_v53, %v4400_v5  ;;  %v4666_v19 = vmax.f32 %v4538_v8, 0.0  ;;  %v4541_v47 = vadd.f32 %v17004_v21, %v4401_v56  ;;  %v4216_v32 = vmax.f32 %v16783_v60, %v3929_v46  ;;  %v3935_v15 = vpop.f32.mrb[71].mxu1  ;;  %v13438_v59 = vld [vmem:[#allocation2 + $0xe4] ss:$8 sps:$4 sm:$0x11]   ;;  %v19945_v5 = vld [vmem:[#allocation175_spill] sm:$0xff]  ;;  %6613 = vmatpush1.bf16.msra.mxu0 %v13514_v29 }
 0x3f9   : > { %v4667_v0 = vmax.f32 %v4539_v18, 0.0  ;;  %v12261_v31 = vcombine.high %v5583_v14, %v5597_v37  ;;  %v12260_v54 = vcombine.low %v5583_v14, %v5597_v37  ;;  %v4217_v35 = vmax.f32 %v19933_v28, %v3931_v39  ;;  %v19942_v11 = vld [vmem:[#allocation173_spill] sm:$0xff]  ;;  %6614 = vmatprep.subr.bf16.mxu0 %v13525_v10  ;;  %v19949_v28 = vld [vmem:[#allocation10_spill] sm:$0xff] }
 0x3fa   : > { %v4668_v26 = vmax.f32 %v4540_v34, 0.0  ;;  %v4669_v2 = vmax.f32 %v4541_v47, 0.0  ;;  %v5601_v58 = vrot.slane %v5599_v20, 4  ;;  %v5604_v13 = vrot.slane %v5602_v42, 5  ;;  %v13528_v52 = vld [vmem:[%s18947_s2 + $0xe4] ss:$8 sps:$4 sm:$0xff]  }
 0x3fb   : > { %v19936_v43 = vmax.f32 %v19934_v30, %v19935_v61  ;;  %v4220_v3 = vmax.f32 %v19937_v49, %v3933_v48  ;;  %6263 = vmatprep.mubr.bf16.mxu0 %v12261_v31  ;;  %v19940_v6 = vmax.f32 %v19938_v27, %v19939_v22  ;;  %v4221_v12 = vmax.f32 %v16795_v16, %v3935_v15  ;;  %v13523_v16 = vld [vmem:[%s18947_s2 + $0xd0] ss:$8 sps:$4 sm:$0xff]   ;;  %v3939_v14 = vpop.f32.mrb[72].mxu1  ;;  %v13526_v1 = vld [vmem:[%s18947_s2 + $0xe0] ss:$8 sps:$4 sm:$0xff]  }
 0x3fc   : > { %v4762_v38 = vpack.c.bf16 %v4668_v26, %v4666_v19  ;;  %v4763_v36 = vpack.c.bf16 %v4669_v2, %v4667_v0  ;;  %6264 = vmatmul.mubr.bf16.gmra.mrb[152].mxu0 %v12260_v54  ;;  %v19943_v50 = vmax.f32 %v19941_v41, %v19942_v11  ;;  %v19946_v55 = vmax.f32 %v19944_v57, %v19945_v5  ;;  %v3941_v47 = vpop.f32.mrb[73].mxu1  ;;  %v19948_v2 = vld [vmem:[#allocation11_spill] sm:$0xff]  ;;  %v19952_v61 = vld [vmem:[#allocation176_spill] sm:$0xff]  ;;  %v19959_v11 = vld [vmem:[#allocation181_spill] sm:$0xff] }
 0x3fd   : > { %v4402_v60 = vmax.f32 %v19936_v43, %v4216_v32  ;;  %v4403_v24 = vmax.f32 %v19940_v6, %v4217_v35  ;;  %v5605_v63 = vor.u32 %v5604_v13, %v5601_v58  ;;  %v5608_v20 = vshll.u32 %v13438_v59, 16  ;;  %v19947_v32 = vld [vmem:[#allocation315_spill] sm:$0xff]  ;;  %v3943_v31 = vpop.f32.mrb[74].mxu1  ;;  %6615 = vmatpush1.bf16.msra.mxu0 %v13523_v16  ;;  %v19951_v58 = vld [vmem:[#allocation316_spill] sm:$0xff]  ;;  %v19953_v43 = vld [vmem:[#allocation177_spill] sm:$0xff] }
 0x3fe   : > { %4826 = vst [vmem:[#allocation2 + $0x100] sm:$0xff] %v4762_v38  ;;  %v4404_v8 = vmax.f32 %v19943_v50, %v4220_v3  ;;  %v13439_v62 = vld [vmem:[#allocation2 + $0xf0] ss:$8 sps:$4 sm:$0xff]   ;;  %4827 = vst [vmem:[#allocation2 + $0x108] sm:$0xff] %v4763_v36  ;;  %v4405_v18 = vmax.f32 %v19946_v55, %v4221_v12  ;;  %v4224_v0 = vmax.f32 %v16806_v23, %v3939_v14  ;;  %v3945_v38 = vpop.f32.mrb[75].mxu1  ;;  %6616 = vmatprep.subr.bf16.mxu0 %v13528_v52  ;;  %v19958_v41 = vld [vmem:[#allocation180_spill] sm:$0xff] }
 0x3ff   : > { %v4542_v4 = vadd.f32 %v17001_v53, %v4402_v60  ;;  %v4543_v45 = vadd.f32 %v17004_v21, %v4403_v24  ;;  %v13441_v25 = vld [vmem:[#allocation2 + $0xf4] ss:$8 sps:$4 sm:$0x11]   ;;  %v5613_v56 = vshrl.u32 %v13439_v62, 16  ;;  %v5616_v17 = vshll.u32 %v13439_v62, 16  ;;  %v19961_v14 = vld [vmem:[#allocation317_spill] sm:$0xff] }
 0x400   : > { %v4544_v9 = vadd.f32 %v17001_v53, %v4404_v8  ;;  %v4545_v34 = vadd.f32 %v17004_v21, %v4405_v18  ;;  %v5622_v42 = vshll.u32 %v13441_v25, 16  ;;  %v4225_v39 = vmax.f32 %v19947_v32, %v3941_v47  ;;  %v19955_v36 = vld [vmem:[#allocation178_spill] sm:$0xff]  ;;  %v19956_v27 = vld [vmem:[#allocation179_spill] sm:$0xff] }
 0x401   : > { %v4670_v44 = vmax.f32 %v4542_v4, 0.0  ;;  %v5615_v46 = vrot.slane %v5613_v56, 4  ;;  %v5618_v37 = vrot.slane %v5616_v17, 5  ;;  %v4671_v29 = vmax.f32 %v4543_v45, 0.0  ;;  %6617 = vmatpush1.bf16.msra.mxu0 %v13526_v1  ;;  %v19962_v47 = vld [vmem:[#allocation14_spill] sm:$0xff] }
 0x402   : > { %v4672_v19 = vmax.f32 %v4544_v9, 0.0  ;;  %v4673_v26 = vmax.f32 %v4545_v34, 0.0  ;;  %v5606_v54 = vrot.slane %v5605_v63, 4  ;;  %v19950_v35 = vmax.f32 %v19948_v2, %v19949_v28  ;;  %v3949_v55 = vpop.f32.mrb[76].mxu1  ;;  %v19967_v2 = vld [vmem:[#allocation183_spill] sm:$0xff] }
 0x403   : > { %v4228_v13 = vmax.f32 %v19951_v58, %v3943_v31  ;;  %v5619_v30 = vor.u32 %v5618_v37, %v5615_v46  ;;  %v19954_v60 = vmax.f32 %v19952_v61, %v19953_v43  ;;  %v4229_v3 = vmax.f32 %v16818_v7, %v3945_v38  ;;  %v3951_v17 = vpop.f32.mrb[77].mxu1  ;;  %v19963_v46 = vld [vmem:[#allocation13_spill] sm:$0xff]  ;;  %v13537_v31 = vld [vmem:[%s18947_s2 + $0xf4] ss:$8 sps:$4 sm:$0xff]  }
 0x404   : > { %v4764_v33 = vpack.c.bf16 %v4672_v19, %v4670_v44  ;;  %v4406_v48 = vmax.f32 %v19950_v35, %v4224_v0  ;;  %v4765_v23 = vpack.c.bf16 %v4673_v26, %v4671_v29  ;;  %v5610_v15 = vrot.slane %v5608_v20, 5  ;;  %v13535_v19 = vld [vmem:[%s18947_s2 + $0xf0] ss:$8 sps:$4 sm:$0xff]   ;;  %6618 = vmatprep.subr.bf16.mxu0 %v13537_v31 }
 0x405   : > { %v4407_v49 = vmax.f32 %v19954_v60, %v4225_v39  ;;  %v19957_v22 = vmax.f32 %v19955_v36, %v19956_v27  ;;  %v5620_v24 = vrot.slane %v5619_v30, 4  ;;  %v5624_v12 = vrot.slane %v5622_v42, 5  ;;  %v13445_v59 = vld [vmem:[#allocation2 + $0x100] ss:$8 sps:$4 sm:$0xff]   ;;  %v3953_v42 = vpop.f32.mrb[78].mxu1  ;;  %v19965_v26 = vld [vmem:[#allocation318_spill] sm:$0xff]  ;;  %6619 = vmatpush1.bf16.msra.mxu0 %v13535_v19 }
 0x406   : > { %4828 = vst [vmem:[#allocation2 + $0x110] sm:$0xff] %v4764_v33  ;;  %v4546_v10 = vadd.f32 %v17001_v53, %v4406_v48  ;;  %4829 = vst [vmem:[#allocation2 + $0x118] sm:$0xff] %v4765_v23  ;;  %v19960_v50 = vmax.f32 %v19958_v41, %v19959_v11  ;;  %v5611_v62 = vsel %vm14307_vm2, %v5606_v54, %v5610_v15  ;;  %v5627_v57 = vshrl.u32 %v13445_v59, 16  ;;  %v13447_v63 = vld [vmem:[#allocation2 + $0x104] ss:$8 sps:$4 sm:$0x11]  }
 0x407   : > { %v4408_v6 = vmax.f32 %v19957_v22, %v4228_v13  ;;  %v4547_v4 = vadd.f32 %v17004_v21, %v4407_v49  ;;  %v5625_v45 = vsel %vm14307_vm2, %v5620_v24, %v5624_v12  ;;  %v4232_v56 = vmax.f32 %v16829_v51, %v3949_v55  ;;  %v3955_v32 = vpop.f32.mrb[79].mxu1  ;;  %v19966_v33 = vld [vmem:[#allocation182_spill] sm:$0xff]  ;;  %v19969_v48 = vld [vmem:[#allocation319_spill] sm:$0xff]  ;;  %v19970_v30 = vld [vmem:[#allocation184_spill] sm:$0xff] }
 0x408   : > { %v4409_v8 = vmax.f32 %v19960_v50, %v4229_v3  ;;  %v12263_v18 = vcombine.high %v5611_v62, %v5625_v45  ;;  %v12262_v25 = vcombine.low %v5611_v62, %v5625_v45  ;;  %v4674_v16 = vmax.f32 %v4546_v10, 0.0  ;;  %v19971_v23 = vld [vmem:[#allocation185_spill] sm:$0xff]  ;;  %v19973_v15 = vld [vmem:[#allocation186_spill] sm:$0xff]  ;;  %v19974_v10 = vld [vmem:[#allocation187_spill] sm:$0xff] }
 0x409   : > { %v4548_v7 = vadd.f32 %v17001_v53, %v4408_v6  ;;  %v5630_v52 = vshll.u32 %v13445_v59, 16  ;;  %v4675_v44 = vmax.f32 %v4547_v4, 0.0  ;;  %v4233_v20 = vmax.f32 %v19961_v14, %v3951_v17  ;;  %v13541_v49 = vld [vmem:[%s18947_s2 + $0x204] ss:$8 sps:$4 sm:$0xff]   ;;  %v19981_v14 = vld [vmem:[#allocation322_spill] sm:$0xff]  ;;  %v19987_v31 = vld [vmem:[#allocation191_spill] sm:$0xff] }
 0x40a   : > { %v4549_v5 = vadd.f32 %v17004_v21, %v4409_v8  ;;  %6273 = vmatprep.mubr.bf16.mxu0 %v12263_v18  ;;  %v5629_v1 = vrot.slane %v5627_v57, 4  ;;  %v19964_v37 = vmax.f32 %v19962_v47, %v19963_v46  ;;  %v4236_v51 = vmax.f32 %v19965_v26, %v3953_v42  ;;  %7550 = vmatprep.subr.bf16.mxu0 %v13541_v49  ;;  %v3959_v41 = vpop.f32.mrb[80].mxu1  ;;  %v19976_v62 = vld [vmem:[#allocation320_spill] sm:$0xff]  ;;  %v19977_v18 = vld [vmem:[#allocation321_spill] sm:$0xff] }
 0x40b   : > { %v4676_v9 = vmax.f32 %v4548_v7, 0.0  ;;  %6274 = vmatmul.mubr.bf16.gmra.mrb[156].mxu0 %v12262_v25  ;;  %v5632_v39 = vrot.slane %v5630_v52, 5  ;;  %v19968_v28 = vmax.f32 %v19966_v33, %v19967_v2  ;;  %v4237_v58 = vmax.f32 %v19969_v48, %v3955_v32  ;;  %v3961_v57 = vpop.f32.mrb[81].mxu1  ;;  %v19978_v17 = vld [vmem:[#allocation17_spill] sm:$0xff]  ;;  %v19979_v52 = vld [vmem:[#allocation16_spill] sm:$0xff] }
 0x40c   : > { %v4677_v34 = vmax.f32 %v4549_v5, 0.0  ;;  %v4410_v29 = vmax.f32 %v19964_v37, %v4232_v56  ;;  %v5636_v13 = vshll.u32 %v13447_v63, 16  ;;  %v19972_v61 = vmax.f32 %v19970_v30, %v19971_v23  ;;  %v3963_v63 = vpop.f32.mrb[82].mxu1  ;;  %v19983_v47 = vld [vmem:[#allocation189_spill] sm:$0xff] }
 0x40d   : > { %v4766_v0 = vpack.c.bf16 %v4676_v9, %v4674_v16  ;;  %v4411_v35 = vmax.f32 %v19968_v28, %v4233_v20  ;;  %v13448_v60 = vld [vmem:[#allocation2 + $0x110] ss:$8 sps:$4 sm:$0xff]   ;;  %v19975_v36 = vmax.f32 %v19973_v15, %v19974_v10  ;;  %v13450_v22 = vld [vmem:[#allocation2 + $0x114] ss:$8 sps:$4 sm:$0x11]   ;;  %v5633_v24 = vor.u32 %v5632_v39, %v5629_v1  ;;  %v3965_v42 = vpop.f32.mrb[83].mxu1 }
 0x40e   : > { %v4767_v54 = vpack.c.bf16 %v4677_v34, %v4675_v44  ;;  %v4550_v38 = vadd.f32 %v17001_v53, %v4410_v29  ;;  %v4412_v43 = vmax.f32 %v19972_v61, %v4236_v51  ;;  %v5641_v12 = vshrl.u32 %v13448_v60, 16  ;;  %v19985_v29 = vld [vmem:[#allocation323_spill] sm:$0xff]  ;;  %v19986_v39 = vld [vmem:[#allocation190_spill] sm:$0xff]  ;;  %v19990_v48 = vld [vmem:[#allocation193_spill] sm:$0xff] }
 0x40f   : > { %4830 = vst [vmem:[#allocation2 + $0x120] sm:$0xff] %v4766_v0  ;;  %v4551_v3 = vadd.f32 %v17004_v21, %v4411_v35  ;;  %v4413_v27 = vmax.f32 %v19975_v36, %v4237_v58  ;;  %v5638_v11 = vrot.slane %v5636_v13, 5  ;;  %v5644_v50 = vshll.u32 %v13448_v60, 16  ;;  %v19982_v0 = vld [vmem:[#allocation188_spill] sm:$0xff] }
 0x410   : > { %4831 = vst [vmem:[#allocation2 + $0x128] sm:$0xff] %v4767_v54  ;;  %v4552_v6 = vadd.f32 %v17001_v53, %v4412_v43  ;;  %v4678_v59 = vmax.f32 %v4550_v38, 0.0  ;;  %v4240_v45 = vmax.f32 %v19976_v62, %v3959_v41  ;;  %v5643_v5 = vrot.slane %v5641_v12, 4  ;;  %v19989_v35 = vld [vmem:[#allocation192_spill] sm:$0xff]  ;;  %v19993_v41 = vld [vmem:[#allocation325_spill] sm:$0xff] }
 0x411   : > { %v4553_v4 = vadd.f32 %v17004_v21, %v4413_v27  ;;  %v4679_v8 = vmax.f32 %v4551_v3, 0.0  ;;  %v4241_v25 = vmax.f32 %v19977_v18, %v3961_v57  ;;  %v5646_v16 = vrot.slane %v5644_v50, 5  ;;  %v19995_v57 = vld [vmem:[#allocation20_spill] sm:$0xff]  ;;  %v19997_v18 = vld [vmem:[#allocation326_spill] sm:$0xff] }
 0x412   : > { %v4680_v7 = vmax.f32 %v4552_v6, 0.0  ;;  %v5650_v9 = vshll.u32 %v13450_v22, 16  ;;  %v19980_v44 = vmax.f32 %v19978_v17, %v19979_v52  ;;  %v4244_v20 = vmax.f32 %v19981_v14, %v3963_v63  ;;  %v3969_v10 = vpop.f32.mrb[84].mxu1  ;;  %v19992_v22 = vld [vmem:[#allocation324_spill] sm:$0xff] }
 0x413   : > { %v4681_v55 = vmax.f32 %v4553_v4, 0.0  ;;  %v5634_v1 = vrot.slane %v5633_v24, 4  ;;  %v19984_v46 = vmax.f32 %v19982_v0, %v19983_v47  ;;  %v4245_v26 = vmax.f32 %v19985_v29, %v3965_v42  ;;  %v3971_v24 = vpop.f32.mrb[85].mxu1  ;;  %v20002_v42 = vld [vmem:[#allocation196_spill] sm:$0xff]  ;;  %v20006_v29 = vld [vmem:[#allocation199_spill] sm:$0xff] }
 0x414   : > { %v4768_v56 = vpack.c.bf16 %v4680_v7, %v4678_v59  ;;  %v4414_v34 = vmax.f32 %v19980_v44, %v4240_v45  ;;  %v5647_v51 = vor.u32 %v5646_v16, %v5643_v5  ;;  %v19988_v54 = vmax.f32 %v19986_v39, %v19987_v31  ;;  %v19994_v45 = vld [vmem:[#allocation19_spill] sm:$0xff] }
 0x415   : > { %v4769_v19 = vpack.c.bf16 %v4681_v55, %v4679_v8  ;;  %v4415_v37 = vmax.f32 %v19984_v46, %v4241_v25  ;;  %v19991_v58 = vmax.f32 %v19989_v35, %v19990_v48  ;;  %v5652_v30 = vrot.slane %v5650_v9, 5  ;;  %v19998_v9 = vld [vmem:[#allocation194_spill] sm:$0xff]  ;;  %v20001_v44 = vld [vmem:[#allocation327_spill] sm:$0xff] }
 0x416   : > { %4832 = vst [vmem:[#allocation2 + $0x130] sm:$0xff] %v4768_v56  ;;  %v4554_v32 = vadd.f32 %v17001_v53, %v4414_v34  ;;  %v4416_v33 = vmax.f32 %v19988_v54, %v4244_v20  ;;  %v5648_v38 = vrot.slane %v5647_v51, 4  ;;  %v5639_v61 = vsel %vm14307_vm2, %v5634_v1, %v5638_v11  ;;  %v3973_v11 = vpop.f32.mrb[86].mxu1  ;;  %v19999_v56 = vld [vmem:[#allocation195_spill] sm:$0xff]  ;;  %v20003_v1 = vld [vmem:[#allocation197_spill] sm:$0xff] }
 0x417   : > { %v13457_v2 = vld [vmem:[#allocation2 + $0x120] ss:$8 sps:$4 sm:$0xff]   ;;  %4833 = vst [vmem:[#allocation2 + $0x138] sm:$0xff] %v4769_v19  ;;  %v4555_v28 = vadd.f32 %v17004_v21, %v4415_v37  ;;  %v4417_v13 = vmax.f32 %v19991_v58, %v4245_v26  ;;  %v4248_v6 = vmax.f32 %v19992_v22, %v3969_v10  ;;  %v4249_v50 = vmax.f32 %v19993_v41, %v3971_v24  ;;  %v3975_v63 = vpop.f32.mrb[87].mxu1  ;;  %v20005_v37 = vld [vmem:[#allocation198_spill] sm:$0xff] }
 0x418   : > { %v4556_v23 = vadd.f32 %v17001_v53, %v4416_v33  ;;  %v5655_v43 = vshrl.u32 %v13457_v2, 16  ;;  %v5658_v60 = vshll.u32 %v13457_v2, 16  ;;  %v4682_v49 = vmax.f32 %v4554_v32, 0.0  ;;  %v13459_v14 = vld [vmem:[#allocation2 + $0x124] ss:$8 sps:$4 sm:$0x11]  }
 0x419   : > { %v4683_v3 = vmax.f32 %v4555_v28, 0.0  ;;  %v4557_v15 = vadd.f32 %v17004_v21, %v4417_v13  ;;  %v5653_v36 = vsel %vm14307_vm2, %v5648_v38, %v5652_v30  ;;  %v19996_v5 = vmax.f32 %v19994_v45, %v19995_v57  ;;  %v20008_v38 = vld [vmem:[#allocation22_spill] sm:$0xff]  ;;  %v20010_v22 = vld [vmem:[#allocation200_spill] sm:$0xff]  ;;  %v20017_v57 = vld [vmem:[#allocation329_spill] sm:$0xff] }
 0x41a   : > { %v4684_v27 = vmax.f32 %v4556_v23, 0.0  ;;  %v12265_v12 = vcombine.high %v5639_v61, %v5653_v36  ;;  %v12264_v59 = vcombine.low %v5639_v61, %v5653_v36  ;;  %v5657_v8 = vrot.slane %v5655_v43, 4  ;;  %v3979_v35 = vpop.f32.mrb[88].mxu1 }
 0x41b   : > { %v4685_v4 = vmax.f32 %v4557_v15, 0.0  ;;  %v5660_v7 = vrot.slane %v5658_v60, 5  ;;  %v4418_v55 = vmax.f32 %v19996_v5, %v4248_v6  ;;  %v4252_v25 = vmax.f32 %v19997_v18, %v3973_v11  ;;  %v3981_v23 = vpop.f32.mrb[89].mxu1  ;;  %v20011_v6 = vld [vmem:[#allocation201_spill] sm:$0xff] }
 0x41c   : > { %v4770_v62 = vpack.c.bf16 %v4684_v27, %v4682_v49  ;;  %6283 = vmatprep.mubr.bf16.mxu0 %v12265_v12  ;;  %v20000_v17 = vmax.f32 %v19998_v9, %v19999_v56  ;;  %v4253_v34 = vmax.f32 %v20001_v44, %v3975_v63  ;;  %v20004_v19 = vmax.f32 %v20002_v42, %v20003_v1  ;;  %v3983_v10 = vpop.f32.mrb[90].mxu1  ;;  %v20019_v63 = vld [vmem:[#allocation205_spill] sm:$0xff] }
 0x41d   : > { %v4771_v16 = vpack.c.bf16 %v4685_v4, %v4683_v3  ;;  %6284 = vmatmul.mubr.bf16.gmra.mrb[160].mxu0 %v12264_v59  ;;  %v4558_v20 = vadd.f32 %v17001_v53, %v4418_v55  ;;  %v20007_v26 = vmax.f32 %v20005_v37, %v20006_v29  ;;  %v5661_v39 = vor.u32 %v5660_v7, %v5657_v8  ;;  %v20009_v3 = vld [vmem:[#allocation23_spill] sm:$0xff]  ;;  %v20013_v59 = vld [vmem:[#allocation328_spill] sm:$0xff]  ;;  %v3985_v41 = vpop.f32.mrb[91].mxu1  ;;  %v20014_v8 = vld [vmem:[#allocation202_spill] sm:$0xff] }
 0x41e   : > { %v4419_v52 = vmax.f32 %v20000_v17, %v4249_v50  ;;  %4834 = vst [vmem:[#allocation2 + $0x140] sm:$0xff] %v4770_v62  ;;  %v4420_v0 = vmax.f32 %v20004_v19, %v4252_v25  ;;  %v13460_v47 = vld [vmem:[#allocation2 + $0x130] ss:$8 sps:$4 sm:$0xff]   ;;  %v13462_v32 = vld [vmem:[#allocation2 + $0x134] ss:$8 sps:$4 sm:$0x11]   ;;  %v4256_v30 = vmax.f32 %v20008_v38, %v3979_v35  ;;  %v4257_v15 = vmax.f32 %v20009_v3, %v3981_v23 }
 0x41f   : > { %4835 = vst [vmem:[#allocation2 + $0x148] sm:$0xff] %v4771_v16  ;;  %v4421_v51 = vmax.f32 %v20007_v26, %v4253_v34  ;;  %v5669_v54 = vshrl.u32 %v13460_v47, 16  ;;  %v5672_v33 = vshll.u32 %v13460_v47, 16  ;;  %v4686_v2 = vmax.f32 %v4558_v20, 0.0  ;;  %v20015_v7 = vld [vmem:[#allocation203_spill] sm:$0xff]  ;;  %v20018_v25 = vld [vmem:[#allocation204_spill] sm:$0xff] }
 0x420   : > { %v4559_v46 = vadd.f32 %v17004_v21, %v4419_v52  ;;  %v4560_v31 = vadd.f32 %v17001_v53, %v4420_v0  ;;  %v5664_v48 = vshll.u32 %v13459_v14, 16  ;;  %v5678_v58 = vshll.u32 %v13462_v32, 16  ;;  %v20021_v34 = vld [vmem:[#allocation206_spill] sm:$0xff]  ;;  %v20022_v14 = vld [vmem:[#allocation207_spill] sm:$0xff]  ;;  %v20026_v23 = vld [vmem:[#allocation208_spill] sm:$0xff] }
 0x421   : > { %v4561_v28 = vadd.f32 %v17004_v21, %v4421_v51  ;;  %v5671_v61 = vrot.slane %v5669_v54, 4  ;;  %v5674_v43 = vrot.slane %v5672_v33, 5  ;;  %v5662_v36 = vrot.slane %v5661_v39, 4 }
 0x422   : > { %v4688_v13 = vmax.f32 %v4560_v31, 0.0  ;;  %v4687_v60 = vmax.f32 %v4559_v46, 0.0  ;;  %v20012_v24 = vmax.f32 %v20010_v22, %v20011_v6  ;;  %v4260_v4 = vmax.f32 %v20013_v59, %v3983_v10  ;;  %v3989_v37 = vpop.f32.mrb[92].mxu1  ;;  %v20024_v31 = vld [vmem:[#allocation24_spill] sm:$0xff]  ;;  %v20031_v22 = vld [vmem:[#allocation211_spill] sm:$0xff] }
 0x423   : > { %v4689_v49 = vmax.f32 %v4561_v28, 0.0  ;;  %v5675_v50 = vor.u32 %v5674_v43, %v5671_v61  ;;  %v20016_v62 = vmax.f32 %v20014_v8, %v20015_v7  ;;  %v4261_v5 = vmax.f32 %v20017_v57, %v3985_v41  ;;  %v3991_v33 = vpop.f32.mrb[93].mxu1  ;;  %v20027_v61 = vld [vmem:[#allocation209_spill] sm:$0xff]  ;;  %v20037_v57 = vld [vmem:[#allocation214_spill] sm:$0xff] }
 0x424   : > { %v4772_v27 = vpack.c.bf16 %v4688_v13, %v4686_v2  ;;  %v4422_v12 = vmax.f32 %v20012_v24, %v4256_v30  ;;  %v5666_v55 = vrot.slane %v5664_v48, 5  ;;  %v20020_v16 = vmax.f32 %v20018_v25, %v20019_v63  ;;  %v20025_v48 = vld [vmem:[#allocation330_spill] sm:$0xff]  ;;  %v3993_v13 = vpop.f32.mrb[94].mxu1 }
 0x425   : > { %v4773_v11 = vpack.c.bf16 %v4689_v49, %v4687_v60  ;;  %v4423_v45 = vmax.f32 %v20016_v62, %v4257_v15  ;;  %v5676_v56 = vrot.slane %v5675_v50, 4  ;;  %v5680_v17 = vrot.slane %v5678_v58, 5  ;;  %v20029_v49 = vld [vmem:[#allocation331_spill] sm:$0xff]  ;;  %v3995_v15 = vpop.f32.mrb[95].mxu1  ;;  %v20034_v50 = vld [vmem:[#allocation212_spill] sm:$0xff] }
 0x426   : > { %4836 = vst [vmem:[#allocation2 + $0x150] sm:$0xff] %v4772_v27  ;;  %v4562_v18 = vadd.f32 %v17001_v53, %v4422_v12  ;;  %v4424_v9 = vmax.f32 %v20020_v16, %v4260_v4  ;;  %v13469_v52 = vld [vmem:[#allocation2 + $0x140] ss:$8 sps:$4 sm:$0xff]   ;;  %v20023_v20 = vmax.f32 %v20021_v34, %v20022_v14  ;;  %v5667_v19 = vsel %vm14307_vm2, %v5662_v36, %v5666_v55  ;;  %v13471_v51 = vld [vmem:[#allocation2 + $0x144] ss:$8 sps:$4 sm:$0x11]  }
 0x427   : > { %4837 = vst [vmem:[#allocation2 + $0x158] sm:$0xff] %v4773_v11  ;;  %v4563_v44 = vadd.f32 %v17004_v21, %v4423_v45  ;;  %v5681_v0 = vsel %vm14307_vm2, %v5676_v56, %v5680_v17  ;;  %v5683_v47 = vshrl.u32 %v13469_v52, 16  ;;  %v4264_v54 = vmax.f32 %v20024_v31, %v3989_v37  ;;  %v20030_v27 = vld [vmem:[#allocation210_spill] sm:$0xff]  ;;  %v20033_v12 = vld [vmem:[#allocation332_spill] sm:$0xff]  ;;  %v20035_v11 = vld [vmem:[#allocation213_spill] sm:$0xff] }
 0x428   : > { %v4425_v42 = vmax.f32 %v20023_v20, %v4261_v5  ;;  %v4564_v1 = vadd.f32 %v17001_v53, %v4424_v9  ;;  %v12267_v29 = vcombine.high %v5667_v19, %v5681_v0  ;;  %v12266_v26 = vcombine.low %v5667_v19, %v5681_v0  ;;  %v20038_v5 = vld [vmem:[#allocation215_spill] sm:$0xff]  ;;  %v20043_v31 = vld [vmem:[#allocation217_spill] sm:$0xff] }
 0x429   : > { %v4690_v32 = vmax.f32 %v4562_v18, 0.0  ;;  %v5686_v2 = vshll.u32 %v13469_v52, 16  ;;  %v4691_v28 = vmax.f32 %v4563_v44, 0.0  ;;  %v4265_v58 = vmax.f32 %v20025_v48, %v3991_v33 }
 0x42a   : > { %v4565_v46 = vadd.f32 %v17004_v21, %v4425_v42  ;;  %v4692_v39 = vmax.f32 %v4564_v1, 0.0  ;;  %6293 = vmatprep.mubr.bf16.mxu0 %v12267_v29  ;;  %v5685_v38 = vrot.slane %v5683_v47, 4  ;;  %v20028_v43 = vmax.f32 %v20026_v23, %v20027_v61  ;;  %v3999_v52 = vpop.f32.mrb[96].mxu1  ;;  %v20040_v42 = vld [vmem:[#allocation25_spill] sm:$0xff]  ;;  %v20049_v61 = vld [vmem:[#allocation334_spill] sm:$0xff] }
 0x42b   : > { %v4268_v3 = vmax.f32 %v20029_v49, %v3993_v13  ;;  %6294 = vmatmul.mubr.bf16.gmra.mrb[164].mxu0 %v12266_v26  ;;  %v5688_v10 = vrot.slane %v5686_v2, 5  ;;  %v20032_v6 = vmax.f32 %v20030_v27, %v20031_v22  ;;  %v4269_v59 = vmax.f32 %v20033_v12, %v3995_v15  ;;  %v4001_v19 = vpop.f32.mrb[97].mxu1  ;;  %v20045_v2 = vld [vmem:[#allocation333_spill] sm:$0xff]  ;;  %v20046_v13 = vld [vmem:[#allocation218_spill] sm:$0xff] }
 0x42c   : > { %v4693_v35 = vmax.f32 %v4565_v46, 0.0  ;;  %v4774_v30 = vpack.c.bf16 %v4692_v39, %v4690_v32  ;;  %v4426_v60 = vmax.f32 %v20028_v43, %v4264_v54  ;;  %v5692_v4 = vshll.u32 %v13471_v51, 16  ;;  %v20041_v46 = vld [vmem:[#allocation26_spill] sm:$0xff]  ;;  %v4003_v29 = vpop.f32.mrb[98].mxu1  ;;  %v20042_v39 = vld [vmem:[#allocation216_spill] sm:$0xff]  ;;  %v20051_v15 = vld [vmem:[#allocation221_spill] sm:$0xff] }
 0x42d   : > { %v4427_v24 = vmax.f32 %v20032_v6, %v4265_v58  ;;  %v20036_v8 = vmax.f32 %v20034_v50, %v20035_v11  ;;  %v20039_v55 = vmax.f32 %v20037_v57, %v20038_v5  ;;  %v5689_v16 = vor.u32 %v5688_v10, %v5685_v38  ;;  %v20047_v38 = vld [vmem:[#allocation219_spill] sm:$0xff]  ;;  %v20053_v6 = vld [vmem:[#allocation222_spill] sm:$0xff] }
 0x42e   : > { %v4775_v36 = vpack.c.bf16 %v4693_v35, %v4691_v28  ;;  %4838 = vst [vmem:[#allocation2 + $0x160] sm:$0xff] %v4774_v30  ;;  %v4566_v41 = vadd.f32 %v17001_v53, %v4426_v60  ;;  %v13472_v62 = vld [vmem:[#allocation2 + $0x150] ss:$8 sps:$4 sm:$0xff]   ;;  %v13474_v25 = vld [vmem:[#allocation2 + $0x154] ss:$8 sps:$4 sm:$0x11]   ;;  %v4272_v1 = vmax.f32 %v20040_v42, %v3999_v52  ;;  %v4273_v37 = vmax.f32 %v20041_v46, %v4001_v19 }
 0x42f   : > { %v4428_v7 = vmax.f32 %v20036_v8, %v4268_v3  ;;  %v4567_v45 = vadd.f32 %v17004_v21, %v4427_v24  ;;  %v4429_v18 = vmax.f32 %v20039_v55, %v4269_v59  ;;  %v5697_v9 = vshrl.u32 %v13472_v62, 16  ;;  %v4005_v35 = vpop.f32.mrb[99].mxu1  ;;  %v20050_v3 = vld [vmem:[#allocation220_spill] sm:$0xff]  ;;  %v20054_v24 = vld [vmem:[#allocation223_spill] sm:$0xff]  ;;  %v20059_v19 = vld [vmem:[#allocation225_spill] sm:$0xff] }
 0x430   : > { %4839 = vst [vmem:[#allocation2 + $0x168] sm:$0xff] %v4775_v36  ;;  %v4694_v56 = vmax.f32 %v4566_v41, 0.0  ;;  %v5694_v44 = vrot.slane %v5692_v4, 5  ;;  %v5700_v34 = vshll.u32 %v13472_v62, 16  ;;  %v5706_v51 = vshll.u32 %v13474_v25, 16  ;;  %v20056_v25 = vld [vmem:[#allocation27_spill] sm:$0xff] }
 0x431   : > { %v4568_v63 = vadd.f32 %v17001_v53, %v4428_v7  ;;  %v4569_v17 = vadd.f32 %v17004_v21, %v4429_v18  ;;  %v4695_v14 = vmax.f32 %v4567_v45, 0.0  ;;  %v5699_v0 = vrot.slane %v5697_v9, 4  ;;  %v20057_v52 = vld [vmem:[#allocation28_spill] sm:$0xff]  ;;  %v20061_v46 = vld [vmem:[#allocation335_spill] sm:$0xff] }
 0x432   : > { %v5702_v26 = vrot.slane %v5700_v34, 5  ;;  %v20044_v54 = vmax.f32 %v20042_v39, %v20043_v31  ;;  %v4276_v28 = vmax.f32 %v20045_v2, %v4003_v29  ;;  %v5690_v48 = vrot.slane %v5689_v16, 4  ;;  %v4009_v5 = vpop.f32.mrb[100].mxu1 }
 0x433   : > { %v4696_v20 = vmax.f32 %v4568_v63, 0.0  ;;  %v4697_v47 = vmax.f32 %v4569_v17, 0.0  ;;  %v20048_v30 = vmax.f32 %v20046_v13, %v20047_v38  ;;  %v4277_v43 = vmax.f32 %v20049_v61, %v4005_v35  ;;  %v4011_v16 = vpop.f32.mrb[101].mxu1  ;;  %v20066_v35 = vld [vmem:[#allocation228_spill] sm:$0xff]  ;;  %v20070_v61 = vld [vmem:[#allocation231_spill] sm:$0xff] }
 0x434   : > { %v4430_v33 = vmax.f32 %v20044_v54, %v4272_v1  ;;  %v5703_v60 = vor.u32 %v5702_v26, %v5699_v0  ;;  %v20052_v10 = vmax.f32 %v20050_v3, %v20051_v15  ;;  %v20055_v12 = vmax.f32 %v20053_v6, %v20054_v24  ;;  %v20058_v1 = vld [vmem:[#allocation224_spill] sm:$0xff] }
 0x435   : > { %v4776_v32 = vpack.c.bf16 %v4696_v20, %v4694_v56  ;;  %v4777_v58 = vpack.c.bf16 %v4697_v47, %v4695_v14  ;;  %v4431_v23 = vmax.f32 %v20048_v30, %v4273_v37  ;;  %v5708_v41 = vrot.slane %v5706_v51, 5  ;;  %v20062_v51 = vld [vmem:[#allocation226_spill] sm:$0xff]  ;;  %v20065_v54 = vld [vmem:[#allocation336_spill] sm:$0xff] }
 0x436   : > { %v4570_v49 = vadd.f32 %v17001_v53, %v4430_v33  ;;  %v4432_v36 = vmax.f32 %v20052_v10, %v4276_v28  ;;  %v4433_v59 = vmax.f32 %v20055_v12, %v4277_v43  ;;  %v5704_v4 = vrot.slane %v5703_v60, 4 }
 0x437   : > { %4840 = vst [vmem:[#allocation2 + $0x170] sm:$0xff] %v4776_v32  ;;  %v13481_v27 = vld [vmem:[#allocation2 + $0x160] ss:$8 sps:$4 sm:$0xff]   ;;  %4841 = vst [vmem:[#allocation2 + $0x178] sm:$0xff] %v4777_v58  ;;  %v4571_v22 = vadd.f32 %v17004_v21, %v4431_v23  ;;  %v5695_v11 = vsel %vm14307_vm2, %v5690_v48, %v5694_v44  ;;  %v4280_v63 = vmax.f32 %v20056_v25, %v4009_v5  ;;  %v4013_v44 = vpop.f32.mrb[102].mxu1  ;;  %v20063_v32 = vld [vmem:[#allocation227_spill] sm:$0xff] }
 0x438   : > { %v4572_v50 = vadd.f32 %v17001_v53, %v4432_v36  ;;  %v5711_v8 = vshrl.u32 %v13481_v27, 16  ;;  %v5714_v7 = vshll.u32 %v13481_v27, 16  ;;  %v4698_v62 = vmax.f32 %v4570_v49, 0.0  ;;  %v4015_v29 = vpop.f32.mrb[103].mxu1  ;;  %v20067_v48 = vld [vmem:[#allocation229_spill] sm:$0xff]  ;;  %v20069_v23 = vld [vmem:[#allocation230_spill] sm:$0xff] }
 0x439   : > { %v4699_v45 = vmax.f32 %v4571_v22, 0.0  ;;  %v4573_v57 = vadd.f32 %v17004_v21, %v4433_v59  ;;  %v5709_v55 = vsel %vm14307_vm2, %v5704_v4, %v5708_v41  ;;  %v4281_v34 = vmax.f32 %v20057_v52, %v4011_v16  ;;  %v13483_v2 = vld [vmem:[#allocation2 + $0x164] ss:$8 sps:$4 sm:$0x11]  }
 0x43a   : > { %v4700_v18 = vmax.f32 %v4572_v50, 0.0  ;;  %v12269_v9 = vcombine.high %v5695_v11, %v5709_v55  ;;  %v12268_v56 = vcombine.low %v5695_v11, %v5709_v55  ;;  %v5713_v14 = vrot.slane %v5711_v8, 4  ;;  %v4019_v6 = vpop.f32.mrb[104].mxu1  ;;  %v20072_v4 = vld [vmem:[#allocation29_spill] sm:$0xff]  ;;  %v20074_v25 = vld [vmem:[#allocation232_spill] sm:$0xff] }
 0x43b   : > { %v4701_v17 = vmax.f32 %v4573_v57, 0.0  ;;  %v5716_v20 = vrot.slane %v5714_v7, 5  ;;  %v20060_v0 = vmax.f32 %v20058_v1, %v20059_v19  ;;  %v4284_v37 = vmax.f32 %v20061_v46, %v4013_v44  ;;  %v4021_v50 = vpop.f32.mrb[105].mxu1  ;;  %v20081_v19 = vld [vmem:[#allocation338_spill] sm:$0xff] }
 0x43c   : > { %v4778_v42 = vpack.c.bf16 %v4700_v18, %v4698_v62  ;;  %6303 = vmatprep.mubr.bf16.mxu0 %v12269_v9  ;;  %v20064_v39 = vmax.f32 %v20062_v51, %v20063_v32  ;;  %v4285_v33 = vmax.f32 %v20065_v54, %v4015_v29  ;;  %v20068_v58 = vmax.f32 %v20066_v35, %v20067_v48  ;;  %v4023_v5 = vpop.f32.mrb[106].mxu1  ;;  %v20083_v29 = vld [vmem:[#allocation237_spill] sm:$0xff] }
 0x43d   : > { %v4434_v47 = vmax.f32 %v20060_v0, %v4280_v63  ;;  %v4779_v26 = vpack.c.bf16 %v4701_v17, %v4699_v45  ;;  %6304 = vmatmul.mubr.bf16.gmra.mrb[168].mxu0 %v12268_v56  ;;  %v20071_v43 = vmax.f32 %v20069_v23, %v20070_v61  ;;  %v5717_v3 = vor.u32 %v5716_v20, %v5713_v14  ;;  %v20073_v45 = vld [vmem:[#allocation30_spill] sm:$0xff]  ;;  %v20075_v63 = vld [vmem:[#allocation233_spill] sm:$0xff]  ;;  %v4025_v52 = vpop.f32.mrb[107].mxu1  ;;  %v20079_v20 = vld [vmem:[#allocation235_spill] sm:$0xff] }
 0x43e   : > { %v4435_v31 = vmax.f32 %v20064_v39, %v4281_v34  ;;  %4842 = vst [vmem:[#allocation2 + $0x180] sm:$0xff] %v4778_v42  ;;  %v4436_v13 = vmax.f32 %v20068_v58, %v4284_v37  ;;  %v13484_v38 = vld [vmem:[#allocation2 + $0x170] ss:$8 sps:$4 sm:$0xff]   ;;  %v13486_v49 = vld [vmem:[#allocation2 + $0x174] ss:$8 sps:$4 sm:$0x11]   ;;  %v4288_v41 = vmax.f32 %v20072_v4, %v4019_v6  ;;  %v4289_v57 = vmax.f32 %v20073_v45, %v4021_v50 }
 0x43f   : > { %v4574_v28 = vadd.f32 %v17001_v53, %v4434_v47  ;;  %4843 = vst [vmem:[#allocation2 + $0x188] sm:$0xff] %v4779_v26  ;;  %v4437_v60 = vmax.f32 %v20071_v43, %v4285_v33  ;;  %v5725_v10 = vshrl.u32 %v13484_v38, 16  ;;  %v5728_v36 = vshll.u32 %v13484_v38, 16  ;;  %v20077_v56 = vld [vmem:[#allocation337_spill] sm:$0xff]  ;;  %v20078_v14 = vld [vmem:[#allocation234_spill] sm:$0xff]  ;;  %v20082_v37 = vld [vmem:[#allocation236_spill] sm:$0xff] }
 0x440   : > { %v4575_v30 = vadd.f32 %v17004_v21, %v4435_v31  ;;  %v4576_v15 = vadd.f32 %v17001_v53, %v4436_v13  ;;  %v5720_v24 = vshll.u32 %v13483_v2, 16  ;;  %v5734_v12 = vshll.u32 %v13486_v49, 16  ;;  %v20085_v33 = vld [vmem:[#allocation238_spill] sm:$0xff]  ;;  %v20086_v2 = vld [vmem:[#allocation239_spill] sm:$0xff]  ;;  %v20090_v50 = vld [vmem:[#allocation240_spill] sm:$0xff] }
 0x441   : > { %v4702_v27 = vmax.f32 %v4574_v28, 0.0  ;;  %v4577_v22 = vadd.f32 %v17004_v21, %v4437_v60  ;;  %v5727_v11 = vrot.slane %v5725_v10, 4  ;;  %v5730_v8 = vrot.slane %v5728_v36, 5 }
 0x442   : > { %v4704_v59 = vmax.f32 %v4576_v15, 0.0  ;;  %v4703_v7 = vmax.f32 %v4575_v30, 0.0  ;;  %v5718_v55 = vrot.slane %v5717_v3, 4  ;;  %v20076_v16 = vmax.f32 %v20074_v25, %v20075_v63  ;;  %v4029_v23 = vpop.f32.mrb[108].mxu1  ;;  %v20088_v15 = vld [vmem:[#allocation31_spill] sm:$0xff] }
 0x443   : > { %v4705_v62 = vmax.f32 %v4577_v22, 0.0  ;;  %v4292_v17 = vmax.f32 %v20077_v56, %v4023_v5  ;;  %v5731_v34 = vor.u32 %v5730_v8, %v5727_v11  ;;  %v20080_v42 = vmax.f32 %v20078_v14, %v20079_v20  ;;  %v4031_v36 = vpop.f32.mrb[109].mxu1  ;;  %v20091_v11 = vld [vmem:[#allocation241_spill] sm:$0xff]  ;;  %v20095_v25 = vld [vmem:[#allocation243_spill] sm:$0xff] }
 0x444   : > { %v4780_v18 = vpack.c.bf16 %v4704_v59, %v4702_v27  ;;  %v4438_v9 = vmax.f32 %v20076_v16, %v4288_v41  ;;  %v4293_v0 = vmax.f32 %v20081_v19, %v4025_v52  ;;  %v5722_v47 = vrot.slane %v5720_v24, 5  ;;  %v20089_v24 = vld [vmem:[#allocation32_spill] sm:$0xff]  ;;  %v4033_v59 = vpop.f32.mrb[110].mxu1  ;;  %v20101_v19 = vld [vmem:[#allocation246_spill] sm:$0xff] }
 0x445   : > { %v4781_v44 = vpack.c.bf16 %v4705_v62, %v4703_v7  ;;  %v4439_v1 = vmax.f32 %v20080_v42, %v4289_v57  ;;  %v20084_v26 = vmax.f32 %v20082_v37, %v20083_v29  ;;  %v5732_v32 = vrot.slane %v5731_v34, 4  ;;  %v20093_v62 = vld [vmem:[#allocation339_spill] sm:$0xff]  ;;  %v4035_v57 = vpop.f32.mrb[111].mxu1  ;;  %v20098_v34 = vld [vmem:[#allocation244_spill] sm:$0xff] }
 0x446   : > { %4844 = vst [vmem:[#allocation2 + $0x190] sm:$0xff] %v4780_v18  ;;  %v4578_v46 = vadd.f32 %v17001_v53, %v4438_v9  ;;  %v5736_v39 = vrot.slane %v5734_v12, 5  ;;  %v13493_v31 = vld [vmem:[#allocation2 + $0x180] ss:$8 sps:$4 sm:$0xff]   ;;  %v20087_v28 = vmax.f32 %v20085_v33, %v20086_v2  ;;  %v5723_v58 = vsel %vm14307_vm2, %v5718_v55, %v5722_v47  ;;  %v20094_v18 = vld [vmem:[#allocation242_spill] sm:$0xff] }
 0x447   : > { %v4440_v51 = vmax.f32 %v20084_v26, %v4292_v17  ;;  %4845 = vst [vmem:[#allocation2 + $0x198] sm:$0xff] %v4781_v44  ;;  %v4579_v54 = vadd.f32 %v17004_v21, %v4439_v1  ;;  %v5739_v38 = vshrl.u32 %v13493_v31, 16  ;;  %v13495_v60 = vld [vmem:[#allocation2 + $0x184] ss:$8 sps:$4 sm:$0x11]   ;;  %v4296_v10 = vmax.f32 %v20088_v15, %v4029_v23 }
 0x448   : > { %v4441_v35 = vmax.f32 %v20087_v28, %v4293_v0  ;;  %v5737_v13 = vsel %vm14307_vm2, %v5732_v32, %v5736_v39  ;;  %v4706_v49 = vmax.f32 %v4578_v46, 0.0  ;;  %v5742_v27 = vshll.u32 %v13493_v31, 16  ;;  %v20097_v9 = vld [vmem:[#allocation340_spill] sm:$0xff]  ;;  %v20099_v44 = vld [vmem:[#allocation245_spill] sm:$0xff]  ;;  %v20102_v0 = vld [vmem:[#allocation247_spill] sm:$0xff] }
 0x449   : > { %v4580_v48 = vadd.f32 %v17001_v53, %v4440_v51  ;;  %v12271_v61 = vcombine.high %v5723_v58, %v5737_v13  ;;  %v12270_v43 = vcombine.low %v5723_v58, %v5737_v13  ;;  %v4707_v22 = vmax.f32 %v4579_v54, 0.0  ;;  %v20107_v15 = vld [vmem:[#allocation249_spill] sm:$0xff] }
 0x44a   : > { %v4581_v30 = vadd.f32 %v17004_v21, %v4441_v35  ;;  %v4297_v12 = vmax.f32 %v20089_v24, %v4031_v36  ;;  %v5741_v4 = vrot.slane %v5739_v38, 4  ;;  %v20092_v8 = vmax.f32 %v20090_v50, %v20091_v11  ;;  %v4039_v31 = vpop.f32.mrb[112].mxu1  ;;  %v20104_v35 = vld [vmem:[#allocation341_spill] sm:$0xff]  ;;  %v20113_v11 = vld [vmem:[#allocation344_spill] sm:$0xff] }
 0x44b   : > { %v4708_v3 = vmax.f32 %v4580_v48, 0.0  ;;  %6313 = vmatprep.mubr.bf16.mxu0 %v12271_v61  ;;  %v4300_v45 = vmax.f32 %v20093_v62, %v4033_v59  ;;  %v5744_v5 = vrot.slane %v5742_v27, 5  ;;  %v20096_v63 = vmax.f32 %v20094_v18, %v20095_v25  ;;  %v4041_v58 = vpop.f32.mrb[113].mxu1  ;;  %v20109_v27 = vld [vmem:[#allocation343_spill] sm:$0xff]  ;;  %v20110_v59 = vld [vmem:[#allocation250_spill] sm:$0xff] }
 0x44c   : > { %v4709_v6 = vmax.f32 %v4581_v30, 0.0  ;;  %v4442_v7 = vmax.f32 %v20092_v8, %v4296_v10  ;;  %6314 = vmatmul.mubr.bf16.gmra.mrb[172].mxu0 %v12270_v43  ;;  %v4301_v56 = vmax.f32 %v20097_v9, %v4035_v57  ;;  %v5748_v17 = vshll.u32 %v13495_v60, 16  ;;  %v20105_v30 = vld [vmem:[#allocation342_spill] sm:$0xff]  ;;  %v4043_v61 = vpop.f32.mrb[114].mxu1  ;;  %v20115_v57 = vld [vmem:[#allocation253_spill] sm:$0xff] }
 0x44d   : > { %v4782_v41 = vpack.c.bf16 %v4708_v3, %v4706_v49  ;;  %v4443_v16 = vmax.f32 %v20096_v63, %v4297_v12  ;;  %v20100_v14 = vmax.f32 %v20098_v34, %v20099_v44  ;;  %v20103_v47 = vmax.f32 %v20101_v19, %v20102_v0  ;;  %v20106_v3 = vld [vmem:[#allocation248_spill] sm:$0xff]  ;;  %v20117_v63 = vld [vmem:[#allocation254_spill] sm:$0xff] }
 0x44e   : > { %v4783_v55 = vpack.c.bf16 %v4709_v6, %v4707_v22  ;;  %v4582_v52 = vadd.f32 %v17001_v53, %v4442_v7  ;;  %v13496_v42 = vld [vmem:[#allocation2 + $0x190] ss:$8 sps:$4 sm:$0xff]   ;;  %v13498_v37 = vld [vmem:[#allocation2 + $0x194] ss:$8 sps:$4 sm:$0x11]   ;;  %v5745_v26 = vor.u32 %v5744_v5, %v5741_v4  ;;  %v5750_v54 = vrot.slane %v5748_v17, 5 }
 0x44f   : > { %4846 = vst [vmem:[#allocation2 + $0x1a0] sm:$0xff] %v4782_v41  ;;  %v4444_v20 = vmax.f32 %v20100_v14, %v4300_v45  ;;  %v4583_v1 = vadd.f32 %v17004_v21, %v4443_v16  ;;  %v4445_v46 = vmax.f32 %v20103_v47, %v4301_v56  ;;  %v5753_v51 = vshrl.u32 %v13496_v42, 16  ;;  %v4045_v6 = vpop.f32.mrb[115].mxu1  ;;  %v20111_v4 = vld [vmem:[#allocation251_spill] sm:$0xff]  ;;  %v20114_v45 = vld [vmem:[#allocation252_spill] sm:$0xff] }
 0x450   : > { %4847 = vst [vmem:[#allocation2 + $0x1a8] sm:$0xff] %v4783_v55  ;;  %v4710_v32 = vmax.f32 %v4582_v52, 0.0  ;;  %v5756_v33 = vshll.u32 %v13496_v42, 16  ;;  %v4304_v48 = vmax.f32 %v20104_v35, %v4039_v31  ;;  %v4305_v23 = vmax.f32 %v20105_v30, %v4041_v58  ;;  %v20118_v16 = vld [vmem:[#allocation255_spill] sm:$0xff]  ;;  %v20121_v31 = vld [vmem:[#allocation346_spill] sm:$0xff]  ;;  %v20123_v58 = vld [vmem:[#allocation257_spill] sm:$0xff] }
 0x451   : > { %v4584_v29 = vadd.f32 %v17001_v53, %v4444_v20  ;;  %v4585_v39 = vadd.f32 %v17004_v21, %v4445_v46  ;;  %v4711_v2 = vmax.f32 %v4583_v1, 0.0  ;;  %v5755_v13 = vrot.slane %v5753_v51, 4  ;;  %v20125_v30 = vld [vmem:[#allocation347_spill] sm:$0xff] }
 0x452   : > { %v5758_v43 = vrot.slane %v5756_v33, 5  ;;  %v5762_v60 = vshll.u32 %v13498_v37, 16  ;;  %v20108_v10 = vmax.f32 %v20106_v3, %v20107_v15  ;;  %v4308_v22 = vmax.f32 %v20109_v27, %v4043_v61  ;;  %v4049_v0 = vpop.f32.mrb[116].mxu1  ;;  %v20120_v37 = vld [vmem:[#allocation345_spill] sm:$0xff] }
 0x453   : > { %v4712_v28 = vmax.f32 %v4584_v29, 0.0  ;;  %v4713_v38 = vmax.f32 %v4585_v39, 0.0  ;;  %v5746_v24 = vrot.slane %v5745_v26, 4  ;;  %v20112_v41 = vmax.f32 %v20110_v59, %v20111_v4  ;;  %v4051_v26 = vpop.f32.mrb[117].mxu1 }
 0x454   : > { %v4446_v36 = vmax.f32 %v20108_v10, %v4304_v48  ;;  %v4309_v8 = vmax.f32 %v20113_v11, %v4045_v6  ;;  %v5759_v7 = vor.u32 %v5758_v43, %v5755_v13  ;;  %v20116_v5 = vmax.f32 %v20114_v45, %v20115_v57  ;;  %v20122_v48 = vld [vmem:[#allocation256_spill] sm:$0xff]  ;;  %v20134_v11 = vld [vmem:[#allocation263_spill] sm:$0xff] }
 0x455   : > { %v4784_v49 = vpack.c.bf16 %v4712_v28, %v4710_v32  ;;  %v4785_v12 = vpack.c.bf16 %v4713_v38, %v4711_v2  ;;  %v4447_v50 = vmax.f32 %v20112_v41, %v4305_v23  ;;  %v20119_v9 = vmax.f32 %v20117_v63, %v20118_v16  ;;  %v20129_v10 = vld [vmem:[#allocation348_spill] sm:$0xff] }
 0x456   : > { %v4586_v62 = vadd.f32 %v17001_v53, %v4446_v36  ;;  %v4448_v55 = vmax.f32 %v20116_v5, %v4308_v22  ;;  %v5760_v17 = vrot.slane %v5759_v7, 4  ;;  %v5764_v52 = vrot.slane %v5762_v60, 5  ;;  %v20126_v60 = vld [vmem:[#allocation258_spill] sm:$0xff]  ;;  %v20130_v6 = vld [vmem:[#allocation260_spill] sm:$0xff] }
 0x457   : > { %4848 = vst [vmem:[#allocation2 + $0x1b0] sm:$0xff] %v4784_v49  ;;  %v13505_v18 = vld [vmem:[#allocation2 + $0x1a0] ss:$8 sps:$4 sm:$0xff]   ;;  %4849 = vst [vmem:[#allocation2 + $0x1b8] sm:$0xff] %v4785_v12  ;;  %v4587_v25 = vadd.f32 %v17004_v21, %v4447_v50  ;;  %v4449_v56 = vmax.f32 %v20119_v9, %v4309_v8  ;;  %v5751_v44 = vsel %vm14307_vm2, %v5746_v24, %v5750_v54  ;;  %v4053_v54 = vpop.f32.mrb[118].mxu1  ;;  %v20127_v49 = vld [vmem:[#allocation259_spill] sm:$0xff] }
 0x458   : > { %v4588_v34 = vadd.f32 %v17001_v53, %v4448_v55  ;;  %v5767_v14 = vshrl.u32 %v13505_v18, 16  ;;  %v5770_v20 = vshll.u32 %v13505_v18, 16  ;;  %v4714_v42 = vmax.f32 %v4586_v62, 0.0  ;;  %v4055_v61 = vpop.f32.mrb[119].mxu1  ;;  %v20131_v24 = vld [vmem:[#allocation261_spill] sm:$0xff]  ;;  %v20133_v50 = vld [vmem:[#allocation262_spill] sm:$0xff] }
 0x459   : > { %v4715_v1 = vmax.f32 %v4587_v25, 0.0  ;;  %v4589_v19 = vadd.f32 %v17004_v21, %v4449_v56  ;;  %v5765_v47 = vsel %vm14307_vm2, %v5760_v17, %v5764_v52  ;;  %v4312_v29 = vmax.f32 %v20120_v37, %v4049_v0  ;;  %v13507_v27 = vld [vmem:[#allocation2 + $0x1a4] ss:$8 sps:$4 sm:$0x11]  }
 0x45a   : > { %v4716_v46 = vmax.f32 %v4588_v34, 0.0  ;;  %v12273_v51 = vcombine.high %v5751_v44, %v5765_v47  ;;  %v12272_v32 = vcombine.low %v5751_v44, %v5765_v47  ;;  %v4313_v33 = vmax.f32 %v20121_v31, %v4051_v26  ;;  %v4059_v63 = vpop.f32.mrb[120].mxu1  ;;  %v20136_v17 = vld [vmem:[#allocation349_spill] sm:$0xff]  ;;  %v20138_v37 = vld [vmem:[#allocation264_spill] sm:$0xff] }
 0x45b   : > { %v4717_v39 = vmax.f32 %v4589_v19, 0.0  ;;  %v5769_v2 = vrot.slane %v5767_v14, 4  ;;  %v5772_v28 = vrot.slane %v5770_v20, 5  ;;  %v20124_v13 = vmax.f32 %v20122_v48, %v20123_v58  ;;  %v4061_v34 = vpop.f32.mrb[121].mxu1  ;;  %v20145_v58 = vld [vmem:[#allocation352_spill] sm:$0xff] }
 0x45c   : > { %v4786_v35 = vpack.c.bf16 %v4716_v46, %v4714_v42  ;;  %v4316_v23 = vmax.f32 %v20125_v30, %v4053_v54  ;;  %6323 = vmatprep.mubr.bf16.mxu0 %v12273_v51  ;;  %v20128_v3 = vmax.f32 %v20126_v60, %v20127_v49  ;;  %v4317_v36 = vmax.f32 %v20129_v10, %v4055_v61  ;;  %v4063_v0 = vpop.f32.mrb[122].mxu1  ;;  %v20147_v61 = vld [vmem:[#allocation269_spill] sm:$0xff] }
 0x45d   : > { %v4450_v38 = vmax.f32 %v20124_v13, %v4312_v29  ;;  %v4787_v43 = vpack.c.bf16 %v4717_v39, %v4715_v1  ;;  %6324 = vmatmul.mubr.bf16.gmra.mrb[176].mxu0 %v12272_v32  ;;  %v20132_v12 = vmax.f32 %v20130_v6, %v20131_v24  ;;  %v20135_v8 = vmax.f32 %v20133_v50, %v20134_v11  ;;  %v20137_v1 = vld [vmem:[#allocation350_spill] sm:$0xff]  ;;  %v20139_v29 = vld [vmem:[#allocation265_spill] sm:$0xff]  ;;  %v20141_v32 = vld [vmem:[#allocation351_spill] sm:$0xff]  ;;  %v4065_v31 = vpop.f32.mrb[123].mxu1 }
 0x45e   : > { %v4451_v15 = vmax.f32 %v20128_v3, %v4313_v33  ;;  %4850 = vst [vmem:[#allocation2 + $0x1c0] sm:$0xff] %v4786_v35  ;;  %v13508_v4 = vld [vmem:[#allocation2 + $0x1b0] ss:$8 sps:$4 sm:$0xff]   ;;  %v13510_v62 = vld [vmem:[#allocation2 + $0x1b4] ss:$8 sps:$4 sm:$0x11]   ;;  %v5773_v45 = vor.u32 %v5772_v28, %v5769_v2  ;;  %v4320_v52 = vmax.f32 %v20136_v17, %v4059_v63  ;;  %v4321_v19 = vmax.f32 %v20137_v1, %v4061_v34 }
 0x45f   : > { %v4590_v22 = vadd.f32 %v17001_v53, %v4450_v38  ;;  %v4452_v59 = vmax.f32 %v20132_v12, %v4316_v23  ;;  %4851 = vst [vmem:[#allocation2 + $0x1c8] sm:$0xff] %v4787_v43  ;;  %v4453_v7 = vmax.f32 %v20135_v8, %v4317_v36  ;;  %v5781_v5 = vshrl.u32 %v13508_v4, 16  ;;  %v20142_v2 = vld [vmem:[#allocation266_spill] sm:$0xff]  ;;  %v20143_v28 = vld [vmem:[#allocation267_spill] sm:$0xff]  ;;  %v20146_v23 = vld [vmem:[#allocation268_spill] sm:$0xff] }
 0x460   : > { %v4591_v41 = vadd.f32 %v17004_v21, %v4451_v15  ;;  %v5784_v55 = vshll.u32 %v13508_v4, 16  ;;  %v5776_v16 = vshll.u32 %v13507_v27, 16  ;;  %v5790_v9 = vshll.u32 %v13510_v62, 16  ;;  %v20149_v36 = vld [vmem:[#allocation270_spill] sm:$0xff]  ;;  %v20150_v27 = vld [vmem:[#allocation271_spill] sm:$0xff]  ;;  %v20154_v17 = vld [vmem:[#allocation272_spill] sm:$0xff] }
 0x461   : > { %v4592_v57 = vadd.f32 %v17001_v53, %v4452_v59  ;;  %v4718_v18 = vmax.f32 %v4590_v22, 0.0  ;;  %v4593_v25 = vadd.f32 %v17004_v21, %v4453_v7  ;;  %v5783_v44 = vrot.slane %v5781_v5, 4  ;;  %v20153_v63 = vld [vmem:[#allocation354_spill] sm:$0xff] }
 0x462   : > { %v5786_v14 = vrot.slane %v5784_v55, 5  ;;  %v4719_v20 = vmax.f32 %v4591_v41, 0.0  ;;  %v5774_v47 = vrot.slane %v5773_v45, 4  ;;  %v20140_v26 = vmax.f32 %v20138_v37, %v20139_v29  ;;  %v4069_v50 = vpop.f32.mrb[124].mxu1  ;;  %v20152_v45 = vld [vmem:[#allocation353_spill] sm:$0xff]  ;;  %v20161_v29 = vld [vmem:[#allocation356_spill] sm:$0xff] }
 0x463   : > { %v4720_v56 = vmax.f32 %v4592_v57, 0.0  ;;  %v4721_v42 = vmax.f32 %v4593_v25, 0.0  ;;  %v4324_v39 = vmax.f32 %v20141_v32, %v4063_v0  ;;  %v20144_v35 = vmax.f32 %v20142_v2, %v20143_v28  ;;  %v4071_v5 = vpop.f32.mrb[125].mxu1  ;;  %v20158_v0 = vld [vmem:[#allocation274_spill] sm:$0xff] }
 0x464   : > { %v4454_v51 = vmax.f32 %v20140_v26, %v4320_v52  ;;  %v5787_v33 = vor.u32 %v5786_v14, %v5783_v44  ;;  %v4325_v13 = vmax.f32 %v20145_v58, %v4065_v31  ;;  %v5778_v38 = vrot.slane %v5776_v16, 5  ;;  %v20155_v52 = vld [vmem:[#allocation273_spill] sm:$0xff]  ;;  %v20157_v14 = vld [vmem:[#allocation355_spill] sm:$0xff]  ;;  %v20162_v31 = vld [vmem:[#allocation276_spill] sm:$0xff] }
 0x465   : > { %v4788_v46 = vpack.c.bf16 %v4720_v56, %v4718_v18  ;;  %v4789_v54 = vpack.c.bf16 %v4721_v42, %v4719_v20  ;;  %v4455_v48 = vmax.f32 %v20144_v35, %v4321_v19  ;;  %v20148_v43 = vmax.f32 %v20146_v23, %v20147_v61  ;;  %v20166_v58 = vld [vmem:[#allocation279_spill] sm:$0xff] }
 0x466   : > { %v4594_v30 = vadd.f32 %v17001_v53, %v4454_v51  ;;  %v5788_v49 = vrot.slane %v5787_v33, 4  ;;  %v5792_v3 = vrot.slane %v5790_v9, 5  ;;  %v13517_v15 = vld [vmem:[#allocation2 + $0x1c0] ss:$8 sps:$4 sm:$0xff]   ;;  %v20151_v22 = vmax.f32 %v20149_v36, %v20150_v27  ;;  %v4073_v9 = vpop.f32.mrb[126].mxu1 }
 0x467   : > { %4852 = vst [vmem:[#allocation2 + $0x1d0] sm:$0xff] %v4788_v46  ;;  %v4456_v60 = vmax.f32 %v20148_v43, %v4324_v39  ;;  %4853 = vst [vmem:[#allocation2 + $0x1d8] sm:$0xff] %v4789_v54  ;;  %v4595_v10 = vadd.f32 %v17004_v21, %v4455_v48  ;;  %v5779_v12 = vsel %vm14307_vm2, %v5774_v47, %v5778_v38  ;;  %v5795_v4 = vshrl.u32 %v13517_v15, 16  ;;  %v4075_v42 = vpop.f32.mrb[127].mxu1  ;;  %v20159_v47 = vld [vmem:[#allocation275_spill] sm:$0xff]  ;;  %v20163_v33 = vld [vmem:[#allocation277_spill] sm:$0xff] }
 0x468   : > { %v4457_v6 = vmax.f32 %v20151_v22, %v4325_v13  ;;  %v5793_v59 = vsel %vm14307_vm2, %v5788_v49, %v5792_v3  ;;  %v4722_v7 = vmax.f32 %v4594_v30, 0.0  ;;  %v4328_v57 = vmax.f32 %v20152_v45, %v4069_v50  ;;  %v13519_v51 = vld [vmem:[#allocation2 + $0x1c4] ss:$8 sps:$4 sm:$0x11]   ;;  %v20165_v48 = vld [vmem:[#allocation278_spill] sm:$0xff] }
 0x469   : > { %v4596_v24 = vadd.f32 %v17001_v53, %v4456_v60  ;;  %v12275_v11 = vcombine.high %v5779_v12, %v5793_v59  ;;  %v12274_v8 = vcombine.low %v5779_v12, %v5793_v59  ;;  %v5798_v55 = vshll.u32 %v13517_v15, 16 }
 0x46a   : > { %v4597_v41 = vadd.f32 %v17004_v21, %v4457_v6  ;;  %v4723_v18 = vmax.f32 %v4595_v10, 0.0  ;;  %v4329_v16 = vmax.f32 %v20153_v63, %v4071_v5  ;;  %v20156_v34 = vmax.f32 %v20154_v17, %v20155_v52 }
 0x46b   : > { %v4724_v62 = vmax.f32 %v4596_v24, 0.0  ;;  %6333 = vmatprep.mubr.bf16.mxu0 %v12275_v11  ;;  %v4332_v20 = vmax.f32 %v20157_v14, %v4073_v9  ;;  %v5797_v1 = vrot.slane %v5795_v4, 4  ;;  %v20160_v46 = vmax.f32 %v20158_v0, %v20159_v47 }
 0x46c   : > { %v4725_v25 = vmax.f32 %v4597_v41, 0.0  ;;  %v4458_v44 = vmax.f32 %v20156_v34, %v4328_v57  ;;  %6334 = vmatmul.mubr.bf16.gmra.mrb[180].mxu0 %v12274_v8  ;;  %v4333_v26 = vmax.f32 %v20161_v29, %v4075_v42  ;;  %v5800_v32 = vrot.slane %v5798_v55, 5 }
 0x46d   : > { %v4790_v56 = vpack.c.bf16 %v4724_v62, %v4722_v7  ;;  %v4459_v37 = vmax.f32 %v20160_v46, %v4329_v16  ;;  %v20164_v54 = vmax.f32 %v20162_v31, %v20163_v33  ;;  %v20167_v13 = vmax.f32 %v20165_v48, %v20166_v58  ;;  %v13543_v31 = vld [vmem:[#allocation2 + $0x28] ss:$16 sps:$4 sm:$0xff]   ;;  %v13551_v33 = vld [vmem:[%s18947_s2 + $0x224] ss:$8 sps:$4 sm:$0xff]  }
 0x46e   : > { %v4791_v19 = vpack.c.bf16 %v4725_v25, %v4723_v18  ;;  %v4598_v39 = vadd.f32 %v17001_v53, %v4458_v44  ;;  %v13520_v28 = vld [vmem:[#allocation2 + $0x1d0] ss:$8 sps:$4 sm:$0xff]   ;;  %v13522_v30 = vld [vmem:[#allocation2 + $0x1d4] ss:$8 sps:$4 sm:$0x11]   ;;  %v5801_v60 = vor.u32 %v5800_v32, %v5797_v1  ;;  %v5804_v10 = vshll.u32 %v13519_v51, 16 }
 0x46f   : > { %4854 = vst [vmem:[#allocation2 + $0x1e0] sm:$0xff] %v4790_v56  ;;  %v4460_v2 = vmax.f32 %v20164_v54, %v4332_v20  ;;  %v4599_v35 = vadd.f32 %v17004_v21, %v4459_v37  ;;  %v4461_v38 = vmax.f32 %v20167_v13, %v4333_v26  ;;  %v5809_v61 = vshrl.u32 %v13520_v28, 16  ;;  %v13538_v26 = vld [vmem:[#allocation2 + $0x8] ss:$16 sps:$4 sm:$0xff]   ;;  %v13542_v32 = vld [vmem:[#allocation2] ss:$16 sps:$4 sm:$0xff]  }
 0x470   : > { %4855 = vst [vmem:[#allocation2 + $0x1e8] sm:$0xff] %v4791_v19  ;;  %v5812_v49 = vshll.u32 %v13520_v28, 16  ;;  %v4726_v3 = vmax.f32 %v4598_v39, 0.0  ;;  %v5818_v24 = vshll.u32 %v13522_v30, 16  ;;  %v5802_v4 = vrot.slane %v5801_v60, 4 }
 0x471   : > { %v4600_v23 = vadd.f32 %v17001_v53, %v4460_v2  ;;  %v4601_v43 = vadd.f32 %v17004_v21, %v4461_v38  ;;  %v5811_v36 = vrot.slane %v5809_v61, 4  ;;  %v4727_v27 = vmax.f32 %v4599_v35, 0.0  ;;  %v13539_v51 = vld [vmem:[%s18947_s2 + $0x200] ss:$8 sps:$4 sm:$0xff]   ;;  %v13546_v39 = vld [vmem:[%s18947_s2 + $0x214] ss:$8 sps:$4 sm:$0xff]  }
 0x472   : > { %v5814_v6 = vrot.slane %v5812_v49, 5  ;;  %v5806_v53 = vrot.slane %v5804_v10, 5  ;;  %v5820_v21 = vrot.slane %v5818_v24, 5  ;;  %v13549_v54 = vld [vmem:[%s18947_s2 + $0x220] ss:$8 sps:$4 sm:$0xff]  }
 0x473   : > { %v4728_v15 = vmax.f32 %v4600_v23, 0.0  ;;  %v4729_v22 = vmax.f32 %v4601_v43, 0.0  ;;  %v13547_v2 = vld [vmem:[#allocation2 + $0x20] ss:$16 sps:$4 sm:$0xff]   ;;  %v13556_v28 = vld [vmem:[%s18947_s2 + $0x234] ss:$8 sps:$4 sm:$0xff]  }
 0x474   : > { %v5815_v41 = vor.u32 %v5814_v6, %v5811_v36  ;;  %v5807_v62 = vsel %vm14307_vm2, %v5802_v4, %v5806_v53  ;;  %v13548_v35 = vld [vmem:[#allocation2 + $0x48] ss:$16 sps:$4 sm:$0xff]   ;;  %v13561_v58 = vld [vmem:[%s18947_s2 + $0x244] ss:$8 sps:$4 sm:$0xff]   ;;  %v13552_v38 = vld [vmem:[#allocation2 + $0x40] ss:$16 sps:$4 sm:$0xff]  }
 0x475   : > { %v4792_v12 = vpack.c.bf16 %v4728_v15, %v4726_v3  ;;  %v4793_v59 = vpack.c.bf16 %v4729_v22, %v4727_v27  ;;  %v13554_v48 = vld [vmem:[%s18947_s2 + $0x230] ss:$8 sps:$4 sm:$0xff]   ;;  %v13559_v13 = vld [vmem:[%s18947_s2 + $0x240] ss:$8 sps:$4 sm:$0xff]   ;;  %v13566_v30 = vld [vmem:[%s18947_s2 + $0x254] ss:$8 sps:$4 sm:$0xff]  }
 0x476   : > { %v5816_v11 = vrot.slane %v5815_v41, 4  ;;  %v13553_v23 = vld [vmem:[#allocation2 + $0x68] ss:$16 sps:$4 sm:$0xff]   ;;  %v13571_v43 = vld [vmem:[%s18947_s2 + $0x264] ss:$8 sps:$4 sm:$0xff]  }
 0x477   : > { %4856 = vst [vmem:[#allocation2 + $0x1f0] sm:$0xff] %v4792_v12  ;;  %v13529_v50 = vld [vmem:[#allocation2 + $0x1e0] ss:$8 sps:$4 sm:$0xff]   ;;  %4857 = vst [vmem:[#allocation2 + $0x1f8] sm:$0xff] %v4793_v59  ;;  %v13564_v61 = vld [vmem:[%s18947_s2 + $0x250] ss:$8 sps:$4 sm:$0xff]  }
 0x478   : > { %v5823_v8 = vshrl.u32 %v13529_v50, 16  ;;  %v5826_v7 = vshll.u32 %v13529_v50, 16  ;;  %v5821_v45 = vsel %vm14307_vm2, %v5816_v11, %v5820_v21  ;;  %v13531_v25 = vld [vmem:[#allocation2 + $0x1e4] ss:$8 sps:$4 sm:$0x11]  }
 0x479   : > { %v12277_v57 = vcombine.high %v5807_v62, %v5821_v45  ;;  %v12276_v5 = vcombine.low %v5807_v62, %v5821_v45  ;;  %v5832_v52 = vshll.u32 %v13531_v25, 16  ;;  %v13569_v60 = vld [vmem:[%s18947_s2 + $0x260] ss:$8 sps:$4 sm:$0xff]   ;;  %v13576_v3 = vld [vmem:[%s18947_s2 + $0x274] ss:$8 sps:$4 sm:$0xff]  }
 0x47a   : > { %v5825_v55 = vrot.slane %v5823_v8, 4  ;;  %v5828_v18 = vrot.slane %v5826_v7, 5  ;;  %v13557_v49 = vld [vmem:[#allocation2 + $0x60] ss:$16 sps:$4 sm:$0xff]   ;;  %v13558_v15 = vld [vmem:[#allocation2 + $0x88] ss:$16 sps:$4 sm:$0xff]  }
 0x47b   : > { %6343 = vmatprep.mubr.bf16.mxu0 %v12277_v57  ;;  %v5834_v1 = vrot.slane %v5832_v52, 5  ;;  %v13574_v10 = vld [vmem:[%s18947_s2 + $0x270] ss:$8 sps:$4 sm:$0xff]   ;;  %v13581_v36 = vld [vmem:[%s18947_s2 + $0x284] ss:$8 sps:$4 sm:$0xff]  }
 0x47c   : > { %6344 = vmatmul.mubr.bf16.gmra.mrb[184].mxu0 %v12276_v5  ;;  %v5829_v9 = vor.u32 %v5828_v18, %v5825_v55  ;;  %v13579_v27 = vld [vmem:[%s18947_s2 + $0x280] ss:$8 sps:$4 sm:$0xff]   ;;  %v13586_v6 = vld [vmem:[%s18947_s2 + $0x294] ss:$8 sps:$4 sm:$0xff]   ;;  %v13584_v12 = vld [vmem:[%s18947_s2 + $0x290] ss:$8 sps:$4 sm:$0xff]  }
 0x47d   : > { %v13562_v22 = vld [vmem:[#allocation2 + $0x80] ss:$16 sps:$4 sm:$0xff]   ;;  %v13563_v24 = vld [vmem:[#allocation2 + $0xa8] ss:$16 sps:$4 sm:$0xff]   ;;  %v13591_v59 = vld [vmem:[%s18947_s2 + $0x2a4] ss:$8 sps:$4 sm:$0xff]  }
 0x47e   : > { %v13532_v63 = vld [vmem:[#allocation2 + $0x1f0] ss:$8 sps:$4 sm:$0xff]   ;;  %v13534_v16 = vld [vmem:[#allocation2 + $0x1f4] ss:$8 sps:$4 sm:$0x11]   ;;  %v5830_v20 = vrot.slane %v5829_v9, 4 }
 0x47f   : > { %v5837_v56 = vshrl.u32 %v13532_v63, 16  ;;  %v5840_v17 = vshll.u32 %v13532_v63, 16  ;;  %v5846_v14 = vshll.u32 %v13534_v16, 16  ;;  %v13589_v4 = vld [vmem:[%s18947_s2 + $0x2a0] ss:$8 sps:$4 sm:$0xff]  }
 0x480   : > { %v5835_v47 = vsel %vm14307_vm2, %v5830_v20, %v5834_v1  ;;  %v13567_v41 = vld [vmem:[#allocation2 + $0xa0] ss:$16 sps:$4 sm:$0xff]   ;;  %v13596_v50 = vld [vmem:[%s18947_s2 + $0x2b4] ss:$8 sps:$4 sm:$0xff]   ;;  %v13568_v53 = vld [vmem:[#allocation2 + $0xc8] ss:$16 sps:$4 sm:$0xff]  }
 0x481   : > { %v5839_v34 = vrot.slane %v5837_v56, 4  ;;  %v5842_v44 = vrot.slane %v5840_v17, 5  ;;  %v5848_v0 = vrot.slane %v5846_v14, 5  ;;  %v13594_v11 = vld [vmem:[%s18947_s2 + $0x2b0] ss:$8 sps:$4 sm:$0xff]  }
 0x482   : > { %v13601_v21 = vld [vmem:[%s18947_s2 + $0x2c4] ss:$8 sps:$4 sm:$0xff]   ;;  %v13599_v8 = vld [vmem:[%s18947_s2 + $0x2c0] ss:$8 sps:$4 sm:$0xff]   ;;  %v13606_v62 = vld [vmem:[%s18947_s2 + $0x2d4] ss:$8 sps:$4 sm:$0xff]  }
 0x483   : > { %v5843_v42 = vor.u32 %v5842_v44, %v5839_v34  ;;  %v13572_v7 = vld [vmem:[#allocation2 + $0xc0] ss:$16 sps:$4 sm:$0xff]   ;;  %v13573_v45 = vld [vmem:[#allocation2 + $0xe8] ss:$16 sps:$4 sm:$0xff]   ;;  %v13611_v5 = vld [vmem:[%s18947_s2 + $0x2e4] ss:$8 sps:$4 sm:$0xff]  }
 0x484   : > { %v13604_v57 = vld [vmem:[%s18947_s2 + $0x2d0] ss:$8 sps:$4 sm:$0xff]   ;;  %v13609_v18 = vld [vmem:[%s18947_s2 + $0x2e0] ss:$8 sps:$4 sm:$0xff]   ;;  %v13616_v25 = vld [vmem:[%s18947_s2 + $0x2f4] ss:$8 sps:$4 sm:$0xff]  }
 0x485   : > { %v5844_v19 = vrot.slane %v5843_v42, 4  ;;  %v13577_v55 = vld [vmem:[#allocation2 + $0xe0] ss:$16 sps:$4 sm:$0xff]   ;;  %v13578_v63 = vld [vmem:[#allocation2 + $0x108] ss:$16 sps:$4 sm:$0xff]  }
 0x486   : > { %v13614_v16 = vld [vmem:[%s18947_s2 + $0x2f0] ss:$8 sps:$4 sm:$0xff]   ;;  %v13626_v9 = vld [vmem:[%s18947_s2 + $0x304] ss:$8 sps:$4 sm:$0xff]  }
 0x487   : > { %v5849_v46 = vsel %vm14307_vm2, %v5844_v19, %v5848_v0  ;;  %v13582_v56 = vld [vmem:[#allocation2 + $0x100] ss:$16 sps:$4 sm:$0xff]   ;;  %v13583_v17 = vld [vmem:[#allocation2 + $0x128] ss:$16 sps:$4 sm:$0xff]   ;;  %vm10874_vm2 = vcmask 1046534  }
 0x488   : > { %v12279_v37 = vcombine.high %v5835_v47, %v5849_v46  ;;  %v12278_v29 = vcombine.low %v5835_v47, %v5849_v46  ;;  %v13587_v52 = vld [vmem:[#allocation2 + $0x120] ss:$16 sps:$4 sm:$0xff]   ;;  %v13588_v34 = vld [vmem:[#allocation2 + $0x148] ss:$16 sps:$4 sm:$0xff]  }
 0x489   : > { %v13592_v44 = vld [vmem:[#allocation2 + $0x140] ss:$16 sps:$4 sm:$0xff]   ;;  %v13593_v14 = vld [vmem:[#allocation2 + $0x168] ss:$16 sps:$4 sm:$0xff]  }
 0x48a   : > { %6353 = vmatprep.mubr.bf16.mxu0 %v12279_v37  ;;  %v13597_v20 = vld [vmem:[#allocation2 + $0x160] ss:$16 sps:$4 sm:$0xff]   ;;  %v13598_v42 = vld [vmem:[#allocation2 + $0x188] ss:$16 sps:$4 sm:$0xff]  }
 0x48b   : > { %6354 = vmatmul.mubr.bf16.gmra.mrb[188].mxu0 %v12278_v29  ;;  %v13602_v1 = vld [vmem:[#allocation2 + $0x180] ss:$16 sps:$4 sm:$0xff]   ;;  %v13603_v19 = vld [vmem:[#allocation2 + $0x1a8] ss:$16 sps:$4 sm:$0xff]  }
 0x48c   : > { %6620 = vmatprep.mubr.bf16.mxu0 %v13538_v26  ;;  %v13607_v0 = vld [vmem:[#allocation2 + $0x1a0] ss:$16 sps:$4 sm:$0xff]   ;;  %v13608_v47 = vld [vmem:[#allocation2 + $0x1c8] ss:$16 sps:$4 sm:$0xff]  }
 0x48d   : > { %v13621_v46 = vld [vmem:[#allocation2 + $0x10] ss:$8 sps:$4 sm:$0xee]   ;;  %v13623_v37 = vld [vmem:[#allocation2 + $0x14] ss:$8 sps:$4 sm:$0x11]  }
 0x48e   : > { %v13618_v29 = vld [vmem:[#allocation2] ss:$8 sps:$4 sm:$0xee]  }
 0x48f   : > { %v13612_v26 = vld [vmem:[#allocation2 + $0x1c0] ss:$16 sps:$4 sm:$0xff]  }
 0x493   : > { %6621 = vmatmul.mubr.bf16.vlgmr.msra.gmra.mrb[128].mxu0 %v13542_v32  ;;  %v13613_v32 = vld [vmem:[#allocation2 + $0x1e8] ss:$16 sps:$4 sm:$0xff]  }
 0x494   : > { %7551 = vmatpush1.bf16.msra.mxu0 %v13539_v51  ;;  %6630 = vmatprep.mubr.bf16.mxu0 %v13543_v31  ;;  %v13620_v51 = vld [vmem:[#allocation2 + $0x4] ss:$8 sps:$4 sm:$0x11]   ;;  %v7107_v31 = vrot.slane %v13623_v37, 5 }
 0x495   : > { %7552 = vmatprep.subr.bf16.mxu0 %v13546_v39  ;;  %v12441_v39 = vrot.slane %v13621_v46, 9 }
 0x498   : > { %7553 = vmatpush1.bf16.msra.mxu0 %v13544_v40  ;;  %v12440_v40 = vrot.slane %v13618_v29, 9 }
 0x499   : > { %7554 = vmatprep.subr.bf16.mxu0 %v13551_v33  ;;  %v7103_v33 = vrot.slane %v13620_v51, 5  ;;  %v13669_v51 = vld [vmem:[%s18947_s2 + $0x350] ss:$8 sps:$4 sm:$0xff]  }
 0x49b   : > { %6631 = vmatmul.mubr.bf16.gmra.mrb[132].mxu0 %v13547_v2 }
 0x49c   : > { %6640 = vmatprep.mubr.bf16.mxu0 %v13548_v35  ;;  %7555 = vmatpush1.bf16.msra.mxu0 %v13549_v54  ;;  %v13630_v54 = vld [vmem:[#allocation2 + $0x30] ss:$8 sps:$4 sm:$0xee]   ;;  %v13632_v35 = vld [vmem:[#allocation2 + $0x34] ss:$8 sps:$4 sm:$0x11]  }
 0x49d   : > { %7556 = vmatprep.subr.bf16.mxu0 %v13556_v28  ;;  %v7108_v28 = vsel %vm14575_vm6, %v12441_v39, %v7107_v31  ;;  %v13666_v39 = vld [vmem:[#allocation2 + $0xb0] ss:$8 sps:$4 sm:$0xee]   ;;  %v13680_v31 = vld [vmem:[%s18947_s2 + $0x364] ss:$8 sps:$4 sm:$0xff]  }
 0x4a0   : > { %7557 = vmatpush1.bf16.msra.mxu0 %v13554_v48  ;;  %v13627_v48 = vld [vmem:[#allocation2 + $0x20] ss:$8 sps:$4 sm:$0xee]  }
 0x4a1   : > { %7558 = vmatprep.subr.bf16.mxu0 %v13561_v58  ;;  %v13617_v58 = vld [vmem:[#allocation2 + $0x1e0] ss:$16 sps:$4 sm:$0xff]  }
 0x4a3   : > { %6641 = vmatmul.mubr.bf16.gmra.mrb[136].mxu0 %v13552_v38  ;;  %v13629_v38 = vld [vmem:[#allocation2 + $0x24] ss:$8 sps:$4 sm:$0x11]  }
 0x4a4   : > { %6650 = vmatprep.mubr.bf16.mxu0 %v13553_v23  ;;  %7559 = vmatpush1.bf16.msra.mxu0 %v13559_v13  ;;  %v7104_v13 = vsel %vm14575_vm6, %v12440_v40, %v7103_v33  ;;  %v12443_v23 = vrot.slane %v13630_v54, 9  ;;  %v13663_v33 = vld [vmem:[#allocation2 + $0xa0] ss:$8 sps:$4 sm:$0xee]  }
 0x4a5   : > { %7560 = vmatprep.subr.bf16.mxu0 %v13566_v30  ;;  %v12505_v30 = vcombine.high %v7104_v13, %v7108_v28  ;;  %v13665_v54 = vld [vmem:[#allocation2 + $0xa4] ss:$8 sps:$4 sm:$0x11]  }
 0x4a8   : > { %7561 = vmatpush1.bf16.msra.mxu0 %v13564_v61  ;;  %v7115_v61 = vrot.slane %v13632_v35, 5  ;;  %v13675_v35 = vld [vmem:[#allocation2 + $0xd0] ss:$8 sps:$4 sm:$0xee]  }
 0x4a9   : > { %7562 = vmatprep.subr.bf16.mxu0 %v13571_v43  ;;  %v12442_v43 = vrot.slane %v13627_v48, 9  ;;  %v13677_v48 = vld [vmem:[#allocation2 + $0xd4] ss:$8 sps:$4 sm:$0x11]  }
 0x4ab   : > { %6651 = vmatmul.mubr.bf16.gmra.mrb[140].mxu0 %v13557_v49  ;;  %v13636_v49 = vld [vmem:[#allocation2 + $0x40] ss:$8 sps:$4 sm:$0xee]  }
 0x4ac   : > { %6660 = vmatprep.mubr.bf16.mxu0 %v13558_v15  ;;  %7563 = vmatpush1.bf16.msra.mxu0 %v13569_v60  ;;  %v7111_v60 = vrot.slane %v13629_v38, 5  ;;  %v13639_v15 = vld [vmem:[#allocation2 + $0x50] ss:$8 sps:$4 sm:$0xee]  }
 0x4ad   : > { %7564 = vmatprep.subr.bf16.mxu0 %v13576_v3  ;;  %v13638_v3 = vld [vmem:[#allocation2 + $0x44] ss:$8 sps:$4 sm:$0x11]  }
 0x4b0   : > { %7565 = vmatpush1.bf16.msra.mxu0 %v13574_v10  ;;  %v13641_v10 = vld [vmem:[#allocation2 + $0x54] ss:$8 sps:$4 sm:$0x11]  }
 0x4b1   : > { %7566 = vmatprep.subr.bf16.mxu0 %v13581_v36  ;;  %v7116_v36 = vsel %vm14575_vm6, %v12443_v23, %v7115_v61  ;;  %v12451_v61 = vrot.slane %v13666_v39, 9 }
 0x4b3   : > { %6661 = vmatmul.mubr.bf16.gmra.mrb[144].mxu0 %v13562_v22  ;;  %v12504_v22 = vcombine.low %v7104_v13, %v7108_v28  ;;  %v13668_v28 = vld [vmem:[#allocation2 + $0xb4] ss:$8 sps:$4 sm:$0x11]  }
 0x4b4   : > { %6670 = vmatprep.mubr.bf16.mxu0 %v13563_v24  ;;  %7567 = vmatpush1.bf16.msra.mxu0 %v13579_v27  ;;  %v13624_v27 = vld [vmem:[%s18947_s2 + $0x300] ss:$8 sps:$4 sm:$0xff]   ;;  %v13635_v24 = vld [vmem:[%s18947_s2 + $0x314] ss:$8 sps:$4 sm:$0xff]  }
 0x4b5   : > { %7568 = vmatprep.subr.bf16.mxu0 %v13586_v6  ;;  %v7112_v6 = vsel %vm14575_vm6, %v12442_v43, %v7111_v60  ;;  %v7147_v43 = vrot.slane %v13668_v28, 5  ;;  %v13687_v60 = vld [vmem:[%s18947_s2 + $0x370] ss:$8 sps:$4 sm:$0xff]   ;;  %v13699_v28 = vld [vmem:[#allocation2 + $0x120] ss:$8 sps:$4 sm:$0xee]  }
 0x4b8   : > { %7569 = vmatpush1.bf16.msra.mxu0 %v13584_v12  ;;  %v12507_v12 = vcombine.high %v7112_v6, %v7116_v36 }
 0x4b9   : > { %7570 = vmatprep.subr.bf16.mxu0 %v13591_v59  ;;  %v12445_v59 = vrot.slane %v13639_v15, 9  ;;  %v13698_v15 = vld [vmem:[%s18947_s2 + $0x384] ss:$8 sps:$4 sm:$0xff]  }
 0x4bb   : > { %6671 = vmatmul.mubr.bf16.gmra.mrb[148].mxu0 %v13567_v41  ;;  %v13633_v41 = vld [vmem:[%s18947_s2 + $0x310] ss:$8 sps:$4 sm:$0xff]  }
 0x4bc   : > { %6680 = vmatprep.mubr.bf16.mxu0 %v13568_v53  ;;  %7571 = vmatpush1.bf16.msra.mxu0 %v13589_v4  ;;  %v7123_v4 = vrot.slane %v13641_v10, 5  ;;  %v7119_v53 = vrot.slane %v13638_v3, 5  ;;  %v7143_v3 = vrot.slane %v13665_v54, 5  ;;  %v12453_v10 = vrot.slane %v13675_v35, 9  ;;  %v13750_v35 = vld [vmem:[%s18947_s2 + $0x3e0] ss:$8 sps:$4 sm:$0xff]  }
 0x4bd   : > { %7572 = vmatprep.subr.bf16.mxu0 %v13596_v50  ;;  %v12444_v50 = vrot.slane %v13636_v49, 9  ;;  %v12450_v49 = vrot.slane %v13663_v33, 9  ;;  %v13702_v33 = vld [vmem:[#allocation2 + $0x130] ss:$8 sps:$4 sm:$0xee]  }
 0x4be   : > { %v13704_v54 = vld [vmem:[#allocation2 + $0x134] ss:$8 sps:$4 sm:$0x11]  }
 0x4c0   : > { %7573 = vmatpush1.bf16.msra.mxu0 %v13594_v11  ;;  %v13644_v11 = vld [vmem:[%s18947_s2 + $0x324] ss:$8 sps:$4 sm:$0xff]  }
 0x4c1   : > { %7574 = vmatprep.subr.bf16.mxu0 %v13601_v21  ;;  %v13645_v21 = vld [vmem:[#allocation2 + $0x60] ss:$8 sps:$4 sm:$0xee]  }
 0x4c3   : > { %6681 = vmatmul.mubr.bf16.gmra.mrb[152].mxu0 %v13572_v7  ;;  %v7124_v7 = vsel %vm14575_vm6, %v12445_v59, %v7123_v4  ;;  %v7144_v4 = vsel %vm14575_vm6, %v12450_v49, %v7143_v3  ;;  %v13770_v3 = vld [vmem:[%s18947_s2 + $0x404] ss:$8 sps:$4 sm:$0xff]  }
 0x4c4   : > { %6690 = vmatprep.mubr.bf16.mxu0 %v13573_v45  ;;  %7575 = vmatpush1.bf16.msra.mxu0 %v13599_v8  ;;  %v13647_v8 = vld [vmem:[#allocation2 + $0x64] ss:$8 sps:$4 sm:$0x11]   ;;  %v13650_v45 = vld [vmem:[#allocation2 + $0x74] ss:$8 sps:$4 sm:$0x11]  }
 0x4c5   : > { %7576 = vmatprep.subr.bf16.mxu0 %v13606_v62  ;;  %v13648_v62 = vld [vmem:[#allocation2 + $0x70] ss:$8 sps:$4 sm:$0xee]  }
 0x4c8   : > { %7577 = vmatpush1.bf16.msra.mxu0 %v13604_v57  ;;  %v13642_v57 = vld [vmem:[%s18947_s2 + $0x320] ss:$8 sps:$4 sm:$0xff]  }
 0x4c9   : > { %7578 = vmatprep.subr.bf16.mxu0 %v13611_v5  ;;  %v12506_v5 = vcombine.low %v7112_v6, %v7116_v36  ;;  %v7155_v36 = vrot.slane %v13677_v48, 5  ;;  %v13674_v6 = vld [vmem:[#allocation2 + $0xc4] ss:$8 sps:$4 sm:$0x11]  }
 0x4cb   : > { %6691 = vmatmul.mubr.bf16.gmra.mrb[156].mxu0 %v13577_v55  ;;  %v7120_v55 = vsel %vm14575_vm6, %v12444_v50, %v7119_v53  ;;  %v13705_v50 = vld [vmem:[%s18947_s2 + $0x390] ss:$8 sps:$4 sm:$0xff]  }
 0x4cc   : > { %6700 = vmatprep.mubr.bf16.mxu0 %v13578_v63  ;;  %7579 = vmatpush1.bf16.msra.mxu0 %v13609_v18  ;;  %v13653_v18 = vld [vmem:[%s18947_s2 + $0x334] ss:$8 sps:$4 sm:$0xff]   ;;  %v12447_v63 = vrot.slane %v13648_v62, 9 }
 0x4cd   : > { %7580 = vmatprep.subr.bf16.mxu0 %v13616_v25  ;;  %v12509_v25 = vcombine.high %v7120_v55, %v7124_v7  ;;  %v13686_v62 = vld [vmem:[#allocation2 + $0xf4] ss:$8 sps:$4 sm:$0x11]  }
 0x4d0   : > { %7581 = vmatpush1.bf16.msra.mxu0 %v13614_v16  ;;  %v7131_v16 = vrot.slane %v13650_v45, 5  ;;  %v13681_v45 = vld [vmem:[#allocation2 + $0xe0] ss:$8 sps:$4 sm:$0xee]  }
 0x4d1   : > { %9027 = vmatprep.subr.bf16.mxu0 %v13626_v9  ;;  %v12446_v9 = vrot.slane %v13645_v21, 9  ;;  %v13716_v21 = vld [vmem:[%s18947_s2 + $0x3a4] ss:$8 sps:$4 sm:$0xff]  }
 0x4d3   : > { %6701 = vmatmul.mubr.bf16.gmra.mrb[160].mxu0 %v13582_v56  ;;  %v7127_v56 = vrot.slane %v13647_v8, 5  ;;  %v7156_v8 = vsel %vm14575_vm6, %v12453_v10, %v7155_v36  ;;  %v13711_v10 = vld [vmem:[#allocation2 + $0x150] ss:$8 sps:$4 sm:$0xee]  }
 0x4d4   : > { %6710 = vmatprep.mubr.bf16.mxu0 %v13583_v17  ;;  %v13651_v17 = vld [vmem:[%s18947_s2 + $0x330] ss:$8 sps:$4 sm:$0xff]   ;;  %v13713_v36 = vld [vmem:[#allocation2 + $0x154] ss:$8 sps:$4 sm:$0x11]  }
 0x4db   : > { %6711 = vmatmul.mubr.bf16.gmra.mrb[164].mxu0 %v13587_v52  ;;  %v13662_v52 = vld [vmem:[%s18947_s2 + $0x344] ss:$8 sps:$4 sm:$0xff]  }
 0x4dc   : > { %6720 = vmatprep.mubr.bf16.mxu0 %v13588_v34  ;;  %v13654_v34 = vld [vmem:[#allocation2 + $0x80] ss:$8 sps:$4 sm:$0xee]  }
 0x4e3   : > { %6721 = vmatmul.mubr.bf16.gmra.mrb[168].mxu0 %v13592_v44  ;;  %v7132_v44 = vsel %vm14575_vm6, %v12447_v63, %v7131_v16 }
 0x4e4   : > { %6730 = vmatprep.mubr.bf16.mxu0 %v13593_v14  ;;  %v13656_v14 = vld [vmem:[#allocation2 + $0x84] ss:$8 sps:$4 sm:$0x11]  }
 0x4eb   : > { %6731 = vmatmul.mubr.bf16.gmra.mrb[172].mxu0 %v13597_v20  ;;  %v13657_v20 = vld [vmem:[#allocation2 + $0x90] ss:$8 sps:$4 sm:$0xee]  }
 0x4ec   : > { %6740 = vmatprep.mubr.bf16.mxu0 %v13598_v42  ;;  %v13659_v42 = vld [vmem:[#allocation2 + $0x94] ss:$8 sps:$4 sm:$0x11]   ;;  %v12449_v37 = vrot.slane %v13657_v20, 9 }
 0x4ed   : > { %v7139_v29 = vrot.slane %v13659_v42, 5  ;;  %v13695_v20 = vld [vmem:[#allocation2 + $0x114] ss:$8 sps:$4 sm:$0x11]  }
 0x4ee   : > { %v13690_v42 = vld [vmem:[#allocation2 + $0x100] ss:$8 sps:$4 sm:$0xee]  }
 0x4ef   : > { %v7140_v40 = vsel %vm14575_vm6, %v12449_v37, %v7139_v29 }
 0x4f3   : > { %6741 = vmatmul.mubr.bf16.gmra.mrb[176].mxu0 %v13602_v1  ;;  %v13660_v1 = vld [vmem:[%s18947_s2 + $0x340] ss:$8 sps:$4 sm:$0xff]  }
 0x4f4   : > { %6750 = vmatprep.mubr.bf16.mxu0 %v13603_v19  ;;  %v12508_v19 = vcombine.low %v7120_v55, %v7124_v7  ;;  %v13684_v7 = vld [vmem:[#allocation2 + $0xf0] ss:$8 sps:$4 sm:$0xee]  }
 0x4f5   : > { %v12455_v16 = vrot.slane %v13684_v7, 9 }
 0x4fb   : > { %6751 = vmatmul.mubr.bf16.gmra.mrb[180].mxu0 %v13607_v0  ;;  %v7128_v0 = vsel %vm14575_vm6, %v12446_v9, %v7127_v56  ;;  %v7163_v9 = vrot.slane %v13686_v62, 5  ;;  %v13723_v56 = vld [vmem:[%s18947_s2 + $0x3b0] ss:$8 sps:$4 sm:$0xff]   ;;  %v13717_v62 = vld [vmem:[#allocation2 + $0x160] ss:$8 sps:$4 sm:$0xee]  }
 0x4fc   : > { %6760 = vmatprep.mubr.bf16.mxu0 %v13608_v47  ;;  %v13671_v47 = vld [vmem:[%s18947_s2 + $0x354] ss:$8 sps:$4 sm:$0xff]   ;;  %v12511_v46 = vcombine.high %v7128_v0, %v7132_v44  ;;  %v12510_v13 = vcombine.low %v7128_v0, %v7132_v44 }
 0x4fd   : > { %v7164_v44 = vsel %vm14575_vm6, %v12455_v16, %v7163_v9  ;;  %v13729_v16 = vld [vmem:[#allocation2 + $0x190] ss:$8 sps:$4 sm:$0xee]   ;;  %v13731_v9 = vld [vmem:[#allocation2 + $0x194] ss:$8 sps:$4 sm:$0x11]  }
 0x503   : > { %6761 = vmatmul.mubr.bf16.gmra.mrb[184].mxu0 %v13612_v26  ;;  %v12448_v26 = vrot.slane %v13654_v34, 9  ;;  %v13734_v34 = vld [vmem:[%s18947_s2 + $0x3c4] ss:$8 sps:$4 sm:$0xff]  }
 0x504   : > { %6770 = vmatprep.mubr.bf16.mxu0 %v13613_v32  ;;  %v7135_v32 = vrot.slane %v13656_v14, 5  ;;  %v13693_v14 = vld [vmem:[#allocation2 + $0x110] ss:$8 sps:$4 sm:$0xee]  }
 0x505   : > { %v12457_v29 = vrot.slane %v13693_v14, 9  ;;  %v12465_v14 = vrot.slane %v13729_v16, 9 }
 0x506   : > { %v7136_v38 = vsel %vm14575_vm6, %v12448_v26, %v7135_v32  ;;  %v7171_v26 = vrot.slane %v13695_v20, 5  ;;  %v12456_v32 = vrot.slane %v13690_v42, 9  ;;  %v7203_v20 = vrot.slane %v13731_v9, 5 }
 0x507   : > { %v12513_v23 = vcombine.high %v7136_v38, %v7140_v40  ;;  %v12512_v59 = vcombine.low %v7136_v38, %v7140_v40  ;;  %v13761_v38 = vld [vmem:[%s18947_s2 + $0x3f4] ss:$8 sps:$4 sm:$0xff]  }
 0x508   : > { %v7172_v40 = vsel %vm14575_vm6, %v12457_v29, %v7171_v26  ;;  %v13735_v29 = vld [vmem:[#allocation2 + $0x1a0] ss:$8 sps:$4 sm:$0xee]   ;;  %v13737_v26 = vld [vmem:[#allocation2 + $0x1a4] ss:$8 sps:$4 sm:$0x11]  }
 0x50b   : > { %6771 = vmatmul.mubr.bf16.gmra.mrb[188].mxu0 %v13617_v58  ;;  %v13678_v58 = vld [vmem:[%s18947_s2 + $0x360] ss:$8 sps:$4 sm:$0xff]  }
 0x50c   : > { %7582 = vmatprep.mubr.bf16.mxu0 %v12505_v30  ;;  %v13689_v30 = vld [vmem:[%s18947_s2 + $0x374] ss:$8 sps:$4 sm:$0xff]  }
 0x513   : > { %7583 = vmatmul.mubr.bf16.vlgmr.msra.gmra.mrb[128].mxu0 %v12504_v22  ;;  %v13672_v22 = vld [vmem:[#allocation2 + $0xc0] ss:$8 sps:$4 sm:$0xee]  }
 0x514   : > { %9028 = vmatpush1.bf16.msra.mxu0 %v13624_v27  ;;  %7592 = vmatprep.mubr.bf16.mxu0 %v12507_v12  ;;  %v7148_v27 = vsel %vm14575_vm6, %v12451_v61, %v7147_v43  ;;  %v13707_v12 = vld [vmem:[%s18947_s2 + $0x394] ss:$8 sps:$4 sm:$0xff]   ;;  %v12452_v53 = vrot.slane %v13672_v22, 9  ;;  %v7179_v61 = vrot.slane %v13704_v54, 5  ;;  %v13759_v43 = vld [vmem:[%s18947_s2 + $0x3f0] ss:$8 sps:$4 sm:$0xff]  }
 0x515   : > { %9029 = vmatprep.subr.bf16.mxu0 %v13635_v24  ;;  %v13696_v24 = vld [vmem:[%s18947_s2 + $0x380] ss:$8 sps:$4 sm:$0xff]   ;;  %v13747_v54 = vld [vmem:[#allocation2 + $0x1d0] ss:$8 sps:$4 sm:$0xee]  }
 0x518   : > { %9030 = vmatpush1.bf16.msra.mxu0 %v13633_v41  ;;  %v12515_v41 = vcombine.high %v7144_v4, %v7148_v27 }
 0x519   : > { %9031 = vmatprep.subr.bf16.mxu0 %v13644_v11  ;;  %v7151_v11 = vrot.slane %v13674_v6, 5  ;;  %v13708_v6 = vld [vmem:[#allocation2 + $0x140] ss:$8 sps:$4 sm:$0xee]  }
 0x51b   : > { %7593 = vmatmul.mubr.bf16.gmra.mrb[132].mxu0 %v12506_v5  ;;  %v12514_v5 = vcombine.low %v7144_v4, %v7148_v27  ;;  %v7152_v55 = vsel %vm14575_vm6, %v12452_v53, %v7151_v11  ;;  %v7187_v4 = vrot.slane %v13713_v36, 5  ;;  %v13720_v11 = vld [vmem:[#allocation2 + $0x170] ss:$8 sps:$4 sm:$0xee]  }
 0x51c   : > { %7602 = vmatprep.mubr.bf16.mxu0 %v12509_v25  ;;  %9032 = vmatpush1.bf16.msra.mxu0 %v13642_v57  ;;  %v13714_v57 = vld [vmem:[%s18947_s2 + $0x3a0] ss:$8 sps:$4 sm:$0xff]   ;;  %v13725_v25 = vld [vmem:[%s18947_s2 + $0x3b4] ss:$8 sps:$4 sm:$0xff]   ;;  %v12517_v63 = vcombine.high %v7152_v55, %v7156_v8 }
 0x51d   : > { %9033 = vmatprep.subr.bf16.mxu0 %v13653_v18  ;;  %v13683_v18 = vld [vmem:[#allocation2 + $0xe4] ss:$8 sps:$4 sm:$0x11]   ;;  %v13758_v36 = vld [vmem:[#allocation2 + $0x1f4] ss:$8 sps:$4 sm:$0x11]  }
 0x520   : > { %9034 = vmatpush1.bf16.msra.mxu0 %v13651_v17  ;;  %v12454_v17 = vrot.slane %v13681_v45, 9  ;;  %v13719_v45 = vld [vmem:[#allocation2 + $0x164] ss:$8 sps:$4 sm:$0x11]  }
 0x521   : > { %9035 = vmatprep.subr.bf16.mxu0 %v13662_v52  ;;  %v7159_v52 = vrot.slane %v13683_v18, 5  ;;  %v12462_v18 = vrot.slane %v13717_v62, 9 }
 0x523   : > { %7603 = vmatmul.mubr.bf16.gmra.mrb[136].mxu0 %v12508_v19  ;;  %v12516_v19 = vcombine.low %v7152_v55, %v7156_v8  ;;  %v7160_v0 = vsel %vm14575_vm6, %v12454_v17, %v7159_v52  ;;  %v13726_v52 = vld [vmem:[#allocation2 + $0x180] ss:$8 sps:$4 sm:$0xee]  }
 0x524   : > { %7612 = vmatprep.mubr.bf16.mxu0 %v12511_v46  ;;  %9036 = vmatpush1.bf16.msra.mxu0 %v13660_v1  ;;  %v13732_v1 = vld [vmem:[%s18947_s2 + $0x3c0] ss:$8 sps:$4 sm:$0xff]   ;;  %v13743_v46 = vld [vmem:[%s18947_s2 + $0x3d4] ss:$8 sps:$4 sm:$0xff]   ;;  %v12519_v37 = vcombine.high %v7160_v0, %v7164_v44  ;;  %v12518_v48 = vcombine.low %v7160_v0, %v7164_v44  ;;  %v12464_v42 = vrot.slane %v13726_v52, 9 }
 0x525   : > { %9037 = vmatprep.subr.bf16.mxu0 %v13671_v47  ;;  %v13692_v47 = vld [vmem:[#allocation2 + $0x104] ss:$8 sps:$4 sm:$0x11]   ;;  %v13738_v0 = vld [vmem:[#allocation2 + $0x1b0] ss:$8 sps:$4 sm:$0xee]  }
 0x526   : > { %v7167_v39 = vrot.slane %v13692_v47, 5  ;;  %v13740_v47 = vld [vmem:[#allocation2 + $0x1b4] ss:$8 sps:$4 sm:$0x11]  }
 0x528   : > { %9038 = vmatpush1.bf16.msra.mxu0 %v13669_v51  ;;  %v13741_v51 = vld [vmem:[%s18947_s2 + $0x3d0] ss:$8 sps:$4 sm:$0xff]  }
 0x529   : > { %9039 = vmatprep.subr.bf16.mxu0 %v13680_v31  ;;  %v13752_v31 = vld [vmem:[%s18947_s2 + $0x3e4] ss:$8 sps:$4 sm:$0xff]  }
 0x52b   : > { %7613 = vmatmul.mubr.bf16.gmra.mrb[140].mxu0 %v12510_v13  ;;  %v13701_v13 = vld [vmem:[#allocation2 + $0x124] ss:$8 sps:$4 sm:$0x11]  }
 0x52c   : > { %7622 = vmatprep.mubr.bf16.mxu0 %v12513_v23  ;;  %9040 = vmatpush1.bf16.msra.mxu0 %v13678_v58  ;;  %v7168_v58 = vsel %vm14575_vm6, %v12456_v32, %v7167_v39  ;;  %v12459_v23 = vrot.slane %v13702_v33, 9  ;;  %v7175_v49 = vrot.slane %v13701_v13, 5  ;;  %v12467_v32 = vrot.slane %v13738_v0, 9  ;;  %v13746_v13 = vld [vmem:[#allocation2 + $0x1c4] ss:$8 sps:$4 sm:$0x11]  }
 0x52d   : > { %9041 = vmatprep.subr.bf16.mxu0 %v13689_v30  ;;  %v12521_v30 = vcombine.high %v7168_v58, %v7172_v40  ;;  %v12520_v27 = vcombine.low %v7168_v58, %v7172_v40  ;;  %v7211_v39 = vrot.slane %v13740_v47, 5  ;;  %v7207_v40 = vrot.slane %v13737_v26, 5  ;;  %v13744_v58 = vld [vmem:[#allocation2 + $0x1c0] ss:$8 sps:$4 sm:$0xee]  }
 0x52f   : > { %v7212_v33 = vsel %vm14575_vm6, %v12467_v32, %v7211_v39  ;;  %v13783_v32 = vld [vmem:[#allocation2 + $0x50] ss:$8 sps:$4 sm:$0xee]  }
 0x530   : > { %9042 = vmatpush1.bf16.msra.mxu0 %v13687_v60  ;;  %v12458_v60 = vrot.slane %v13699_v28, 9  ;;  %v13749_v28 = vld [vmem:[#allocation2 + $0x1d4] ss:$8 sps:$4 sm:$0x11]  }
 0x531   : > { %9043 = vmatprep.subr.bf16.mxu0 %v13698_v15  ;;  %v7180_v15 = vsel %vm14575_vm6, %v12459_v23, %v7179_v61  ;;  %v7219_v23 = vrot.slane %v13749_v28, 5  ;;  %v13765_v61 = vld [vmem:[#allocation2 + $0x10] ss:$8 sps:$4 sm:$0xee]  }
 0x532   : > { %v7176_v22 = vsel %vm14575_vm6, %v12458_v60, %v7175_v49  ;;  %v12468_v60 = vrot.slane %v13744_v58, 9  ;;  %v7215_v49 = vrot.slane %v13746_v13, 5 }
 0x533   : > { %7623 = vmatmul.mubr.bf16.gmra.mrb[144].mxu0 %v12512_v59  ;;  %v12461_v59 = vrot.slane %v13711_v10, 9  ;;  %v12522_v8 = vcombine.low %v7176_v22, %v7180_v15 }
 0x534   : > { %7632 = vmatprep.mubr.bf16.mxu0 %v12515_v41  ;;  %9044 = vmatpush1.bf16.msra.mxu0 %v13696_v24  ;;  %v13710_v24 = vld [vmem:[#allocation2 + $0x144] ss:$8 sps:$4 sm:$0x11]   ;;  %v12460_v41 = vrot.slane %v13708_v6, 9 }
 0x535   : > { %9045 = vmatprep.subr.bf16.mxu0 %v13707_v12  ;;  %v12523_v12 = vcombine.high %v7176_v22, %v7180_v15  ;;  %v7188_v53 = vsel %vm14575_vm6, %v12461_v59, %v7187_v4  ;;  %v13756_v15 = vld [vmem:[#allocation2 + $0x1f0] ss:$8 sps:$4 sm:$0xee]   ;;  %v8152_v22 = vshll.u32 %v13765_v61, 16  ;;  %v7216_v4 = vsel %vm14575_vm6, %v12468_v60, %v7215_v49 }
 0x536   : > { %v13755_v6 = vld [vmem:[#allocation2 + $0x1e4] ss:$8 sps:$4 sm:$0x11]  }
 0x537   : > { %v8154_v62 = vrot.slane %v8152_v22, 6 }
 0x538   : > { %9046 = vmatpush1.bf16.msra.mxu0 %v13705_v50  ;;  %v7183_v50 = vrot.slane %v13710_v24, 5 }
 0x539   : > { %9047 = vmatprep.subr.bf16.mxu0 %v13716_v21  ;;  %v13722_v21 = vld [vmem:[#allocation2 + $0x174] ss:$8 sps:$4 sm:$0x11]  }
 0x53a   : > { %v7184_v7 = vsel %vm14575_vm6, %v12460_v41, %v7183_v50  ;;  %v7195_v55 = vrot.slane %v13722_v21, 5  ;;  %v13767_v41 = vld [vmem:[#allocation2 + $0x14] ss:$8 sps:$4 sm:$0x33]  }
 0x53b   : > { %7633 = vmatmul.mubr.bf16.gmra.mrb[148].mxu0 %v12514_v5  ;;  %v12463_v5 = vrot.slane %v13720_v11, 9  ;;  %v13774_v50 = vld [vmem:[#allocation2 + $0x30] ss:$8 sps:$4 sm:$0xee]   ;;  %v12471_v11 = vrot.slane %v13756_v15, 9 }
 0x53c   : > { %7642 = vmatprep.mubr.bf16.mxu0 %v12517_v63  ;;  %9048 = vmatpush1.bf16.msra.mxu0 %v13714_v57  ;;  %v12525_v57 = vcombine.high %v7184_v7, %v7188_v53  ;;  %v13764_v21 = vld [vmem:[#allocation2 + $0x4] ss:$8 sps:$4 sm:$0x33]   ;;  %v8185_v16 = vshrl.u32 %v13774_v50, 16  ;;  %v8188_v9 = vshll.u32 %v13774_v50, 16 }
 0x53d   : > { %9049 = vmatprep.subr.bf16.mxu0 %v13725_v25  ;;  %v7191_v25 = vrot.slane %v13719_v45, 5  ;;  %v7196_v63 = vsel %vm14575_vm6, %v12463_v5, %v7195_v55  ;;  %v13771_v45 = vld [vmem:[#allocation2 + $0x20] ss:$8 sps:$4 sm:$0xee]   ;;  %v7223_v5 = vrot.slane %v13755_v6, 5  ;;  %v8143_v52 = vshll.u32 %v13764_v21, 16 }
 0x53e   : > { %v8170_v0 = vshll.u32 %v13771_v45, 16 }
 0x53f   : > { %v7192_v17 = vsel %vm14575_vm6, %v12462_v18, %v7191_v25  ;;  %v8158_v25 = vshrl.u32 %v13767_v41, 16  ;;  %v8145_v39 = vrot.slane %v8143_v52, 6 }
 0x540   : > { %9050 = vmatpush1.bf16.msra.mxu0 %v13723_v56  ;;  %v12524_v56 = vcombine.low %v7184_v7, %v7188_v53  ;;  %v12527_v44 = vcombine.high %v7192_v17, %v7196_v63 }
 0x541   : > { %9051 = vmatprep.subr.bf16.mxu0 %v13734_v34  ;;  %v13728_v34 = vld [vmem:[#allocation2 + $0x184] ss:$8 sps:$4 sm:$0x11]   ;;  %v8160_v47 = vrot.slane %v8158_v25, 5 }
 0x543   : > { %7643 = vmatmul.mubr.bf16.gmra.mrb[152].mxu0 %v12516_v19  ;;  %v7204_v19 = vsel %vm14575_vm6, %v12465_v14, %v7203_v20  ;;  %v8167_v14 = vshrl.u32 %v13771_v45, 16 }
 0x544   : > { %7652 = vmatprep.mubr.bf16.mxu0 %v12519_v37  ;;  %9052 = vmatpush1.bf16.msra.mxu0 %v13732_v1  ;;  %v7199_v1 = vrot.slane %v13728_v34, 5 }
 0x545   : > { %9053 = vmatprep.subr.bf16.mxu0 %v13743_v46  ;;  %v12526_v46 = vcombine.low %v7192_v17, %v7196_v63  ;;  %v8161_v63 = vshll.u32 %v13767_v41, 16 }
 0x546   : > { %v7200_v37 = vsel %vm14575_vm6, %v12464_v42, %v7199_v1 }
 0x548   : > { %9054 = vmatpush1.bf16.msra.mxu0 %v13741_v51  ;;  %v12529_v51 = vcombine.high %v7200_v37, %v7204_v19 }
 0x549   : > { %9055 = vmatprep.subr.bf16.mxu0 %v13752_v31  ;;  %v12466_v31 = vrot.slane %v13735_v29, 9  ;;  %v8190_v29 = vrot.slane %v8188_v9, 6 }
 0x54b   : > { %7653 = vmatmul.mubr.bf16.gmra.mrb[156].mxu0 %v12518_v48  ;;  %v7208_v48 = vsel %vm14575_vm6, %v12466_v31, %v7207_v40  ;;  %v8169_v40 = vrot.slane %v8167_v14, 5  ;;  %v13768_v14 = vld [vmem:[%s18947_s2 + $0x400] ss:$8 sps:$4 sm:$0xff]  }
 0x54c   : > { %7662 = vmatprep.mubr.bf16.mxu0 %v12521_v30  ;;  %9056 = vmatpush1.bf16.msra.mxu0 %v13750_v35  ;;  %v12528_v35 = vcombine.low %v7200_v37, %v7204_v19  ;;  %v12469_v30 = vrot.slane %v13747_v54, 9  ;;  %v12530_v59 = vcombine.low %v7208_v48, %v7212_v33  ;;  %v13776_v19 = vld [vmem:[#allocation2 + $0x34] ss:$8 sps:$4 sm:$0x33]   ;;  %v8187_v37 = vrot.slane %v8185_v16, 5 }
 0x54d   : > { %9057 = vmatprep.subr.bf16.mxu0 %v13761_v38  ;;  %v12531_v38 = vcombine.high %v7208_v48, %v7212_v33  ;;  %v8172_v54 = vrot.slane %v8170_v0, 6  ;;  %v8194_v28 = vshrl.u32 %v13776_v19, 16  ;;  %v13779_v0 = vld [vmem:[%s18947_s2 + $0x414] ss:$8 sps:$4 sm:$0xff]  }
 0x54e   : > { %v7220_v10 = vsel %vm14575_vm6, %v12469_v30, %v7219_v23  ;;  %v8191_v13 = vor.u32 %v8190_v29, %v8187_v37  ;;  %v13785_v23 = vld [vmem:[#allocation2 + $0x54] ss:$8 sps:$4 sm:$0x33]   ;;  %v13798_v37 = vld [vmem:[#allocation2 + $0x80] ss:$8 sps:$4 sm:$0xee]  }
 0x54f   : > { %v12533_v53 = vcombine.high %v7216_v4, %v7220_v10  ;;  %v12532_v20 = vcombine.low %v7216_v4, %v7220_v10  ;;  %v8173_v10 = vor.u32 %v8172_v54, %v8169_v40  ;;  %v13801_v54 = vld [vmem:[#allocation2 + $0x90] ss:$8 sps:$4 sm:$0xee]  }
 0x550   : > { %9058 = vmatpush1.bf16.msra.mxu0 %v13759_v43  ;;  %v13762_v43 = vld [vmem:[#allocation2] ss:$8 sps:$4 sm:$0xee]   ;;  %v13915_v30 = vld [vmem:[#allocation2 + $0x30] ss:$8 sps:$4 sm:$0xcc]  }
 0x551   : > { %10056 = vmatprep.subr.bf16.mxu0 %v13770_v3  ;;  %v13753_v3 = vld [vmem:[#allocation2 + $0x1e0] ss:$8 sps:$4 sm:$0xee]   ;;  %v8131_v24 = vshrl.u32 %v13762_v43, 16 }
 0x553   : > { %7663 = vmatmul.mubr.bf16.gmra.mrb[160].mxu0 %v12520_v27  ;;  %v8149_v27 = vshrl.u32 %v13765_v61, 16  ;;  %v8133_v55 = vrot.slane %v8131_v24, 5  ;;  %v8221_v61 = vshrl.u32 %v13783_v32, 16  ;;  %v8192_v24 = vrot.slane %v8191_v13, 4 }
 0x554   : > { %7672 = vmatprep.mubr.bf16.mxu0 %v12523_v12  ;;  %v8134_v12 = vshll.u32 %v13762_v43, 16  ;;  %v8224_v43 = vshll.u32 %v13783_v32, 16 }
 0x555   : > { %v8151_v7 = vrot.slane %v8149_v27, 5  ;;  %v8196_v27 = vrot.slane %v8194_v28, 5  ;;  %v8223_v50 = vrot.slane %v8221_v61, 5 }
 0x556   : > { %v8136_v18 = vrot.slane %v8134_v12, 6  ;;  %v13782_v12 = vld [vmem:[#allocation2 + $0x44] ss:$8 sps:$4 sm:$0x33]  }
 0x557   : > { %v8155_v34 = vor.u32 %v8154_v62, %v8151_v7  ;;  %v13792_v7 = vld [vmem:[#allocation2 + $0x70] ss:$8 sps:$4 sm:$0xee]   ;;  %v8174_v62 = vrot.slane %v8173_v10, 4  ;;  %v8293_v10 = vshrl.u32 %v13801_v54, 16 }
 0x558   : > { %v8137_v1 = vor.u32 %v8136_v18, %v8133_v55  ;;  %v8212_v18 = vshrl.u32 %v13782_v12, 16 }
 0x559   : > { %v8156_v31 = vrot.slane %v8155_v34, 4  ;;  %v8257_v34 = vshrl.u32 %v13792_v7, 16 }
 0x55a   : > { %v8138_v48 = vrot.slane %v8137_v1, 4 }
 0x55b   : > { %7673 = vmatmul.mubr.bf16.gmra.mrb[164].mxu0 %v12522_v8  ;;  %v7227_v8 = vrot.slane %v13758_v36, 5  ;;  %v8259_v40 = vrot.slane %v8257_v34, 5 }
 0x55c   : > { %7682 = vmatprep.mubr.bf16.mxu0 %v12525_v57  ;;  %v12470_v57 = vrot.slane %v13753_v3, 9 }
 0x55d   : > { %v7228_v17 = vsel %vm14575_vm6, %v12471_v11, %v7227_v8  ;;  %v8230_v11 = vshrl.u32 %v13785_v23, 16  ;;  %v8233_v8 = vshll.u32 %v13785_v23, 16  ;;  %v8275_v23 = vshrl.u32 %v13798_v37, 16 }
 0x55e   : > { %v7224_v42 = vsel %vm14575_vm6, %v12470_v57, %v7223_v5 }
 0x55f   : > { %v12535_v26 = vcombine.high %v7224_v42, %v7228_v17  ;;  %v12534_v60 = vcombine.low %v7224_v42, %v7228_v17  ;;  %v8232_v9 = vrot.slane %v8230_v11, 5  ;;  %v8235_v17 = vrot.slane %v8233_v8, 6  ;;  %v13810_v8 = vld [vmem:[#allocation2 + $0xb0] ss:$8 sps:$4 sm:$0xee]  }
 0x560   : > { %v8332_v34 = vshll.u32 %v13810_v8, 16 }
 0x563   : > { %7683 = vmatmul.mubr.bf16.gmra.mrb[168].mxu0 %v12524_v56  ;;  %v8140_v56 = vshrl.u32 %v13764_v21, 16  ;;  %v13789_v21 = vld [vmem:[#allocation2 + $0x60] ss:$8 sps:$4 sm:$0xee]  }
 0x564   : > { %7692 = vmatprep.mubr.bf16.mxu0 %v12527_v44  ;;  %v13773_v44 = vld [vmem:[#allocation2 + $0x24] ss:$8 sps:$4 sm:$0x33]   ;;  %v8239_v52 = vshrl.u32 %v13789_v21, 16  ;;  %v8242_v42 = vshll.u32 %v13789_v21, 16 }
 0x565   : > { %v8176_v33 = vshrl.u32 %v13773_v44, 16  ;;  %v8179_v2 = vshll.u32 %v13773_v44, 16  ;;  %v8260_v44 = vshll.u32 %v13792_v7, 16  ;;  %v13807_v21 = vld [vmem:[#allocation2 + $0xa0] ss:$8 sps:$4 sm:$0xee]  }
 0x566   : > { %v8241_v28 = vrot.slane %v8239_v52, 5  ;;  %v8329_v52 = vshrl.u32 %v13810_v8, 16  ;;  %v13833_v8 = vld [vmem:[%s18947_s2 + $0x474] ss:$8 sps:$4 sm:$0xff]  }
 0x567   : > { %v8178_v15 = vrot.slane %v8176_v33, 5  ;;  %v8181_v36 = vrot.slane %v8179_v2, 6  ;;  %v8262_v33 = vrot.slane %v8260_v44, 6  ;;  %v13777_v2 = vld [vmem:[%s18947_s2 + $0x410] ss:$8 sps:$4 sm:$0xff]  }
 0x569   : > { %v8182_v57 = vor.u32 %v8181_v36, %v8178_v15  ;;  %v8278_v15 = vshll.u32 %v13798_v37, 16  ;;  %v8296_v36 = vshll.u32 %v13801_v54, 16  ;;  %v13819_v54 = vld [vmem:[#allocation2 + $0xd0] ss:$8 sps:$4 sm:$0xee]  }
 0x56b   : > { %7693 = vmatmul.mubr.bf16.gmra.mrb[172].mxu0 %v12526_v46  ;;  %v8163_v46 = vrot.slane %v8161_v63, 6  ;;  %v8215_v63 = vshll.u32 %v13782_v12, 16 }
 0x56c   : > { %7702 = vmatprep.mubr.bf16.mxu0 %v12529_v51  ;;  %v8142_v51 = vrot.slane %v8140_v56, 5  ;;  %v13791_v56 = vld [vmem:[#allocation2 + $0x64] ss:$8 sps:$4 sm:$0x33]  }
 0x56d   : > { %v8164_v58 = vor.u32 %v8163_v46, %v8160_v47  ;;  %v8214_v46 = vrot.slane %v8212_v18, 5  ;;  %v8248_v32 = vshrl.u32 %v13791_v56, 16 }
 0x56e   : > { %v8146_v49 = vor.u32 %v8145_v39, %v8142_v51  ;;  %v8236_v39 = vor.u32 %v8235_v17, %v8232_v9  ;;  %v13806_v9 = vld [vmem:[%s18947_s2 + $0x444] ss:$8 sps:$4 sm:$0xff]  }
 0x56f   : > { %v8165_v3 = vsel %vm18078_vm9, %v8156_v31, %v8164_v58  ;;  %v8251_v31 = vshll.u32 %v13791_v56, 16 }
 0x570   : > { %v8147_v6 = vsel %vm18078_vm9, %v8138_v48, %v8146_v49  ;;  %v8263_v49 = vor.u32 %v8262_v33, %v8259_v40  ;;  %v8331_v40 = vrot.slane %v8329_v52, 5  ;;  %v8334_v33 = vrot.slane %v8332_v34, 6 }
 0x571   : > { %v12665_v41 = vcombine.high %v8147_v6, %v8165_v3  ;;  %v12664_v1 = vcombine.low %v8147_v6, %v8165_v3  ;;  %v13800_v3 = vld [vmem:[#allocation2 + $0x84] ss:$8 sps:$4 sm:$0x33]   ;;  %v8253_v6 = vrot.slane %v8251_v31, 6 }
 0x572   : > { %v8264_v7 = vrot.slane %v8263_v49, 4  ;;  %v8287_v17 = vshll.u32 %v13800_v3, 16  ;;  %v13824_v49 = vld [vmem:[%s18947_s2 + $0x464] ss:$8 sps:$4 sm:$0xff]  }
 0x573   : > { %7703 = vmatmul.mubr.bf16.gmra.mrb[176].mxu0 %v12528_v35  ;;  %v8197_v35 = vshll.u32 %v13776_v19, 16  ;;  %v8183_v19 = vsel %vm18078_vm9, %v8174_v62, %v8182_v57  ;;  %v8280_v62 = vrot.slane %v8278_v15, 6  ;;  %v8298_v57 = vrot.slane %v8296_v36, 6 }
 0x574   : > { %7712 = vmatprep.mubr.bf16.mxu0 %v12531_v38  ;;  %v13780_v38 = vld [vmem:[#allocation2 + $0x40] ss:$8 sps:$4 sm:$0xee]   ;;  %v8289_v31 = vrot.slane %v8287_v17, 6  ;;  %v8365_v15 = vshrl.u32 %v13819_v54, 16 }
 0x575   : > { %v8199_v22 = vrot.slane %v8197_v35, 6  ;;  %v8206_v4 = vshll.u32 %v13780_v38, 16  ;;  %v8244_v35 = vrot.slane %v8242_v42, 6  ;;  %v13812_v42 = vld [vmem:[#allocation2 + $0xb4] ss:$8 sps:$4 sm:$0x33]  }
 0x577   : > { %v8200_v45 = vor.u32 %v8199_v22, %v8196_v27  ;;  %v8208_v55 = vrot.slane %v8206_v4, 6  ;;  %v13786_v27 = vld [vmem:[%s18947_s2 + $0x420] ss:$8 sps:$4 sm:$0xff]   ;;  %v8245_v22 = vor.u32 %v8244_v35, %v8241_v28 }
 0x579   : > { %v8201_v25 = vsel %vm18078_vm9, %v8192_v24, %v8200_v45  ;;  %v8295_v45 = vrot.slane %v8293_v10, 5  ;;  %v8368_v10 = vshll.u32 %v13819_v54, 16 }
 0x57a   : > { %v12667_v29 = vcombine.high %v8183_v19, %v8201_v25 }
 0x57b   : > { %7713 = vmatmul.mubr.bf16.gmra.mrb[180].mxu0 %v12530_v59  ;;  %v8203_v59 = vshrl.u32 %v13780_v38, 16  ;;  %v13788_v38 = vld [vmem:[%s18947_s2 + $0x424] ss:$8 sps:$4 sm:$0xff]  }
 0x57c   : > { %7722 = vmatprep.mubr.bf16.mxu0 %v12533_v53  ;;  %v8226_v53 = vrot.slane %v8224_v43, 6 }
 0x57d   : > { %v8205_v5 = vrot.slane %v8203_v59, 5  ;;  %v12666_v59 = vcombine.low %v8183_v19, %v8201_v25  ;;  %v8284_v25 = vshrl.u32 %v13800_v3, 16  ;;  %v8335_v3 = vor.u32 %v8334_v33, %v8331_v40  ;;  %v13830_v40 = vld [vmem:[#allocation2 + $0xf4] ss:$8 sps:$4 sm:$0x33]  }
 0x57e   : > { %v8227_v16 = vor.u32 %v8226_v53, %v8223_v50  ;;  %v13803_v50 = vld [vmem:[#allocation2 + $0x94] ss:$8 sps:$4 sm:$0x33]   ;;  %v8277_v53 = vrot.slane %v8275_v23, 5 }
 0x57f   : > { %v8209_v47 = vor.u32 %v8208_v55, %v8205_v5  ;;  %v8246_v5 = vrot.slane %v8245_v22, 4  ;;  %v13795_v55 = vld [vmem:[%s18947_s2 + $0x430] ss:$8 sps:$4 sm:$0xff]   ;;  %v8286_v37 = vrot.slane %v8284_v25, 5  ;;  %v13851_v33 = vld [vmem:[%s18947_s2 + $0x494] ss:$8 sps:$4 sm:$0xff]  }
 0x580   : > { %v8228_v51 = vrot.slane %v8227_v16, 4  ;;  %v8305_v16 = vshll.u32 %v13803_v50, 16 }
 0x581   : > { %v8210_v13 = vrot.slane %v8209_v47, 4  ;;  %v13804_v47 = vld [vmem:[%s18947_s2 + $0x440] ss:$8 sps:$4 sm:$0xff]  }
 0x582   : > { %v8237_v43 = vsel %vm18078_vm9, %v8228_v51, %v8236_v39  ;;  %v8314_v51 = vshll.u32 %v13807_v21, 16 }
 0x583   : > { %7723 = vmatmul.mubr.bf16.gmra.mrb[184].mxu0 %v12532_v20  ;;  %v13794_v20 = vld [vmem:[#allocation2 + $0x74] ss:$8 sps:$4 sm:$0x33]  }
 0x584   : > { %7732 = vmatprep.mubr.bf16.mxu0 %v12535_v26  ;;  %v8217_v26 = vrot.slane %v8215_v63, 6  ;;  %v8266_v48 = vshrl.u32 %v13794_v20, 16  ;;  %v8269_v58 = vshll.u32 %v13794_v20, 16  ;;  %v8302_v63 = vshrl.u32 %v13803_v50, 16 }
 0x585   : > { %v8299_v20 = vor.u32 %v8298_v57, %v8295_v45  ;;  %v13818_v45 = vld [vmem:[#allocation2 + $0xc4] ss:$8 sps:$4 sm:$0x33]   ;;  %v8367_v57 = vrot.slane %v8365_v15, 5  ;;  %v8410_v15 = vshrl.u32 %v13830_v40, 16 }
 0x586   : > { %v8218_v61 = vor.u32 %v8217_v26, %v8214_v46  ;;  %v8268_v24 = vrot.slane %v8266_v48, 5  ;;  %v8271_v12 = vrot.slane %v8269_v58, 6  ;;  %v13809_v46 = vld [vmem:[#allocation2 + $0xa4] ss:$8 sps:$4 sm:$0x33]   ;;  %v8307_v26 = vrot.slane %v8305_v16, 6 }
 0x587   : > { %v8300_v28 = vrot.slane %v8299_v20, 4  ;;  %v8338_v48 = vshrl.u32 %v13812_v42, 16  ;;  %v8341_v58 = vshll.u32 %v13812_v42, 16  ;;  %v8356_v20 = vshrl.u32 %v13818_v45, 16 }
 0x588   : > { %v8219_v4 = vsel %vm18078_vm9, %v8210_v13, %v8218_v61  ;;  %v8272_v18 = vor.u32 %v8271_v12, %v8268_v24  ;;  %v13813_v13 = vld [vmem:[%s18947_s2 + $0x450] ss:$8 sps:$4 sm:$0xff]   ;;  %v8316_v61 = vrot.slane %v8314_v51, 6  ;;  %v8359_v42 = vshll.u32 %v13818_v45, 16  ;;  %v13840_v51 = vld [vmem:[%s18947_s2 + $0x480] ss:$8 sps:$4 sm:$0xff]  }
 0x589   : > { %v12669_v11 = vcombine.high %v8219_v4, %v8237_v43  ;;  %v12668_v19 = vcombine.low %v8219_v4, %v8237_v43  ;;  %v8320_v43 = vshrl.u32 %v13809_v46, 16  ;;  %v8340_v24 = vrot.slane %v8338_v48, 5  ;;  %v13837_v48 = vld [vmem:[#allocation2 + $0x110] ss:$8 sps:$4 sm:$0xee]  }
 0x58a   : > { %v8273_v44 = vsel %vm18078_vm9, %v8264_v7, %v8272_v18  ;;  %v8343_v12 = vrot.slane %v8341_v58, 6  ;;  %v13828_v18 = vld [vmem:[#allocation2 + $0xf0] ss:$8 sps:$4 sm:$0xee]   ;;  %v8412_v45 = vrot.slane %v8410_v15, 5 }
 0x58b   : > { %7733 = vmatmul.mubr.bf16.gmra.mrb[188].mxu0 %v12534_v60  ;;  %v8250_v60 = vrot.slane %v8248_v32, 5  ;;  %v13815_v32 = vld [vmem:[%s18947_s2 + $0x454] ss:$8 sps:$4 sm:$0xff]  }
 0x58c   : > { %9059 = vmatprep.mubr.bf16.mxu0 %v12665_v41  ;;  %v13797_v41 = vld [vmem:[%s18947_s2 + $0x434] ss:$8 sps:$4 sm:$0xff]   ;;  %v8344_v25 = vor.u32 %v8343_v12, %v8340_v24 }
 0x58d   : > { %v8254_v56 = vor.u32 %v8253_v6, %v8250_v60  ;;  %v8323_v60 = vshll.u32 %v13809_v46, 16  ;;  %v13821_v6 = vld [vmem:[#allocation2 + $0xd4] ss:$8 sps:$4 sm:$0x33]   ;;  %v8404_v46 = vshll.u32 %v13828_v18, 16 }
 0x58e   : > { %v8377_v34 = vshll.u32 %v13821_v6, 16 }
 0x593   : > { %9060 = vmatmul.mubr.bf16.vlgmr.msra.gmra.mrb[128].mxu0 %v12664_v1  ;;  %v8311_v1 = vshrl.u32 %v13807_v21, 16  ;;  %v8325_v21 = vrot.slane %v8323_v60, 6  ;;  %v13849_v60 = vld [vmem:[%s18947_s2 + $0x490] ss:$8 sps:$4 sm:$0xff]  }
 0x594   : > { %10057 = vmatpush1.bf16.msra.mxu0 %v13768_v14  ;;  %9069 = vmatprep.mubr.bf16.mxu0 %v12667_v29  ;;  %v8281_v14 = vor.u32 %v8280_v62, %v8277_v53  ;;  %v8304_v29 = vrot.slane %v8302_v63, 5  ;;  %v8336_v62 = vrot.slane %v8335_v3, 4 }
 0x595   : > { %10058 = vmatprep.subr.bf16.mxu0 %v13779_v0  ;;  %v8255_v0 = vsel %vm18078_vm9, %v8246_v5, %v8254_v56  ;;  %v8313_v35 = vrot.slane %v8311_v1, 5  ;;  %v8370_v5 = vrot.slane %v8368_v10, 6  ;;  %v13831_v56 = vld [vmem:[%s18947_s2 + $0x470] ss:$8 sps:$4 sm:$0xff]   ;;  %v8413_v10 = vshll.u32 %v13830_v40, 16 }
 0x596   : > { %v12671_v39 = vcombine.high %v8255_v0, %v8273_v44  ;;  %v8308_v23 = vor.u32 %v8307_v26, %v8304_v29  ;;  %v12670_v36 = vcombine.low %v8255_v0, %v8273_v44  ;;  %v13842_v44 = vld [vmem:[%s18947_s2 + $0x484] ss:$8 sps:$4 sm:$0xff]  }
 0x597   : > { %v8317_v53 = vor.u32 %v8316_v61, %v8313_v35  ;;  %v8371_v1 = vor.u32 %v8370_v5, %v8367_v57  ;;  %v13827_v26 = vld [vmem:[#allocation2 + $0xe4] ss:$8 sps:$4 sm:$0x33]   ;;  %v8415_v57 = vrot.slane %v8413_v10, 6  ;;  %v13869_v5 = vld [vmem:[%s18947_s2 + $0x4b4] ss:$8 sps:$4 sm:$0xff]  }
 0x598   : > { %10059 = vmatpush1.bf16.msra.mxu0 %v13777_v2  ;;  %v8282_v2 = vrot.slane %v8281_v14, 4  ;;  %v8309_v22 = vsel %vm18078_vm9, %v8300_v28, %v8308_v23  ;;  %v18152_v14 = vsel %vm18078_vm9, %v8336_v62, %v8344_v25  ;;  %v8361_v28 = vrot.slane %v8359_v42, 6  ;;  %v13885_v10 = vld [vmem:[%s18947_s2 + $0x4d0] ss:$8 sps:$4 sm:$0xff]  }
 0x599   : > { %10060 = vmatprep.subr.bf16.mxu0 %v13788_v38  ;;  %v13816_v38 = vld [vmem:[#allocation2 + $0xc0] ss:$8 sps:$4 sm:$0xee]   ;;  %v8318_v17 = vrot.slane %v8317_v53, 4  ;;  %v8372_v35 = vrot.slane %v8371_v1, 4  ;;  %v8406_v23 = vrot.slane %v8404_v46, 6  ;;  %v8416_v42 = vor.u32 %v8415_v57, %v8412_v45 }
 0x59a   : > { %v8350_v4 = vshll.u32 %v13816_v38, 16  ;;  %v8392_v3 = vshrl.u32 %v13827_v26, 16  ;;  %v13894_v45 = vld [vmem:[%s18947_s2 + $0x4e0] ss:$8 sps:$4 sm:$0xff]  }
 0x59b   : > { %9070 = vmatmul.mubr.bf16.gmra.mrb[132].mxu0 %v12666_v59  ;;  %v8347_v59 = vshrl.u32 %v13816_v38, 16 }
 0x59c   : > { %9079 = vmatprep.mubr.bf16.mxu0 %v12669_v11  ;;  %10061 = vmatpush1.bf16.msra.mxu0 %v13786_v27  ;;  %v8290_v27 = vor.u32 %v8289_v31, %v8286_v37  ;;  %v8322_v11 = vrot.slane %v8320_v43, 5  ;;  %v8352_v16 = vrot.slane %v8350_v4, 6  ;;  %v8379_v31 = vrot.slane %v8377_v34, 6  ;;  %v13834_v43 = vld [vmem:[#allocation2 + $0x100] ss:$8 sps:$4 sm:$0xee]  }
 0x59d   : > { %10062 = vmatprep.subr.bf16.mxu0 %v13797_v41  ;;  %v13822_v41 = vld [vmem:[%s18947_s2 + $0x460] ss:$8 sps:$4 sm:$0xff]   ;;  %v8349_v63 = vrot.slane %v8347_v59, 5  ;;  %v8394_v62 = vrot.slane %v8392_v3, 5 }
 0x59e   : > { %v8291_v50 = vsel %vm18078_vm9, %v8282_v2, %v8290_v27  ;;  %v8326_v52 = vor.u32 %v8325_v21, %v8322_v11  ;;  %v8358_v2 = vrot.slane %v8356_v20, 5  ;;  %v8395_v27 = vshll.u32 %v13827_v26, 16  ;;  %v13867_v20 = vld [vmem:[%s18947_s2 + $0x4b0] ss:$8 sps:$4 sm:$0xff]  }
 0x59f   : > { %v12673_v7 = vcombine.high %v8291_v50, %v8309_v22  ;;  %v8353_v37 = vor.u32 %v8352_v16, %v8349_v63  ;;  %v8419_v11 = vshrl.u32 %v13834_v43, 16  ;;  %v8422_v21 = vshll.u32 %v13834_v43, 16  ;;  %v13846_v16 = vld [vmem:[#allocation2 + $0x130] ss:$8 sps:$4 sm:$0xee]  }
 0x5a0   : > { %10063 = vmatpush1.bf16.msra.mxu0 %v13795_v55  ;;  %v13825_v55 = vld [vmem:[#allocation2 + $0xe0] ss:$8 sps:$4 sm:$0xee]   ;;  %v8362_v24 = vor.u32 %v8361_v28, %v8358_v2 }
 0x5a1   : > { %10064 = vmatprep.subr.bf16.mxu0 %v13806_v9  ;;  %v8374_v9 = vshrl.u32 %v13821_v6, 16  ;;  %v8386_v0 = vshll.u32 %v13825_v55, 16  ;;  %v8354_v61 = vrot.slane %v8353_v37, 4  ;;  %v8440_v6 = vshll.u32 %v13837_v48, 16 }
 0x5a2   : > { %v8424_v34 = vrot.slane %v8422_v21, 6  ;;  %v8473_v37 = vshrl.u32 %v13846_v16, 16 }
 0x5a3   : > { %9080 = vmatmul.mubr.bf16.gmra.mrb[136].mxu0 %v12668_v19  ;;  %v8383_v19 = vshrl.u32 %v13825_v55, 16  ;;  %v8376_v29 = vrot.slane %v8374_v9, 5  ;;  %v8442_v63 = vrot.slane %v8440_v6, 6 }
 0x5a4   : > { %9089 = vmatprep.mubr.bf16.mxu0 %v12671_v39  ;;  %10065 = vmatpush1.bf16.msra.mxu0 %v13804_v47  ;;  %v8401_v47 = vshrl.u32 %v13828_v18, 16  ;;  %v8327_v39 = vsel %vm18078_vm9, %v8318_v17, %v8326_v52  ;;  %v8397_v18 = vrot.slane %v8395_v27, 6  ;;  %v8421_v52 = vrot.slane %v8419_v11, 5 }
 0x5a5   : > { %10066 = vmatprep.subr.bf16.mxu0 %v13815_v32  ;;  %v12672_v32 = vcombine.low %v8291_v50, %v8309_v22  ;;  %v12675_v54 = vcombine.high %v8327_v39, %v18152_v14  ;;  %v8385_v58 = vrot.slane %v8383_v19, 5  ;;  %v8437_v22 = vshrl.u32 %v13837_v48, 16  ;;  %v13839_v50 = vld [vmem:[#allocation2 + $0x114] ss:$8 sps:$4 sm:$0x33]  }
 0x5a6   : > { %v8403_v38 = vrot.slane %v8401_v47, 5  ;;  %v12674_v53 = vcombine.low %v8327_v39, %v18152_v14  ;;  %v8446_v17 = vshrl.u32 %v13839_v50, 16  ;;  %v8449_v14 = vshll.u32 %v13839_v50, 16  ;;  %v13843_v19 = vld [vmem:[#allocation2 + $0x120] ss:$8 sps:$4 sm:$0xee]  }
 0x5a7   : > { %v8439_v25 = vrot.slane %v8437_v22, 5  ;;  %v8398_v47 = vor.u32 %v8397_v18, %v8394_v62  ;;  %v8458_v48 = vshll.u32 %v13843_v19, 16 }
 0x5a8   : > { %10067 = vmatpush1.bf16.msra.mxu0 %v13813_v13  ;;  %v8388_v13 = vrot.slane %v8386_v0, 6  ;;  %v8407_v4 = vor.u32 %v8406_v23, %v8403_v38  ;;  %v13878_v0 = vld [vmem:[%s18947_s2 + $0x4c4] ss:$8 sps:$4 sm:$0xff]   ;;  %v8451_v40 = vrot.slane %v8449_v14, 6 }
 0x5a9   : > { %10068 = vmatprep.subr.bf16.mxu0 %v13824_v49  ;;  %v8380_v49 = vor.u32 %v8379_v31, %v8376_v29  ;;  %v8443_v46 = vor.u32 %v8442_v63, %v8439_v25  ;;  %v8476_v29 = vshll.u32 %v13846_v16, 16  ;;  %v8425_v31 = vor.u32 %v8424_v34, %v8421_v52  ;;  %v13845_v23 = vld [vmem:[#allocation2 + $0x124] ss:$8 sps:$4 sm:$0x33]   ;;  %v13905_v25 = vld [vmem:[%s18947_s2 + $0x4f4] ss:$8 sps:$4 sm:$0xff]  }
 0x5aa   : > { %v8389_v59 = vor.u32 %v8388_v13, %v8385_v58  ;;  %v13887_v58 = vld [vmem:[%s18947_s2 + $0x4d4] ss:$8 sps:$4 sm:$0xff]   ;;  %v8460_v27 = vrot.slane %v8458_v48, 6 }
 0x5ab   : > { %9090 = vmatmul.mubr.bf16.gmra.mrb[140].mxu0 %v12670_v36  ;;  %v13860_v36 = vld [vmem:[%s18947_s2 + $0x4a4] ss:$8 sps:$4 sm:$0xff]   ;;  %v8381_v12 = vsel %vm18078_vm9, %v8372_v35, %v8380_v49  ;;  %v8455_v35 = vshrl.u32 %v13843_v19, 16  ;;  %v8444_v38 = vrot.slane %v8443_v46, 4  ;;  %v8478_v43 = vrot.slane %v8476_v29, 6 }
 0x5ac   : > { %9099 = vmatprep.mubr.bf16.mxu0 %v12673_v7  ;;  %10069 = vmatpush1.bf16.msra.mxu0 %v13822_v41  ;;  %v13836_v41 = vld [vmem:[#allocation2 + $0x104] ss:$8 sps:$4 sm:$0x33]   ;;  %v8363_v7 = vsel %vm18078_vm9, %v8354_v61, %v8362_v24  ;;  %v8390_v9 = vrot.slane %v8389_v59, 4  ;;  %v8475_v61 = vrot.slane %v8473_v37, 5  ;;  %v8426_v3 = vrot.slane %v8425_v31, 4 }
 0x5ad   : > { %10070 = vmatprep.subr.bf16.mxu0 %v13833_v8  ;;  %v13858_v8 = vld [vmem:[%s18947_s2 + $0x4a0] ss:$8 sps:$4 sm:$0xff]   ;;  %v12677_v55 = vcombine.high %v8363_v7, %v8381_v12  ;;  %v8431_v1 = vshll.u32 %v13836_v41, 16  ;;  %v13855_v49 = vld [vmem:[#allocation2 + $0x150] ss:$8 sps:$4 sm:$0xee]  }
 0x5ae   : > { %v8399_v39 = vsel %vm18078_vm9, %v8390_v9, %v8398_v47  ;;  %v13896_v24 = vld [vmem:[%s18947_s2 + $0x4e4] ss:$8 sps:$4 sm:$0xff]   ;;  %v8479_v50 = vor.u32 %v8478_v43, %v8475_v61  ;;  %v8509_v11 = vshrl.u32 %v13855_v49, 16  ;;  %v8512_v21 = vshll.u32 %v13855_v49, 16  ;;  %v13903_v19 = vld [vmem:[%s18947_s2 + $0x4f0] ss:$8 sps:$4 sm:$0xff]  }
 0x5af   : > { %v8433_v28 = vrot.slane %v8431_v1, 6  ;;  %v13861_v46 = vld [vmem:[#allocation2 + $0x160] ss:$8 sps:$4 sm:$0xee]  }
 0x5b0   : > { %10071 = vmatpush1.bf16.msra.mxu0 %v13831_v56  ;;  %v8408_v56 = vrot.slane %v8407_v4, 4  ;;  %v8464_v4 = vshrl.u32 %v13845_v23, 16  ;;  %v8511_v52 = vrot.slane %v8509_v11, 5  ;;  %v8514_v34 = vrot.slane %v8512_v21, 6 }
 0x5b1   : > { %10072 = vmatprep.subr.bf16.mxu0 %v13842_v44  ;;  %v8428_v44 = vshrl.u32 %v13836_v41, 16  ;;  %v8467_v41 = vshll.u32 %v13845_v23, 16  ;;  %v8527_v48 = vshrl.u32 %v13861_v46, 16  ;;  %v13863_v61 = vld [vmem:[#allocation2 + $0x164] ss:$8 sps:$4 sm:$0x33]  }
 0x5b2   : > { %v8417_v26 = vsel %vm18078_vm9, %v8408_v56, %v8416_v42  ;;  %v8466_v16 = vrot.slane %v8464_v4, 5  ;;  %v13854_v56 = vld [vmem:[#allocation2 + $0x144] ss:$8 sps:$4 sm:$0x33]   ;;  %v8539_v4 = vshll.u32 %v13863_v61, 16 }
 0x5b3   : > { %9100 = vmatmul.mubr.bf16.gmra.mrb[144].mxu0 %v12672_v32  ;;  %v12676_v32 = vcombine.low %v8363_v7, %v8381_v12  ;;  %v8430_v2 = vrot.slane %v8428_v44, 5  ;;  %v12679_v13 = vcombine.high %v8399_v39, %v8417_v26  ;;  %v13857_v7 = vld [vmem:[#allocation2 + $0x154] ss:$8 sps:$4 sm:$0x33]   ;;  %v8469_v9 = vrot.slane %v8467_v41, 6 }
 0x5b4   : > { %9109 = vmatprep.mubr.bf16.mxu0 %v12675_v54  ;;  %10073 = vmatpush1.bf16.msra.mxu0 %v13840_v51  ;;  %v8448_v51 = vrot.slane %v8446_v17, 5  ;;  %v13876_v54 = vld [vmem:[%s18947_s2 + $0x4c0] ss:$8 sps:$4 sm:$0xff]   ;;  %v8480_v17 = vrot.slane %v8479_v50, 4  ;;  %v8518_v42 = vshrl.u32 %v13857_v7, 16  ;;  %v8521_v1 = vshll.u32 %v13857_v7, 16 }
 0x5b5   : > { %10074 = vmatprep.subr.bf16.mxu0 %v13851_v33  ;;  %v13848_v33 = vld [vmem:[#allocation2 + $0x134] ss:$8 sps:$4 sm:$0x33]   ;;  %v8434_v12 = vor.u32 %v8433_v28, %v8430_v2  ;;  %v13864_v44 = vld [vmem:[#allocation2 + $0x170] ss:$8 sps:$4 sm:$0xee]   ;;  %v8470_v37 = vor.u32 %v8469_v9, %v8466_v16 }
 0x5b6   : > { %v8452_v15 = vor.u32 %v8451_v40, %v8448_v51  ;;  %v8482_v22 = vshrl.u32 %v13848_v33, 16  ;;  %v8485_v6 = vshll.u32 %v13848_v33, 16  ;;  %v8500_v29 = vshrl.u32 %v13854_v56, 16  ;;  %v13872_v16 = vld [vmem:[#allocation2 + $0x184] ss:$8 sps:$4 sm:$0x33]  }
 0x5b7   : > { %v8435_v57 = vsel %vm18078_vm9, %v8426_v3, %v8434_v12  ;;  %v8548_v31 = vshll.u32 %v13864_v44, 16  ;;  %v8520_v33 = vrot.slane %v8518_v42, 5  ;;  %v13873_v3 = vld [vmem:[#allocation2 + $0x190] ss:$8 sps:$4 sm:$0xee]   ;;  %v13972_v42 = vld [vmem:[%s18948_s3 + $0x40] sm:$0xff]  }
 0x5b8   : > { %10075 = vmatpush1.bf16.msra.mxu0 %v13849_v60  ;;  %v13852_v60 = vld [vmem:[#allocation2 + $0x140] ss:$8 sps:$4 sm:$0xee]   ;;  %v8453_v59 = vsel %vm18078_vm9, %v8444_v38, %v8452_v15  ;;  %v8487_v18 = vrot.slane %v8485_v6, 6  ;;  %v8502_v38 = vrot.slane %v8500_v29, 5  ;;  %v8584_v11 = vshll.u32 %v13873_v3, 16  ;;  %12962 = vmatprep.subr.bf16.mxu1 %v13972_v42 }
 0x5b9   : > { %10076 = vmatprep.subr.bf16.mxu0 %v13860_v36  ;;  %v8457_v36 = vrot.slane %v8455_v35, 5  ;;  %v8494_v62 = vshll.u32 %v13852_v60, 16  ;;  %v12681_v63 = vcombine.high %v8435_v57, %v8453_v59  ;;  %v12680_v2 = vcombine.low %v8435_v57, %v8453_v59  ;;  %v13866_v35 = vld [vmem:[#allocation2 + $0x174] ss:$8 sps:$4 sm:$0x33]  }
 0x5ba   : > { %v8550_v49 = vrot.slane %v8548_v31, 6  ;;  %v8554_v6 = vshrl.u32 %v13866_v35, 16  ;;  %v8536_v59 = vshrl.u32 %v13863_v61, 16  ;;  %v8575_v29 = vshll.u32 %v13872_v16, 16 }
 0x5bb   : > { %9110 = vmatmul.mubr.bf16.gmra.mrb[148].mxu0 %v12674_v53  ;;  %v8491_v53 = vshrl.u32 %v13852_v60, 16 }
 0x5bc   : > { %9119 = vmatprep.mubr.bf16.mxu0 %v12677_v55  ;;  %10077 = vmatpush1.bf16.msra.mxu0 %v13858_v8  ;;  %v12678_v8 = vcombine.low %v8399_v39, %v8417_v26  ;;  %v8484_v55 = vrot.slane %v8482_v22, 5  ;;  %v8503_v26 = vshll.u32 %v13854_v56, 16  ;;  %v8545_v39 = vshrl.u32 %v13864_v44, 16 }
 0x5bd   : > { %10078 = vmatprep.subr.bf16.mxu0 %v13869_v5  ;;  %v8461_v5 = vor.u32 %v8460_v27, %v8457_v36  ;;  %v8493_v14 = vrot.slane %v8491_v53, 5  ;;  %v13870_v36 = vld [vmem:[#allocation2 + $0x180] ss:$8 sps:$4 sm:$0xee]   ;;  %v8529_v27 = vrot.slane %v8527_v48, 5  ;;  %v8581_v53 = vshrl.u32 %v13873_v3, 16 }
 0x5be   : > { %v8488_v47 = vor.u32 %v8487_v18, %v8484_v55  ;;  %v8505_v23 = vrot.slane %v8503_v26, 6  ;;  %v8547_v60 = vrot.slane %v8545_v39, 5  ;;  %v8563_v7 = vshrl.u32 %v13870_v36, 16 }
 0x5bf   : > { %v8583_v56 = vrot.slane %v8581_v53, 5 }
 0x5c0   : > { %10079 = vmatpush1.bf16.msra.mxu0 %v13867_v20  ;;  %v8496_v20 = vrot.slane %v8494_v62, 6  ;;  %v8489_v51 = vsel %vm18078_vm9, %v8480_v17, %v8488_v47  ;;  %v8506_v12 = vor.u32 %v8505_v23, %v8502_v38  ;;  %v8551_v50 = vor.u32 %v8550_v49, %v8547_v60  ;;  %v13879_v47 = vld [vmem:[#allocation2 + $0x1a0] ss:$8 sps:$4 sm:$0xee]  }
 0x5c1   : > { %10080 = vmatprep.subr.bf16.mxu0 %v13878_v0  ;;  %v8462_v0 = vrot.slane %v8461_v5, 4  ;;  %v8566_v62 = vshll.u32 %v13870_v36, 16  ;;  %v8556_v5 = vrot.slane %v8554_v6, 5  ;;  %v8586_v17 = vrot.slane %v8584_v11, 6 }
 0x5c2   : > { %v8497_v40 = vor.u32 %v8496_v20, %v8493_v14  ;;  %v8552_v9 = vrot.slane %v8551_v50, 4  ;;  %v8602_v48 = vshll.u32 %v13879_v47, 16  ;;  %v8577_v38 = vrot.slane %v8575_v29, 6  ;;  %v13881_v23 = vld [vmem:[#allocation2 + $0x1a4] ss:$8 sps:$4 sm:$0x33]  }
 0x5c3   : > { %9120 = vmatmul.mubr.bf16.gmra.mrb[152].mxu0 %v12676_v32  ;;  %v8515_v32 = vor.u32 %v8514_v34, %v8511_v52  ;;  %v8471_v28 = vsel %vm18078_vm9, %v8462_v0, %v8470_v37  ;;  %v13882_v52 = vld [vmem:[#allocation2 + $0x1b0] ss:$8 sps:$4 sm:$0xee]   ;;  %v8565_v34 = vrot.slane %v8563_v7, 5  ;;  %v8568_v44 = vrot.slane %v8566_v62, 6 }
 0x5c4   : > { %9129 = vmatprep.mubr.bf16.mxu0 %v12679_v13  ;;  %10081 = vmatpush1.bf16.msra.mxu0 %v13876_v54  ;;  %v8523_v54 = vrot.slane %v8521_v1, 6  ;;  %v12683_v13 = vcombine.high %v8471_v28, %v8489_v51  ;;  %v8498_v15 = vrot.slane %v8497_v40, 4  ;;  %v12682_v21 = vcombine.low %v8471_v28, %v8489_v51  ;;  %v13973_v1 = vld [vmem:[%s18948_s3] sm:$0xff]   ;;  %v13884_v28 = vld [vmem:[#allocation2 + $0x1b4] ss:$8 sps:$4 sm:$0x33]  }
 0x5c5   : > { %10082 = vmatprep.subr.bf16.mxu0 %v13887_v58  ;;  %v8530_v58 = vshll.u32 %v13861_v46, 16  ;;  %v8516_v43 = vrot.slane %v8515_v32, 4  ;;  %v8572_v37 = vshrl.u32 %v13872_v16, 16  ;;  %v8587_v51 = vor.u32 %v8586_v17, %v8583_v56  ;;  %12963 = vmatpush3.bf16.msra.mxu1 %v13973_v1  ;;  %v13891_v49 = vld [vmem:[#allocation2 + $0x1d0] ss:$8 sps:$4 sm:$0xee]  }
 0x5c6   : > { %v8617_v32 = vshrl.u32 %v13882_v52, 16  ;;  %v8620_v39 = vshll.u32 %v13882_v52, 16  ;;  %v8569_v31 = vor.u32 %v8568_v44, %v8565_v34  ;;  %v8629_v6 = vshll.u32 %v13884_v28, 16  ;;  %v13900_v17 = vld [vmem:[#allocation2 + $0x1f0] ss:$8 sps:$4 sm:$0xee]  }
 0x5c7   : > { %v8532_v22 = vrot.slane %v8530_v58, 6  ;;  %v8588_v61 = vrot.slane %v8587_v51, 4  ;;  %v8653_v50 = vshrl.u32 %v13891_v49, 16  ;;  %v8656_v53 = vshll.u32 %v13891_v49, 16 }
 0x5c8   : > { %10083 = vmatpush1.bf16.msra.mxu0 %v13885_v10  ;;  %v8524_v10 = vor.u32 %v8523_v54, %v8520_v33  ;;  %v8622_v60 = vrot.slane %v8620_v39, 6  ;;  %v8570_v3 = vrot.slane %v8569_v31, 4  ;;  %v13897_v1 = vld [vmem:[#allocation2 + $0x1e0] ss:$8 sps:$4 sm:$0xee]   ;;  %v8689_v29 = vshrl.u32 %v13900_v17, 16 }
 0x5c9   : > { %10084 = vmatprep.subr.bf16.mxu0 %v13896_v24  ;;  %v8557_v24 = vshll.u32 %v13866_v35, 16  ;;  %v8533_v57 = vor.u32 %v8532_v22, %v8529_v27  ;;  %v8599_v35 = vshrl.u32 %v13879_v47, 16  ;;  %v8604_v27 = vrot.slane %v8602_v48, 6 }
 0x5ca   : > { %v8525_v41 = vsel %vm18078_vm9, %v8516_v43, %v8524_v10  ;;  %v8619_v43 = vrot.slane %v8617_v32, 5  ;;  %v13888_v10 = vld [vmem:[#allocation2 + $0x1c0] ss:$8 sps:$4 sm:$0xee]   ;;  %v8626_v22 = vshrl.u32 %v13884_v28, 16  ;;  %v8658_v56 = vrot.slane %v8656_v53, 6 }
 0x5cb   : > { %9130 = vmatmul.mubr.bf16.gmra.mrb[156].mxu0 %v12678_v8  ;;  %v13875_v8 = vld [vmem:[#allocation2 + $0x194] ss:$8 sps:$4 sm:$0x33]   ;;  %v8559_v55 = vrot.slane %v8557_v24, 6  ;;  %v8601_v36 = vrot.slane %v8599_v35, 5  ;;  %v8638_v7 = vshll.u32 %v13888_v10, 16 }
 0x5cc   : > { %9139 = vmatprep.mubr.bf16.mxu0 %v12681_v63  ;;  %10085 = vmatpush1.bf16.msra.mxu0 %v13894_v45  ;;  %v8507_v45 = vsel %vm18078_vm9, %v8498_v15, %v8506_v12  ;;  %v8541_v63 = vrot.slane %v8539_v4, 6  ;;  %v8590_v14 = vshrl.u32 %v13875_v8, 16  ;;  %v8593_v20 = vshll.u32 %v13875_v8, 16 }
 0x5cd   : > { %10086 = vmatprep.subr.bf16.mxu0 %v13905_v25  ;;  %v12685_v18 = vcombine.high %v8507_v45, %v8525_v41  ;;  %v8538_v25 = vrot.slane %v8536_v59, 5  ;;  %v8560_v0 = vor.u32 %v8559_v55, %v8556_v5  ;;  %v12684_v54 = vcombine.low %v8507_v45, %v8525_v41 }
 0x5ce   : > { %v8592_v40 = vrot.slane %v8590_v14, 5  ;;  %v8595_v33 = vrot.slane %v8593_v20, 6  ;;  %v8608_v12 = vshrl.u32 %v13881_v23, 16  ;;  %v8611_v59 = vshll.u32 %v13881_v23, 16 }
 0x5cf   : > { %v8542_v46 = vor.u32 %v8541_v63, %v8538_v25  ;;  %v8561_v26 = vsel %vm18078_vm9, %v8552_v9, %v8560_v0  ;;  %v8623_v41 = vor.u32 %v8622_v60, %v8619_v43  ;;  %v8635_v8 = vshrl.u32 %v13888_v10, 16  ;;  %v13890_v63 = vld [vmem:[#allocation2 + $0x1c4] ss:$8 sps:$4 sm:$0x33]  }
 0x5d0   : > { %10087 = vmatpush1.bf16.msra.mxu0 %v13903_v19  ;;  %v8534_v19 = vrot.slane %v8533_v57, 4  ;;  %v8596_v15 = vor.u32 %v8595_v33, %v8592_v40  ;;  %v8605_v45 = vor.u32 %v8604_v27, %v8601_v36  ;;  %v8628_v57 = vrot.slane %v8626_v22, 5  ;;  %v13902_v33 = vld [vmem:[#allocation2 + $0x1f4] ss:$8 sps:$4 sm:$0x33]  }
 0x5d1   : > { %v8631_v5 = vrot.slane %v8629_v6, 6  ;;  %v8613_v25 = vrot.slane %v8611_v59, 6  ;;  %v8624_v16 = vrot.slane %v8623_v41, 4  ;;  %v8655_v9 = vrot.slane %v8653_v50, 5 }
 0x5d2   : > { %v8597_v4 = vsel %vm18078_vm9, %v8588_v61, %v8596_v15  ;;  %v8637_v52 = vrot.slane %v8635_v8, 5  ;;  %v8640_v34 = vrot.slane %v8638_v7, 6  ;;  %v8606_v20 = vrot.slane %v8605_v45, 4  ;;  %v13998_v8 = vld [vmem:[%s18948_s3 + $0x48] sm:$0xff]  }
 0x5d3   : > { %9140 = vmatmul.mubr.bf16.gmra.mrb[160].mxu0 %v12680_v2  ;;  %v8543_v2 = vsel %vm18078_vm9, %v8534_v19, %v8542_v46  ;;  %v8632_v42 = vor.u32 %v8631_v5, %v8628_v57  ;;  %v8644_v0 = vshrl.u32 %v13890_v63, 16  ;;  %v8647_v47 = vshll.u32 %v13890_v63, 16  ;;  %v13999_v7 = vld [vmem:[%s18948_s3 + $0x8] sm:$0xff]   ;;  %12964 = vmatprep.subr.bf16.mxu1 %v13998_v8 }
 0x5d4   : > { %9149 = vmatprep.mubr.bf16.mxu0 %v12683_v13  ;;  %v12687_v58 = vcombine.high %v8543_v2, %v8561_v26  ;;  %v8574_v13 = vrot.slane %v8572_v37, 5  ;;  %v12686_v11 = vcombine.low %v8543_v2, %v8561_v26  ;;  %v8659_v37 = vor.u32 %v8658_v56, %v8655_v9  ;;  %12965 = vmatpush3.bf16.msra.mxu1 %v13999_v7  ;;  %v13908_v9 = vld [vmem:[#allocation2 + $0x4] ss:$8 sps:$4 sm:$0x33]  }
 0x5d5   : > { %v8633_v46 = vsel %vm18078_vm9, %v8624_v16, %v8632_v42  ;;  %v8692_v26 = vshll.u32 %v13900_v17, 16  ;;  %v8641_v51 = vor.u32 %v8640_v34, %v8637_v52  ;;  %v8674_v2 = vshll.u32 %v13897_v1, 16  ;;  %v13906_v16 = vld [vmem:[#allocation2] ss:$8 sps:$4 sm:$0xcc]  }
 0x5d6   : > { %v8578_v24 = vor.u32 %v8577_v38, %v8574_v13  ;;  %v8646_v35 = vrot.slane %v8644_v0, 5  ;;  %v8649_v48 = vrot.slane %v8647_v47, 6  ;;  %v13899_v13 = vld [vmem:[#allocation2 + $0x1e4] ss:$8 sps:$4 sm:$0x33]   ;;  %v8691_v38 = vrot.slane %v8689_v29, 5 }
 0x5d7   : > { %v8694_v23 = vrot.slane %v8692_v26, 6  ;;  %v8642_v61 = vrot.slane %v8641_v51, 4  ;;  %v8676_v49 = vrot.slane %v8674_v2, 6  ;;  %v8701_v15 = vshll.u32 %v13902_v33, 16  ;;  %v14006_v26 = vld [vmem:[%s18948_s3 + $0x50] sm:$0xff]  }
 0x5d8   : > { %v8579_v62 = vsel %vm18078_vm9, %v8570_v3, %v8578_v24  ;;  %v8698_v3 = vshrl.u32 %v13902_v33, 16  ;;  %v8650_v10 = vor.u32 %v8649_v48, %v8646_v35  ;;  %v8680_v27 = vshrl.u32 %v13899_v13, 16  ;;  %v13917_v42 = vld [vmem:[#allocation2 + $0x34] ss:$8 sps:$4 sm:$0x33]   ;;  %12966 = vmatprep.subr.bf16.mxu1 %v14006_v26 }
 0x5d9   : > { %v12689_v55 = vcombine.high %v8579_v62, %v8597_v4  ;;  %v12688_v31 = vcombine.low %v8579_v62, %v8597_v4  ;;  %v8683_v22 = vshll.u32 %v13899_v13, 16  ;;  %v8695_v6 = vor.u32 %v8694_v23, %v8691_v38  ;;  %v13912_v0 = vld [vmem:[#allocation2 + $0x20] ss:$8 sps:$4 sm:$0xcc]   ;;  %v14007_v51 = vld [vmem:[%s18948_s3 + $0x10] sm:$0xff]   ;;  %v14009_v33 = vld [vmem:[%s18948_s3 + $0x18] sm:$0xff]  }
 0x5da   : > { %v8700_v4 = vrot.slane %v8698_v3, 5  ;;  %v8703_v41 = vrot.slane %v8701_v15, 6  ;;  %v8682_v53 = vrot.slane %v8680_v27, 5  ;;  %v12792_v34 = vrot.slane %v13906_v16, 10  ;;  %12967 = vmatpush3.bf16.msra.mxu1 %v14007_v51  ;;  %v14011_v23 = vld [vmem:[%s18948_s3 + $0x20] sm:$0xff]  }
 0x5db   : > { %9150 = vmatmul.mubr.bf16.gmra.mrb[164].mxu0 %v12682_v21  ;;  %v13893_v21 = vld [vmem:[#allocation2 + $0x1d4] ss:$8 sps:$4 sm:$0x33]   ;;  %v13914_v47 = vld [vmem:[#allocation2 + $0x24] ss:$8 sps:$4 sm:$0x33]  }
 0x5dc   : > { %9159 = vmatprep.mubr.bf16.mxu0 %v12685_v18  ;;  %v8610_v18 = vrot.slane %v8608_v12, 5  ;;  %v8662_v44 = vshrl.u32 %v13893_v21, 16  ;;  %v8665_v14 = vshll.u32 %v13893_v21, 16  ;;  %v8651_v12 = vsel %vm18078_vm9, %v8642_v61, %v8650_v10  ;;  %v13923_v2 = vld [vmem:[#allocation2 + $0x54] ss:$8 sps:$4 sm:$0x33]  }
 0x5dd   : > { %v8696_v21 = vrot.slane %v8695_v6, 4  ;;  %v8704_v45 = vor.u32 %v8703_v41, %v8700_v4  ;;  %v9621_v29 = vrot.slane %v13917_v42, 6  ;;  %v13920_v13 = vld [vmem:[#allocation2 + $0x44] ss:$8 sps:$4 sm:$0x33]  }
 0x5de   : > { %v8614_v19 = vor.u32 %v8613_v25, %v8610_v18  ;;  %v8664_v32 = vrot.slane %v8662_v44, 5  ;;  %v8667_v39 = vrot.slane %v8665_v14, 6  ;;  %v13911_v18 = vld [vmem:[#allocation2 + $0x14] ss:$8 sps:$4 sm:$0x33]   ;;  %v9609_v44 = vrot.slane %v13908_v9, 6 }
 0x5df   : > { %v8705_v5 = vsel %vm18078_vm9, %v8696_v21, %v8704_v45  ;;  %v9613_v52 = vrot.slane %v13911_v18, 6  ;;  %v13927_v15 = vld [vmem:[#allocation2 + $0x70] ss:$8 sps:$4 sm:$0xcc]  }
 0x5e0   : > { %v8615_v40 = vsel %vm18078_vm9, %v8606_v20, %v8614_v19  ;;  %v8668_v43 = vor.u32 %v8667_v39, %v8664_v32  ;;  %v9610_v19 = vsel %vm18255_vm12, %v12792_v34, %v9609_v44  ;;  %v14008_v32 = vld [vmem:[%s18948_s3 + $0x58] sm:$0xff]   ;;  %v12794_v39 = vrot.slane %v13912_v0, 10  ;;  %v13926_v6 = vld [vmem:[#allocation2 + $0x64] ss:$8 sps:$4 sm:$0x33]   ;;  %v14014_v14 = vld [vmem:[%s18948_s3 + $0x70] sm:$0xff]  }
 0x5e1   : > { %v12691_v28 = vcombine.high %v8615_v40, %v8633_v46  ;;  %v12690_v24 = vcombine.low %v8615_v40, %v8633_v46  ;;  %v13921_v40 = vld [vmem:[#allocation2 + $0x50] ss:$8 sps:$4 sm:$0xcc]   ;;  %12968 = vmatprep.subr.bf16.mxu1 %v14008_v32  ;;  %v13929_v10 = vld [vmem:[#allocation2 + $0x74] ss:$8 sps:$4 sm:$0x33]  }
 0x5e2   : > { %12969 = vmatpush3.bf16.msra.mxu1 %v14009_v33  ;;  %v12797_v61 = vrot.slane %v13921_v40, 10  ;;  %v9633_v41 = vrot.slane %v13926_v6, 6  ;;  %v13930_v7 = vld [vmem:[#allocation2 + $0x80] ss:$8 sps:$4 sm:$0xcc]  }
 0x5e3   : > { %9160 = vmatmul.mubr.bf16.gmra.mrb[168].mxu0 %v12684_v54  ;;  %v8671_v54 = vshrl.u32 %v13897_v1, 16  ;;  %v13941_v16 = vld [vmem:[#allocation2 + $0xb4] ss:$8 sps:$4 sm:$0x33]  }
 0x5e4   : > { %9169 = vmatprep.mubr.bf16.mxu0 %v12687_v58  ;;  %v8660_v58 = vrot.slane %v8659_v37, 4  ;;  %v12795_v37 = vrot.slane %v13915_v30, 10  ;;  %v13947_v0 = vld [vmem:[#allocation2 + $0xd4] ss:$8 sps:$4 sm:$0x33]  }
 0x5e5   : > { %v8673_v60 = vrot.slane %v8671_v54, 5  ;;  %v9661_v32 = vrot.slane %v13947_v0, 6  ;;  %v13951_v33 = vld [vmem:[#allocation2 + $0xf0] ss:$8 sps:$4 sm:$0xcc]  }
 0x5e6   : > { %v8669_v36 = vsel %vm18078_vm9, %v8660_v58, %v8668_v43  ;;  %v9622_v54 = vsel %vm18255_vm12, %v12795_v37, %v9621_v29  ;;  %v13918_v58 = vld [vmem:[#allocation2 + $0x40] ss:$8 sps:$4 sm:$0xcc]   ;;  %v9629_v43 = vrot.slane %v13923_v2, 6 }
 0x5e7   : > { %v8677_v59 = vor.u32 %v8676_v49, %v8673_v60  ;;  %v12693_v50 = vcombine.high %v8651_v12, %v8669_v36  ;;  %v12692_v25 = vcombine.low %v8651_v12, %v8669_v36  ;;  %v12796_v60 = vrot.slane %v13918_v58, 10  ;;  %v13942_v37 = vld [vmem:[#allocation2 + $0xc0] ss:$8 sps:$4 sm:$0xcc]  }
 0x5e8   : > { %v9625_v49 = vrot.slane %v13920_v13, 6  ;;  %v9630_v3 = vsel %vm18255_vm12, %v12797_v61, %v9629_v43  ;;  %v12799_v12 = vrot.slane %v13927_v15, 10  ;;  %v13944_v29 = vld [vmem:[#allocation2 + $0xc4] ss:$8 sps:$4 sm:$0x33]   ;;  %v12807_v13 = vrot.slane %v13951_v33, 10 }
 0x5e9   : > { %v8678_v62 = vrot.slane %v8677_v59, 4  ;;  %v9637_v59 = vrot.slane %v13929_v10, 6  ;;  %v13954_v10 = vld [vmem:[#allocation2 + $0x100] ss:$8 sps:$4 sm:$0xcc]  }
 0x5ea   : > { %v9626_v27 = vsel %vm18255_vm12, %v12796_v60, %v9625_v49  ;;  %v13957_v60 = vld [vmem:[#allocation2 + $0x110] ss:$8 sps:$4 sm:$0xcc]   ;;  %v13959_v49 = vld [vmem:[#allocation2 + $0x114] ss:$8 sps:$4 sm:$0x33]  }
 0x5eb   : > { %9170 = vmatmul.mubr.bf16.gmra.mrb[172].mxu0 %v12686_v11  ;;  %v8685_v11 = vrot.slane %v8683_v22, 6  ;;  %v13924_v22 = vld [vmem:[#allocation2 + $0x60] ss:$8 sps:$4 sm:$0xcc]   ;;  %v12860_v21 = vcombine.low %v9626_v27, %v9630_v3  ;;  %v9677_v6 = vrot.slane %v13959_v49, 6 }
 0x5ec   : > { %9179 = vmatprep.mubr.bf16.mxu0 %v12689_v55  ;;  %v13909_v55 = vld [vmem:[#allocation2 + $0x10] ss:$8 sps:$4 sm:$0xcc]   ;;  %v12798_v4 = vrot.slane %v13924_v22, 10  ;;  %v12809_v22 = vrot.slane %v13957_v60, 10 }
 0x5ed   : > { %v8686_v57 = vor.u32 %v8685_v11, %v8682_v53  ;;  %v12793_v17 = vrot.slane %v13909_v55, 10  ;;  %v13933_v53 = vld [vmem:[#allocation2 + $0x90] ss:$8 sps:$4 sm:$0xcc]   ;;  %v12800_v55 = vrot.slane %v13930_v7, 10 }
 0x5ee   : > { %v13935_v11 = vld [vmem:[#allocation2 + $0x94] ss:$8 sps:$4 sm:$0x33]   ;;  %v9634_v8 = vsel %vm18255_vm12, %v12798_v4, %v9633_v41  ;;  %v13963_v4 = vld [vmem:[#allocation2 + $0x130] ss:$8 sps:$4 sm:$0xcc]  }
 0x5ef   : > { %v8687_v63 = vsel %vm18078_vm9, %v8678_v62, %v8686_v57  ;;  %v9614_v20 = vsel %vm18255_vm12, %v12793_v17, %v9613_v52  ;;  %v13932_v62 = vld [vmem:[#allocation2 + $0x84] ss:$8 sps:$4 sm:$0x33]   ;;  %v12801_v57 = vrot.slane %v13933_v53, 10  ;;  %v12811_v7 = vrot.slane %v13963_v4, 10 }
 0x5f0   : > { %v12695_v56 = vcombine.high %v8687_v63, %v8705_v5  ;;  %v12694_v1 = vcombine.low %v8687_v63, %v8705_v5  ;;  %v12857_v46 = vcombine.high %v9610_v19, %v9614_v20  ;;  %v12856_v35 = vcombine.low %v9610_v19, %v9614_v20  ;;  %v13939_v63 = vld [vmem:[#allocation2 + $0xb0] ss:$8 sps:$4 sm:$0xcc]   ;;  %v13936_v17 = vld [vmem:[#allocation2 + $0xa0] ss:$8 sps:$4 sm:$0xcc]  }
 0x5f1   : > { %v9645_v5 = vrot.slane %v13935_v11, 6  ;;  %v9641_v18 = vrot.slane %v13932_v62, 6  ;;  %v13938_v52 = vld [vmem:[#allocation2 + $0xa4] ss:$8 sps:$4 sm:$0x33]   ;;  %v12803_v44 = vrot.slane %v13939_v63, 10 }
 0x5f2   : > { %v9653_v20 = vrot.slane %v13941_v16, 6  ;;  %v12802_v30 = vrot.slane %v13936_v17, 10  ;;  %v9649_v42 = vrot.slane %v13938_v52, 6  ;;  %v13945_v19 = vld [vmem:[#allocation2 + $0xd0] ss:$8 sps:$4 sm:$0xcc]  }
 0x5f3   : > { %9180 = vmatmul.mubr.bf16.gmra.mrb[176].mxu0 %v12688_v31  ;;  %v9617_v31 = vrot.slane %v13914_v47, 6  ;;  %v12805_v51 = vrot.slane %v13945_v19, 10  ;;  %v13965_v41 = vld [vmem:[#allocation2 + $0x134] ss:$8 sps:$4 sm:$0x33]  }
 0x5f4   : > { %9189 = vmatprep.mubr.bf16.mxu0 %v12691_v28  ;;  %v14010_v28 = vld [vmem:[%s18948_s3 + $0x60] sm:$0xff]   ;;  %v9685_v62 = vrot.slane %v13965_v41, 6 }
 0x5f5   : > { %v9618_v48 = vsel %vm18255_vm12, %v12794_v39, %v9617_v31  ;;  %12970 = vmatprep.subr.bf16.mxu1 %v14010_v28  ;;  %v12804_v39 = vrot.slane %v13942_v37, 10  ;;  %v9657_v31 = vrot.slane %v13944_v29, 6  ;;  %v9662_v40 = vsel %vm18255_vm12, %v12805_v51, %v9661_v32  ;;  %v13960_v11 = vld [vmem:[#allocation2 + $0x120] ss:$8 sps:$4 sm:$0xcc]  }
 0x5f6   : > { %v12859_v38 = vcombine.high %v9618_v48, %v9622_v54  ;;  %12971 = vmatpush3.bf16.msra.mxu1 %v14011_v23  ;;  %v12858_v36 = vcombine.low %v9618_v48, %v9622_v54  ;;  %v13953_v54 = vld [vmem:[#allocation2 + $0xf4] ss:$8 sps:$4 sm:$0x33]   ;;  %v13950_v48 = vld [vmem:[#allocation2 + $0xe4] ss:$8 sps:$4 sm:$0x33]  }
 0x5f7   : > { %v9658_v28 = vsel %vm18255_vm12, %v12804_v39, %v9657_v31  ;;  %v9665_v61 = vrot.slane %v13950_v48, 6  ;;  %v13966_v16 = vld [vmem:[#allocation2 + $0x140] ss:$8 sps:$4 sm:$0xcc]  }
 0x5f8   : > { %v12869_v58 = vcombine.high %v9658_v28, %v9662_v40  ;;  %v13974_v0 = vld [vmem:[#allocation2 + $0x160] ss:$8 sps:$4 sm:$0xcc]   ;;  %v13983_v39 = vld [vmem:[#allocation2 + $0x190] ss:$8 sps:$4 sm:$0xcc]  }
 0x5f9   : > { %v13985_v31 = vld [vmem:[#allocation2 + $0x194] ss:$8 sps:$4 sm:$0x33]   ;;  %v13986_v49 = vld [vmem:[#allocation2 + $0x1a0] ss:$8 sps:$4 sm:$0xcc]  }
 0x5fa   : > { %v9709_v48 = vrot.slane %v13985_v31, 6  ;;  %v13992_v41 = vld [vmem:[#allocation2 + $0x1c0] ss:$8 sps:$4 sm:$0xcc]  }
 0x5fb   : > { %9190 = vmatmul.mubr.bf16.gmra.mrb[180].mxu0 %v12690_v24  ;;  %v12861_v24 = vcombine.high %v9626_v27, %v9630_v3  ;;  %v12868_v3 = vcombine.low %v9658_v28, %v9662_v40 }
 0x5fc   : > { %9199 = vmatprep.mubr.bf16.mxu0 %v12693_v50  ;;  %v9638_v50 = vsel %vm18255_vm12, %v12799_v12, %v9637_v59  ;;  %v9678_v59 = vsel %vm18255_vm12, %v12809_v22, %v9677_v6 }
 0x5fd   : > { %v12863_v45 = vcombine.high %v9634_v8, %v9638_v50  ;;  %v12862_v9 = vcombine.low %v9634_v8, %v9638_v50 }
 0x603   : > { %9200 = vmatmul.mubr.bf16.gmra.mrb[184].mxu0 %v12692_v25  ;;  %v9646_v25 = vsel %vm18255_vm12, %v12801_v57, %v9645_v5  ;;  %v9686_v5 = vsel %vm18255_vm12, %v12811_v7, %v9685_v62 }
 0x604   : > { %9209 = vmatprep.mubr.bf16.mxu0 %v12695_v56  ;;  %v9642_v56 = vsel %vm18255_vm12, %v12800_v55, %v9641_v18  ;;  %v13969_v55 = vld [vmem:[#allocation2 + $0x150] ss:$8 sps:$4 sm:$0xcc]   ;;  %v13971_v18 = vld [vmem:[#allocation2 + $0x154] ss:$8 sps:$4 sm:$0x33]  }
 0x605   : > { %v12865_v34 = vcombine.high %v9642_v56, %v9646_v25  ;;  %v12864_v47 = vcombine.low %v9642_v56, %v9646_v25  ;;  %v12813_v17 = vrot.slane %v13969_v55, 10  ;;  %v9693_v52 = vrot.slane %v13971_v18, 6  ;;  %v14000_v18 = vld [vmem:[#allocation2 + $0x1e0] ss:$8 sps:$4 sm:$0xcc]  }
 0x60b   : > { %9210 = vmatmul.mubr.bf16.gmra.mrb[188].mxu0 %v12694_v1  ;;  %v9654_v1 = vsel %vm18255_vm12, %v12803_v44, %v9653_v20  ;;  %v9694_v20 = vsel %vm18255_vm12, %v12813_v17, %v9693_v52 }
 0x60c   : > { %10088 = vmatprep.mubr.bf16.mxu0 %v12857_v46  ;;  %v9650_v46 = vsel %vm18255_vm12, %v12802_v30, %v9649_v42  ;;  %v13977_v30 = vld [vmem:[#allocation2 + $0x170] ss:$8 sps:$4 sm:$0xcc]   ;;  %v13979_v42 = vld [vmem:[#allocation2 + $0x174] ss:$8 sps:$4 sm:$0x33]  }
 0x60d   : > { %v12867_v26 = vcombine.high %v9650_v46, %v9654_v1  ;;  %v12866_v2 = vcombine.low %v9650_v46, %v9654_v1  ;;  %v12815_v37 = vrot.slane %v13977_v30, 10  ;;  %v9701_v29 = vrot.slane %v13979_v42, 6  ;;  %v14012_v42 = vld [vmem:[%s18948_s3 + $0x68] sm:$0xff]  }
 0x60e   : > { %12972 = vmatprep.subr.bf16.mxu1 %v14012_v42 }
 0x60f   : > { %v9702_v32 = vsel %vm18255_vm12, %v12815_v37, %v9701_v29  ;;  %v18362_v29 = vld [vmem:[%s18950_s5 + $0x1] ss:$0 sm:$0xff] }
 0x613   : > { %10089 = vmatmul.mubr.bf16.vlgmr.msra.gmra.mrb[128].mxu0 %v12856_v35  ;;  %v13948_v35 = vld [vmem:[#allocation2 + $0xe0] ss:$8 sps:$4 sm:$0xcc]  }
 0x614   : > { %10098 = vmatprep.mubr.bf16.mxu0 %v12859_v38  ;;  %v9669_v38 = vrot.slane %v13953_v54, 6  ;;  %v12806_v23 = vrot.slane %v13948_v35, 10  ;;  %v13980_v54 = vld [vmem:[#allocation2 + $0x180] ss:$8 sps:$4 sm:$0xcc]   ;;  %v12817_v35 = vrot.slane %v13983_v39, 10 }
 0x615   : > { %v14018_v39 = vld [vmem:[%s18948_s3 + $0xc0] sm:$0xff]  }
 0x616   : > { %v9670_v43 = vsel %vm18255_vm12, %v12807_v13, %v9669_v38  ;;  %v9666_v15 = vsel %vm18255_vm12, %v12806_v23, %v9665_v61  ;;  %v9710_v38 = vsel %vm18255_vm12, %v12817_v35, %v9709_v48  ;;  %v13989_v23 = vld [vmem:[#allocation2 + $0x1b0] ss:$8 sps:$4 sm:$0xcc]   ;;  %v13991_v61 = vld [vmem:[#allocation2 + $0x1b4] ss:$8 sps:$4 sm:$0x33]  }
 0x617   : > { %v12871_v27 = vcombine.high %v9666_v15, %v9670_v43  ;;  %v12870_v50 = vcombine.low %v9666_v15, %v9670_v43 }
 0x61b   : > { %10099 = vmatmul.mubr.bf16.gmra.mrb[132].mxu0 %v12858_v36  ;;  %v13956_v36 = vld [vmem:[#allocation2 + $0x104] ss:$8 sps:$4 sm:$0x33]  }
 0x61c   : > { %10108 = vmatprep.mubr.bf16.mxu0 %v12861_v24  ;;  %v12808_v24 = vrot.slane %v13954_v10, 10  ;;  %v9673_v12 = vrot.slane %v13956_v36, 6  ;;  %v12819_v10 = vrot.slane %v13989_v23, 10  ;;  %v9717_v36 = vrot.slane %v13991_v61, 6 }
 0x61e   : > { %v9674_v53 = vsel %vm18255_vm12, %v12808_v24, %v9673_v12  ;;  %v9718_v6 = vsel %vm18255_vm12, %v12819_v10, %v9717_v36  ;;  %v13995_v24 = vld [vmem:[#allocation2 + $0x1d0] ss:$8 sps:$4 sm:$0xcc]   ;;  %v13997_v12 = vld [vmem:[#allocation2 + $0x1d4] ss:$8 sps:$4 sm:$0x33]  }
 0x61f   : > { %v12873_v8 = vcombine.high %v9674_v53, %v9678_v59  ;;  %v12872_v25 = vcombine.low %v9674_v53, %v9678_v59 }
 0x623   : > { %10109 = vmatmul.mubr.bf16.gmra.mrb[136].mxu0 %v12860_v21  ;;  %v13962_v21 = vld [vmem:[#allocation2 + $0x124] ss:$8 sps:$4 sm:$0x33]  }
 0x624   : > { %10118 = vmatprep.mubr.bf16.mxu0 %v12863_v45  ;;  %v12810_v45 = vrot.slane %v13960_v11, 10  ;;  %v9681_v57 = vrot.slane %v13962_v21, 6  ;;  %v12821_v11 = vrot.slane %v13995_v24, 10  ;;  %v9725_v21 = vrot.slane %v13997_v12, 6 }
 0x626   : > { %v9682_v63 = vsel %vm18255_vm12, %v12810_v45, %v9681_v57  ;;  %v9726_v62 = vsel %vm18255_vm12, %v12821_v11, %v9725_v21  ;;  %v14003_v45 = vld [vmem:[#allocation2 + $0x1f0] ss:$8 sps:$4 sm:$0xcc]   ;;  %v14005_v57 = vld [vmem:[#allocation2 + $0x1f4] ss:$8 sps:$4 sm:$0x33]  }
 0x627   : > { %v12875_v56 = vcombine.high %v9682_v63, %v9686_v5  ;;  %v12874_v1 = vcombine.low %v9682_v63, %v9686_v5 }
 0x62b   : > { %10119 = vmatmul.mubr.bf16.gmra.mrb[140].mxu0 %v12862_v9  ;;  %v13968_v9 = vld [vmem:[#allocation2 + $0x144] ss:$8 sps:$4 sm:$0x33]  }
 0x62c   : > { %10128 = vmatprep.mubr.bf16.mxu0 %v12865_v34  ;;  %v12812_v34 = vrot.slane %v13966_v16, 10  ;;  %v9689_v44 = vrot.slane %v13968_v9, 6  ;;  %v12823_v16 = vrot.slane %v14003_v45, 10  ;;  %v9733_v9 = vrot.slane %v14005_v57, 6 }
 0x62e   : > { %v9690_v19 = vsel %vm18255_vm12, %v12812_v34, %v9689_v44  ;;  %v9734_v52 = vsel %vm18255_vm12, %v12823_v16, %v9733_v9 }
 0x62f   : > { %v12877_v46 = vcombine.high %v9690_v19, %v9694_v20  ;;  %v12876_v40 = vcombine.low %v9690_v19, %v9694_v20  ;;  %v14015_v19 = vld [vmem:[%s18948_s3 + $0x30] sm:$0xff]  }
 0x633   : > { %10129 = vmatmul.mubr.bf16.gmra.mrb[144].mxu0 %v12864_v47  ;;  %v13976_v47 = vld [vmem:[#allocation2 + $0x164] ss:$8 sps:$4 sm:$0x33]  }
 0x634   : > { %10138 = vmatprep.mubr.bf16.mxu0 %v12867_v26  ;;  %v12814_v26 = vrot.slane %v13974_v0, 10  ;;  %v9697_v51 = vrot.slane %v13976_v47, 6  ;;  %v14016_v0 = vld [vmem:[%s18948_s3 + $0x78] sm:$0xff]  }
 0x635   : > { %v14017_v47 = vld [vmem:[%s18948_s3 + $0x38] sm:$0xff]  }
 0x636   : > { %v9698_v33 = vsel %vm18255_vm12, %v12814_v26, %v9697_v51 }
 0x637   : > { %v12879_v28 = vcombine.high %v9698_v33, %v9702_v32  ;;  %v12878_v43 = vcombine.low %v9698_v33, %v9702_v32 }
 0x63b   : > { %10139 = vmatmul.mubr.bf16.gmra.mrb[148].mxu0 %v12866_v2  ;;  %v13982_v2 = vld [vmem:[#allocation2 + $0x184] ss:$8 sps:$4 sm:$0x33]  }
 0x63c   : > { %10148 = vmatprep.mubr.bf16.mxu0 %v12869_v58  ;;  %v12816_v58 = vrot.slane %v13980_v54, 10  ;;  %v9705_v13 = vrot.slane %v13982_v2, 6 }
 0x63e   : > { %v9706_v60 = vsel %vm18255_vm12, %v12816_v58, %v9705_v13 }
 0x63f   : > { %v12881_v15 = vcombine.high %v9706_v60, %v9710_v38  ;;  %v12880_v59 = vcombine.low %v9706_v60, %v9710_v38 }
 0x643   : > { %10149 = vmatmul.mubr.bf16.gmra.mrb[152].mxu0 %v12868_v3  ;;  %v13988_v3 = vld [vmem:[#allocation2 + $0x1a4] ss:$8 sps:$4 sm:$0x33]  }
 0x644   : > { %10158 = vmatprep.mubr.bf16.mxu0 %v12871_v27  ;;  %v12818_v27 = vrot.slane %v13986_v49, 10  ;;  %v9713_v22 = vrot.slane %v13988_v3, 6 }
 0x646   : > { %v9714_v4 = vsel %vm18255_vm12, %v12818_v27, %v9713_v22 }
 0x647   : > { %v12883_v53 = vcombine.high %v9714_v4, %v9718_v6  ;;  %v12882_v5 = vcombine.low %v9714_v4, %v9718_v6 }
 0x64b   : > { %10159 = vmatmul.mubr.bf16.gmra.mrb[156].mxu0 %v12870_v50  ;;  %v13994_v50 = vld [vmem:[#allocation2 + $0x1c4] ss:$8 sps:$4 sm:$0x33]  }
 0x64c   : > { %10168 = vmatprep.mubr.bf16.mxu0 %v12873_v8  ;;  %v12820_v8 = vrot.slane %v13992_v41, 10  ;;  %v9721_v7 = vrot.slane %v13994_v50, 6 }
 0x64e   : > { %v9722_v55 = vsel %vm18255_vm12, %v12820_v8, %v9721_v7 }
 0x64f   : > { %v12885_v63 = vcombine.high %v9722_v55, %v9726_v62  ;;  %v12884_v34 = vcombine.low %v9722_v55, %v9726_v62 }
 0x653   : > { %10169 = vmatmul.mubr.bf16.gmra.mrb[160].mxu0 %v12872_v25  ;;  %v14002_v25 = vld [vmem:[#allocation2 + $0x1e4] ss:$8 sps:$4 sm:$0x33]  }
 0x654   : > { %10178 = vmatprep.mubr.bf16.mxu0 %v12875_v56  ;;  %v12822_v56 = vrot.slane %v14000_v18, 10  ;;  %v9729_v17 = vrot.slane %v14002_v25, 6 }
 0x656   : > { %v9730_v44 = vsel %vm18255_vm12, %v12822_v56, %v9729_v17 }
 0x657   : > { %v12887_v20 = vcombine.high %v9730_v44, %v9734_v52  ;;  %v12886_v30 = vcombine.low %v9730_v44, %v9734_v52 }
 0x65b   : > { %10179 = vmatmul.mubr.bf16.gmra.mrb[164].mxu0 %v12874_v1  ;;  %v14013_v1 = vld [vmem:[%s18948_s3 + $0x28] sm:$0xff]  }
 0x65c   : > { %10188 = vmatprep.mubr.bf16.mxu0 %v12877_v46  ;;  %12973 = vmatpush3.bf16.msra.mxu1 %v14013_v1 }
 0x65d   : > { %12974 = vmatprep.subr.bf16.mxu1 %v14014_v14 }
 0x660   : > { %12975 = vmatpush3.bf16.msra.mxu1 %v14015_v19 }
 0x661   : > { %12976 = vmatprep.subr.bf16.mxu1 %v14016_v0 }
 0x663   : > { %10189 = vmatmul.mubr.bf16.gmra.mrb[168].mxu0 %v12876_v40 }
 0x664   : > { %10198 = vmatprep.mubr.bf16.mxu0 %v12879_v28  ;;  %12977 = vmatpush3.bf16.msra.mxu1 %v14017_v47 }
 0x665   : > { %12990 = vmatprep.subr.bf16.mxu1 %v14018_v39 }
 0x66b   : > { %10199 = vmatmul.mubr.bf16.gmra.mrb[172].mxu0 %v12878_v43 }
 0x66c   : > { %10208 = vmatprep.mubr.bf16.mxu0 %v12881_v15 }
 0x673   : > { %10209 = vmatmul.mubr.bf16.gmra.mrb[176].mxu0 %v12880_v59 }
 0x674   : > { %10218 = vmatprep.mubr.bf16.mxu0 %v12883_v53 }
 0x67b   : > { %10219 = vmatmul.mubr.bf16.gmra.mrb[180].mxu0 %v12882_v5 }
 0x67c   : > { %10228 = vmatprep.mubr.bf16.mxu0 %v12885_v63 }
 0x683   : > { %10229 = vmatmul.mubr.bf16.gmra.mrb[184].mxu0 %v12884_v34 }
 0x684   : > { %10238 = vmatprep.mubr.bf16.mxu0 %v12887_v20 }
 0x68b   : > { %10239 = vmatmul.mubr.bf16.gmra.mrb[188].mxu0 %v12886_v30 }
 0x6e6   : > { %v10090_v46 = vpop.f32.mrb[128].mxu0 }
 0x6e7   : > { %v10092_v37 = vpop.f32.mrb[129].mxu0 }
 0x6e8   : > { %v10313_v26 = vmax.f32 %v10090_v46, %v10092_v37  ;;  %v10094_v51 = vpop.f32.mrb[130].mxu0 }
 0x6e9   : > { %v10096_v32 = vpop.f32.mrb[131].mxu0 }
 0x6ea   : > { %v10346_v31 = vadd.f32 %v18362_v29, %v10313_v26  ;;  %v10314_v40 = vmax.f32 %v10094_v51, %v10096_v32 }
 0x6ec   : > { %v10378_v33 = vmax.f32 %v10346_v31, 0.0  ;;  %v10347_v54 = vadd.f32 %v18362_v29, %v10314_v40 }
 0x6ee   : > { %10410 = vst [vmem:[#allocation3] sm:$0xff] %v10378_v33  ;;  %v10379_v2 = vmax.f32 %v10347_v54, 0.0  ;;  %v10100_v28 = vpop.f32.mrb[132].mxu0 }
 0x6ef   : > { %v10102_v35 = vpop.f32.mrb[133].mxu0 }
 0x6f0   : > { %10411 = vst [vmem:[#allocation3 + $0x8] sm:$0xff] %v10379_v2  ;;  %v10315_v48 = vmax.f32 %v10100_v28, %v10102_v35  ;;  %v10104_v58 = vpop.f32.mrb[134].mxu0 }
 0x6f1   : > { %v10106_v13 = vpop.f32.mrb[135].mxu0 }
 0x6f2   : > { %v10348_v38 = vadd.f32 %v18362_v29, %v10315_v48  ;;  %v10316_v23 = vmax.f32 %v10104_v58, %v10106_v13 }
 0x6f4   : > { %v10380_v61 = vmax.f32 %v10348_v38, 0.0  ;;  %v10349_v43 = vadd.f32 %v18362_v29, %v10316_v23 }
 0x6f6   : > { %10412 = vst [vmem:[#allocation3 + $0x10] sm:$0xff] %v10380_v61  ;;  %v10381_v60 = vmax.f32 %v10349_v43, 0.0  ;;  %v10110_v49 = vpop.f32.mrb[136].mxu0 }
 0x6f7   : > { %v10112_v3 = vpop.f32.mrb[137].mxu0  ;;  %v10443_v56 = vld [vmem:[#allocation3 + $0x8] sm:$0x1]  ;;  %v10475_v17 = vld [vmem:[#allocation3 + $0x9] sm:$0x1] }
 0x6f8   : > { %10413 = vst [vmem:[#allocation3 + $0x18] sm:$0xff] %v10381_v60  ;;  %v10317_v15 = vmax.f32 %v10110_v49, %v10112_v3  ;;  %v10114_v10 = vpop.f32.mrb[138].mxu0  ;;  %v10635_v34 = vld [vmem:[#allocation3 + $0xc] sm:$0x1]  ;;  %v10667_v44 = vld [vmem:[#allocation3 + $0xd] sm:$0x1]  ;;  %v10507_v40 = vmax.f32 %v10443_v56, %v10475_v17 }
 0x6f9   : > { %v10116_v36 = vpop.f32.mrb[139].mxu0  ;;  %v10539_v42 = vld [vmem:[#allocation3 + $0xa] sm:$0x1]  ;;  %v10571_v19 = vld [vmem:[#allocation3 + $0xb] sm:$0x1]  ;;  %v10699_v2 = vmax.f32 %v10635_v34, %v10667_v44 }
 0x6fa   : > { %v10350_v27 = vadd.f32 %v18362_v29, %v10317_v15  ;;  %v10318_v22 = vmax.f32 %v10114_v10, %v10116_v36  ;;  %v10731_v0 = vld [vmem:[#allocation3 + $0xe] sm:$0x1]  ;;  %v10763_v37 = vld [vmem:[#allocation3 + $0xf] sm:$0x1]  ;;  %v10603_v48 = vmax.f32 %v10539_v42, %v10571_v19  ;;  %v10858_v3 = vrot.slane %v10507_v40, 7 }
 0x6fb   : > { %v10795_v61 = vmax.f32 %v10731_v0, %v10763_v37 }
 0x6fc   : > { %v10351_v6 = vadd.f32 %v18362_v29, %v10318_v22  ;;  %v10382_v24 = vmax.f32 %v10350_v27, 0.0  ;;  %v10442_v27 = vld [vmem:[#allocation3] sm:$0x1]  ;;  %v10474_v22 = vld [vmem:[#allocation3 + $0x1] sm:$0x1] }
 0x6fd   : > { %v10444_v47 = vld [vmem:[#allocation3 + $0x10] sm:$0x1]  ;;  %v10476_v26 = vld [vmem:[#allocation3 + $0x11] sm:$0x1]  ;;  %v10636_v51 = vld [vmem:[#allocation3 + $0x14] sm:$0x1]  ;;  %v10506_v42 = vmax.f32 %v10442_v27, %v10474_v22 }
 0x6fe   : > { %v10120_v12 = vpop.f32.mrb[140].mxu0  ;;  %10414 = vst [vmem:[#allocation3 + $0x20] sm:$0xff] %v10382_v24  ;;  %v10383_v59 = vmax.f32 %v10351_v6, 0.0  ;;  %v10668_v32 = vld [vmem:[#allocation3 + $0x15] sm:$0x1]  ;;  %v10508_v58 = vmax.f32 %v10444_v47, %v10476_v26  ;;  %v11049_v6 = vrot.slane %v10699_v2, 7 }
 0x6ff   : > { %v10122_v4 = vpop.f32.mrb[141].mxu0  ;;  %v10445_v33 = vld [vmem:[#allocation3 + $0x18] sm:$0x1]  ;;  %v10477_v54 = vld [vmem:[#allocation3 + $0x19] sm:$0x1]  ;;  %v10700_v13 = vmax.f32 %v10636_v51, %v10668_v32  ;;  %v10860_v40 = vsel %vm10859_vm13, %v10858_v3, %v10506_v42 }
 0x700   : > { %v10319_v41 = vmax.f32 %v10120_v12, %v10122_v4  ;;  %v10124_v50 = vpop.f32.mrb[142].mxu0  ;;  %10415 = vst [vmem:[#allocation3 + $0x28] sm:$0xff] %v10383_v59  ;;  %v10637_v38 = vld [vmem:[#allocation3 + $0x1c] sm:$0x1]  ;;  %v10669_v23 = vld [vmem:[#allocation3 + $0x1d] sm:$0x1]  ;;  %v10509_v43 = vmax.f32 %v10445_v33, %v10477_v54 }
 0x701   : > { %v10126_v53 = vpop.f32.mrb[143].mxu0  ;;  %v10540_v10 = vld [vmem:[#allocation3 + $0x12] sm:$0x1]  ;;  %v10572_v36 = vld [vmem:[#allocation3 + $0x13] sm:$0x1]  ;;  %v10701_v24 = vmax.f32 %v10637_v38, %v10669_v23  ;;  %v10957_v59 = vrot.slane %v10603_v48, 7 }
 0x702   : > { %v10352_v11 = vadd.f32 %v18362_v29, %v10319_v41  ;;  %v10320_v21 = vmax.f32 %v10124_v50, %v10126_v53  ;;  %v10634_v4 = vld [vmem:[#allocation3 + $0x4] sm:$0x1]  ;;  %v10666_v41 = vld [vmem:[#allocation3 + $0x5] sm:$0x1]  ;;  %v10861_v50 = vrot.slane %v10508_v58, 6  ;;  %v18379_v53 = vrot.slane %v10700_v13, 6 }
 0x703   : > { %v18390_v34 = vrot.slane %v10701_v24, 5 }
 0x704   : > { %v10384_v8 = vmax.f32 %v10352_v11, 0.0  ;;  %v10353_v7 = vadd.f32 %v18362_v29, %v10320_v21  ;;  %v10538_v21 = vld [vmem:[#allocation3 + $0x2] sm:$0x1]  ;;  %v10863_v13 = vsel %vm10862_vm14, %v10861_v50, %v10860_v40 }
 0x705   : > { %v10478_v56 = vld [vmem:[#allocation3 + $0x21] sm:$0x1]  ;;  %v10638_v44 = vld [vmem:[#allocation3 + $0x24] sm:$0x1] }
 0x706   : > { %v10130_v62 = vpop.f32.mrb[144].mxu0  ;;  %10416 = vst [vmem:[#allocation3 + $0x30] sm:$0xff] %v10384_v8  ;;  %v10385_v45 = vmax.f32 %v10353_v7, 0.0  ;;  %v10541_v8 = vld [vmem:[#allocation3 + $0x1a] sm:$0x1] }
 0x707   : > { %v10132_v57 = vpop.f32.mrb[145].mxu0  ;;  %v10570_v7 = vld [vmem:[#allocation3 + $0x3] sm:$0x1]  ;;  %v18392_v19 = vld [vmem:[#allocation3 + $0x2c] sm:$0x1] }
 0x708   : > { %v10321_v5 = vmax.f32 %v10130_v62, %v10132_v57  ;;  %10417 = vst [vmem:[#allocation3 + $0x38] sm:$0xff] %v10385_v45  ;;  %v10134_v55 = vpop.f32.mrb[146].mxu0  ;;  %v18381_v62 = vrot.slane %v10795_v61, 7  ;;  %v18383_v45 = vrot.slane %v10509_v43, 5  ;;  %v10602_v32 = vmax.f32 %v10538_v21, %v10570_v7  ;;  %v10671_v2 = vld [vmem:[#allocation3 + $0x2d] sm:$0x1] }
 0x709   : > { %v10136_v25 = vpop.f32.mrb[147].mxu0  ;;  %v18401_v43 = vld [vmem:[#allocation3 + $0x1e] sm:$0x1]  ;;  %v10703_v24 = vmax.f32 %v18392_v19, %v10671_v2 }
 0x70a   : > { %v10354_v18 = vadd.f32 %v18362_v29, %v10321_v5  ;;  %v10322_v63 = vmax.f32 %v10134_v55, %v10136_v25  ;;  %v10573_v55 = vld [vmem:[#allocation3 + $0x1b] sm:$0x1]  ;;  %v18386_v25 = vld [vmem:[#allocation3 + $0x6] sm:$0x1]  ;;  %v10958_v61 = vsel %vm10859_vm13, %v10957_v59, %v10602_v32 }
 0x70b   : > { %v10605_v47 = vmax.f32 %v10541_v8, %v10573_v55  ;;  %v18414_v55 = vld [vmem:[#allocation3 + $0x23] sm:$0x1] }
 0x70c   : > { %v10386_v16 = vmax.f32 %v10354_v18, 0.0  ;;  %v10355_v9 = vadd.f32 %v18362_v29, %v10322_v63  ;;  %v10604_v18 = vmax.f32 %v10540_v10, %v10572_v36  ;;  %v10732_v63 = vld [vmem:[#allocation3 + $0x16] sm:$0x1] }
 0x70d   : > { %v10961_v22 = vrot.slane %v10605_v47, 5 }
 0x70e   : > { %10418 = vst [vmem:[#allocation3 + $0x40] sm:$0xff] %v10386_v16  ;;  %v10140_v52 = vpop.f32.mrb[148].mxu0  ;;  %v10387_v20 = vmax.f32 %v10355_v9, 0.0  ;;  %v18388_v16 = vld [vmem:[#allocation3 + $0x7] sm:$0x1] }
 0x70f   : > { %v10142_v30 = vpop.f32.mrb[149].mxu0  ;;  %v10446_v9 = vld [vmem:[#allocation3 + $0x20] sm:$0x1]  ;;  %v10794_v48 = vmax.f32 %v18386_v25, %v18388_v16 }
 0x710   : > { %v10323_v1 = vmax.f32 %v10140_v52, %v10142_v30  ;;  %v10144_v14 = vpop.f32.mrb[150].mxu0  ;;  %10419 = vst [vmem:[#allocation3 + $0x48] sm:$0xff] %v10387_v20  ;;  %v10764_v52 = vld [vmem:[#allocation3 + $0x17] sm:$0x1]  ;;  %v10670_v20 = vld [vmem:[#allocation3 + $0x25] sm:$0x1]  ;;  %v10510_v33 = vmax.f32 %v10446_v9, %v10478_v56 }
 0x711   : > { %v10146_v46 = vpop.f32.mrb[151].mxu0  ;;  %v10702_v54 = vmax.f32 %v10638_v44, %v10670_v20  ;;  %v18422_v9 = vld [vmem:[#allocation3 + $0x30] sm:$0x1]  ;;  %v18424_v56 = vld [vmem:[#allocation3 + $0x31] sm:$0x1] }
 0x712   : > { %v10356_v39 = vadd.f32 %v18362_v29, %v10323_v1  ;;  %v10324_v31 = vmax.f32 %v10144_v14, %v10146_v46  ;;  %v10447_v1 = vld [vmem:[#allocation3 + $0x28] sm:$0x1]  ;;  %v10479_v14 = vld [vmem:[#allocation3 + $0x29] sm:$0x1]  ;;  %v10698_v46 = vmax.f32 %v10634_v4, %v10666_v41  ;;  %v18428_v20 = vld [vmem:[#allocation3 + $0x2b] sm:$0x1] }
 0x713   : > { %v18409_v21 = vrot.slane %v10702_v54, 4 }
 0x714   : > { %v10388_v28 = vmax.f32 %v10356_v39, 0.0  ;;  %v10357_v35 = vadd.f32 %v18362_v29, %v10324_v31  ;;  %v10959_v39 = vrot.slane %v10604_v18, 6  ;;  %v10796_v31 = vmax.f32 %v10732_v63, %v10764_v52  ;;  %v18426_v52 = vld [vmem:[#allocation3 + $0x2a] sm:$0x1] }
 0x715   : > { %v11050_v58 = vsel %vm10859_vm13, %v11049_v6, %v10698_v46  ;;  %v10450_v8 = vld [vmem:[#allocation3 + $0x40] sm:$0x1]  ;;  %v10866_v63 = vsel %vm10865_vm15, %v18383_v45, %v10863_v13  ;;  %v18433_v46 = vrot.slane %v10703_v24, 3  ;;  %v10546_v32 = vld [vmem:[#allocation3 + $0x42] sm:$0x1] }
 0x716   : > { %10420 = vst [vmem:[#allocation3 + $0x50] sm:$0xff] %v10388_v28  ;;  %v10389_v60 = vmax.f32 %v10357_v35, 0.0  ;;  %v10150_v49 = vpop.f32.mrb[152].mxu0  ;;  %v10960_v59 = vsel %vm10862_vm14, %v10959_v39, %v10958_v61  ;;  %v18407_v50 = vrot.slane %v10796_v31, 6  ;;  %v18418_v18 = vsel %vm10862_vm14, %v18379_v53, %v11050_v58  ;;  %v10578_v39 = vld [vmem:[#allocation3 + $0x43] sm:$0x1] }
 0x717   : > { %v10152_v15 = vpop.f32.mrb[153].mxu0  ;;  %v10451_v37 = vld [vmem:[#allocation3 + $0x48] sm:$0x1]  ;;  %v10483_v26 = vld [vmem:[#allocation3 + $0x49] sm:$0x1]  ;;  %v18436_v31 = vsel %vm10865_vm15, %v10961_v22, %v10960_v59 }
 0x718   : > { %10421 = vst [vmem:[#allocation3 + $0x58] sm:$0xff] %v10389_v60  ;;  %v10325_v12 = vmax.f32 %v10150_v49, %v10152_v15  ;;  %v10154_v11 = vpop.f32.mrb[154].mxu0  ;;  %v18403_v60 = vld [vmem:[#allocation3 + $0x1f] sm:$0x1]  ;;  %v10511_v49 = vmax.f32 %v10447_v1, %v10479_v14  ;;  %v10515_v3 = vmax.f32 %v10451_v37, %v10483_v26  ;;  %v10547_v36 = vld [vmem:[#allocation3 + $0x4a] sm:$0x1] }
 0x719   : > { %v10156_v5 = vpop.f32.mrb[155].mxu0  ;;  %v10579_v27 = vld [vmem:[#allocation3 + $0x4b] sm:$0x1]  ;;  %v10797_v1 = vmax.f32 %v18401_v43, %v18403_v60  ;;  %v10735_v43 = vld [vmem:[#allocation3 + $0x2e] sm:$0x1] }
 0x71a   : > { %v10358_v57 = vadd.f32 %v18362_v29, %v10325_v12  ;;  %v10326_v17 = vmax.f32 %v10154_v11, %v10156_v5  ;;  %v10867_v11 = vrot.slane %v10510_v33, 4  ;;  %v18412_v5 = vld [vmem:[#allocation3 + $0x22] sm:$0x1]  ;;  %v10611_v42 = vmax.f32 %v10547_v36, %v10579_v27  ;;  %v10767_v60 = vld [vmem:[#allocation3 + $0x2f] sm:$0x1] }
 0x71b   : > { %v10870_v53 = vrot.slane %v10511_v49, 3  ;;  %v10879_v14 = vrot.slane %v10515_v3, 7  ;;  %v10606_v3 = vmax.f32 %v18412_v5, %v18414_v55 }
 0x71c   : > { %v10390_v30 = vmax.f32 %v10358_v57, 0.0  ;;  %v10359_v0 = vadd.f32 %v18362_v29, %v10326_v17  ;;  %v10482_v17 = vld [vmem:[#allocation3 + $0x41] sm:$0x1]  ;;  %v10869_v13 = vsel %vm10868_vm0, %v10867_v11, %v10866_v63  ;;  %v10544_v11 = vld [vmem:[#allocation3 + $0x32] sm:$0x1]  ;;  %v10610_v63 = vmax.f32 %v10546_v32, %v10578_v39 }
 0x71d   : > { %v10452_v28 = vld [vmem:[#allocation3 + $0x50] sm:$0x1]  ;;  %v10484_v35 = vld [vmem:[#allocation3 + $0x51] sm:$0x1]  ;;  %v10548_v44 = vld [vmem:[#allocation3 + $0x52] sm:$0x1]  ;;  %v10514_v40 = vmax.f32 %v10450_v8, %v10482_v17 }
 0x71e   : > { %10422 = vst [vmem:[#allocation3 + $0x60] sm:$0xff] %v10390_v30  ;;  %v10160_v51 = vpop.f32.mrb[156].mxu0  ;;  %v10391_v38 = vmax.f32 %v10359_v0, 0.0  ;;  %v10516_v6 = vmax.f32 %v10452_v28, %v10484_v35  ;;  %v10580_v30 = vld [vmem:[#allocation3 + $0x53] sm:$0x1] }
 0x71f   : > { %v10162_v23 = vpop.f32.mrb[157].mxu0  ;;  %v10453_v12 = vld [vmem:[#allocation3 + $0x58] sm:$0x1]  ;;  %v10485_v4 = vld [vmem:[#allocation3 + $0x59] sm:$0x1]  ;;  %v10612_v58 = vmax.f32 %v10548_v44, %v10580_v30  ;;  %v10880_v36 = vsel %vm10859_vm13, %v10879_v14, %v10514_v40  ;;  %v10963_v30 = vrot.slane %v10606_v3, 4 }
 0x720   : > { %v10327_v15 = vmax.f32 %v10160_v51, %v10162_v23  ;;  %v10164_v10 = vpop.f32.mrb[158].mxu0  ;;  %10423 = vst [vmem:[#allocation3 + $0x68] sm:$0xff] %v10391_v38  ;;  %v10517_v19 = vmax.f32 %v10453_v12, %v10485_v4  ;;  %v10881_v37 = vrot.slane %v10516_v6, 6  ;;  %v10549_v28 = vld [vmem:[#allocation3 + $0x5a] sm:$0x1]  ;;  %v10607_v12 = vmax.f32 %v18426_v52, %v18428_v20 }
 0x721   : > { %v10166_v41 = vpop.f32.mrb[159].mxu0  ;;  %v10581_v35 = vld [vmem:[#allocation3 + $0x5b] sm:$0x1]  ;;  %v10576_v8 = vld [vmem:[#allocation3 + $0x33] sm:$0x1] }
 0x722   : > { %v10360_v7 = vadd.f32 %v18362_v29, %v10327_v15  ;;  %v10328_v57 = vmax.f32 %v10164_v10, %v10166_v41  ;;  %v10971_v15 = vrot.slane %v10611_v42, 7  ;;  %v10512_v10 = vmax.f32 %v18422_v9, %v18424_v56  ;;  %v10481_v14 = vld [vmem:[#allocation3 + $0x39] sm:$0x1]  ;;  %v10577_v40 = vld [vmem:[#allocation3 + $0x3b] sm:$0x1] }
 0x723   : > { %v10883_v27 = vrot.slane %v10517_v19, 5  ;;  %v10882_v5 = vsel %vm10862_vm14, %v10881_v37, %v10880_v36  ;;  %v10973_v9 = vrot.slane %v10612_v58, 6  ;;  %v10872_v42 = vsel %vm10871_vm1, %v10870_v53, %v10869_v13  ;;  %v10672_v36 = vld [vmem:[#allocation3 + $0x35] sm:$0x1] }
 0x724   : > { %v10361_v47 = vadd.f32 %v18362_v29, %v10328_v57  ;;  %v10392_v26 = vmax.f32 %v10360_v7, 0.0  ;;  %v10613_v7 = vmax.f32 %v10549_v28, %v10581_v35  ;;  %v18447_v57 = vld [vmem:[#allocation3 + $0x38] sm:$0x1]  ;;  %v10873_v13 = vrot.slane %v10512_v10, 2 }
 0x725   : > { %v10454_v0 = vld [vmem:[#allocation3 + $0x60] sm:$0x1]  ;;  %v10486_v45 = vld [vmem:[#allocation3 + $0x61] sm:$0x1]  ;;  %v10550_v61 = vld [vmem:[#allocation3 + $0x62] sm:$0x1]  ;;  %v10884_v37 = vsel %vm10865_vm15, %v10883_v27, %v10882_v5 }
 0x726   : > { %v10170_v51 = vpop.f32.mrb[160].mxu0  ;;  %v10518_v33 = vmax.f32 %v10454_v0, %v10486_v45  ;;  %v10393_v54 = vmax.f32 %v10361_v47, 0.0  ;;  %10424 = vst [vmem:[#allocation3 + $0x70] sm:$0xff] %v10392_v26  ;;  %v10582_v49 = vld [vmem:[#allocation3 + $0x63] sm:$0x1]  ;;  %v10608_v45 = vmax.f32 %v10544_v11, %v10576_v8  ;;  %v10965_v47 = vrot.slane %v10607_v12, 3 }
 0x727   : > { %v10172_v2 = vpop.f32.mrb[161].mxu0  ;;  %v10455_v22 = vld [vmem:[#allocation3 + $0x68] sm:$0x1]  ;;  %v10487_v24 = vld [vmem:[#allocation3 + $0x69] sm:$0x1]  ;;  %v10614_v20 = vmax.f32 %v10550_v61, %v10582_v49  ;;  %v10972_v26 = vsel %vm10859_vm13, %v10971_v15, %v10610_v63 }
 0x728   : > { %v10329_v38 = vmax.f32 %v10170_v51, %v10172_v2  ;;  %v10174_v23 = vpop.f32.mrb[162].mxu0  ;;  %10425 = vst [vmem:[#allocation3 + $0x78] sm:$0xff] %v10393_v54  ;;  %v10519_v4 = vmax.f32 %v10455_v22, %v10487_v24  ;;  %v10885_v55 = vrot.slane %v10518_v33, 4  ;;  %v10551_v44 = vld [vmem:[#allocation3 + $0x6a] sm:$0x1]  ;;  %v10975_v33 = vrot.slane %v10613_v7, 5 }
 0x729   : > { %v10176_v6 = vpop.f32.mrb[163].mxu0  ;;  %v10583_v52 = vld [vmem:[#allocation3 + $0x6b] sm:$0x1]  ;;  %v10545_v0 = vld [vmem:[#allocation3 + $0x3a] sm:$0x1]  ;;  %v10974_v58 = vsel %vm10862_vm14, %v10973_v9, %v10972_v26  ;;  %v10977_v3 = vrot.slane %v10614_v20, 4 }
 0x72a   : > { %v10362_v41 = vadd.f32 %v18362_v29, %v10329_v38  ;;  %v10330_v59 = vmax.f32 %v10174_v23, %v10176_v6  ;;  %v10887_v51 = vrot.slane %v10519_v4, 3  ;;  %v10886_v54 = vsel %vm10868_vm0, %v10885_v55, %v10884_v37  ;;  %v10640_v15 = vld [vmem:[#allocation3 + $0x34] sm:$0x1]  ;;  %v18458_v4 = vld [vmem:[#allocation3 + $0x26] sm:$0x1] }
 0x72b   : > { %v10615_v35 = vmax.f32 %v10551_v44, %v10583_v52  ;;  %v10513_v38 = vmax.f32 %v18447_v57, %v10481_v14  ;;  %v10609_v6 = vmax.f32 %v10545_v0, %v10577_v40  ;;  %v10967_v12 = vrot.slane %v10608_v45, 2  ;;  %v10641_v0 = vld [vmem:[#allocation3 + $0x3c] sm:$0x1]  ;;  %v10673_v45 = vld [vmem:[#allocation3 + $0x3d] sm:$0x1] }
 0x72c   : > { %v10394_v56 = vmax.f32 %v10362_v41, 0.0  ;;  %v10363_v17 = vadd.f32 %v18362_v29, %v10330_v59  ;;  %v18460_v41 = vld [vmem:[#allocation3 + $0x27] sm:$0x1]  ;;  %v10888_v10 = vsel %vm10871_vm1, %v10887_v51, %v10886_v54  ;;  %v10964_v57 = vsel %vm10868_vm0, %v10963_v30, %v18436_v31 }
 0x72d   : > { %v10456_v2 = vld [vmem:[#allocation3 + $0x70] sm:$0x1]  ;;  %v10488_v53 = vld [vmem:[#allocation3 + $0x71] sm:$0x1]  ;;  %v10552_v8 = vld [vmem:[#allocation3 + $0x72] sm:$0x1]  ;;  %v10976_v5 = vsel %vm10865_vm15, %v10975_v33, %v10974_v58  ;;  %v10704_v44 = vmax.f32 %v10640_v15, %v10672_v36  ;;  %v10875_v51 = vsel %vm10874_vm2, %v10873_v13, %v10872_v42  ;;  %v10966_v33 = vsel %vm10871_vm1, %v10965_v47, %v10964_v57 }
 0x72e   : > { %v10180_v19 = vpop.f32.mrb[164].mxu0  ;;  %10426 = vst [vmem:[#allocation3 + $0x80] sm:$0xff] %v10394_v56  ;;  %v10395_v32 = vmax.f32 %v10363_v17, 0.0  ;;  %v10520_v23 = vmax.f32 %v10456_v2, %v10488_v53  ;;  %v10584_v56 = vld [vmem:[#allocation3 + $0x73] sm:$0x1]  ;;  %v10979_v17 = vrot.slane %v10615_v35, 3  ;;  %v10798_v2 = vmax.f32 %v18458_v4, %v18460_v41 }
 0x72f   : > { %v10182_v39 = vpop.f32.mrb[165].mxu0  ;;  %v10457_v61 = vld [vmem:[#allocation3 + $0x78] sm:$0x1]  ;;  %v10489_v49 = vld [vmem:[#allocation3 + $0x79] sm:$0x1]  ;;  %v10616_v14 = vmax.f32 %v10552_v8, %v10584_v56  ;;  %v10876_v26 = vrot.slane %v10513_v38, 1  ;;  %v10968_v35 = vsel %vm10874_vm2, %v10967_v12, %v10966_v33  ;;  %v11054_v56 = vsel %vm10865_vm15, %v18390_v34, %v18418_v18 }
 0x730   : > { %v10331_v28 = vmax.f32 %v10180_v19, %v10182_v39  ;;  %10427 = vst [vmem:[#allocation3 + $0x88] sm:$0xff] %v10395_v32  ;;  %v10521_v27 = vmax.f32 %v10457_v61, %v10489_v49  ;;  %v10184_v24 = vpop.f32.mrb[166].mxu0  ;;  %v10889_v59 = vrot.slane %v10520_v23, 2  ;;  %v10553_v7 = vld [vmem:[#allocation3 + $0x7a] sm:$0x1]  ;;  %v10978_v19 = vsel %vm10868_vm0, %v10977_v3, %v10976_v5  ;;  %v14021_v34 = vld [vmem:[%s18948_s3 + $0x88] sm:$0xff]  }
 0x731   : > { %v10186_v11 = vpop.f32.mrb[167].mxu0  ;;  %v10585_v20 = vld [vmem:[#allocation3 + $0x7b] sm:$0x1]  ;;  %v10969_v37 = vrot.slane %v10609_v6, 1  ;;  %v10643_v32 = vld [vmem:[#allocation3 + $0x4c] sm:$0x1]  ;;  %v10980_v58 = vsel %vm10871_vm1, %v10979_v17, %v10978_v19  ;;  %v10705_v3 = vmax.f32 %v10641_v0, %v10673_v45 }
 0x732   : > { %v10364_v22 = vadd.f32 %v18362_v29, %v10331_v28  ;;  %v10891_v55 = vrot.slane %v10521_v27, 1  ;;  %v10332_v9 = vmax.f32 %v10184_v24, %v10186_v11  ;;  %v10890_v52 = vsel %vm10874_vm2, %v10889_v59, %v10888_v10  ;;  %v10675_v39 = vld [vmem:[#allocation3 + $0x4d] sm:$0x1]  ;;  %v10644_v53 = vld [vmem:[#allocation3 + $0x54] sm:$0x1]  ;;  %v14019_v24 = vld [vmem:[%s18948_s3 + $0x80] sm:$0xff]  }
 0x733   : > { %v10617_v30 = vmax.f32 %v10553_v7, %v10585_v20  ;;  %v10981_v54 = vrot.slane %v10616_v14, 2  ;;  %v10676_v28 = vld [vmem:[#allocation3 + $0x55] sm:$0x1]  ;;  %v18479_v42 = vrot.slane %v10797_v1, 5  ;;  %v18481_v13 = vrot.slane %v10704_v44, 2  ;;  %v14020_v10 = vld [vmem:[%s18948_s3 + $0xc8] sm:$0xff]  }
 0x734   : > { %v10396_v63 = vmax.f32 %v10364_v22, 0.0  ;;  %v10365_v31 = vadd.f32 %v18362_v29, %v10332_v9  ;;  %v10892_v38 = vsel %vm10877_vm3, %v10891_v55, %v10890_v52  ;;  %v10707_v15 = vmax.f32 %v10643_v32, %v10675_v39  ;;  %v18493_v59 = vld [vmem:[#allocation3 + $0x36] sm:$0x1]  ;;  %v18495_v11 = vld [vmem:[#allocation3 + $0x37] sm:$0x1] }
 0x735   : > { %v10982_v61 = vsel %vm10874_vm2, %v10981_v54, %v10980_v58  ;;  %v10983_v49 = vrot.slane %v10617_v30, 1  ;;  %v10878_v22 = vsel %vm10877_vm3, %v10876_v26, %v10875_v51  ;;  %v10708_v1 = vmax.f32 %v10644_v53, %v10676_v28  ;;  %v10642_v8 = vld [vmem:[#allocation3 + $0x44] sm:$0x1]  ;;  %v10645_v7 = vld [vmem:[#allocation3 + $0x5c] sm:$0x1] }
 0x736   : > { %10428 = vst [vmem:[#allocation3 + $0x90] sm:$0xff] %v10396_v63  ;;  %v10190_v40 = vpop.f32.mrb[168].mxu0  ;;  %v10397_v47 = vmax.f32 %v10365_v31, 0.0  ;;  %v10970_v6 = vsel %vm10877_vm3, %v10969_v37, %v10968_v35  ;;  %v11201_v4 = vpack.c.bf16 %v10892_v38, %v10878_v22  ;;  %v10677_v57 = vld [vmem:[#allocation3 + $0x5d] sm:$0x1]  ;;  %v11142_v9 = vsel %vm10859_vm13, %v18381_v62, %v10794_v48 }
 0x737   : > { %v10192_v23 = vpop.f32.mrb[169].mxu0  ;;  %v10984_v12 = vsel %vm10877_vm3, %v10983_v49, %v10982_v61  ;;  %v10674_v17 = vld [vmem:[#allocation3 + $0x45] sm:$0x1]  ;;  %v10646_v44 = vld [vmem:[#allocation3 + $0x64] sm:$0x1]  ;;  %v10799_v20 = vmax.f32 %v10735_v43, %v10767_v60  ;;  %v11144_v14 = vsel %vm10862_vm14, %v18407_v50, %v11142_v9  ;;  %v18508_v19 = vrot.slane %v10705_v3, 1 }
 0x738   : > { %v10333_v36 = vmax.f32 %v10190_v40, %v10192_v23  ;;  %v10194_v27 = vpop.f32.mrb[170].mxu0  ;;  %10429 = vst [vmem:[#allocation3 + $0x98] sm:$0xff] %v10397_v47  ;;  %v11202_v55 = vpack.c.bf16 %v10984_v12, %v10970_v6  ;;  %v10678_v52 = vld [vmem:[#allocation3 + $0x65] sm:$0x1]  ;;  %v11063_v0 = vrot.slane %v10707_v15, 7  ;;  %v11065_v62 = vrot.slane %v10708_v1, 6 }
 0x739   : > { %v10196_v41 = vpop.f32.mrb[171].mxu0  ;;  %v10709_v48 = vmax.f32 %v10645_v7, %v10677_v57  ;;  %v14022_v50 = vld [vmem:[%s18948_s3 + $0xd0] sm:$0xff]   ;;  %v10800_v18 = vmax.f32 %v18493_v59, %v18495_v11  ;;  %v11147_v31 = vrot.slane %v10798_v2, 4  ;;  %v10706_v30 = vmax.f32 %v10642_v8, %v10674_v17  ;;  %v18519_v40 = vld [vmem:[#allocation3 + $0x3e] sm:$0x1] }
 0x73a   : > { %v10366_v5 = vadd.f32 %v18362_v29, %v10333_v36  ;;  %v10334_v63 = vmax.f32 %v10194_v27, %v10196_v41  ;;  %11498 = vmatprep.mubr.bf16.mxu1 %v11202_v55  ;;  %v10710_v37 = vmax.f32 %v10646_v44, %v10678_v52  ;;  %v18521_v33 = vld [vmem:[#allocation3 + $0x3f] sm:$0x1]  ;;  %v11056_v54 = vsel %vm10868_vm0, %v18409_v21, %v11054_v56  ;;  %v10647_v53 = vld [vmem:[#allocation3 + $0x6c] sm:$0x1]  ;;  %v10679_v28 = vld [vmem:[#allocation3 + $0x6d] sm:$0x1] }
 0x73b   : > { %11499 = vmatmul.mubr.bf16.vlgmr.msra.gmra.mrb[128].mxu1 %v11201_v4  ;;  %v18525_v58 = vld [vmem:[#allocation3 + $0x46] sm:$0x1]  ;;  %v18527_v2 = vld [vmem:[#allocation3 + $0x4e] sm:$0x1]  ;;  %v18529_v38 = vld [vmem:[#allocation3 + $0x47] sm:$0x1]  ;;  %v11064_v23 = vsel %vm10859_vm13, %v11063_v0, %v10706_v30  ;;  %v11146_v27 = vsel %vm10865_vm15, %v18479_v42, %v11144_v14  ;;  %v10711_v42 = vmax.f32 %v10647_v53, %v10679_v28  ;;  %v11058_v57 = vsel %vm10871_vm1, %v18433_v46, %v11056_v54 }
 0x73c   : > { %v10398_v45 = vmax.f32 %v10366_v5, 0.0  ;;  %v10367_v25 = vadd.f32 %v18362_v29, %v10334_v63  ;;  %12991 = vmatpush3.bf16.msra.mxu1 %v14019_v24  ;;  %v11149_v47 = vrot.slane %v10799_v20, 3  ;;  %v14023_v21 = vld [vmem:[%s18948_s3 + $0x90] sm:$0xff]   ;;  %v18538_v15 = vld [vmem:[#allocation3 + $0x4f] sm:$0x1]  ;;  %v11066_v22 = vsel %vm10862_vm14, %v11065_v62, %v11064_v23  ;;  %v14024_v43 = vld [vmem:[%s18948_s3 + $0xd8] sm:$0xff]  }
 0x73d   : > { %12992 = vmatprep.subr.bf16.mxu1 %v14020_v10  ;;  %v18536_v3 = vld [vmem:[#allocation3 + $0x56] sm:$0x1]  ;;  %v18540_v36 = vld [vmem:[#allocation3 + $0x57] sm:$0x1]  ;;  %v11067_v24 = vrot.slane %v10709_v48, 5  ;;  %v11148_v4 = vsel %vm10868_vm0, %v11147_v31, %v11146_v27  ;;  %v11151_v41 = vrot.slane %v10800_v18, 2  ;;  %v10801_v9 = vmax.f32 %v18519_v40, %v18521_v33 }
 0x73e   : > { %v10200_v16 = vpop.f32.mrb[172].mxu0  ;;  %10430 = vst [vmem:[#allocation3 + $0xa0] sm:$0xff] %v10398_v45  ;;  %v10399_v51 = vmax.f32 %v10367_v25, 0.0  ;;  %v18548_v60 = vld [vmem:[#allocation3 + $0x5e] sm:$0x1]  ;;  %v11069_v10 = vrot.slane %v10710_v37, 4  ;;  %v18566_v56 = vsel %vm10874_vm2, %v18481_v13, %v11058_v57  ;;  %v10802_v14 = vmax.f32 %v18525_v58, %v18529_v38 }
 0x73f   : > { %v10202_v26 = vpop.f32.mrb[173].mxu0  ;;  %v18550_v1 = vld [vmem:[#allocation3 + $0x66] sm:$0x1]  ;;  %v18552_v6 = vld [vmem:[#allocation3 + $0x5f] sm:$0x1]  ;;  %v10803_v0 = vmax.f32 %v18527_v2, %v18538_v15  ;;  %v11068_v45 = vsel %vm10865_vm15, %v11067_v24, %v11066_v22 }
 0x740   : > { %v10335_v32 = vmax.f32 %v10200_v16, %v10202_v26  ;;  %v10204_v39 = vpop.f32.mrb[174].mxu0  ;;  %10431 = vst [vmem:[#allocation3 + $0xa8] sm:$0xff] %v10399_v51  ;;  %v18554_v12 = vld [vmem:[#allocation3 + $0x67] sm:$0x1]  ;;  %v10648_v59 = vld [vmem:[#allocation3 + $0x74] sm:$0x1]  ;;  %12993 = vmatpush3.bf16.msra.mxu1 %v14021_v34  ;;  %v10804_v26 = vmax.f32 %v18536_v3, %v18540_v36  ;;  %v11150_v34 = vsel %vm10871_vm1, %v11149_v47, %v11148_v4 }
 0x741   : > { %v10206_v35 = vpop.f32.mrb[175].mxu0  ;;  %v10680_v11 = vld [vmem:[#allocation3 + $0x75] sm:$0x1]  ;;  %v10649_v5 = vld [vmem:[#allocation3 + $0x7c] sm:$0x1]  ;;  %12994 = vmatprep.subr.bf16.mxu1 %v14022_v50  ;;  %v14026_v48 = vld [vmem:[%s18948_s3 + $0xe0] sm:$0xff]   ;;  %v10805_v51 = vmax.f32 %v18548_v60, %v18552_v6  ;;  %v11152_v28 = vsel %vm10874_vm2, %v11151_v41, %v11150_v34 }
 0x742   : > { %v10368_v61 = vadd.f32 %v18362_v29, %v10335_v32  ;;  %v10336_v49 = vmax.f32 %v10204_v39, %v10206_v35  ;;  %v10681_v55 = vld [vmem:[#allocation3 + $0x7d] sm:$0x1]  ;;  %v18560_v63 = vld [vmem:[#allocation3 + $0x6e] sm:$0x1]  ;;  %v10459_v17 = vld [vmem:[#allocation3 + $0x88] sm:$0x1]  ;;  %v10712_v13 = vmax.f32 %v10648_v59, %v10680_v11  ;;  %v10806_v32 = vmax.f32 %v18550_v1, %v18554_v12 }
 0x743   : > { %v14025_v46 = vld [vmem:[%s18948_s3 + $0x98] sm:$0xff]   ;;  %v18571_v20 = vld [vmem:[#allocation3 + $0x6f] sm:$0x1]  ;;  %v10491_v25 = vld [vmem:[#allocation3 + $0x89] sm:$0x1]  ;;  %v11071_v50 = vrot.slane %v10711_v42, 3  ;;  %v10713_v18 = vmax.f32 %v10649_v5, %v10681_v55  ;;  %v11070_v39 = vsel %vm10868_vm0, %v11069_v10, %v11068_v45 }
 0x744   : > { %v10400_v8 = vmax.f32 %v10368_v61, 0.0  ;;  %v10369_v7 = vadd.f32 %v18362_v29, %v10336_v49  ;;  %v10651_v16 = vld [vmem:[#allocation3 + $0x8c] sm:$0x1]  ;;  %v10683_v62 = vld [vmem:[#allocation3 + $0x8d] sm:$0x1]  ;;  %12995 = vmatpush3.bf16.msra.mxu1 %v14023_v21  ;;  %v11153_v35 = vrot.slane %v10801_v9, 1  ;;  %v10523_v2 = vmax.f32 %v10459_v17, %v10491_v25 }
 0x745   : > { %v18584_v30 = vld [vmem:[#allocation3 + $0x8a] sm:$0x1]  ;;  %v18586_v37 = vld [vmem:[#allocation3 + $0x76] sm:$0x1]  ;;  %12996 = vmatprep.subr.bf16.mxu1 %v14024_v43  ;;  %v10587_v54 = vld [vmem:[#allocation3 + $0x8b] sm:$0x1]  ;;  %v10715_v47 = vmax.f32 %v10651_v16, %v10683_v62  ;;  %v10807_v3 = vmax.f32 %v18560_v63, %v18571_v20  ;;  %v11072_v1 = vsel %vm10871_vm1, %v11071_v50, %v11070_v39 }
 0x746   : > { %10432 = vst [vmem:[#allocation3 + $0xb0] sm:$0xff] %v10400_v8  ;;  %v10401_v44 = vmax.f32 %v10369_v7, 0.0  ;;  %v10210_v52 = vpop.f32.mrb[176].mxu0  ;;  %v18593_v53 = vld [vmem:[#allocation3 + $0x77] sm:$0x1]  ;;  %v14027_v21 = vld [vmem:[%s18948_s3 + $0xa0] sm:$0xff]   ;;  %v10619_v41 = vmax.f32 %v18584_v30, %v10587_v54 }
 0x747   : > { %v10212_v31 = vpop.f32.mrb[177].mxu0  ;;  %v10460_v23 = vld [vmem:[#allocation3 + $0x90] sm:$0x1]  ;;  %v10492_v61 = vld [vmem:[#allocation3 + $0x91] sm:$0x1]  ;;  %v11155_v15 = vrot.slane %v10803_v0, 7  ;;  %v10808_v5 = vmax.f32 %v18586_v37, %v18593_v53 }
 0x748   : > { %10433 = vst [vmem:[#allocation3 + $0xb8] sm:$0xff] %v10401_v44  ;;  %v10337_v40 = vmax.f32 %v10210_v52, %v10212_v31  ;;  %v10214_v33 = vpop.f32.mrb[178].mxu0  ;;  %v11073_v36 = vrot.slane %v10712_v13, 2  ;;  %v18601_v27 = vld [vmem:[#allocation3 + $0x80] sm:$0x1]  ;;  %v11157_v60 = vrot.slane %v10804_v26, 6  ;;  %12997 = vmatpush3.bf16.msra.mxu1 %v14025_v46  ;;  %v10524_v42 = vmax.f32 %v10460_v23, %v10492_v61 }
 0x749   : > { %v10216_v49 = vpop.f32.mrb[179].mxu0  ;;  %v18603_v22 = vld [vmem:[#allocation3 + $0x81] sm:$0x1]  ;;  %v18607_v6 = vrot.slane %v10713_v18, 1  ;;  %v18609_v12 = vld [vmem:[#allocation3 + $0x84] sm:$0x1]  ;;  %12998 = vmatprep.subr.bf16.mxu1 %v14026_v48  ;;  %v11156_v20 = vsel %vm10859_vm13, %v11155_v15, %v10802_v14  ;;  %v18644_v26 = vsel %vm10877_vm3, %v11153_v35, %v11152_v28 }
 0x74a   : > { %v10370_v24 = vadd.f32 %v18362_v29, %v10337_v40  ;;  %v10338_v43 = vmax.f32 %v10214_v33, %v10216_v49  ;;  %v18611_v4 = vld [vmem:[#allocation3 + $0x85] sm:$0x1]  ;;  %v11159_v10 = vrot.slane %v10805_v51, 5  ;;  %v14028_v8 = vld [vmem:[%s18948_s3 + $0xe8] sm:$0xff]   ;;  %v10556_v7 = vld [vmem:[#allocation3 + $0x92] sm:$0x1]  ;;  %v18638_v45 = vsel %vm10874_vm2, %v11073_v36, %v11072_v1 }
 0x74b   : > { %v10588_v57 = vld [vmem:[#allocation3 + $0x93] sm:$0x1]  ;;  %v10893_v55 = vrot.slane %v10523_v2, 7  ;;  %v18620_v63 = vrot.slane %v10715_v47, 7  ;;  %v14029_v17 = vld [vmem:[%s18948_s3 + $0xa8] sm:$0xff]   ;;  %v11161_v0 = vrot.slane %v10806_v32, 4  ;;  %v11158_v58 = vsel %vm10862_vm14, %v11157_v60, %v11156_v20 }
 0x74c   : > { %v10402_v59 = vmax.f32 %v10370_v24, 0.0  ;;  %v10371_v11 = vadd.f32 %v18362_v29, %v10338_v43  ;;  %v18625_v44 = vld [vmem:[#allocation3 + $0x82] sm:$0x1]  ;;  %v18627_v29 = vld [vmem:[#allocation3 + $0x83] sm:$0x1]  ;;  %v14030_v48 = vld [vmem:[%s18948_s3 + $0xf0] sm:$0xff]   ;;  %v10522_v38 = vmax.f32 %v18601_v27, %v18603_v22  ;;  %12999 = vmatpush3.bf16.msra.mxu1 %v14027_v21  ;;  %v10620_v37 = vmax.f32 %v10556_v7, %v10588_v57 }
 0x74d   : > { %v18629_v52 = vld [vmem:[#allocation3 + $0x7e] sm:$0x1]  ;;  %v18631_v46 = vld [vmem:[#allocation3 + $0x7f] sm:$0x1]  ;;  %v10461_v13 = vld [vmem:[#allocation3 + $0x98] sm:$0x1]  ;;  %v10714_v32 = vmax.f32 %v18609_v12, %v18611_v4  ;;  %13000 = vmatprep.subr.bf16.mxu1 %v14028_v8  ;;  %v11160_v15 = vsel %vm10865_vm15, %v11159_v10, %v11158_v58  ;;  %v10618_v36 = vmax.f32 %v18625_v44, %v18627_v29 }
 0x74e   : > { %v10220_v9 = vpop.f32.mrb[180].mxu0  ;;  %v10493_v25 = vld [vmem:[#allocation3 + $0x99] sm:$0x1]  ;;  %10434 = vst [vmem:[#allocation3 + $0xc0] sm:$0xff] %v10402_v59  ;;  %v10403_v16 = vmax.f32 %v10371_v11, 0.0  ;;  %v10985_v51 = vrot.slane %v10619_v41, 7  ;;  %v10809_v22 = vmax.f32 %v18629_v52, %v18631_v46  ;;  %v11162_v24 = vsel %vm10868_vm0, %v11161_v0, %v11160_v15 }
 0x74f   : > { %v10222_v62 = vpop.f32.mrb[181].mxu0  ;;  %v18649_v14 = vld [vmem:[#allocation3 + $0x94] sm:$0x1]  ;;  %v18651_v34 = vld [vmem:[#allocation3 + $0x95] sm:$0x1]  ;;  %v10895_v39 = vrot.slane %v10524_v42, 6  ;;  %v10525_v28 = vmax.f32 %v10461_v13, %v10493_v25  ;;  %v10894_v8 = vsel %vm10859_vm13, %v10893_v55, %v10522_v38 }
 0x750   : > { %v10339_v50 = vmax.f32 %v10220_v9, %v10222_v62  ;;  %v10224_v18 = vpop.f32.mrb[182].mxu0  ;;  %v10557_v31 = vld [vmem:[#allocation3 + $0x9a] sm:$0x1]  ;;  %v10589_v30 = vld [vmem:[#allocation3 + $0x9b] sm:$0x1]  ;;  %10435 = vst [vmem:[#allocation3 + $0xc8] sm:$0xff] %v10403_v16  ;;  %13001 = vmatpush3.bf16.msra.mxu1 %v14029_v17  ;;  %v10716_v7 = vmax.f32 %v18649_v14, %v18651_v34  ;;  %v10986_v29 = vsel %vm10859_vm13, %v10985_v51, %v10618_v36 }
 0x751   : > { %v10462_v40 = vld [vmem:[#allocation3 + $0xa0] sm:$0x1]  ;;  %v10226_v33 = vpop.f32.mrb[183].mxu0  ;;  %v11163_v54 = vrot.slane %v10807_v3, 3  ;;  %v11165_v53 = vrot.slane %v10808_v5, 2  ;;  %v14031_v21 = vld [vmem:[%s18948_s3 + $0xb0] sm:$0xff]   ;;  %v10621_v27 = vmax.f32 %v10557_v31, %v10589_v30  ;;  %13002 = vmatprep.subr.bf16.mxu1 %v14030_v48  ;;  %v10896_v17 = vsel %vm10862_vm14, %v10895_v39, %v10894_v8 }
 0x752   : > { %v10494_v35 = vld [vmem:[#allocation3 + $0xa1] sm:$0x1]  ;;  %v10340_v23 = vmax.f32 %v10224_v18, %v10226_v33  ;;  %v10558_v61 = vld [vmem:[#allocation3 + $0xa2] sm:$0x1]  ;;  %v10590_v49 = vld [vmem:[#allocation3 + $0xa3] sm:$0x1]  ;;  %v18697_v33 = vsel %vm10877_vm3, %v18607_v6, %v18638_v45  ;;  %v18717_v6 = vsel %vm10859_vm13, %v18620_v63, %v10714_v32 }
 0x753   : > { %v18658_v2 = vld [vmem:[%s18950_s5 + $0x1] ss:$0 sm:$0xff]  ;;  %v18665_v3 = vld [vmem:[#allocation3 + $0xaa] sm:$0x1]  ;;  %v14032_v43 = vld [vmem:[%s18948_s3 + $0xf8] sm:$0xff]   ;;  %v10987_v59 = vrot.slane %v10620_v37, 6  ;;  %v10526_v57 = vmax.f32 %v10462_v40, %v10494_v35  ;;  %v10622_v44 = vmax.f32 %v10558_v61, %v10590_v49  ;;  %v11164_v20 = vsel %vm10871_vm1, %v11163_v54, %v11162_v24 }
 0x754   : > { %v10372_v47 = vadd.f32 %v18658_v2, %v10339_v50  ;;  %v10747_v60 = vld [vmem:[#allocation3 + $0x8e] sm:$0x1]  ;;  %v10779_v1 = vld [vmem:[#allocation3 + $0x8f] sm:$0x1]  ;;  %v10373_v10 = vadd.f32 %v18658_v2, %v10340_v23  ;;  %v10591_v42 = vld [vmem:[#allocation3 + $0xab] sm:$0x1]  ;;  %13003 = vmatpush3.bf16.msra.mxu1 %v14031_v21  ;;  %v11166_v30 = vsel %vm10874_vm2, %v11165_v53, %v11164_v20 }
 0x755   : > { %v10463_v11 = vld [vmem:[#allocation3 + $0xa8] sm:$0x1]  ;;  %v10560_v5 = vld [vmem:[#allocation3 + $0xb2] sm:$0x1]  ;;  %v10592_v9 = vld [vmem:[#allocation3 + $0xb3] sm:$0x1]  ;;  %v10811_v0 = vmax.f32 %v10747_v60, %v10779_v1  ;;  %v10623_v25 = vmax.f32 %v18665_v3, %v10591_v42  ;;  %v10988_v34 = vsel %vm10862_vm14, %v10987_v59, %v10986_v29  ;;  %13004 = vmatprep.subr.bf16.mxu1 %v14032_v43 }
 0x756   : > { %v10404_v41 = vmax.f32 %v10372_v47, 0.0  ;;  %v10495_v52 = vld [vmem:[#allocation3 + $0xa9] sm:$0x1]  ;;  %v10897_v46 = vrot.slane %v10525_v28, 5  ;;  %v10405_v13 = vmax.f32 %v10373_v10, 0.0  ;;  %v10230_v55 = vpop.f32.mrb[184].mxu0  ;;  %v10624_v14 = vmax.f32 %v10560_v5, %v10592_v9 }
 0x757   : > { %v10989_v16 = vrot.slane %v10621_v27, 5  ;;  %v11167_v62 = vrot.slane %v10809_v22, 1  ;;  %v14033_v58 = vld [vmem:[%s18948_s3 + $0xb8] sm:$0xff]   ;;  %v10464_v50 = vld [vmem:[#allocation3 + $0xb0] sm:$0x1]  ;;  %v10527_v31 = vmax.f32 %v10463_v11, %v10495_v52  ;;  %v18692_v37 = vrot.slane %v10716_v7, 6 }
 0x758   : > { %10436 = vst [vmem:[#allocation3 + $0xd0] sm:$0xff] %v10404_v41  ;;  %v18686_v38 = vld [vmem:[#allocation3 + $0x9c] sm:$0x1]  ;;  %v18688_v48 = vld [vmem:[#allocation3 + $0x9d] sm:$0x1]  ;;  %10437 = vst [vmem:[#allocation3 + $0xd8] sm:$0xff] %v10405_v13  ;;  %v10898_v61 = vsel %vm10865_vm15, %v10897_v46, %v10896_v17  ;;  %13005 = vmatpush3.bf16.msra.mxu1 %v14033_v58 }
 0x759   : > { %v10496_v18 = vld [vmem:[#allocation3 + $0xb1] sm:$0x1]  ;;  %v10232_v51 = vpop.f32.mrb[185].mxu0  ;;  %v10991_v39 = vrot.slane %v10622_v44, 4  ;;  %v10899_v40 = vrot.slane %v10526_v57, 4  ;;  %v18710_v3 = vrot.slane %v10811_v0, 7  ;;  %v10990_v36 = vsel %vm10865_vm15, %v10989_v16, %v10988_v34 }
 0x75a   : > { %v18699_v54 = vld [vmem:[#allocation3 + $0x86] sm:$0x1]  ;;  %v18701_v28 = vld [vmem:[#allocation3 + $0x87] sm:$0x1]  ;;  %v10341_v35 = vmax.f32 %v10230_v55, %v10232_v51  ;;  %v10234_v47 = vpop.f32.mrb[186].mxu0  ;;  %v10993_v27 = vrot.slane %v10623_v25, 3  ;;  %v10528_v43 = vmax.f32 %v10464_v50, %v10496_v18  ;;  %v18721_v60 = vsel %vm10877_vm3, %v11167_v62, %v11166_v30 }
 0x75b   : > { %v10561_v23 = vld [vmem:[#allocation3 + $0xba] sm:$0x1]  ;;  %v10593_v53 = vld [vmem:[#allocation3 + $0xbb] sm:$0x1]  ;;  %v18704_v49 = vld [vmem:[#allocation3 + $0x96] sm:$0x1]  ;;  %v10992_v7 = vsel %vm10868_vm0, %v10991_v39, %v10990_v36  ;;  %v10900_v57 = vsel %vm10868_vm0, %v10899_v40, %v10898_v61  ;;  %v10810_v0 = vmax.f32 %v18699_v54, %v18701_v28 }
 0x75c   : > { %v18706_v21 = vld [vmem:[#allocation3 + $0x9e] sm:$0x1]  ;;  %v18708_v15 = vld [vmem:[#allocation3 + $0x97] sm:$0x1]  ;;  %v10236_v45 = vpop.f32.mrb[187].mxu0  ;;  %v10374_v41 = vadd.f32 %v18658_v2, %v10341_v35  ;;  %v10995_v12 = vrot.slane %v10624_v14, 2  ;;  %v10625_v8 = vmax.f32 %v10561_v23, %v10593_v53  ;;  %v10994_v18 = vsel %vm10871_vm1, %v10993_v27, %v10992_v7 }
 0x75d   : > { %v10465_v22 = vld [vmem:[#allocation3 + $0xb8] sm:$0x1]  ;;  %v10497_v24 = vld [vmem:[#allocation3 + $0xb9] sm:$0x1]  ;;  %v18723_v1 = vld [vmem:[#allocation3 + $0xc8] sm:$0x1]  ;;  %v10342_v10 = vmax.f32 %v10234_v47, %v10236_v45  ;;  %v10812_v58 = vmax.f32 %v18704_v49, %v18708_v15 }
 0x75e   : > { %v10901_v4 = vrot.slane %v10527_v31, 3  ;;  %v18726_v63 = vld [vmem:[#allocation3 + $0x9f] sm:$0x1]  ;;  %v18730_v42 = vld [vmem:[#allocation3 + $0xc9] sm:$0x1]  ;;  %v10406_v52 = vmax.f32 %v10374_v41, 0.0  ;;  %v10529_v20 = vmax.f32 %v10465_v22, %v10497_v24  ;;  %v10996_v28 = vsel %vm10874_vm2, %v10995_v12, %v10994_v18 }
 0x75f   : > { %v18732_v59 = vld [vmem:[#allocation3 + $0xca] sm:$0x1]  ;;  %v18734_v11 = vld [vmem:[#allocation3 + $0xcb] sm:$0x1]  ;;  %v18738_v5 = vld [vmem:[#allocation3 + $0xa4] sm:$0x1]  ;;  %v10375_v46 = vadd.f32 %v18658_v2, %v10342_v10  ;;  %v10813_v14 = vmax.f32 %v18706_v21, %v18726_v63  ;;  %v10531_v39 = vmax.f32 %v18723_v1, %v18730_v42 }
 0x760   : > { %v18740_v9 = vld [vmem:[#allocation3 + $0xa5] sm:$0x1]  ;;  %v10468_v44 = vld [vmem:[#allocation3 + $0xd0] sm:$0x1]  ;;  %v10500_v29 = vld [vmem:[#allocation3 + $0xd1] sm:$0x1]  ;;  %v10902_v31 = vsel %vm10871_vm1, %v10901_v4, %v10900_v57  ;;  %v10627_v54 = vmax.f32 %v18732_v59, %v18734_v11  ;;  %v18784_v59 = vsel %vm10859_vm13, %v18710_v3, %v10810_v0 }
 0x761   : > { %v10240_v17 = vpop.f32.mrb[188].mxu0  ;;  %v10564_v55 = vld [vmem:[#allocation3 + $0xd2] sm:$0x1]  ;;  %v10596_v25 = vld [vmem:[#allocation3 + $0xd3] sm:$0x1]  ;;  %v10903_v16 = vrot.slane %v10528_v43, 2  ;;  %v10532_v49 = vmax.f32 %v10468_v44, %v10500_v29 }
 0x762   : > { %v10242_v13 = vpop.f32.mrb[189].mxu0  ;;  %10438 = vst [vmem:[#allocation3 + $0xe0] sm:$0xff] %v10406_v52  ;;  %v10407_v34 = vmax.f32 %v10375_v46, 0.0  ;;  %v18753_v30 = vld [vmem:[#allocation3 + $0xa6] sm:$0x1]  ;;  %v10997_v35 = vrot.slane %v10625_v8, 1  ;;  %v10628_v27 = vmax.f32 %v10564_v55, %v10596_v25 }
 0x763   : > { %v10343_v50 = vmax.f32 %v10240_v17, %v10242_v13  ;;  %v18755_v51 = vld [vmem:[#allocation3 + $0xae] sm:$0x1]  ;;  %v10244_v40 = vpop.f32.mrb[190].mxu0  ;;  %v18762_v47 = vld [vmem:[#allocation3 + $0xa7] sm:$0x1]  ;;  %v10905_v22 = vrot.slane %v10529_v20, 1  ;;  %v10904_v4 = vsel %vm10874_vm2, %v10903_v16, %v10902_v31 }
 0x764   : > { %v18764_v23 = vld [vmem:[#allocation3 + $0xaf] sm:$0x1]  ;;  %v18766_v53 = vld [vmem:[#allocation3 + $0xc0] sm:$0x1]  ;;  %v18768_v61 = vld [vmem:[#allocation3 + $0xc1] sm:$0x1]  ;;  %v10814_v44 = vmax.f32 %v18753_v30, %v18762_v47  ;;  %v18796_v20 = vsel %vm10877_vm3, %v10997_v35, %v10996_v28 }
 0x765   : > { %10439 = vst [vmem:[#allocation3 + $0xe8] sm:$0xff] %v10407_v34  ;;  %v10376_v21 = vadd.f32 %v18658_v2, %v10343_v50  ;;  %v10246_v15 = vpop.f32.mrb[191].mxu0  ;;  %v10562_v45 = vld [vmem:[#allocation3 + $0xc2] sm:$0x1]  ;;  %v10594_v36 = vld [vmem:[#allocation3 + $0xc3] sm:$0x1]  ;;  %v10815_v29 = vmax.f32 %v18755_v51, %v18764_v23 }
 0x766   : > { %v18771_v24 = vld [vmem:[#allocation3 + $0xb6] sm:$0x1]  ;;  %v18773_v43 = vld [vmem:[#allocation3 + $0xb7] sm:$0x1]  ;;  %v10344_v41 = vmax.f32 %v10244_v40, %v10246_v15  ;;  %v10565_v10 = vld [vmem:[#allocation3 + $0xda] sm:$0x1] }
 0x767   : > { %v10597_v12 = vld [vmem:[#allocation3 + $0xdb] sm:$0x1]  ;;  %v18778_v63 = vld [vmem:[#allocation3 + $0xce] sm:$0x1]  ;;  %v18780_v42 = vld [vmem:[#allocation3 + $0xcf] sm:$0x1] }
 0x768   : > { %v10469_v11 = vld [vmem:[#allocation3 + $0xd8] sm:$0x1]  ;;  %v10501_v8 = vld [vmem:[#allocation3 + $0xd9] sm:$0x1]  ;;  %v10408_v7 = vmax.f32 %v10376_v21, 0.0  ;;  %v18792_v52 = vrot.slane %v10812_v58, 6  ;;  %v10377_v17 = vadd.f32 %v18658_v2, %v10344_v41  ;;  %v10629_v25 = vmax.f32 %v10565_v10, %v10597_v12 }
 0x769   : > { %v18786_v57 = vld [vmem:[#allocation3 + $0xbe] sm:$0x1]  ;;  %v10907_v46 = vrot.slane %v10531_v39, 7  ;;  %v10999_v3 = vrot.slane %v10627_v54, 7  ;;  %v10756_v0 = vld [vmem:[#allocation3 + $0xd6] sm:$0x1]  ;;  %v10530_v58 = vmax.f32 %v18766_v53, %v18768_v61  ;;  %v10533_v18 = vmax.f32 %v10469_v11, %v10501_v8 }
 0x76a   : > { %v10788_v13 = vld [vmem:[#allocation3 + $0xd7] sm:$0x1]  ;;  %v10909_v55 = vrot.slane %v10532_v49, 6  ;;  %10440 = vst [vmem:[#allocation3 + $0xf0] sm:$0xff] %v10408_v7  ;;  %v11001_v16 = vrot.slane %v10628_v27, 6  ;;  %v18800_v50 = vrot.slane %v10813_v14, 5  ;;  %v10626_v39 = vmax.f32 %v10562_v45, %v10594_v36 }
 0x76b   : > { %v18798_v34 = vld [vmem:[#allocation3 + $0xbf] sm:$0x1]  ;;  %v10470_v31 = vld [vmem:[#allocation3 + $0xe0] sm:$0x1]  ;;  %v10502_v2 = vld [vmem:[#allocation3 + $0xe1] sm:$0x1]  ;;  %v10819_v45 = vmax.f32 %v18778_v63, %v18780_v42  ;;  %v10820_v36 = vmax.f32 %v10756_v0, %v10788_v13  ;;  %v18820_v7 = vsel %vm10877_vm3, %v10905_v22, %v10904_v4  ;;  %v10908_v1 = vsel %vm10859_vm13, %v10907_v46, %v10530_v58 }
 0x76c   : > { %v18804_v40 = vld [vmem:[#allocation3 + $0xde] sm:$0x1]  ;;  %v18808_v28 = vld [vmem:[#allocation3 + $0xc4] sm:$0x1]  ;;  %v18810_v35 = vld [vmem:[#allocation3 + $0xc5] sm:$0x1]  ;;  %v10534_v21 = vmax.f32 %v10470_v31, %v10502_v2  ;;  %v11000_v8 = vsel %vm10859_vm13, %v10999_v3, %v10626_v39  ;;  %v10910_v42 = vsel %vm10862_vm14, %v10909_v55, %v10908_v1 }
 0x76d   : > { %v18812_v49 = vld [vmem:[#allocation3 + $0xcc] sm:$0x1]  ;;  %v18814_v14 = vld [vmem:[#allocation3 + $0xcd] sm:$0x1]  ;;  %v10409_v15 = vmax.f32 %v10377_v17, 0.0  ;;  %v11003_v62 = vrot.slane %v10629_v25, 5  ;;  %v11002_v13 = vsel %vm10862_vm14, %v11001_v16, %v11000_v8 }
 0x76e   : > { %v10566_v53 = vld [vmem:[#allocation3 + $0xe2] sm:$0x1]  ;;  %v10754_v61 = vld [vmem:[#allocation3 + $0xc6] sm:$0x1]  ;;  %v10786_v27 = vld [vmem:[#allocation3 + $0xc7] sm:$0x1]  ;;  %v10723_v1 = vmax.f32 %v18812_v49, %v18814_v14 }
 0x76f   : > { %v10789_v41 = vld [vmem:[#allocation3 + $0xdf] sm:$0x1]  ;;  %v10567_v10 = vld [vmem:[#allocation3 + $0xea] sm:$0x1]  ;;  %v10598_v12 = vld [vmem:[#allocation3 + $0xe3] sm:$0x1] }
 0x770   : > { %v10599_v11 = vld [vmem:[#allocation3 + $0xeb] sm:$0x1]  ;;  %10441 = vst [vmem:[#allocation3 + $0xf8] sm:$0xff] %v10409_v15  ;;  %v10630_v31 = vmax.f32 %v10566_v53, %v10598_v12  ;;  %v10471_v32 = vld [vmem:[#allocation3 + $0xe8] sm:$0x1]  ;;  %v10911_v0 = vrot.slane %v10533_v18, 5  ;;  %v10821_v4 = vmax.f32 %v18804_v40, %v10789_v41  ;;  %v10818_v18 = vmax.f32 %v10754_v61, %v10786_v27 }
 0x771   : > { %v10631_v2 = vmax.f32 %v10567_v10, %v10599_v11  ;;  %v10503_v63 = vld [vmem:[#allocation3 + $0xe9] sm:$0x1]  ;;  %v10758_v39 = vld [vmem:[#allocation3 + $0xe6] sm:$0x1]  ;;  %v10790_v22 = vld [vmem:[#allocation3 + $0xe7] sm:$0x1]  ;;  %v11172_v40 = vsel %vm10862_vm14, %v18792_v52, %v18784_v59 }
 0x772   : > { %v10535_v3 = vmax.f32 %v10471_v32, %v10503_v63  ;;  %v10660_v46 = vld [vmem:[#allocation3 + $0xd4] sm:$0x1]  ;;  %v10692_v58 = vld [vmem:[#allocation3 + $0xd5] sm:$0x1]  ;;  %v11005_v54 = vrot.slane %v10630_v31, 4  ;;  %v10913_v17 = vrot.slane %v10534_v21, 4  ;;  %v11004_v21 = vsel %vm10865_vm15, %v11003_v62, %v11002_v13 }
 0x773   : > { %v10759_v15 = vld [vmem:[#allocation3 + $0xee] sm:$0x1]  ;;  %v11183_v53 = vrot.slane %v10819_v45, 7  ;;  %v11185_v10 = vrot.slane %v10820_v36, 6  ;;  %v10568_v55 = vld [vmem:[#allocation3 + $0xf2] sm:$0x1]  ;;  %v10822_v11 = vmax.f32 %v10758_v39, %v10790_v22  ;;  %v10912_v49 = vsel %vm10865_vm15, %v10911_v0, %v10910_v42 }
 0x774   : > { %v10600_v16 = vld [vmem:[#allocation3 + $0xf3] sm:$0x1]  ;;  %v10472_v32 = vld [vmem:[#allocation3 + $0xf0] sm:$0x1]  ;;  %v11007_v12 = vrot.slane %v10631_v2, 3  ;;  %v11006_v8 = vsel %vm10868_vm0, %v11005_v54, %v11004_v21  ;;  %v10915_v14 = vrot.slane %v10535_v3, 3  ;;  %v10914_v59 = vsel %vm10868_vm0, %v10913_v17, %v10912_v49 }
 0x775   : > { %v10632_v41 = vmax.f32 %v10568_v55, %v10600_v16  ;;  %v10504_v45 = vld [vmem:[#allocation3 + $0xf1] sm:$0x1]  ;;  %v10791_v36 = vld [vmem:[#allocation3 + $0xef] sm:$0x1]  ;;  %v10661_v63 = vld [vmem:[#allocation3 + $0xdc] sm:$0x1]  ;;  %v11184_v62 = vsel %vm10859_vm13, %v11183_v53, %v10818_v18  ;;  %v10724_v13 = vmax.f32 %v10660_v46, %v10692_v58  ;;  %v11174_v42 = vsel %vm10865_vm15, %v18800_v50, %v11172_v40 }
 0x776   : > { %v10536_v31 = vmax.f32 %v10472_v32, %v10504_v45  ;;  %v10693_v25 = vld [vmem:[#allocation3 + $0xdd] sm:$0x1]  ;;  %v18838_v61 = vld [vmem:[#allocation3 + $0xe4] sm:$0x1]  ;;  %v10760_v52 = vld [vmem:[#allocation3 + $0xf6] sm:$0x1]  ;;  %v10823_v16 = vmax.f32 %v10759_v15, %v10791_v36  ;;  %v11186_v0 = vsel %vm10862_vm14, %v11185_v10, %v11184_v62  ;;  %v10916_v46 = vsel %vm10871_vm1, %v10915_v14, %v10914_v59 }
 0x777   : > { %v11009_v27 = vrot.slane %v10632_v41, 2  ;;  %v10792_v55 = vld [vmem:[#allocation3 + $0xf7] sm:$0x1]  ;;  %v11187_v2 = vrot.slane %v10821_v4, 5  ;;  %v10569_v39 = vld [vmem:[#allocation3 + $0xfa] sm:$0x1]  ;;  %v11008_v41 = vsel %vm10871_vm1, %v11007_v12, %v11006_v8  ;;  %v10725_v12 = vmax.f32 %v10661_v63, %v10693_v25 }
 0x778   : > { %v10601_v22 = vld [vmem:[#allocation3 + $0xfb] sm:$0x1]  ;;  %v10473_v54 = vld [vmem:[#allocation3 + $0xf8] sm:$0x1]  ;;  %v10694_v3 = vld [vmem:[#allocation3 + $0xe5] sm:$0x1]  ;;  %v10824_v15 = vmax.f32 %v10760_v52, %v10792_v55 }
 0x779   : > { %v10633_v32 = vmax.f32 %v10569_v39, %v10601_v22  ;;  %v10505_v17 = vld [vmem:[#allocation3 + $0xf9] sm:$0x1]  ;;  %v10917_v21 = vrot.slane %v10536_v31, 2  ;;  %v11189_v45 = vrot.slane %v10822_v11, 4  ;;  %v11010_v53 = vsel %vm10874_vm2, %v11009_v27, %v11008_v41  ;;  %v10761_v58 = vld [vmem:[#allocation3 + $0xfe] sm:$0x1] }
 0x77a   : > { %v10537_v4 = vmax.f32 %v10473_v54, %v10505_v17  ;;  %v10793_v18 = vld [vmem:[#allocation3 + $0xff] sm:$0x1]  ;;  %v11091_v36 = vrot.slane %v10723_v1, 7  ;;  %v11175_v10 = vrot.slane %v10814_v44, 4  ;;  %v11093_v40 = vrot.slane %v10724_v13, 6 }
 0x77b   : > { %v11011_v49 = vrot.slane %v10633_v32, 1  ;;  %v10918_v50 = vsel %vm10874_vm2, %v10917_v21, %v10916_v46  ;;  %v10726_v11 = vmax.f32 %v18838_v61, %v10694_v3  ;;  %v10825_v27 = vmax.f32 %v10761_v58, %v10793_v18  ;;  %v10663_v52 = vld [vmem:[#allocation3 + $0xec] sm:$0x1]  ;;  %v10695_v1 = vld [vmem:[#allocation3 + $0xed] sm:$0x1] }
 0x77c   : > { %v10919_v8 = vrot.slane %v10537_v4, 1  ;;  %v11188_v14 = vsel %vm10865_vm15, %v11187_v2, %v11186_v0  ;;  %v11191_v59 = vrot.slane %v10823_v16, 3  ;;  %v11193_v47 = vrot.slane %v10824_v15, 2  ;;  %v10664_v44 = vld [vmem:[#allocation3 + $0xf4] sm:$0x1] }
 0x77d   : > { %v11012_v31 = vsel %vm10877_vm3, %v11011_v49, %v11010_v53  ;;  %v11190_v30 = vsel %vm10868_vm0, %v11189_v45, %v11188_v14  ;;  %v10696_v25 = vld [vmem:[#allocation3 + $0xf5] sm:$0x1]  ;;  %v11176_v61 = vsel %vm10868_vm0, %v11175_v10, %v11174_v42  ;;  %v11177_v2 = vrot.slane %v10815_v29, 3  ;;  %v10655_v13 = vld [vmem:[#allocation3 + $0xac] sm:$0x1] }
 0x77e   : > { %v11206_v55 = vpack.c.bf16 %v11012_v31, %v18796_v20  ;;  %v10920_v62 = vsel %vm10877_vm3, %v10919_v8, %v10918_v50  ;;  %v10687_v39 = vld [vmem:[#allocation3 + $0xad] sm:$0x1]  ;;  %v20173_v20 = vmax.f32 %v18808_v28, %v18810_v35  ;;  %v11095_v54 = vrot.slane %v10725_v12, 5  ;;  %v10688_v3 = vld [vmem:[#allocation3 + $0xb5] sm:$0x1] }
 0x77f   : > { %v11205_v63 = vpack.c.bf16 %v10920_v62, %v18820_v7  ;;  %v20174_v16 = vmax.f32 %v18771_v24, %v18773_v43  ;;  %v10656_v7 = vld [vmem:[#allocation3 + $0xb4] sm:$0x1]  ;;  %v10727_v42 = vmax.f32 %v10663_v52, %v10695_v1  ;;  %v11192_v51 = vsel %vm10871_vm1, %v11191_v59, %v11190_v30  ;;  %v10665_v29 = vld [vmem:[#allocation3 + $0xfc] sm:$0x1]  ;;  %v10697_v41 = vld [vmem:[#allocation3 + $0xfd] sm:$0x1] }
 0x780   : > { %v11092_v22 = vsel %vm10859_vm13, %v11091_v36, %v20173_v20  ;;  %11506 = vmatprep.mubr.bf16.mxu1 %v11206_v55  ;;  %v11195_v23 = vrot.slane %v10825_v27, 1  ;;  %v10728_v28 = vmax.f32 %v10664_v44, %v10696_v25  ;;  %v11097_v35 = vrot.slane %v10726_v11, 4  ;;  %v10657_v18 = vld [vmem:[#allocation3 + $0xbc] sm:$0x1]  ;;  %v14034_v62 = vld [vmem:[%s18949_s4] sm:$0xff]   ;;  %v14035_v30 = vld [vmem:[%s18949_s4 + $0x8] sm:$0xff]  }
 0x781   : > { %v11179_v0 = vrot.slane %v20174_v16, 2  ;;  %v11094_v32 = vsel %vm10862_vm14, %v11093_v40, %v11092_v22  ;;  %11507 = vmatmul.mubr.bf16.gmra.mrb[132].mxu1 %v11205_v63  ;;  %v20175_v17 = vmax.f32 %v18686_v38, %v18688_v48  ;;  %v20176_v24 = vpack.c.bf16 %v18721_v60, %v18644_v26  ;;  %v10689_v38 = vld [vmem:[#allocation3 + $0xbd] sm:$0x1]  ;;  %13028 = vmatprep.subr.bf16.mxu1 %v14034_v62  ;;  %v14038_v25 = vld [vmem:[%s18949_s4 + $0x20] sm:$0xff]   ;;  %v14039_v63 = vld [vmem:[%s18949_s4 + $0x28] sm:$0xff]  }
 0x782   : > { %v11194_v43 = vsel %vm10874_vm2, %v11193_v47, %v11192_v51  ;;  %v10719_v45 = vmax.f32 %v10655_v13, %v10687_v39  ;;  %v11080_v53 = vsel %vm10862_vm14, %v18692_v37, %v18717_v6  ;;  %v11178_v4 = vsel %vm10871_vm1, %v11177_v2, %v11176_v61  ;;  %v14036_v47 = vld [vmem:[%s18949_s4 + $0x10] sm:$0xff]   ;;  %v14037_v44 = vld [vmem:[%s18949_s4 + $0x18] sm:$0xff]  }
 0x783   : > { %v11081_v21 = vrot.slane %v20175_v17, 5  ;;  %11547 = vmatprep.mubr.bf16.mxu1 %v20176_v24  ;;  %v20177_v46 = vmax.f32 %v18786_v57, %v18798_v34  ;;  %v10720_v48 = vmax.f32 %v10656_v7, %v10688_v3  ;;  %v20178_v26 = vmax.f32 %v18738_v5, %v18740_v9  ;;  %v14040_v61 = vld [vmem:[%s18949_s4 + $0x30] sm:$0xff]   ;;  %v14041_v2 = vld [vmem:[%s18949_s4 + $0x38] sm:$0xff]  }
 0x784   : > { %v11180_v15 = vsel %vm10874_vm2, %v11179_v0, %v11178_v4  ;;  %v10729_v36 = vmax.f32 %v10665_v29, %v10697_v41  ;;  %v11096_v49 = vsel %vm10865_vm15, %v11095_v54, %v11094_v32  ;;  %v11099_v50 = vrot.slane %v10727_v42, 3 }
 0x785   : > { %v11181_v58 = vrot.slane %v20177_v46, 1  ;;  %v11083_v60 = vrot.slane %v20178_v26, 4  ;;  %v11196_v37 = vsel %vm10877_vm3, %v11195_v23, %v11194_v43  ;;  %v11098_v6 = vsel %vm10868_vm0, %v11097_v35, %v11096_v49  ;;  %v11273_v23 = vld [vmem:[%s18950_s5 + $0x2] ss:$0 sm:$0xff] }
 0x786   : > { %v11101_v10 = vrot.slane %v10728_v28, 2  ;;  %v11062_v57 = vsel %vm10877_vm3, %v18508_v19, %v18566_v56  ;;  %v10721_v34 = vmax.f32 %v10657_v18, %v10689_v38  ;;  %v11082_v40 = vsel %vm10865_vm15, %v11081_v21, %v11080_v53 }
 0x787   : > { %v11085_v5 = vrot.slane %v10719_v45, 3  ;;  %v11203_v9 = vpack.c.bf16 %v18697_v33, %v11062_v57  ;;  %v11182_v12 = vsel %vm10877_vm3, %v11181_v58, %v11180_v15  ;;  %v11084_v11 = vsel %vm10868_vm0, %v11083_v60, %v11082_v40 }
 0x788   : > { %v11087_v8 = vrot.slane %v10720_v48, 2  ;;  %v11208_v31 = vpack.c.bf16 %v11196_v37, %v11182_v12  ;;  %v11100_v27 = vsel %vm10871_vm1, %v11099_v50, %v11098_v6  ;;  %v11103_v14 = vrot.slane %v10729_v36, 1 }
 0x789   : > { %11548 = vmatmul.mubr.bf16.vlgmr.msra.gmra.mrb[136].mxu1 %v11203_v9  ;;  %v11102_v59 = vsel %vm10874_vm2, %v11101_v10, %v11100_v27  ;;  %v11086_v19 = vsel %vm10871_vm1, %v11085_v5, %v11084_v11  ;;  %v11089_v56 = vrot.slane %v10721_v34, 1  ;;  %v20179_v34 = vlaneseq  ;;  %v11586_v5 = vld [vmem:[%s18950_s5 + $0x3] ss:$0 sm:$0xff] }
 0x78a   : > { %11555 = vmatprep.mubr.bf16.mxu1 %v11208_v31  ;;  %v11088_v52 = vsel %vm10874_vm2, %v11087_v8, %v11086_v19  ;;  %v11104_v33 = vsel %vm10877_vm3, %v11103_v14, %v11102_v59  ;;  %13029 = vmatpush3.bf16.msra.mxu1 %v14034_v62 }
 0x78b   : > { %v11090_v1 = vsel %vm10877_vm3, %v11089_v56, %v11088_v52  ;;  %13030 = vmatprep.subr.bf16.mxu1 %v14035_v30  ;;  %v11685_v40 = vand.u32 127, %v20179_v34 }
 0x78c   : > { %v11207_v55 = vpack.c.bf16 %v11104_v33, %v11090_v1 }
 0x78d   : > { %vm11686_vm4 = vcmp.lt.s32.totalorder %v11685_v40, 10 }
 0x78e   : > { %13031 = vmatpush3.bf16.msra.mxu1 %v14035_v30 }
 0x78f   : > { %13032 = vmatprep.subr.bf16.mxu1 %v14036_v47 }
 0x791   : > { %11556 = vmatmul.mubr.bf16.gmra.mrb[140].mxu1 %v11207_v55 }
 0x792   : > { %13033 = vmatpush3.bf16.msra.mxu1 %v14036_v47 }
 0x793   : > { %13034 = vmatprep.subr.bf16.mxu1 %v14037_v44 }
 0x796   : > { %13035 = vmatpush3.bf16.msra.mxu1 %v14037_v44 }
 0x797   : > { %13036 = vmatprep.subr.bf16.mxu1 %v14038_v25 }
 0x79a   : > { %13037 = vmatpush3.bf16.msra.mxu1 %v14038_v25 }
 0x79b   : > { %13038 = vmatprep.subr.bf16.mxu1 %v14039_v63 }
 0x79e   : > { %13039 = vmatpush3.bf16.msra.mxu1 %v14039_v63 }
 0x79f   : > { %13040 = vmatprep.subr.bf16.mxu1 %v14040_v61 }
 0x7a2   : > { %13041 = vmatpush3.bf16.msra.mxu1 %v14040_v61 }
 0x7a3   : > { %13042 = vmatprep.subr.bf16.mxu1 %v14041_v2 }
 0x7a6   : > { %13043 = vmatpush3.bf16.msra.mxu1 %v14041_v2 }
 0x80e   : > { %v12978_v13 = vpop.f32.mrb[128].mxu1 }
 0x80f   : > { %v12979_v39 = vpop.f32.mrb[129].mxu1 }
 0x810   : > { %v12980_v20 = vadd.f32 %v12979_v39, %v12978_v13  ;;  %v12981_v22 = vpop.f32.mrb[130].mxu1 }
 0x811   : > { %v12982_v54 = vpop.f32.mrb[131].mxu1 }
 0x812   : > { %v12983_v16 = vadd.f32 %v12982_v54, %v12981_v22  ;;  %v11501_v28 = vadd.f32 %v12980_v20, %v11273_v23 }
 0x814   : > { %v11504_v24 = vadd.f32 %v12983_v16, %v11273_v23 }
 0x854   : > { %v12984_v0 = vpop.f32.mrb[132].mxu1 }
 0x855   : > { %v12985_v7 = vpop.f32.mrb[133].mxu1 }
 0x856   : > { %v12986_v3 = vadd.f32 %v12985_v7, %v12984_v0  ;;  %v12987_v42 = vpop.f32.mrb[134].mxu1 }
 0x857   : > { %v12988_v32 = vpop.f32.mrb[135].mxu1 }
 0x858   : > { %v12989_v51 = vadd.f32 %v12988_v32, %v12987_v42  ;;  %v11509_v38 = vadd.f32 %v12986_v3, %v11273_v23 }
 0x85a   : > { %v11512_v36 = vadd.f32 %v12989_v51, %v11273_v23 }
 0x85c   : > { %v13006_v29 = vpop.f32.mrb[136].mxu1 }
 0x85d   : > { %v13007_v41 = vpop.f32.mrb[137].mxu1 }
 0x85e   : > { %v13008_v35 = vadd.f32 %v13007_v41, %v13006_v29  ;;  %v13009_v17 = vpop.f32.mrb[138].mxu1 }
 0x85f   : > { %v13010_v21 = vpop.f32.mrb[139].mxu1 }
 0x860   : > { %v11550_v43 = vadd.f32 %v13008_v35, %v11501_v28  ;;  %v13011_v45 = vadd.f32 %v13010_v21, %v13009_v17 }
 0x862   : > { %v11553_v53 = vadd.f32 %v13011_v45, %v11504_v24  ;;  %v11564_v4 = vmax.f32 %v11550_v43, 0.0 }
 0x864   : > { %v11565_v46 = vmax.f32 %v11553_v53, 0.0  ;;  %v13012_v58 = vpop.f32.mrb[140].mxu1 }
 0x865   : > { %v13013_v18 = vpop.f32.mrb[141].mxu1 }
 0x866   : > { %v13014_v48 = vadd.f32 %v13013_v18, %v13012_v58  ;;  %v13015_v26 = vpop.f32.mrb[142].mxu1  ;;  %v11568_v60 = vpack.c.bf16 %v11565_v46, %v11564_v4 }
 0x867   : > { %v13016_v15 = vpop.f32.mrb[143].mxu1 }
 0x868   : > { %v11558_v49 = vadd.f32 %v13014_v48, %v11509_v38  ;;  %v13017_v50 = vadd.f32 %v13016_v15, %v13015_v26  ;;  %13044 = vmatprep.mubr.bf16.mxu1 %v11568_v60 }
 0x86a   : > { %v11561_v37 = vadd.f32 %v13017_v50, %v11512_v36  ;;  %v11566_v6 = vmax.f32 %v11558_v49, 0.0 }
 0x86c   : > { %v11567_v10 = vmax.f32 %v11561_v37, 0.0 }
 0x86e   : > { %v11569_v57 = vpack.c.bf16 %v11567_v10, %v11566_v6 }
 0x870   : > { %13045 = vmatmul.mubr.bf16.vlgmr.msra.gmra.mrb[144].mxu1 %v11569_v57 }
 0x943   : > { %v13046_v9 = vpop.f32.mrb[144].mxu1 }
 0x944   : > { %v11669_v12 = vpop.f32.mrb[145].mxu1  ;;  %v11678_v27 = vadd.f32 %v13046_v9, %v11586_v5 }
 0x945   : > { %v11670_v11 = vadd.f32 %v11669_v12, %v11586_v5  ;;  %v13047_v8 = vpop.f32.mrb[146].mxu1 }
 0x946   : > { %v11672_v31 = vpop.f32.mrb[147].mxu1  ;;  %v11681_v56 = vadd.f32 %v13047_v8, %v11586_v5  ;;  %v11689_v52 = vsel %vm11686_vm4, %v11678_v27, -1e+30 }
 0x947   : > { %v11673_v14 = vadd.f32 %v11672_v31, %v11586_v5  ;;  %v11687_v59 = vsel %vm11686_vm4, %v11670_v11, -1e+30 }
 0x948   : > { %11691 = vmax.xlane.f32.xlu0 %v11687_v59  ;;  %v11690_v33 = vsel %vm11686_vm4, %v11681_v56, -1e+30 }
 0x949   : > { %v11688_v19 = vsel %vm11686_vm4, %v11673_v14, -1e+30 }
 0x94a   : > { %11693 = vmax.xlane.f32.xlu1 %v11688_v19 }
 0x94c   : > { %11695 = vmax.xlane.f32.xlu0 %v11689_v52 }
 0x950   : > { %11697 = vmax.xlane.f32.xlu0 %v11690_v33 }
 0x9d5   : > { %v11692_v1 = vpop.xlane.xlu0 %11691 }
 0x9d6   : > { %v11699_v55 = vsub.f32 %v11687_v59, %v11692_v1 }
 0x9d7   : > { %v11694_v62 = vpop.xlane.xlu1 %11693 }
 0x9d8   : > { %v11703_v30 = vmul.f32 1.442695, %v11699_v55  ;;  %v11700_v47 = vsub.f32 %v11688_v19, %v11694_v62 }
 0x9d9   : > { %v11696_v44 = vpop.xlane.xlu0 %11695 }
 0x9da   : > { %14042 = vpow2.f32 %v11703_v30  ;;  %v11705_v25 = vmul.f32 1.442695, %v11700_v47  ;;  %v11701_v63 = vsub.f32 %v11689_v52, %v11696_v44 }
 0x9dc   : > { %14044 = vpow2.f32 %v11705_v25  ;;  %v11707_v61 = vmul.f32 1.442695, %v11701_v63 }
 0x9dd   : > { %v11698_v2 = vpop.xlane.xlu0 %11697 }
 0x9de   : > { %14046 = vpow2.f32 %v11707_v61  ;;  %v11702_v13 = vsub.f32 %v11690_v33, %v11698_v2 }
 0x9e0   : > { %v11709_v39 = vmul.f32 1.442695, %v11702_v13 }
 0x9e2   : > { %14048 = vpow2.f32 %v11709_v39 }
 0x9e4   : > { %v14043_v20 = vpop.eup %14042 }
 0x9e5   : > { %11711 = vadd.xlane.f32.xlu1 %v14043_v20 }
 0x9e6   : > { %v14045_v22 = vpop.eup %14044 }
 0x9e7   : > { %11713 = vadd.xlane.f32.xlu0 %v14045_v22 }
 0x9e8   : > { %v14047_v54 = vpop.eup %14046 }
 0x9e9   : > { %11715 = vadd.xlane.f32.xlu1 %v14047_v54 }
 0x9ec   : > { %v14049_v16 = vpop.eup %14048 }
 0x9ed   : > { %11717 = vadd.xlane.f32.xlu0 %v14049_v16 }
 0xa72   : > { %v11712_v0 = vpop.xlane.xlu1 %11711 }
 0xa73   : > { %14050 = vlog2.f32 %v11712_v0 }
 0xa74   : > { %v11714_v7 = vpop.xlane.xlu0 %11713 }
 0xa75   : > { %14052 = vlog2.f32 %v11714_v7 }
 0xa76   : > { %v11716_v3 = vpop.xlane.xlu1 %11715 }
 0xa77   : > { %14054 = vlog2.f32 %v11716_v3 }
 0xa7a   : > { %v11718_v42 = vpop.xlane.xlu0 %11717 }
 0xa7b   : > { %14056 = vlog2.f32 %v11718_v42 }
 0xa7d   : > { %v14051_v32 = vpop.eup %14050 }
 0xa7e   : > { %v11720_v51 = vmul.f32 0.6931472, %v14051_v32 }
 0xa7f   : > { %v14053_v23 = vpop.eup %14052 }
 0xa80   : > { %v11727_v29 = vsub.f32 %v11699_v55, %v11720_v51  ;;  %v11722_v41 = vmul.f32 0.6931472, %v14053_v23 }
 0xa81   : > { %v14055_v28 = vpop.eup %14054 }
 0xa82   : > { %11731 = vst [vmem:[%s256_s29] sm:$0xff] %v11727_v29  ;;  %v11728_v35 = vsub.f32 %v11700_v47, %v11722_v41  ;;  %v11724_v17 = vmul.f32 0.6931472, %v14055_v28 }
 0xa84   : > { %11732 = vst [vmem:[%s256_s29 + $0x8] sm:$0xff] %v11728_v35  ;;  %v11729_v21 = vsub.f32 %v11701_v63, %v11724_v17 }
 0xa85   : > { %v14057_v24 = vpop.eup %14056 }
 0xa86   : > { %11733 = vst [vmem:[%s256_s29 + $0x10] sm:$0xff] %v11729_v21  ;;  %v11726_v43 = vmul.f32 0.6931472, %v14057_v24 }
 0xa88   : > { %v11730_v45 = vsub.f32 %v11702_v13, %v11726_v43 }
 0xa8a   : > { %11734 = vst [vmem:[%s256_s29 + $0x18] sm:$0xff] %v11730_v45 }
 0xa8b PF: > { %s16_s21 = sadd.s32 1, %s14139_s21  }
 0xa8c   : > { %p13_p5 = scmp.ge.s32.totalorder %s16_s21, 4  }
 0xa8e   :  { %15 = sbr.rel (!%p13_p5) target bundleno = 1 (0x1), region = 78 }

</bundles_post_ra>
